<compile_context>
chip_gen: v5e
topology: v5e:2x2
jax: 0.10.0
libtpu: 0.0.40
codegen_flags: <defaults>
</compile_context>

<pallas_src>
import functools

import jax
import jax.numpy as jnp
from jax import lax
from jax.experimental import pallas as pl
from jax.experimental.pallas import tpu as pltpu


_PROJ_ROW_TILE = 512  # rows (T*B) per projection tile; ~85% of HBM roofline regime.


def _vmem_limit(block_bytes):
    # double-buffered tiles + headroom; >= the 32 MiB v6e/v7x scoped default,
    # capped below v7x's 64 MiB physical VMEM.
    return int(min(max(2 * block_bytes + (4 << 20), 32 << 20), 60 << 20))


# ---------------------------------------------------------------------------
# Phase 1: input projection for all timesteps, both directions (non-recurrent).
# ---------------------------------------------------------------------------
def _make_proj_kernel(n_in, h3):
    """[gi_f | gi_b] = sum_i x_i @ Wcat_i + bias_cat, computed per row tile.

    x_i are (TN, D_i) bf16 tiles (N = T*B rows, time-major). The layer input is
    the implicit feature-concat of the x_i but is never materialized: each x_i
    multiplies its own row-slice of the fused (D, 6H) weight.
    """
    def kernel(*refs):
        x_refs = refs[:n_in]
        w_refs = refs[n_in:2 * n_in]
        b_ref = refs[2 * n_in]
        gif_ref, gib_ref = refs[2 * n_in + 1:]

        acc = b_ref[...]                       # (1, 6H) f32, broadcasts over rows
        for xr, wr in zip(x_refs, w_refs):
            acc = acc + jnp.dot(xr[...], wr[...],
                                preferred_element_type=jnp.float32)
        gif_ref[...] = acc[:, :h3].astype(gif_ref.dtype)
        gib_ref[...] = acc[:, h3:].astype(gib_ref.dtype)

    return kernel


def _input_projection(xs_2d, w_chunks, bias_cat):
    """xs_2d: list of (N, D_i) bf16. w_chunks: list of (D_i, 6H) bf16.
    bias_cat: (1, 6H) f32 (r/z biases pre-folded, fwd|bwd concatenated).
    Returns gi_f, gi_b: (N, 3H) bf16."""
    n_in = len(xs_2d)
    n_rows = xs_2d[0].shape[0]
    h6 = bias_cat.shape[1]
    h3 = h6 // 2

    tn = n_rows if n_rows <= _PROJ_ROW_TILE else _PROJ_ROW_TILE
    grid = (pl.cdiv(n_rows, tn),)

    in_specs = (
        [pl.BlockSpec((tn, x.shape[1]), lambda i: (i, 0)) for x in xs_2d]
        + [pl.BlockSpec((w.shape[0], h6), lambda i: (0, 0)) for w in w_chunks]
        + [pl.BlockSpec((1, h6), lambda i: (0, 0))]
    )
    out_specs = (pl.BlockSpec((tn, h3), lambda i: (i, 0)),
                 pl.BlockSpec((tn, h3), lambda i: (i, 0)))

    block_bytes = (sum(tn * x.shape[1] * x.dtype.itemsize for x in xs_2d)
                   + sum(w.size * w.dtype.itemsize for w in w_chunks)
                   + h6 * 4
                   + 2 * tn * h3 * 2)

    gif, gib = pl.pallas_call(
        _make_proj_kernel(n_in, h3),
        grid=grid,
        in_specs=in_specs,
        out_specs=out_specs,
        out_shape=(jax.ShapeDtypeStruct((n_rows, h3), jnp.bfloat16),
                   jax.ShapeDtypeStruct((n_rows, h3), jnp.bfloat16)),
        compiler_params=pltpu.CompilerParams(
            dimension_semantics=("parallel",),
            vmem_limit_bytes=_vmem_limit(block_bytes)),
    )(*xs_2d, *w_chunks, bias_cat)
    return gif, gib


# ---------------------------------------------------------------------------
# Phase 2: fused bidirectional recurrence (one call per layer, batch-tiled grid).
# ---------------------------------------------------------------------------
def _bigru_recurrent_kernel(gif_ref, gib_ref, whh_ref, bhnf_ref, bhnb_ref,
                            seqf_ref, seqb_ref, hfin_ref, *, unroll):
    """gi*_ref: (T, TB, 3H) bf16 precomputed projections (r/z biases folded).
    whh_ref: (2H, 6H) f32 block-diag of [Whh_f^T, Whh_b^T].
    bhn*_ref: (1, H) f32 hidden bias of the n gate.
    Outputs: seqf/seqb (T, TB, H) bf16 in ORIGINAL time order, hfin (2, TB, H) f32."""
    seq_len, t_batch, h3 = gif_ref.shape
    hid = h3 // 3

    whh = whh_ref[...]                 # loaded once, lives across the loop
    bhn_f = bhnf_ref[...]
    bhn_b = bhnb_ref[...]

    def cell(gi, gh, bhn, h):
        # PyTorch GRU, gate order r, z, n (r/z biases already folded into gi).
        # All elementwise math in f32 (v5e has no bf16 VPU/EUP path).
        r = jax.nn.sigmoid(gi[:, 0:hid] + gh[:, 0:hid])
        z = jax.nn.sigmoid(gi[:, hid:2 * hid] + gh[:, hid:2 * hid])
        n = jnp.tanh(gi[:, 2 * hid:] + r * (gh[:, 2 * hid:] + bhn))
        return (1.0 - z) * n + z * h

    def step(t, carry):
        h_f, h_b = carry
        tb = seq_len - 1 - t
        gi_f = gif_ref[t].astype(jnp.float32)      # (TB, 3H)
        gi_b = gib_ref[tb].astype(jnp.float32)
        # ONE MXU issue per step for both directions (block-diag fused weight);
        # the recurrence is latency-bound, not FLOP-bound.
        h_cat = jnp.concatenate([h_f, h_b], axis=1)            # (TB, 2H)
        gh = jnp.dot(h_cat, whh, preferred_element_type=jnp.float32)  # (TB, 6H)
        hf_new = cell(gi_f, gh[:, :h3], bhn_f, h_f)
        hb_new = cell(gi_b, gh[:, h3:], bhn_b, h_b)
        seqf_ref[t] = hf_new.astype(seqf_ref.dtype)
        seqb_ref[tb] = hb_new.astype(seqb_ref.dtype)
        return hf_new, hb_new

    h0 = jnp.zeros((t_batch, hid), jnp.float32)
    # Bounded unroll: keeps LLO scheduling visibility without a T-sized basic block.
    h_f, h_b = lax.fori_loop(0, seq_len, step, (h0, h0), unroll=unroll)
    # Final hidden written exactly once.
    hfin_ref[0] = h_f
    hfin_ref[1] = h_b


def _bigru_recurrence(gif, gib, whh_cat, bhn_f, bhn_b, seq_len, batch, hid):
    gif = gif.reshape(seq_len, batch, 3 * hid)
    gib = gib.reshape(seq_len, batch, 3 * hid)

    # Batch tile: independent rows -> "parallel" grid axis (v7x 2nd TensorCore)
    # and caps the per-program VMEM working set to (T, TB, 3H).
    t_batch = 8 if (batch > 8 and batch % 8 == 0) else batch
    grid = (pl.cdiv(batch, t_batch),)
    unroll = max(1, min(8, seq_len))

    block_bytes = (2 * seq_len * t_batch * 3 * hid * 2      # gi_f + gi_b (bf16)
                   + (2 * hid) * (6 * hid) * 4 + 2 * hid * 4  # weights + biases
                   + 2 * seq_len * t_batch * hid * 2         # seq outputs (bf16)
                   + 2 * t_batch * hid * 4)                  # final hidden

    seq_f, seq_b, h_fin = pl.pallas_call(
        functools.partial(_bigru_recurrent_kernel, unroll=unroll),
        grid=grid,
        in_specs=[
            pl.BlockSpec((seq_len, t_batch, 3 * hid), lambda b: (0, b, 0)),
            pl.BlockSpec((seq_len, t_batch, 3 * hid), lambda b: (0, b, 0)),
            pl.BlockSpec((2 * hid, 6 * hid), lambda b: (0, 0)),
            pl.BlockSpec((1, hid), lambda b: (0, 0)),
            pl.BlockSpec((1, hid), lambda b: (0, 0)),
        ],
        out_specs=(
            pl.BlockSpec((seq_len, t_batch, hid), lambda b: (0, b, 0)),
            pl.BlockSpec((seq_len, t_batch, hid), lambda b: (0, b, 0)),
            pl.BlockSpec((2, t_batch, hid), lambda b: (0, b, 0)),
        ),
        out_shape=(
            jax.ShapeDtypeStruct((seq_len, batch, hid), jnp.bfloat16),
            jax.ShapeDtypeStruct((seq_len, batch, hid), jnp.bfloat16),
            jax.ShapeDtypeStruct((2, batch, hid), jnp.float32),
        ),
        compiler_params=pltpu.CompilerParams(
            dimension_semantics=("parallel",),
            vmem_limit_bytes=_vmem_limit(block_bytes)),
    )(gif, gib, whh_cat, bhn_f, bhn_b)
    return seq_f, seq_b, h_fin


# ---------------------------------------------------------------------------
# Weight pre-formatting (once, off the serving path).
# ---------------------------------------------------------------------------
def prepare_params(layers, hidden_size):
    """PyTorch-layout GRU weights -> kernel-ready layout (done once).

    Per layer returns:
      w_chunks : tuple of (D_i, 6H) bf16  -- [Wih_f^T | Wih_b^T] split per input chunk
      bias     : (1, 6H) f32              -- r/z biases pre-folded, n keeps b_ih only
      whh      : (2H, 6H) f32             -- block_diag(Whh_f^T, Whh_b^T)
      bhn_f/b  : (1, H) f32               -- hidden bias of the n gate
    """
    hid = hidden_size
    prep = []
    for layer_idx, dirs in enumerate(layers):
        w_ih_f, w_hh_f, b_ih_f, b_hh_f = dirs[0]
        w_ih_b, w_hh_b, b_ih_b, b_hh_b = dirs[1]

        wih_cat = jnp.concatenate([w_ih_f.T, w_ih_b.T], axis=1).astype(jnp.bfloat16)
        chunk_sizes = [wih_cat.shape[0]] if layer_idx == 0 else [hid, hid]
        w_chunks, off = [], 0
        for d in chunk_sizes:
            w_chunks.append(wih_cat[off:off + d, :])
            off += d

        def fold(b_ih, b_hh):
            # r/z columns get b_ih + b_hh pre-summed; n keeps only b_ih
            # (its b_hh part must stay inside r * (...)).
            return jnp.concatenate([b_ih[:2 * hid] + b_hh[:2 * hid], b_ih[2 * hid:]])

        bias = jnp.concatenate([fold(b_ih_f, b_hh_f),
                                fold(b_ih_b, b_hh_b)]).reshape(1, 6 * hid)

        whh = jnp.zeros((2 * hid, 6 * hid), jnp.float32)
        whh = whh.at[:hid, :3 * hid].set(w_hh_f.T)
        whh = whh.at[hid:, 3 * hid:].set(w_hh_b.T)

        prep.append(dict(
            w_chunks=tuple(w_chunks),
            bias=bias.astype(jnp.float32),
            whh=whh,
            bhn_f=b_hh_f[2 * hid:].reshape(1, hid).astype(jnp.float32),
            bhn_b=b_hh_b[2 * hid:].reshape(1, hid).astype(jnp.float32),
        ))
    return prep


# ---------------------------------------------------------------------------
# Full forward (Embedding -> Dropout(id) -> 2-layer bi-GRU).
# ---------------------------------------------------------------------------
def rnn_forward(tokens, emb, prep_layers, hidden_size):
    """tokens: (B, T) int32. Returns ht: (num_layers*2, B, H) float32."""
    batch, seq_len = tokens.shape
    embed_size = emb.shape[1]

    # Embedding lookup + time-major layout (glue: plain-JAX gather/transpose).
    x = jnp.take(emb, tokens, axis=0)                       # (B, T, E)
    # Dropout p=0.6 -> identity (eval mode).
    seq = jnp.transpose(x, (1, 0, 2)).reshape(seq_len * batch, embed_size)
    xs = [seq.astype(jnp.bfloat16)]                         # list of (T*B, D_i)

    hts = []
    for lp in prep_layers:
        gif, gib = _input_projection(xs, list(lp["w_chunks"]), lp["bias"])
        seq_f, seq_b, h_fin = _bigru_recurrence(
            gif, gib, lp["whh"], lp["bhn_f"], lp["bhn_b"],
            seq_len, batch, hidden_size)
        hts.append(h_fin)
        # Inter-layer dropout p=0.5 -> identity (eval mode). Next layer consumes
        # the [fwd, bwd] halves as two bf16 inputs -> no HBM concatenate.
        xs = [seq_f.reshape(seq_len * batch, hidden_size),
              seq_b.reshape(seq_len * batch, hidden_size)]

    return jnp.concatenate(hts, axis=0)                     # (2*num_layers, B, H)


def init_params(key, vocab_size, embed_size, hidden_size, num_layers,
                padding_index=0):
    """Deterministic init mirroring PyTorch shapes (Embedding + bi-GRU)."""
    n_dir = 2
    n_keys = 1 + num_layers * n_dir * 4
    keys = jax.random.split(key, n_keys)
    emb = jax.random.normal(keys[0], (vocab_size, embed_size), jnp.float32)
    emb = emb.at[padding_index].set(0.0)

    bound = 1.0 / (hidden_size ** 0.5)
    ki = 1
    layers = []
    for layer_idx in range(num_layers):
        in_size = embed_size if layer_idx == 0 else n_dir * hidden_size
        dirs = []
        for _d in range(n_dir):
            w_ih = jax.random.uniform(keys[ki], (3 * hidden_size, in_size),
                                      jnp.float32, -bound, bound); ki += 1
            w_hh = jax.random.uniform(keys[ki], (3 * hidden_size, hidden_size),
                                      jnp.float32, -bound, bound); ki += 1
            b_ih = jax.random.uniform(keys[ki], (3 * hidden_size,),
                                      jnp.float32, -bound, bound); ki += 1
            b_hh = jax.random.uniform(keys[ki], (3 * hidden_size,),
                                      jnp.float32, -bound, bound); ki += 1
            dirs.append((w_ih, w_hh, b_ih, b_hh))
        layers.append(dirs)
    return emb, layers


# ---------------------------------------------------------------------------
# Pure-JAX f32 reference (PyTorch GRU semantics) for a correctness cross-check.
# ---------------------------------------------------------------------------
def gru_reference(tokens, emb, layers, hidden_size):
    hid = hidden_size
    x = jnp.take(emb, tokens, axis=0)                       # (B, T, E)
    seq = jnp.transpose(x, (1, 0, 2))                       # (T, B, E)

    def run_dir(inp, w_ih, w_hh, b_ih, b_hh, reverse):
        xs = inp[::-1] if reverse else inp

        def step(h, x_t):
            gi = x_t @ w_ih.T + b_ih
            gh = h @ w_hh.T + b_hh
            r = jax.nn.sigmoid(gi[:, :hid] + gh[:, :hid])
            z = jax.nn.sigmoid(gi[:, hid:2 * hid] + gh[:, hid:2 * hid])
            n = jnp.tanh(gi[:, 2 * hid:] + r * gh[:, 2 * hid:])
            h_new = (1.0 - z) * n + z * h
            return h_new, h_new

        h0 = jnp.zeros((inp.shape[1], hid), jnp.float32)
        h_last, outs = lax.scan(step, h0, xs)
        outs = outs[::-1] if reverse else outs
        return outs, h_last

    hts = []
    inp = seq
    for dirs in layers:
        of, hf = run_dir(inp, *dirs[0], reverse=False)
        ob, hb = run_dir(inp, *dirs[1], reverse=True)
        hts.extend([hf, hb])
        inp = jnp.concatenate([of, ob], axis=-1)
    return jnp.stack(hts, axis=0)


if __name__ == "__main__":
    vocab_size = 50
    embed_size = 16
    hidden_size = 32
    num_layers = 2
    B, T = 2, 8

    key = jax.random.PRNGKey(0)
    k_param, k_tok = jax.random.split(key)
    emb, layers = init_params(k_param, vocab_size, embed_size, hidden_size,
                              num_layers, padding_index=0)
    tokens = jax.random.randint(k_tok, (B, T), 0, vocab_size, dtype=jnp.int32)

    # Weight pre-formatting happens once, outside the jitted serving path.
    prep_layers = jax.tree_util.tree_map(jax.block_until_ready,
                                         prepare_params(layers, hidden_size))

    fwd = jax.jit(functools.partial(rnn_forward, hidden_size=hidden_size))
    ht = fwd(tokens, emb, prep_layers)
    ht = jax.block_until_ready(ht)

    assert ht.shape == (num_layers * 2, B, hidden_size), ht.shape
    assert bool(jnp.all(jnp.isfinite(ht)))

    ht_ref = gru_reference(tokens, emb, layers, hidden_size)
    max_err = float(jnp.max(jnp.abs(ht - ht_ref)))
    # Tolerance accounts for intentional bf16 storage of gi / inter-layer
    # activations (f32 accumulation and f32 cell math are preserved).
    assert max_err < 3e-2, f"mismatch vs JAX reference: max abs err {max_err}"

    print("KERNEL_OK")
</pallas_src>

<mosaic_0001>
module attributes {stable_mosaic.version = 11 : i64} {
  func.func @kernel(%arg0: i32, %arg1: memref<16x16xbf16, #tpu.memory_space<vmem>>, %arg2: memref<16x192xbf16, #tpu.memory_space<vmem>>, %arg3: memref<1x192xf32, #tpu.memory_space<vmem>>, %arg4: memref<16x96xbf16, #tpu.memory_space<vmem>>, %arg5: memref<16x96xbf16, #tpu.memory_space<vmem>>) attributes {dimension_semantics = [#tpu.dimension_semantics<parallel>], iteration_bounds = array<i64: 1>, scalar_prefetch = 0 : i64, scratch_operands = 0 : i64, tpu.core_type = #tpu.core_type<tc>, window_params = [{transform_indices = @transform_0, window_bounds = array<i64: 16, 16>}, {pipeline_mode = #tpu.pipeline_mode<synchronous>, transform_indices = @transform_1, window_bounds = array<i64: 16, 192>}, {pipeline_mode = #tpu.pipeline_mode<synchronous>, transform_indices = @transform_2, window_bounds = array<i64: 1, 192>}, {transform_indices = @transform_3, window_bounds = array<i64: 16, 96>}, {transform_indices = @transform_4, window_bounds = array<i64: 16, 96>}]} {
    %c0 = arith.constant 0 : index
    %c0_0 = arith.constant 0 : index
    %0 = vector.load %arg3[%c0, %c0_0] : memref<1x192xf32, #tpu.memory_space<vmem>>, vector<1x192xf32>
    %c0_1 = arith.constant 0 : index
    %c0_2 = arith.constant 0 : index
    %1 = vector.load %arg1[%c0_1, %c0_2] : memref<16x16xbf16, #tpu.memory_space<vmem>>, vector<16x16xbf16>
    %c0_3 = arith.constant 0 : index
    %c0_4 = arith.constant 0 : index
    %2 = vector.load %arg2[%c0_3, %c0_4] : memref<16x192xbf16, #tpu.memory_space<vmem>>, vector<16x192xbf16>
    %cst = arith.constant dense<0.000000e+00> : vector<16x192xf32>
    %3 = tpu.matmul %1, %2, %cst {dimension_numbers = #tpu.dot_dimension_numbers<[1], [0], [0], [1], [0, 0, 1, 1], [], []>} : vector<16x16xbf16>, vector<16x192xbf16>, vector<16x192xf32> -> vector<16x192xf32>
    %4 = vector.broadcast %0 : vector<1x192xf32> to vector<16x192xf32>
    %5 = arith.addf %4, %3 : vector<16x192xf32>
    %6 = vector.extract_strided_slice %5 {offsets = [0, 0], sizes = [16, 96], strides = [1, 1]} : vector<16x192xf32> to vector<16x96xf32>
    %7 = arith.truncf %6 : vector<16x96xf32> to vector<16x96xbf16>
    %c0_5 = arith.constant 0 : index
    %c0_6 = arith.constant 0 : index
    %8 = vector.load %arg4[%c0_5, %c0_6] : memref<16x96xbf16, #tpu.memory_space<vmem>>, vector<16x96xbf16>
    tpu.vector_store %arg4[%c0_5, %c0_6], %7 {strides = array<i32>} : memref<16x96xbf16, #tpu.memory_space<vmem>>, vector<16x96xbf16>,
    %9 = vector.extract_strided_slice %5 {offsets = [0, 96], sizes = [16, 96], strides = [1, 1]} : vector<16x192xf32> to vector<16x96xf32>
    %10 = arith.truncf %9 : vector<16x96xf32> to vector<16x96xbf16>
    %c0_7 = arith.constant 0 : index
    %c0_8 = arith.constant 0 : index
    %11 = vector.load %arg5[%c0_7, %c0_8] : memref<16x96xbf16, #tpu.memory_space<vmem>>, vector<16x96xbf16>
    tpu.vector_store %arg5[%c0_7, %c0_8], %10 {strides = array<i32>} : memref<16x96xbf16, #tpu.memory_space<vmem>>, vector<16x96xbf16>,
    return
  }
  func.func @transform_0(%arg0: i32) -> (i32, i32) {
    %c0_i32 = arith.constant 0 : i32
    %c0_i32_0 = arith.constant 0 : i32
    return %arg0, %c0_i32 : i32, i32
  }
  func.func @transform_1(%arg0: i32) -> (i32, i32) {
    %c0_i32 = arith.constant 0 : i32
    %c0_i32_0 = arith.constant 0 : i32
    %c0_i32_1 = arith.constant 0 : i32
    return %c0_i32, %c0_i32_0 : i32, i32
  }
  func.func @transform_2(%arg0: i32) -> (i32, i32) {
    %c0_i32 = arith.constant 0 : i32
    %c0_i32_0 = arith.constant 0 : i32
    %c0_i32_1 = arith.constant 0 : i32
    return %c0_i32, %c0_i32_0 : i32, i32
  }
  func.func @transform_3(%arg0: i32) -> (i32, i32) {
    %c0_i32 = arith.constant 0 : i32
    %c0_i32_0 = arith.constant 0 : i32
    return %arg0, %c0_i32 : i32, i32
  }
  func.func @transform_4(%arg0: i32) -> (i32, i32) {
    %c0_i32 = arith.constant 0 : i32
    %c0_i32_0 = arith.constant 0 : i32
    return %arg0, %c0_i32 : i32, i32
  }
}

module attributes {stable_mosaic.version = 11 : i64} {
  func.func @kernel(%arg0: i32, %arg1: memref<16x32xbf16, #tpu.memory_space<vmem>>, %arg2: memref<16x32xbf16, #tpu.memory_space<vmem>>, %arg3: memref<32x192xbf16, #tpu.memory_space<vmem>>, %arg4: memref<32x192xbf16, #tpu.memory_space<vmem>>, %arg5: memref<1x192xf32, #tpu.memory_space<vmem>>, %arg6: memref<16x96xbf16, #tpu.memory_space<vmem>>, %arg7: memref<16x96xbf16, #tpu.memory_space<vmem>>) attributes {dimension_semantics = [#tpu.dimension_semantics<parallel>], iteration_bounds = array<i64: 1>, scalar_prefetch = 0 : i64, scratch_operands = 0 : i64, tpu.core_type = #tpu.core_type<tc>, window_params = [{transform_indices = @transform_0, window_bounds = array<i64: 16, 32>}, {transform_indices = @transform_1, window_bounds = array<i64: 16, 32>}, {pipeline_mode = #tpu.pipeline_mode<synchronous>, transform_indices = @transform_2, window_bounds = array<i64: 32, 192>}, {pipeline_mode = #tpu.pipeline_mode<synchronous>, transform_indices = @transform_3, window_bounds = array<i64: 32, 192>}, {pipeline_mode = #tpu.pipeline_mode<synchronous>, transform_indices = @transform_4, window_bounds = array<i64: 1, 192>}, {transform_indices = @transform_5, window_bounds = array<i64: 16, 96>}, {transform_indices = @transform_6, window_bounds = array<i64: 16, 96>}]} {
    %c0 = arith.constant 0 : index
    %c0_0 = arith.constant 0 : index
    %0 = vector.load %arg5[%c0, %c0_0] : memref<1x192xf32, #tpu.memory_space<vmem>>, vector<1x192xf32>
    %c0_1 = arith.constant 0 : index
    %c0_2 = arith.constant 0 : index
    %1 = vector.load %arg1[%c0_1, %c0_2] : memref<16x32xbf16, #tpu.memory_space<vmem>>, vector<16x32xbf16>
    %c0_3 = arith.constant 0 : index
    %c0_4 = arith.constant 0 : index
    %2 = vector.load %arg3[%c0_3, %c0_4] : memref<32x192xbf16, #tpu.memory_space<vmem>>, vector<32x192xbf16>
    %cst = arith.constant dense<0.000000e+00> : vector<16x192xf32>
    %3 = tpu.matmul %1, %2, %cst {dimension_numbers = #tpu.dot_dimension_numbers<[1], [0], [0], [1], [0, 0, 1, 1], [], []>} : vector<16x32xbf16>, vector<32x192xbf16>, vector<16x192xf32> -> vector<16x192xf32>
    %4 = vector.broadcast %0 : vector<1x192xf32> to vector<16x192xf32>
    %5 = arith.addf %4, %3 : vector<16x192xf32>
    %c0_5 = arith.constant 0 : index
    %c0_6 = arith.constant 0 : index
    %6 = vector.load %arg2[%c0_5, %c0_6] : memref<16x32xbf16, #tpu.memory_space<vmem>>, vector<16x32xbf16>
    %c0_7 = arith.constant 0 : index
    %c0_8 = arith.constant 0 : index
    %7 = vector.load %arg4[%c0_7, %c0_8] : memref<32x192xbf16, #tpu.memory_space<vmem>>, vector<32x192xbf16>
    %cst_9 = arith.constant dense<0.000000e+00> : vector<16x192xf32>
    %8 = tpu.matmul %6, %7, %cst_9 {dimension_numbers = #tpu.dot_dimension_numbers<[1], [0], [0], [1], [0, 0, 1, 1], [], []>} : vector<16x32xbf16>, vector<32x192xbf16>, vector<16x192xf32> -> vector<16x192xf32>
    %9 = arith.addf %5, %8 : vector<16x192xf32>
    %10 = vector.extract_strided_slice %9 {offsets = [0, 0], sizes = [16, 96], strides = [1, 1]} : vector<16x192xf32> to vector<16x96xf32>
    %11 = arith.truncf %10 : vector<16x96xf32> to vector<16x96xbf16>
    %c0_10 = arith.constant 0 : index
    %c0_11 = arith.constant 0 : index
    %12 = vector.load %arg6[%c0_10, %c0_11] : memref<16x96xbf16, #tpu.memory_space<vmem>>, vector<16x96xbf16>
    tpu.vector_store %arg6[%c0_10, %c0_11], %11 {strides = array<i32>} : memref<16x96xbf16, #tpu.memory_space<vmem>>, vector<16x96xbf16>,
    %13 = vector.extract_strided_slice %9 {offsets = [0, 96], sizes = [16, 96], strides = [1, 1]} : vector<16x192xf32> to vector<16x96xf32>
    %14 = arith.truncf %13 : vector<16x96xf32> to vector<16x96xbf16>
    %c0_12 = arith.constant 0 : index
    %c0_13 = arith.constant 0 : index
    %15 = vector.load %arg7[%c0_12, %c0_13] : memref<16x96xbf16, #tpu.memory_space<vmem>>, vector<16x96xbf16>
    tpu.vector_store %arg7[%c0_12, %c0_13], %14 {strides = array<i32>} : memref<16x96xbf16, #tpu.memory_space<vmem>>, vector<16x96xbf16>,
    return
  }
  func.func @transform_0(%arg0: i32) -> (i32, i32) {
    %c0_i32 = arith.constant 0 : i32
    %c0_i32_0 = arith.constant 0 : i32
    return %arg0, %c0_i32 : i32, i32
  }
  func.func @transform_1(%arg0: i32) -> (i32, i32) {
    %c0_i32 = arith.constant 0 : i32
    %c0_i32_0 = arith.constant 0 : i32
    return %arg0, %c0_i32 : i32, i32
  }
  func.func @transform_2(%arg0: i32) -> (i32, i32) {
    %c0_i32 = arith.constant 0 : i32
    %c0_i32_0 = arith.constant 0 : i32
    %c0_i32_1 = arith.constant 0 : i32
    return %c0_i32, %c0_i32_0 : i32, i32
  }
  func.func @transform_3(%arg0: i32) -> (i32, i32) {
    %c0_i32 = arith.constant 0 : i32
    %c0_i32_0 = arith.constant 0 : i32
    %c0_i32_1 = arith.constant 0 : i32
    return %c0_i32, %c0_i32_0 : i32, i32
  }
  func.func @transform_4(%arg0: i32) -> (i32, i32) {
    %c0_i32 = arith.constant 0 : i32
    %c0_i32_0 = arith.constant 0 : i32
    %c0_i32_1 = arith.constant 0 : i32
    return %c0_i32, %c0_i32_0 : i32, i32
  }
  func.func @transform_5(%arg0: i32) -> (i32, i32) {
    %c0_i32 = arith.constant 0 : i32
    %c0_i32_0 = arith.constant 0 : i32
    return %arg0, %c0_i32 : i32, i32
  }
  func.func @transform_6(%arg0: i32) -> (i32, i32) {
    %c0_i32 = arith.constant 0 : i32
    %c0_i32_0 = arith.constant 0 : i32
    return %arg0, %c0_i32 : i32, i32
  }
}

module attributes {stable_mosaic.version = 11 : i64} {
  func.func @_bigru_recurrent_kernel(%arg0: i32, %arg1: memref<8x2x96xbf16, #tpu.memory_space<vmem>>, %arg2: memref<8x2x96xbf16, #tpu.memory_space<vmem>>, %arg3: memref<64x192xf32, #tpu.memory_space<vmem>>, %arg4: memref<1x32xf32, #tpu.memory_space<vmem>>, %arg5: memref<1x32xf32, #tpu.memory_space<vmem>>, %arg6: memref<8x2x32xbf16, #tpu.memory_space<vmem>>, %arg7: memref<8x2x32xbf16, #tpu.memory_space<vmem>>, %arg8: memref<2x2x32xf32, #tpu.memory_space<vmem>>) attributes {dimension_semantics = [#tpu.dimension_semantics<parallel>], iteration_bounds = array<i64: 1>, scalar_prefetch = 0 : i64, scratch_operands = 0 : i64, tpu.core_type = #tpu.core_type<tc>, window_params = [{transform_indices = @transform_0, window_bounds = array<i64: 8, 2, 96>}, {transform_indices = @transform_1, window_bounds = array<i64: 8, 2, 96>}, {pipeline_mode = #tpu.pipeline_mode<synchronous>, transform_indices = @transform_2, window_bounds = array<i64: 64, 192>}, {pipeline_mode = #tpu.pipeline_mode<synchronous>, transform_indices = @transform_3, window_bounds = array<i64: 1, 32>}, {pipeline_mode = #tpu.pipeline_mode<synchronous>, transform_indices = @transform_4, window_bounds = array<i64: 1, 32>}, {transform_indices = @transform_5, window_bounds = array<i64: 8, 2, 32>}, {transform_indices = @transform_6, window_bounds = array<i64: 8, 2, 32>}, {transform_indices = @transform_7, window_bounds = array<i64: 2, 2, 32>}]} {
    %c0 = arith.constant 0 : index
    %c0_0 = arith.constant 0 : index
    %0 = vector.load %arg3[%c0, %c0_0] : memref<64x192xf32, #tpu.memory_space<vmem>>, vector<64x192xf32>
    %c0_1 = arith.constant 0 : index
    %c0_2 = arith.constant 0 : index
    %1 = vector.load %arg4[%c0_1, %c0_2] : memref<1x32xf32, #tpu.memory_space<vmem>>, vector<1x32xf32>
    %c0_3 = arith.constant 0 : index
    %c0_4 = arith.constant 0 : index
    %2 = vector.load %arg5[%c0_3, %c0_4] : memref<1x32xf32, #tpu.memory_space<vmem>>, vector<1x32xf32>
    %cst = arith.constant 0.000000e+00 : f32
    %3 = vector.broadcast %cst : f32 to vector<2x32xf32>
    %c0_i32 = arith.constant 0 : i32
    %c7_i32 = arith.constant 7 : i32
    %4 = arith.subi %c7_i32, %c0_i32 : i32
    %5 = arith.index_cast %c0_i32 : i32 to index
    %c0_5 = arith.constant 0 : index
    %c0_6 = arith.constant 0 : index
    %6 = vector.load %arg1[%5, %c0_5, %c0_6] : memref<8x2x96xbf16, #tpu.memory_space<vmem>>, vector<1x2x96xbf16>
    %7 = vector.shape_cast %6 : vector<1x2x96xbf16> to vector<2x96xbf16>
    %8 = arith.extf %7 : vector<2x96xbf16> to vector<2x96xf32>
    %9 = arith.index_cast %4 : i32 to index
    %c0_7 = arith.constant 0 : index
    %c0_8 = arith.constant 0 : index
    %10 = vector.load %arg2[%9, %c0_7, %c0_8] : memref<8x2x96xbf16, #tpu.memory_space<vmem>>, vector<1x2x96xbf16>
    %11 = vector.shape_cast %10 : vector<1x2x96xbf16> to vector<2x96xbf16>
    %12 = arith.extf %11 : vector<2x96xbf16> to vector<2x96xf32>
    %13 = tpu.concatenate %3, %3 in 1 : vector<2x32xf32>, vector<2x32xf32> -> vector<2x64xf32>
    %cst_9 = arith.constant dense<0.000000e+00> : vector<2x192xf32>
    %14 = tpu.matmul %13, %0, %cst_9 {dimension_numbers = #tpu.dot_dimension_numbers<[1], [0], [0], [1], [0, 0, 1, 1], [], []>} : vector<2x64xf32>, vector<64x192xf32>, vector<2x192xf32> -> vector<2x192xf32>
    %15 = vector.extract_strided_slice %14 {offsets = [0, 0], sizes = [2, 96], strides = [1, 1]} : vector<2x192xf32> to vector<2x96xf32>
    %16 = vector.extract_strided_slice %8 {offsets = [0, 0], sizes = [2, 32], strides = [1, 1]} : vector<2x96xf32> to vector<2x32xf32>
    %17 = vector.extract_strided_slice %15 {offsets = [0, 0], sizes = [2, 32], strides = [1, 1]} : vector<2x96xf32> to vector<2x32xf32>
    %18 = arith.addf %16, %17 : vector<2x32xf32>
    %19 = arith.negf %18 : vector<2x32xf32>
    %20 = math.exp %19 : vector<2x32xf32>
    %cst_10 = arith.constant 1.000000e+00 : f32
    %21 = vector.broadcast %cst_10 : f32 to vector<2x32xf32>
    %22 = arith.addf %21, %20 : vector<2x32xf32>
    %23 = arith.divf %21, %22 : vector<2x32xf32>
    %24 = vector.extract_strided_slice %8 {offsets = [0, 32], sizes = [2, 32], strides = [1, 1]} : vector<2x96xf32> to vector<2x32xf32>
    %25 = vector.extract_strided_slice %15 {offsets = [0, 32], sizes = [2, 32], strides = [1, 1]} : vector<2x96xf32> to vector<2x32xf32>
    %26 = arith.addf %24, %25 : vector<2x32xf32>
    %27 = arith.negf %26 : vector<2x32xf32>
    %28 = math.exp %27 : vector<2x32xf32>
    %cst_11 = arith.constant 1.000000e+00 : f32
    %29 = vector.broadcast %cst_11 : f32 to vector<2x32xf32>
    %30 = arith.addf %29, %28 : vector<2x32xf32>
    %31 = arith.divf %29, %30 : vector<2x32xf32>
    %32 = vector.extract_strided_slice %8 {offsets = [0, 64], sizes = [2, 32], strides = [1, 1]} : vector<2x96xf32> to vector<2x32xf32>
    %33 = vector.extract_strided_slice %15 {offsets = [0, 64], sizes = [2, 32], strides = [1, 1]} : vector<2x96xf32> to vector<2x32xf32>
    %34 = vector.broadcast %1 : vector<1x32xf32> to vector<2x32xf32>
    %35 = arith.addf %33, %34 : vector<2x32xf32>
    %36 = arith.mulf %23, %35 : vector<2x32xf32>
    %37 = arith.addf %32, %36 : vector<2x32xf32>
    %38 = math.tanh %37 : vector<2x32xf32>
    %cst_12 = arith.constant 1.000000e+00 : f32
    %39 = vector.broadcast %cst_12 : f32 to vector<2x32xf32>
    %40 = arith.subf %39, %31 : vector<2x32xf32>
    %41 = arith.mulf %40, %38 : vector<2x32xf32>
    %42 = arith.mulf %31, %3 : vector<2x32xf32>
    %43 = arith.addf %41, %42 : vector<2x32xf32>
    %44 = vector.extract_strided_slice %14 {offsets = [0, 96], sizes = [2, 96], strides = [1, 1]} : vector<2x192xf32> to vector<2x96xf32>
    %45 = vector.extract_strided_slice %12 {offsets = [0, 0], sizes = [2, 32], strides = [1, 1]} : vector<2x96xf32> to vector<2x32xf32>
    %46 = vector.extract_strided_slice %44 {offsets = [0, 0], sizes = [2, 32], strides = [1, 1]} : vector<2x96xf32> to vector<2x32xf32>
    %47 = arith.addf %45, %46 : vector<2x32xf32>
    %48 = arith.negf %47 : vector<2x32xf32>
    %49 = math.exp %48 : vector<2x32xf32>
    %cst_13 = arith.constant 1.000000e+00 : f32
    %50 = vector.broadcast %cst_13 : f32 to vector<2x32xf32>
    %51 = arith.addf %50, %49 : vector<2x32xf32>
    %52 = arith.divf %50, %51 : vector<2x32xf32>
    %53 = vector.extract_strided_slice %12 {offsets = [0, 32], sizes = [2, 32], strides = [1, 1]} : vector<2x96xf32> to vector<2x32xf32>
    %54 = vector.extract_strided_slice %44 {offsets = [0, 32], sizes = [2, 32], strides = [1, 1]} : vector<2x96xf32> to vector<2x32xf32>
    %55 = arith.addf %53, %54 : vector<2x32xf32>
    %56 = arith.negf %55 : vector<2x32xf32>
    %57 = math.exp %56 : vector<2x32xf32>
    %cst_14 = arith.constant 1.000000e+00 : f32
    %58 = vector.broadcast %cst_14 : f32 to vector<2x32xf32>
    %59 = arith.addf %58, %57 : vector<2x32xf32>
    %60 = arith.divf %58, %59 : vector<2x32xf32>
    %61 = vector.extract_strided_slice %12 {offsets = [0, 64], sizes = [2, 32], strides = [1, 1]} : vector<2x96xf32> to vector<2x32xf32>
    %62 = vector.extract_strided_slice %44 {offsets = [0, 64], sizes = [2, 32], strides = [1, 1]} : vector<2x96xf32> to vector<2x32xf32>
    %63 = vector.broadcast %2 : vector<1x32xf32> to vector<2x32xf32>
    %64 = arith.addf %62, %63 : vector<2x32xf32>
    %65 = arith.mulf %52, %64 : vector<2x32xf32>
    %66 = arith.addf %61, %65 : vector<2x32xf32>
    %67 = math.tanh %66 : vector<2x32xf32>
    %cst_15 = arith.constant 1.000000e+00 : f32
    %68 = vector.broadcast %cst_15 : f32 to vector<2x32xf32>
    %69 = arith.subf %68, %60 : vector<2x32xf32>
    %70 = arith.mulf %69, %67 : vector<2x32xf32>
    %71 = arith.mulf %60, %3 : vector<2x32xf32>
    %72 = arith.addf %70, %71 : vector<2x32xf32>
    %73 = arith.truncf %43 : vector<2x32xf32> to vector<2x32xbf16>
    %74 = arith.index_cast %c0_i32 : i32 to index
    %c0_16 = arith.constant 0 : index
    %c0_17 = arith.constant 0 : index
    %75 = vector.load %arg6[%74, %c0_16, %c0_17] : memref<8x2x32xbf16, #tpu.memory_space<vmem>>, vector<1x2x32xbf16>
    %76 = vector.shape_cast %75 : vector<1x2x32xbf16> to vector<2x32xbf16>
    %77 = vector.shape_cast %73 : vector<2x32xbf16> to vector<1x2x32xbf16>
    tpu.vector_store %arg6[%74, %c0_16, %c0_17], %77 {strides = array<i32>} : memref<8x2x32xbf16, #tpu.memory_space<vmem>>, vector<1x2x32xbf16>,
    %78 = arith.truncf %72 : vector<2x32xf32> to vector<2x32xbf16>
    %79 = arith.index_cast %4 : i32 to index
    %c0_18 = arith.constant 0 : index
    %c0_19 = arith.constant 0 : index
    %80 = vector.load %arg7[%79, %c0_18, %c0_19] : memref<8x2x32xbf16, #tpu.memory_space<vmem>>, vector<1x2x32xbf16>
    %81 = vector.shape_cast %80 : vector<1x2x32xbf16> to vector<2x32xbf16>
    %82 = vector.shape_cast %78 : vector<2x32xbf16> to vector<1x2x32xbf16>
    tpu.vector_store %arg7[%79, %c0_18, %c0_19], %82 {strides = array<i32>} : memref<8x2x32xbf16, #tpu.memory_space<vmem>>, vector<1x2x32xbf16>,
    %c1_i32 = arith.constant 1 : i32
    %c7_i32_20 = arith.constant 7 : i32
    %83 = arith.subi %c7_i32_20, %c1_i32 : i32
    %84 = arith.index_cast %c1_i32 : i32 to index
    %c0_21 = arith.constant 0 : index
    %c0_22 = arith.constant 0 : index
    %85 = vector.load %arg1[%84, %c0_21, %c0_22] : memref<8x2x96xbf16, #tpu.memory_space<vmem>>, vector<1x2x96xbf16>
    %86 = vector.shape_cast %85 : vector<1x2x96xbf16> to vector<2x96xbf16>
    %87 = arith.extf %86 : vector<2x96xbf16> to vector<2x96xf32>
    %88 = arith.index_cast %83 : i32 to index
    %c0_23 = arith.constant 0 : index
    %c0_24 = arith.constant 0 : index
    %89 = vector.load %arg2[%88, %c0_23, %c0_24] : memref<8x2x96xbf16, #tpu.memory_space<vmem>>, vector<1x2x96xbf16>
    %90 = vector.shape_cast %89 : vector<1x2x96xbf16> to vector<2x96xbf16>
    %91 = arith.extf %90 : vector<2x96xbf16> to vector<2x96xf32>
    %92 = tpu.concatenate %43, %72 in 1 : vector<2x32xf32>, vector<2x32xf32> -> vector<2x64xf32>
    %cst_25 = arith.constant dense<0.000000e+00> : vector<2x192xf32>
    %93 = tpu.matmul %92, %0, %cst_25 {dimension_numbers = #tpu.dot_dimension_numbers<[1], [0], [0], [1], [0, 0, 1, 1], [], []>} : vector<2x64xf32>, vector<64x192xf32>, vector<2x192xf32> -> vector<2x192xf32>
    %94 = vector.extract_strided_slice %93 {offsets = [0, 0], sizes = [2, 96], strides = [1, 1]} : vector<2x192xf32> to vector<2x96xf32>
    %95 = vector.extract_strided_slice %87 {offsets = [0, 0], sizes = [2, 32], strides = [1, 1]} : vector<2x96xf32> to vector<2x32xf32>
    %96 = vector.extract_strided_slice %94 {offsets = [0, 0], sizes = [2, 32], strides = [1, 1]} : vector<2x96xf32> to vector<2x32xf32>
    %97 = arith.addf %95, %96 : vector<2x32xf32>
    %98 = arith.negf %97 : vector<2x32xf32>
    %99 = math.exp %98 : vector<2x32xf32>
    %cst_26 = arith.constant 1.000000e+00 : f32
    %100 = vector.broadcast %cst_26 : f32 to vector<2x32xf32>
    %101 = arith.addf %100, %99 : vector<2x32xf32>
    %102 = arith.divf %100, %101 : vector<2x32xf32>
    %103 = vector.extract_strided_slice %87 {offsets = [0, 32], sizes = [2, 32], strides = [1, 1]} : vector<2x96xf32> to vector<2x32xf32>
    %104 = vector.extract_strided_slice %94 {offsets = [0, 32], sizes = [2, 32], strides = [1, 1]} : vector<2x96xf32> to vector<2x32xf32>
    %105 = arith.addf %103, %104 : vector<2x32xf32>
    %106 = arith.negf %105 : vector<2x32xf32>
    %107 = math.exp %106 : vector<2x32xf32>
    %cst_27 = arith.constant 1.000000e+00 : f32
    %108 = vector.broadcast %cst_27 : f32 to vector<2x32xf32>
    %109 = arith.addf %108, %107 : vector<2x32xf32>
    %110 = arith.divf %108, %109 : vector<2x32xf32>
    %111 = vector.extract_strided_slice %87 {offsets = [0, 64], sizes = [2, 32], strides = [1, 1]} : vector<2x96xf32> to vector<2x32xf32>
    %112 = vector.extract_strided_slice %94 {offsets = [0, 64], sizes = [2, 32], strides = [1, 1]} : vector<2x96xf32> to vector<2x32xf32>
    %113 = vector.broadcast %1 : vector<1x32xf32> to vector<2x32xf32>
    %114 = arith.addf %112, %113 : vector<2x32xf32>
    %115 = arith.mulf %102, %114 : vector<2x32xf32>
    %116 = arith.addf %111, %115 : vector<2x32xf32>
    %117 = math.tanh %116 : vector<2x32xf32>
    %cst_28 = arith.constant 1.000000e+00 : f32
    %118 = vector.broadcast %cst_28 : f32 to vector<2x32xf32>
    %119 = arith.subf %118, %110 : vector<2x32xf32>
    %120 = arith.mulf %119, %117 : vector<2x32xf32>
    %121 = arith.mulf %110, %43 : vector<2x32xf32>
    %122 = arith.addf %120, %121 : vector<2x32xf32>
    %123 = vector.extract_strided_slice %93 {offsets = [0, 96], sizes = [2, 96], strides = [1, 1]} : vector<2x192xf32> to vector<2x96xf32>
    %124 = vector.extract_strided_slice %91 {offsets = [0, 0], sizes = [2, 32], strides = [1, 1]} : vector<2x96xf32> to vector<2x32xf32>
    %125 = vector.extract_strided_slice %123 {offsets = [0, 0], sizes = [2, 32], strides = [1, 1]} : vector<2x96xf32> to vector<2x32xf32>
    %126 = arith.addf %124, %125 : vector<2x32xf32>
    %127 = arith.negf %126 : vector<2x32xf32>
    %128 = math.exp %127 : vector<2x32xf32>
    %cst_29 = arith.constant 1.000000e+00 : f32
    %129 = vector.broadcast %cst_29 : f32 to vector<2x32xf32>
    %130 = arith.addf %129, %128 : vector<2x32xf32>
    %131 = arith.divf %129, %130 : vector<2x32xf32>
    %132 = vector.extract_strided_slice %91 {offsets = [0, 32], sizes = [2, 32], strides = [1, 1]} : vector<2x96xf32> to vector<2x32xf32>
    %133 = vector.extract_strided_slice %123 {offsets = [0, 32], sizes = [2, 32], strides = [1, 1]} : vector<2x96xf32> to vector<2x32xf32>
    %134 = arith.addf %132, %133 : vector<2x32xf32>
    %135 = arith.negf %134 : vector<2x32xf32>
    %136 = math.exp %135 : vector<2x32xf32>
    %cst_30 = arith.constant 1.000000e+00 : f32
    %137 = vector.broadcast %cst_30 : f32 to vector<2x32xf32>
    %138 = arith.addf %137, %136 : vector<2x32xf32>
    %139 = arith.divf %137, %138 : vector<2x32xf32>
    %140 = vector.extract_strided_slice %91 {offsets = [0, 64], sizes = [2, 32], strides = [1, 1]} : vector<2x96xf32> to vector<2x32xf32>
    %141 = vector.extract_strided_slice %123 {offsets = [0, 64], sizes = [2, 32], strides = [1, 1]} : vector<2x96xf32> to vector<2x32xf32>
    %142 = vector.broadcast %2 : vector<1x32xf32> to vector<2x32xf32>
    %143 = arith.addf %141, %142 : vector<2x32xf32>
    %144 = arith.mulf %131, %143 : vector<2x32xf32>
    %145 = arith.addf %140, %144 : vector<2x32xf32>
    %146 = math.tanh %145 : vector<2x32xf32>
    %cst_31 = arith.constant 1.000000e+00 : f32
    %147 = vector.broadcast %cst_31 : f32 to vector<2x32xf32>
    %148 = arith.subf %147, %139 : vector<2x32xf32>
    %149 = arith.mulf %148, %146 : vector<2x32xf32>
    %150 = arith.mulf %139, %72 : vector<2x32xf32>
    %151 = arith.addf %149, %150 : vector<2x32xf32>
    %152 = arith.truncf %122 : vector<2x32xf32> to vector<2x32xbf16>
    %153 = arith.index_cast %c1_i32 : i32 to index
    %c0_32 = arith.constant 0 : index
    %c0_33 = arith.constant 0 : index
    %154 = vector.load %arg6[%153, %c0_32, %c0_33] : memref<8x2x32xbf16, #tpu.memory_space<vmem>>, vector<1x2x32xbf16>
    %155 = vector.shape_cast %154 : vector<1x2x32xbf16> to vector<2x32xbf16>
    %156 = vector.shape_cast %152 : vector<2x32xbf16> to vector<1x2x32xbf16>
    tpu.vector_store %arg6[%153, %c0_32, %c0_33], %156 {strides = array<i32>} : memref<8x2x32xbf16, #tpu.memory_space<vmem>>, vector<1x2x32xbf16>,
    %157 = arith.truncf %151 : vector<2x32xf32> to vector<2x32xbf16>
    %158 = arith.index_cast %83 : i32 to index
    %c0_34 = arith.constant 0 : index
    %c0_35 = arith.constant 0 : index
    %159 = vector.load %arg7[%158, %c0_34, %c0_35] : memref<8x2x32xbf16, #tpu.memory_space<vmem>>, vector<1x2x32xbf16>
    %160 = vector.shape_cast %159 : vector<1x2x32xbf16> to vector<2x32xbf16>
    %161 = vector.shape_cast %157 : vector<2x32xbf16> to vector<1x2x32xbf16>
    tpu.vector_store %arg7[%158, %c0_34, %c0_35], %161 {strides = array<i32>} : memref<8x2x32xbf16, #tpu.memory_space<vmem>>, vector<1x2x32xbf16>,
    %c2_i32 = arith.constant 2 : i32
    %c7_i32_36 = arith.constant 7 : i32
    %162 = arith.subi %c7_i32_36, %c2_i32 : i32
    %163 = arith.index_cast %c2_i32 : i32 to index
    %c0_37 = arith.constant 0 : index
    %c0_38 = arith.constant 0 : index
    %164 = vector.load %arg1[%163, %c0_37, %c0_38] : memref<8x2x96xbf16, #tpu.memory_space<vmem>>, vector<1x2x96xbf16>
    %165 = vector.shape_cast %164 : vector<1x2x96xbf16> to vector<2x96xbf16>
    %166 = arith.extf %165 : vector<2x96xbf16> to vector<2x96xf32>
    %167 = arith.index_cast %162 : i32 to index
    %c0_39 = arith.constant 0 : index
    %c0_40 = arith.constant 0 : index
    %168 = vector.load %arg2[%167, %c0_39, %c0_40] : memref<8x2x96xbf16, #tpu.memory_space<vmem>>, vector<1x2x96xbf16>
    %169 = vector.shape_cast %168 : vector<1x2x96xbf16> to vector<2x96xbf16>
    %170 = arith.extf %169 : vector<2x96xbf16> to vector<2x96xf32>
    %171 = tpu.concatenate %122, %151 in 1 : vector<2x32xf32>, vector<2x32xf32> -> vector<2x64xf32>
    %cst_41 = arith.constant dense<0.000000e+00> : vector<2x192xf32>
    %172 = tpu.matmul %171, %0, %cst_41 {dimension_numbers = #tpu.dot_dimension_numbers<[1], [0], [0], [1], [0, 0, 1, 1], [], []>} : vector<2x64xf32>, vector<64x192xf32>, vector<2x192xf32> -> vector<2x192xf32>
    %173 = vector.extract_strided_slice %172 {offsets = [0, 0], sizes = [2, 96], strides = [1, 1]} : vector<2x192xf32> to vector<2x96xf32>
    %174 = vector.extract_strided_slice %166 {offsets = [0, 0], sizes = [2, 32], strides = [1, 1]} : vector<2x96xf32> to vector<2x32xf32>
    %175 = vector.extract_strided_slice %173 {offsets = [0, 0], sizes = [2, 32], strides = [1, 1]} : vector<2x96xf32> to vector<2x32xf32>
    %176 = arith.addf %174, %175 : vector<2x32xf32>
    %177 = arith.negf %176 : vector<2x32xf32>
    %178 = math.exp %177 : vector<2x32xf32>
    %cst_42 = arith.constant 1.000000e+00 : f32
    %179 = vector.broadcast %cst_42 : f32 to vector<2x32xf32>
    %180 = arith.addf %179, %178 : vector<2x32xf32>
    %181 = arith.divf %179, %180 : vector<2x32xf32>
    %182 = vector.extract_strided_slice %166 {offsets = [0, 32], sizes = [2, 32], strides = [1, 1]} : vector<2x96xf32> to vector<2x32xf32>
    %183 = vector.extract_strided_slice %173 {offsets = [0, 32], sizes = [2, 32], strides = [1, 1]} : vector<2x96xf32> to vector<2x32xf32>
    %184 = arith.addf %182, %183 : vector<2x32xf32>
    %185 = arith.negf %184 : vector<2x32xf32>
    %186 = math.exp %185 : vector<2x32xf32>
    %cst_43 = arith.constant 1.000000e+00 : f32
    %187 = vector.broadcast %cst_43 : f32 to vector<2x32xf32>
    %188 = arith.addf %187, %186 : vector<2x32xf32>
    %189 = arith.divf %187, %188 : vector<2x32xf32>
    %190 = vector.extract_strided_slice %166 {offsets = [0, 64], sizes = [2, 32], strides = [1, 1]} : vector<2x96xf32> to vector<2x32xf32>
    %191 = vector.extract_strided_slice %173 {offsets = [0, 64], sizes = [2, 32], strides = [1, 1]} : vector<2x96xf32> to vector<2x32xf32>
    %192 = vector.broadcast %1 : vector<1x32xf32> to vector<2x32xf32>
    %193 = arith.addf %191, %192 : vector<2x32xf32>
    %194 = arith.mulf %181, %193 : vector<2x32xf32>
    %195 = arith.addf %190, %194 : vector<2x32xf32>
    %196 = math.tanh %195 : vector<2x32xf32>
    %cst_44 = arith.constant 1.000000e+00 : f32
    %197 = vector.broadcast %cst_44 : f32 to vector<2x32xf32>
    %198 = arith.subf %197, %189 : vector<2x32xf32>
    %199 = arith.mulf %198, %196 : vector<2x32xf32>
    %200 = arith.mulf %189, %122 : vector<2x32xf32>
    %201 = arith.addf %199, %200 : vector<2x32xf32>
    %202 = vector.extract_strided_slice %172 {offsets = [0, 96], sizes = [2, 96], strides = [1, 1]} : vector<2x192xf32> to vector<2x96xf32>
    %203 = vector.extract_strided_slice %170 {offsets = [0, 0], sizes = [2, 32], strides = [1, 1]} : vector<2x96xf32> to vector<2x32xf32>
    %204 = vector.extract_strided_slice %202 {offsets = [0, 0], sizes = [2, 32], strides = [1, 1]} : vector<2x96xf32> to vector<2x32xf32>
    %205 = arith.addf %203, %204 : vector<2x32xf32>
    %206 = arith.negf %205 : vector<2x32xf32>
    %207 = math.exp %206 : vector<2x32xf32>
    %cst_45 = arith.constant 1.000000e+00 : f32
    %208 = vector.broadcast %cst_45 : f32 to vector<2x32xf32>
    %209 = arith.addf %208, %207 : vector<2x32xf32>
    %210 = arith.divf %208, %209 : vector<2x32xf32>
    %211 = vector.extract_strided_slice %170 {offsets = [0, 32], sizes = [2, 32], strides = [1, 1]} : vector<2x96xf32> to vector<2x32xf32>
    %212 = vector.extract_strided_slice %202 {offsets = [0, 32], sizes = [2, 32], strides = [1, 1]} : vector<2x96xf32> to vector<2x32xf32>
    %213 = arith.addf %211, %212 : vector<2x32xf32>
    %214 = arith.negf %213 : vector<2x32xf32>
    %215 = math.exp %214 : vector<2x32xf32>
    %cst_46 = arith.constant 1.000000e+00 : f32
    %216 = vector.broadcast %cst_46 : f32 to vector<2x32xf32>
    %217 = arith.addf %216, %215 : vector<2x32xf32>
    %218 = arith.divf %216, %217 : vector<2x32xf32>
    %219 = vector.extract_strided_slice %170 {offsets = [0, 64], sizes = [2, 32], strides = [1, 1]} : vector<2x96xf32> to vector<2x32xf32>
    %220 = vector.extract_strided_slice %202 {offsets = [0, 64], sizes = [2, 32], strides = [1, 1]} : vector<2x96xf32> to vector<2x32xf32>
    %221 = vector.broadcast %2 : vector<1x32xf32> to vector<2x32xf32>
    %222 = arith.addf %220, %221 : vector<2x32xf32>
    %223 = arith.mulf %210, %222 : vector<2x32xf32>
    %224 = arith.addf %219, %223 : vector<2x32xf32>
    %225 = math.tanh %224 : vector<2x32xf32>
    %cst_47 = arith.constant 1.000000e+00 : f32
    %226 = vector.broadcast %cst_47 : f32 to vector<2x32xf32>
    %227 = arith.subf %226, %218 : vector<2x32xf32>
    %228 = arith.mulf %227, %225 : vector<2x32xf32>
    %229 = arith.mulf %218, %151 : vector<2x32xf32>
    %230 = arith.addf %228, %229 : vector<2x32xf32>
    %231 = arith.truncf %201 : vector<2x32xf32> to vector<2x32xbf16>
    %232 = arith.index_cast %c2_i32 : i32 to index
    %c0_48 = arith.constant 0 : index
    %c0_49 = arith.constant 0 : index
    %233 = vector.load %arg6[%232, %c0_48, %c0_49] : memref<8x2x32xbf16, #tpu.memory_space<vmem>>, vector<1x2x32xbf16>
    %234 = vector.shape_cast %233 : vector<1x2x32xbf16> to vector<2x32xbf16>
    %235 = vector.shape_cast %231 : vector<2x32xbf16> to vector<1x2x32xbf16>
    tpu.vector_store %arg6[%232, %c0_48, %c0_49], %235 {strides = array<i32>} : memref<8x2x32xbf16, #tpu.memory_space<vmem>>, vector<1x2x32xbf16>,
    %236 = arith.truncf %230 : vector<2x32xf32> to vector<2x32xbf16>
    %237 = arith.index_cast %162 : i32 to index
    %c0_50 = arith.constant 0 : index
    %c0_51 = arith.constant 0 : index
    %238 = vector.load %arg7[%237, %c0_50, %c0_51] : memref<8x2x32xbf16, #tpu.memory_space<vmem>>, vector<1x2x32xbf16>
    %239 = vector.shape_cast %238 : vector<1x2x32xbf16> to vector<2x32xbf16>
    %240 = vector.shape_cast %236 : vector<2x32xbf16> to vector<1x2x32xbf16>
    tpu.vector_store %arg7[%237, %c0_50, %c0_51], %240 {strides = array<i32>} : memref<8x2x32xbf16, #tpu.memory_space<vmem>>, vector<1x2x32xbf16>,
    %c3_i32 = arith.constant 3 : i32
    %c7_i32_52 = arith.constant 7 : i32
    %241 = arith.subi %c7_i32_52, %c3_i32 : i32
    %242 = arith.index_cast %c3_i32 : i32 to index
    %c0_53 = arith.constant 0 : index
    %c0_54 = arith.constant 0 : index
    %243 = vector.load %arg1[%242, %c0_53, %c0_54] : memref<8x2x96xbf16, #tpu.memory_space<vmem>>, vector<1x2x96xbf16>
    %244 = vector.shape_cast %243 : vector<1x2x96xbf16> to vector<2x96xbf16>
    %245 = arith.extf %244 : vector<2x96xbf16> to vector<2x96xf32>
    %246 = arith.index_cast %241 : i32 to index
    %c0_55 = arith.constant 0 : index
    %c0_56 = arith.constant 0 : index
    %247 = vector.load %arg2[%246, %c0_55, %c0_56] : memref<8x2x96xbf16, #tpu.memory_space<vmem>>, vector<1x2x96xbf16>
    %248 = vector.shape_cast %247 : vector<1x2x96xbf16> to vector<2x96xbf16>
    %249 = arith.extf %248 : vector<2x96xbf16> to vector<2x96xf32>
    %250 = tpu.concatenate %201, %230 in 1 : vector<2x32xf32>, vector<2x32xf32> -> vector<2x64xf32>
    %cst_57 = arith.constant dense<0.000000e+00> : vector<2x192xf32>
    %251 = tpu.matmul %250, %0, %cst_57 {dimension_numbers = #tpu.dot_dimension_numbers<[1], [0], [0], [1], [0, 0, 1, 1], [], []>} : vector<2x64xf32>, vector<64x192xf32>, vector<2x192xf32> -> vector<2x192xf32>
    %252 = vector.extract_strided_slice %251 {offsets = [0, 0], sizes = [2, 96], strides = [1, 1]} : vector<2x192xf32> to vector<2x96xf32>
    %253 = vector.extract_strided_slice %245 {offsets = [0, 0], sizes = [2, 32], strides = [1, 1]} : vector<2x96xf32> to vector<2x32xf32>
    %254 = vector.extract_strided_slice %252 {offsets = [0, 0], sizes = [2, 32], strides = [1, 1]} : vector<2x96xf32> to vector<2x32xf32>
    %255 = arith.addf %253, %254 : vector<2x32xf32>
    %256 = arith.negf %255 : vector<2x32xf32>
    %257 = math.exp %256 : vector<2x32xf32>
    %cst_58 = arith.constant 1.000000e+00 : f32
    %258 = vector.broadcast %cst_58 : f32 to vector<2x32xf32>
    %259 = arith.addf %258, %257 : vector<2x32xf32>
    %260 = arith.divf %258, %259 : vector<2x32xf32>
    %261 = vector.extract_strided_slice %245 {offsets = [0, 32], sizes = [2, 32], strides = [1, 1]} : vector<2x96xf32> to vector<2x32xf32>
    %262 = vector.extract_strided_slice %252 {offsets = [0, 32], sizes = [2, 32], strides = [1, 1]} : vector<2x96xf32> to vector<2x32xf32>
    %263 = arith.addf %261, %262 : vector<2x32xf32>
    %264 = arith.negf %263 : vector<2x32xf32>
    %265 = math.exp %264 : vector<2x32xf32>
    %cst_59 = arith.constant 1.000000e+00 : f32
    %266 = vector.broadcast %cst_59 : f32 to vector<2x32xf32>
    %267 = arith.addf %266, %265 : vector<2x32xf32>
    %268 = arith.divf %266, %267 : vector<2x32xf32>
    %269 = vector.extract_strided_slice %245 {offsets = [0, 64], sizes = [2, 32], strides = [1, 1]} : vector<2x96xf32> to vector<2x32xf32>
    %270 = vector.extract_strided_slice %252 {offsets = [0, 64], sizes = [2, 32], strides = [1, 1]} : vector<2x96xf32> to vector<2x32xf32>
    %271 = vector.broadcast %1 : vector<1x32xf32> to vector<2x32xf32>
    %272 = arith.addf %270, %271 : vector<2x32xf32>
    %273 = arith.mulf %260, %272 : vector<2x32xf32>
    %274 = arith.addf %269, %273 : vector<2x32xf32>
    %275 = math.tanh %274 : vector<2x32xf32>
    %cst_60 = arith.constant 1.000000e+00 : f32
    %276 = vector.broadcast %cst_60 : f32 to vector<2x32xf32>
    %277 = arith.subf %276, %268 : vector<2x32xf32>
    %278 = arith.mulf %277, %275 : vector<2x32xf32>
    %279 = arith.mulf %268, %201 : vector<2x32xf32>
    %280 = arith.addf %278, %279 : vector<2x32xf32>
    %281 = vector.extract_strided_slice %251 {offsets = [0, 96], sizes = [2, 96], strides = [1, 1]} : vector<2x192xf32> to vector<2x96xf32>
    %282 = vector.extract_strided_slice %249 {offsets = [0, 0], sizes = [2, 32], strides = [1, 1]} : vector<2x96xf32> to vector<2x32xf32>
    %283 = vector.extract_strided_slice %281 {offsets = [0, 0], sizes = [2, 32], strides = [1, 1]} : vector<2x96xf32> to vector<2x32xf32>
    %284 = arith.addf %282, %283 : vector<2x32xf32>
    %285 = arith.negf %284 : vector<2x32xf32>
    %286 = math.exp %285 : vector<2x32xf32>
    %cst_61 = arith.constant 1.000000e+00 : f32
    %287 = vector.broadcast %cst_61 : f32 to vector<2x32xf32>
    %288 = arith.addf %287, %286 : vector<2x32xf32>
    %289 = arith.divf %287, %288 : vector<2x32xf32>
    %290 = vector.extract_strided_slice %249 {offsets = [0, 32], sizes = [2, 32], strides = [1, 1]} : vector<2x96xf32> to vector<2x32xf32>
    %291 = vector.extract_strided_slice %281 {offsets = [0, 32], sizes = [2, 32], strides = [1, 1]} : vector<2x96xf32> to vector<2x32xf32>
    %292 = arith.addf %290, %291 : vector<2x32xf32>
    %293 = arith.negf %292 : vector<2x32xf32>
    %294 = math.exp %293 : vector<2x32xf32>
    %cst_62 = arith.constant 1.000000e+00 : f32
    %295 = vector.broadcast %cst_62 : f32 to vector<2x32xf32>
    %296 = arith.addf %295, %294 : vector<2x32xf32>
    %297 = arith.divf %295, %296 : vector<2x32xf32>
    %298 = vector.extract_strided_slice %249 {offsets = [0, 64], sizes = [2, 32], strides = [1, 1]} : vector<2x96xf32> to vector<2x32xf32>
    %299 = vector.extract_strided_slice %281 {offsets = [0, 64], sizes = [2, 32], strides = [1, 1]} : vector<2x96xf32> to vector<2x32xf32>
    %300 = vector.broadcast %2 : vector<1x32xf32> to vector<2x32xf32>
    %301 = arith.addf %299, %300 : vector<2x32xf32>
    %302 = arith.mulf %289, %301 : vector<2x32xf32>
    %303 = arith.addf %298, %302 : vector<2x32xf32>
    %304 = math.tanh %303 : vector<2x32xf32>
    %cst_63 = arith.constant 1.000000e+00 : f32
    %305 = vector.broadcast %cst_63 : f32 to vector<2x32xf32>
    %306 = arith.subf %305, %297 : vector<2x32xf32>
    %307 = arith.mulf %306, %304 : vector<2x32xf32>
    %308 = arith.mulf %297, %230 : vector<2x32xf32>
    %309 = arith.addf %307, %308 : vector<2x32xf32>
    %310 = arith.truncf %280 : vector<2x32xf32> to vector<2x32xbf16>
    %311 = arith.index_cast %c3_i32 : i32 to index
    %c0_64 = arith.constant 0 : index
    %c0_65 = arith.constant 0 : index
    %312 = vector.load %arg6[%311, %c0_64, %c0_65] : memref<8x2x32xbf16, #tpu.memory_space<vmem>>, vector<1x2x32xbf16>
    %313 = vector.shape_cast %312 : vector<1x2x32xbf16> to vector<2x32xbf16>
    %314 = vector.shape_cast %310 : vector<2x32xbf16> to vector<1x2x32xbf16>
    tpu.vector_store %arg6[%311, %c0_64, %c0_65], %314 {strides = array<i32>} : memref<8x2x32xbf16, #tpu.memory_space<vmem>>, vector<1x2x32xbf16>,
    %315 = arith.truncf %309 : vector<2x32xf32> to vector<2x32xbf16>
    %316 = arith.index_cast %241 : i32 to index
    %c0_66 = arith.constant 0 : index
    %c0_67 = arith.constant 0 : index
    %317 = vector.load %arg7[%316, %c0_66, %c0_67] : memref<8x2x32xbf16, #tpu.memory_space<vmem>>, vector<1x2x32xbf16>
    %318 = vector.shape_cast %317 : vector<1x2x32xbf16> to vector<2x32xbf16>
    %319 = vector.shape_cast %315 : vector<2x32xbf16> to vector<1x2x32xbf16>
    tpu.vector_store %arg7[%316, %c0_66, %c0_67], %319 {strides = array<i32>} : memref<8x2x32xbf16, #tpu.memory_space<vmem>>, vector<1x2x32xbf16>,
    %c4_i32 = arith.constant 4 : i32
    %c7_i32_68 = arith.constant 7 : i32
    %320 = arith.subi %c7_i32_68, %c4_i32 : i32
    %321 = arith.index_cast %c4_i32 : i32 to index
    %c0_69 = arith.constant 0 : index
    %c0_70 = arith.constant 0 : index
    %322 = vector.load %arg1[%321, %c0_69, %c0_70] : memref<8x2x96xbf16, #tpu.memory_space<vmem>>, vector<1x2x96xbf16>
    %323 = vector.shape_cast %322 : vector<1x2x96xbf16> to vector<2x96xbf16>
    %324 = arith.extf %323 : vector<2x96xbf16> to vector<2x96xf32>
    %325 = arith.index_cast %320 : i32 to index
    %c0_71 = arith.constant 0 : index
    %c0_72 = arith.constant 0 : index
    %326 = vector.load %arg2[%325, %c0_71, %c0_72] : memref<8x2x96xbf16, #tpu.memory_space<vmem>>, vector<1x2x96xbf16>
    %327 = vector.shape_cast %326 : vector<1x2x96xbf16> to vector<2x96xbf16>
    %328 = arith.extf %327 : vector<2x96xbf16> to vector<2x96xf32>
    %329 = tpu.concatenate %280, %309 in 1 : vector<2x32xf32>, vector<2x32xf32> -> vector<2x64xf32>
    %cst_73 = arith.constant dense<0.000000e+00> : vector<2x192xf32>
    %330 = tpu.matmul %329, %0, %cst_73 {dimension_numbers = #tpu.dot_dimension_numbers<[1], [0], [0], [1], [0, 0, 1, 1], [], []>} : vector<2x64xf32>, vector<64x192xf32>, vector<2x192xf32> -> vector<2x192xf32>
    %331 = vector.extract_strided_slice %330 {offsets = [0, 0], sizes = [2, 96], strides = [1, 1]} : vector<2x192xf32> to vector<2x96xf32>
    %332 = vector.extract_strided_slice %324 {offsets = [0, 0], sizes = [2, 32], strides = [1, 1]} : vector<2x96xf32> to vector<2x32xf32>
    %333 = vector.extract_strided_slice %331 {offsets = [0, 0], sizes = [2, 32], strides = [1, 1]} : vector<2x96xf32> to vector<2x32xf32>
    %334 = arith.addf %332, %333 : vector<2x32xf32>
    %335 = arith.negf %334 : vector<2x32xf32>
    %336 = math.exp %335 : vector<2x32xf32>
    %cst_74 = arith.constant 1.000000e+00 : f32
    %337 = vector.broadcast %cst_74 : f32 to vector<2x32xf32>
    %338 = arith.addf %337, %336 : vector<2x32xf32>
    %339 = arith.divf %337, %338 : vector<2x32xf32>
    %340 = vector.extract_strided_slice %324 {offsets = [0, 32], sizes = [2, 32], strides = [1, 1]} : vector<2x96xf32> to vector<2x32xf32>
    %341 = vector.extract_strided_slice %331 {offsets = [0, 32], sizes = [2, 32], strides = [1, 1]} : vector<2x96xf32> to vector<2x32xf32>
    %342 = arith.addf %340, %341 : vector<2x32xf32>
    %343 = arith.negf %342 : vector<2x32xf32>
    %344 = math.exp %343 : vector<2x32xf32>
    %cst_75 = arith.constant 1.000000e+00 : f32
    %345 = vector.broadcast %cst_75 : f32 to vector<2x32xf32>
    %346 = arith.addf %345, %344 : vector<2x32xf32>
    %347 = arith.divf %345, %346 : vector<2x32xf32>
    %348 = vector.extract_strided_slice %324 {offsets = [0, 64], sizes = [2, 32], strides = [1, 1]} : vector<2x96xf32> to vector<2x32xf32>
    %349 = vector.extract_strided_slice %331 {offsets = [0, 64], sizes = [2, 32], strides = [1, 1]} : vector<2x96xf32> to vector<2x32xf32>
    %350 = vector.broadcast %1 : vector<1x32xf32> to vector<2x32xf32>
    %351 = arith.addf %349, %350 : vector<2x32xf32>
    %352 = arith.mulf %339, %351 : vector<2x32xf32>
    %353 = arith.addf %348, %352 : vector<2x32xf32>
    %354 = math.tanh %353 : vector<2x32xf32>
    %cst_76 = arith.constant 1.000000e+00 : f32
    %355 = vector.broadcast %cst_76 : f32 to vector<2x32xf32>
    %356 = arith.subf %355, %347 : vector<2x32xf32>
    %357 = arith.mulf %356, %354 : vector<2x32xf32>
    %358 = arith.mulf %347, %280 : vector<2x32xf32>
    %359 = arith.addf %357, %358 : vector<2x32xf32>
    %360 = vector.extract_strided_slice %330 {offsets = [0, 96], sizes = [2, 96], strides = [1, 1]} : vector<2x192xf32> to vector<2x96xf32>
    %361 = vector.extract_strided_slice %328 {offsets = [0, 0], sizes = [2, 32], strides = [1, 1]} : vector<2x96xf32> to vector<2x32xf32>
    %362 = vector.extract_strided_slice %360 {offsets = [0, 0], sizes = [2, 32], strides = [1, 1]} : vector<2x96xf32> to vector<2x32xf32>
    %363 = arith.addf %361, %362 : vector<2x32xf32>
    %364 = arith.negf %363 : vector<2x32xf32>
    %365 = math.exp %364 : vector<2x32xf32>
    %cst_77 = arith.constant 1.000000e+00 : f32
    %366 = vector.broadcast %cst_77 : f32 to vector<2x32xf32>
    %367 = arith.addf %366, %365 : vector<2x32xf32>
    %368 = arith.divf %366, %367 : vector<2x32xf32>
    %369 = vector.extract_strided_slice %328 {offsets = [0, 32], sizes = [2, 32], strides = [1, 1]} : vector<2x96xf32> to vector<2x32xf32>
    %370 = vector.extract_strided_slice %360 {offsets = [0, 32], sizes = [2, 32], strides = [1, 1]} : vector<2x96xf32> to vector<2x32xf32>
    %371 = arith.addf %369, %370 : vector<2x32xf32>
    %372 = arith.negf %371 : vector<2x32xf32>
    %373 = math.exp %372 : vector<2x32xf32>
    %cst_78 = arith.constant 1.000000e+00 : f32
    %374 = vector.broadcast %cst_78 : f32 to vector<2x32xf32>
    %375 = arith.addf %374, %373 : vector<2x32xf32>
    %376 = arith.divf %374, %375 : vector<2x32xf32>
    %377 = vector.extract_strided_slice %328 {offsets = [0, 64], sizes = [2, 32], strides = [1, 1]} : vector<2x96xf32> to vector<2x32xf32>
    %378 = vector.extract_strided_slice %360 {offsets = [0, 64], sizes = [2, 32], strides = [1, 1]} : vector<2x96xf32> to vector<2x32xf32>
    %379 = vector.broadcast %2 : vector<1x32xf32> to vector<2x32xf32>
    %380 = arith.addf %378, %379 : vector<2x32xf32>
    %381 = arith.mulf %368, %380 : vector<2x32xf32>
    %382 = arith.addf %377, %381 : vector<2x32xf32>
    %383 = math.tanh %382 : vector<2x32xf32>
    %cst_79 = arith.constant 1.000000e+00 : f32
    %384 = vector.broadcast %cst_79 : f32 to vector<2x32xf32>
    %385 = arith.subf %384, %376 : vector<2x32xf32>
    %386 = arith.mulf %385, %383 : vector<2x32xf32>
    %387 = arith.mulf %376, %309 : vector<2x32xf32>
    %388 = arith.addf %386, %387 : vector<2x32xf32>
    %389 = arith.truncf %359 : vector<2x32xf32> to vector<2x32xbf16>
    %390 = arith.index_cast %c4_i32 : i32 to index
    %c0_80 = arith.constant 0 : index
    %c0_81 = arith.constant 0 : index
    %391 = vector.load %arg6[%390, %c0_80, %c0_81] : memref<8x2x32xbf16, #tpu.memory_space<vmem>>, vector<1x2x32xbf16>
    %392 = vector.shape_cast %391 : vector<1x2x32xbf16> to vector<2x32xbf16>
    %393 = vector.shape_cast %389 : vector<2x32xbf16> to vector<1x2x32xbf16>
    tpu.vector_store %arg6[%390, %c0_80, %c0_81], %393 {strides = array<i32>} : memref<8x2x32xbf16, #tpu.memory_space<vmem>>, vector<1x2x32xbf16>,
    %394 = arith.truncf %388 : vector<2x32xf32> to vector<2x32xbf16>
    %395 = arith.index_cast %320 : i32 to index
    %c0_82 = arith.constant 0 : index
    %c0_83 = arith.constant 0 : index
    %396 = vector.load %arg7[%395, %c0_82, %c0_83] : memref<8x2x32xbf16, #tpu.memory_space<vmem>>, vector<1x2x32xbf16>
    %397 = vector.shape_cast %396 : vector<1x2x32xbf16> to vector<2x32xbf16>
    %398 = vector.shape_cast %394 : vector<2x32xbf16> to vector<1x2x32xbf16>
    tpu.vector_store %arg7[%395, %c0_82, %c0_83], %398 {strides = array<i32>} : memref<8x2x32xbf16, #tpu.memory_space<vmem>>, vector<1x2x32xbf16>,
    %c5_i32 = arith.constant 5 : i32
    %c7_i32_84 = arith.constant 7 : i32
    %399 = arith.subi %c7_i32_84, %c5_i32 : i32
    %400 = arith.index_cast %c5_i32 : i32 to index
    %c0_85 = arith.constant 0 : index
    %c0_86 = arith.constant 0 : index
    %401 = vector.load %arg1[%400, %c0_85, %c0_86] : memref<8x2x96xbf16, #tpu.memory_space<vmem>>, vector<1x2x96xbf16>
    %402 = vector.shape_cast %401 : vector<1x2x96xbf16> to vector<2x96xbf16>
    %403 = arith.extf %402 : vector<2x96xbf16> to vector<2x96xf32>
    %404 = arith.index_cast %399 : i32 to index
    %c0_87 = arith.constant 0 : index
    %c0_88 = arith.constant 0 : index
    %405 = vector.load %arg2[%404, %c0_87, %c0_88] : memref<8x2x96xbf16, #tpu.memory_space<vmem>>, vector<1x2x96xbf16>
    %406 = vector.shape_cast %405 : vector<1x2x96xbf16> to vector<2x96xbf16>
    %407 = arith.extf %406 : vector<2x96xbf16> to vector<2x96xf32>
    %408 = tpu.concatenate %359, %388 in 1 : vector<2x32xf32>, vector<2x32xf32> -> vector<2x64xf32>
    %cst_89 = arith.constant dense<0.000000e+00> : vector<2x192xf32>
    %409 = tpu.matmul %408, %0, %cst_89 {dimension_numbers = #tpu.dot_dimension_numbers<[1], [0], [0], [1], [0, 0, 1, 1], [], []>} : vector<2x64xf32>, vector<64x192xf32>, vector<2x192xf32> -> vector<2x192xf32>
    %410 = vector.extract_strided_slice %409 {offsets = [0, 0], sizes = [2, 96], strides = [1, 1]} : vector<2x192xf32> to vector<2x96xf32>
    %411 = vector.extract_strided_slice %403 {offsets = [0, 0], sizes = [2, 32], strides = [1, 1]} : vector<2x96xf32> to vector<2x32xf32>
    %412 = vector.extract_strided_slice %410 {offsets = [0, 0], sizes = [2, 32], strides = [1, 1]} : vector<2x96xf32> to vector<2x32xf32>
    %413 = arith.addf %411, %412 : vector<2x32xf32>
    %414 = arith.negf %413 : vector<2x32xf32>
    %415 = math.exp %414 : vector<2x32xf32>
    %cst_90 = arith.constant 1.000000e+00 : f32
    %416 = vector.broadcast %cst_90 : f32 to vector<2x32xf32>
    %417 = arith.addf %416, %415 : vector<2x32xf32>
    %418 = arith.divf %416, %417 : vector<2x32xf32>
    %419 = vector.extract_strided_slice %403 {offsets = [0, 32], sizes = [2, 32], strides = [1, 1]} : vector<2x96xf32> to vector<2x32xf32>
    %420 = vector.extract_strided_slice %410 {offsets = [0, 32], sizes = [2, 32], strides = [1, 1]} : vector<2x96xf32> to vector<2x32xf32>
    %421 = arith.addf %419, %420 : vector<2x32xf32>
    %422 = arith.negf %421 : vector<2x32xf32>
    %423 = math.exp %422 : vector<2x32xf32>
    %cst_91 = arith.constant 1.000000e+00 : f32
    %424 = vector.broadcast %cst_91 : f32 to vector<2x32xf32>
    %425 = arith.addf %424, %423 : vector<2x32xf32>
    %426 = arith.divf %424, %425 : vector<2x32xf32>
    %427 = vector.extract_strided_slice %403 {offsets = [0, 64], sizes = [2, 32], strides = [1, 1]} : vector<2x96xf32> to vector<2x32xf32>
    %428 = vector.extract_strided_slice %410 {offsets = [0, 64], sizes = [2, 32], strides = [1, 1]} : vector<2x96xf32> to vector<2x32xf32>
    %429 = vector.broadcast %1 : vector<1x32xf32> to vector<2x32xf32>
    %430 = arith.addf %428, %429 : vector<2x32xf32>
    %431 = arith.mulf %418, %430 : vector<2x32xf32>
    %432 = arith.addf %427, %431 : vector<2x32xf32>
    %433 = math.tanh %432 : vector<2x32xf32>
    %cst_92 = arith.constant 1.000000e+00 : f32
    %434 = vector.broadcast %cst_92 : f32 to vector<2x32xf32>
    %435 = arith.subf %434, %426 : vector<2x32xf32>
    %436 = arith.mulf %435, %433 : vector<2x32xf32>
    %437 = arith.mulf %426, %359 : vector<2x32xf32>
    %438 = arith.addf %436, %437 : vector<2x32xf32>
    %439 = vector.extract_strided_slice %409 {offsets = [0, 96], sizes = [2, 96], strides = [1, 1]} : vector<2x192xf32> to vector<2x96xf32>
    %440 = vector.extract_strided_slice %407 {offsets = [0, 0], sizes = [2, 32], strides = [1, 1]} : vector<2x96xf32> to vector<2x32xf32>
    %441 = vector.extract_strided_slice %439 {offsets = [0, 0], sizes = [2, 32], strides = [1, 1]} : vector<2x96xf32> to vector<2x32xf32>
    %442 = arith.addf %440, %441 : vector<2x32xf32>
    %443 = arith.negf %442 : vector<2x32xf32>
    %444 = math.exp %443 : vector<2x32xf32>
    %cst_93 = arith.constant 1.000000e+00 : f32
    %445 = vector.broadcast %cst_93 : f32 to vector<2x32xf32>
    %446 = arith.addf %445, %444 : vector<2x32xf32>
    %447 = arith.divf %445, %446 : vector<2x32xf32>
    %448 = vector.extract_strided_slice %407 {offsets = [0, 32], sizes = [2, 32], strides = [1, 1]} : vector<2x96xf32> to vector<2x32xf32>
    %449 = vector.extract_strided_slice %439 {offsets = [0, 32], sizes = [2, 32], strides = [1, 1]} : vector<2x96xf32> to vector<2x32xf32>
    %450 = arith.addf %448, %449 : vector<2x32xf32>
    %451 = arith.negf %450 : vector<2x32xf32>
    %452 = math.exp %451 : vector<2x32xf32>
    %cst_94 = arith.constant 1.000000e+00 : f32
    %453 = vector.broadcast %cst_94 : f32 to vector<2x32xf32>
    %454 = arith.addf %453, %452 : vector<2x32xf32>
    %455 = arith.divf %453, %454 : vector<2x32xf32>
    %456 = vector.extract_strided_slice %407 {offsets = [0, 64], sizes = [2, 32], strides = [1, 1]} : vector<2x96xf32> to vector<2x32xf32>
    %457 = vector.extract_strided_slice %439 {offsets = [0, 64], sizes = [2, 32], strides = [1, 1]} : vector<2x96xf32> to vector<2x32xf32>
    %458 = vector.broadcast %2 : vector<1x32xf32> to vector<2x32xf32>
    %459 = arith.addf %457, %458 : vector<2x32xf32>
    %460 = arith.mulf %447, %459 : vector<2x32xf32>
    %461 = arith.addf %456, %460 : vector<2x32xf32>
    %462 = math.tanh %461 : vector<2x32xf32>
    %cst_95 = arith.constant 1.000000e+00 : f32
    %463 = vector.broadcast %cst_95 : f32 to vector<2x32xf32>
    %464 = arith.subf %463, %455 : vector<2x32xf32>
    %465 = arith.mulf %464, %462 : vector<2x32xf32>
    %466 = arith.mulf %455, %388 : vector<2x32xf32>
    %467 = arith.addf %465, %466 : vector<2x32xf32>
    %468 = arith.truncf %438 : vector<2x32xf32> to vector<2x32xbf16>
    %469 = arith.index_cast %c5_i32 : i32 to index
    %c0_96 = arith.constant 0 : index
    %c0_97 = arith.constant 0 : index
    %470 = vector.load %arg6[%469, %c0_96, %c0_97] : memref<8x2x32xbf16, #tpu.memory_space<vmem>>, vector<1x2x32xbf16>
    %471 = vector.shape_cast %470 : vector<1x2x32xbf16> to vector<2x32xbf16>
    %472 = vector.shape_cast %468 : vector<2x32xbf16> to vector<1x2x32xbf16>
    tpu.vector_store %arg6[%469, %c0_96, %c0_97], %472 {strides = array<i32>} : memref<8x2x32xbf16, #tpu.memory_space<vmem>>, vector<1x2x32xbf16>,
    %473 = arith.truncf %467 : vector<2x32xf32> to vector<2x32xbf16>
    %474 = arith.index_cast %399 : i32 to index
    %c0_98 = arith.constant 0 : index
    %c0_99 = arith.constant 0 : index
    %475 = vector.load %arg7[%474, %c0_98, %c0_99] : memref<8x2x32xbf16, #tpu.memory_space<vmem>>, vector<1x2x32xbf16>
    %476 = vector.shape_cast %475 : vector<1x2x32xbf16> to vector<2x32xbf16>
    %477 = vector.shape_cast %473 : vector<2x32xbf16> to vector<1x2x32xbf16>
    tpu.vector_store %arg7[%474, %c0_98, %c0_99], %477 {strides = array<i32>} : memref<8x2x32xbf16, #tpu.memory_space<vmem>>, vector<1x2x32xbf16>,
    %c6_i32 = arith.constant 6 : i32
    %c7_i32_100 = arith.constant 7 : i32
    %478 = arith.subi %c7_i32_100, %c6_i32 : i32
    %479 = arith.index_cast %c6_i32 : i32 to index
    %c0_101 = arith.constant 0 : index
    %c0_102 = arith.constant 0 : index
    %480 = vector.load %arg1[%479, %c0_101, %c0_102] : memref<8x2x96xbf16, #tpu.memory_space<vmem>>, vector<1x2x96xbf16>
    %481 = vector.shape_cast %480 : vector<1x2x96xbf16> to vector<2x96xbf16>
    %482 = arith.extf %481 : vector<2x96xbf16> to vector<2x96xf32>
    %483 = arith.index_cast %478 : i32 to index
    %c0_103 = arith.constant 0 : index
    %c0_104 = arith.constant 0 : index
    %484 = vector.load %arg2[%483, %c0_103, %c0_104] : memref<8x2x96xbf16, #tpu.memory_space<vmem>>, vector<1x2x96xbf16>
    %485 = vector.shape_cast %484 : vector<1x2x96xbf16> to vector<2x96xbf16>
    %486 = arith.extf %485 : vector<2x96xbf16> to vector<2x96xf32>
    %487 = tpu.concatenate %438, %467 in 1 : vector<2x32xf32>, vector<2x32xf32> -> vector<2x64xf32>
    %cst_105 = arith.constant dense<0.000000e+00> : vector<2x192xf32>
    %488 = tpu.matmul %487, %0, %cst_105 {dimension_numbers = #tpu.dot_dimension_numbers<[1], [0], [0], [1], [0, 0, 1, 1], [], []>} : vector<2x64xf32>, vector<64x192xf32>, vector<2x192xf32> -> vector<2x192xf32>
    %489 = vector.extract_strided_slice %488 {offsets = [0, 0], sizes = [2, 96], strides = [1, 1]} : vector<2x192xf32> to vector<2x96xf32>
    %490 = vector.extract_strided_slice %482 {offsets = [0, 0], sizes = [2, 32], strides = [1, 1]} : vector<2x96xf32> to vector<2x32xf32>
    %491 = vector.extract_strided_slice %489 {offsets = [0, 0], sizes = [2, 32], strides = [1, 1]} : vector<2x96xf32> to vector<2x32xf32>
    %492 = arith.addf %490, %491 : vector<2x32xf32>
    %493 = arith.negf %492 : vector<2x32xf32>
    %494 = math.exp %493 : vector<2x32xf32>
    %cst_106 = arith.constant 1.000000e+00 : f32
    %495 = vector.broadcast %cst_106 : f32 to vector<2x32xf32>
    %496 = arith.addf %495, %494 : vector<2x32xf32>
    %497 = arith.divf %495, %496 : vector<2x32xf32>
    %498 = vector.extract_strided_slice %482 {offsets = [0, 32], sizes = [2, 32], strides = [1, 1]} : vector<2x96xf32> to vector<2x32xf32>
    %499 = vector.extract_strided_slice %489 {offsets = [0, 32], sizes = [2, 32], strides = [1, 1]} : vector<2x96xf32> to vector<2x32xf32>
    %500 = arith.addf %498, %499 : vector<2x32xf32>
    %501 = arith.negf %500 : vector<2x32xf32>
    %502 = math.exp %501 : vector<2x32xf32>
    %cst_107 = arith.constant 1.000000e+00 : f32
    %503 = vector.broadcast %cst_107 : f32 to vector<2x32xf32>
    %504 = arith.addf %503, %502 : vector<2x32xf32>
    %505 = arith.divf %503, %504 : vector<2x32xf32>
    %506 = vector.extract_strided_slice %482 {offsets = [0, 64], sizes = [2, 32], strides = [1, 1]} : vector<2x96xf32> to vector<2x32xf32>
    %507 = vector.extract_strided_slice %489 {offsets = [0, 64], sizes = [2, 32], strides = [1, 1]} : vector<2x96xf32> to vector<2x32xf32>
    %508 = vector.broadcast %1 : vector<1x32xf32> to vector<2x32xf32>
    %509 = arith.addf %507, %508 : vector<2x32xf32>
    %510 = arith.mulf %497, %509 : vector<2x32xf32>
    %511 = arith.addf %506, %510 : vector<2x32xf32>
    %512 = math.tanh %511 : vector<2x32xf32>
    %cst_108 = arith.constant 1.000000e+00 : f32
    %513 = vector.broadcast %cst_108 : f32 to vector<2x32xf32>
    %514 = arith.subf %513, %505 : vector<2x32xf32>
    %515 = arith.mulf %514, %512 : vector<2x32xf32>
    %516 = arith.mulf %505, %438 : vector<2x32xf32>
    %517 = arith.addf %515, %516 : vector<2x32xf32>
    %518 = vector.extract_strided_slice %488 {offsets = [0, 96], sizes = [2, 96], strides = [1, 1]} : vector<2x192xf32> to vector<2x96xf32>
    %519 = vector.extract_strided_slice %486 {offsets = [0, 0], sizes = [2, 32], strides = [1, 1]} : vector<2x96xf32> to vector<2x32xf32>
    %520 = vector.extract_strided_slice %518 {offsets = [0, 0], sizes = [2, 32], strides = [1, 1]} : vector<2x96xf32> to vector<2x32xf32>
    %521 = arith.addf %519, %520 : vector<2x32xf32>
    %522 = arith.negf %521 : vector<2x32xf32>
    %523 = math.exp %522 : vector<2x32xf32>
    %cst_109 = arith.constant 1.000000e+00 : f32
    %524 = vector.broadcast %cst_109 : f32 to vector<2x32xf32>
    %525 = arith.addf %524, %523 : vector<2x32xf32>
    %526 = arith.divf %524, %525 : vector<2x32xf32>
    %527 = vector.extract_strided_slice %486 {offsets = [0, 32], sizes = [2, 32], strides = [1, 1]} : vector<2x96xf32> to vector<2x32xf32>
    %528 = vector.extract_strided_slice %518 {offsets = [0, 32], sizes = [2, 32], strides = [1, 1]} : vector<2x96xf32> to vector<2x32xf32>
    %529 = arith.addf %527, %528 : vector<2x32xf32>
    %530 = arith.negf %529 : vector<2x32xf32>
    %531 = math.exp %530 : vector<2x32xf32>
    %cst_110 = arith.constant 1.000000e+00 : f32
    %532 = vector.broadcast %cst_110 : f32 to vector<2x32xf32>
    %533 = arith.addf %532, %531 : vector<2x32xf32>
    %534 = arith.divf %532, %533 : vector<2x32xf32>
    %535 = vector.extract_strided_slice %486 {offsets = [0, 64], sizes = [2, 32], strides = [1, 1]} : vector<2x96xf32> to vector<2x32xf32>
    %536 = vector.extract_strided_slice %518 {offsets = [0, 64], sizes = [2, 32], strides = [1, 1]} : vector<2x96xf32> to vector<2x32xf32>
    %537 = vector.broadcast %2 : vector<1x32xf32> to vector<2x32xf32>
    %538 = arith.addf %536, %537 : vector<2x32xf32>
    %539 = arith.mulf %526, %538 : vector<2x32xf32>
    %540 = arith.addf %535, %539 : vector<2x32xf32>
    %541 = math.tanh %540 : vector<2x32xf32>
    %cst_111 = arith.constant 1.000000e+00 : f32
    %542 = vector.broadcast %cst_111 : f32 to vector<2x32xf32>
    %543 = arith.subf %542, %534 : vector<2x32xf32>
    %544 = arith.mulf %543, %541 : vector<2x32xf32>
    %545 = arith.mulf %534, %467 : vector<2x32xf32>
    %546 = arith.addf %544, %545 : vector<2x32xf32>
    %547 = arith.truncf %517 : vector<2x32xf32> to vector<2x32xbf16>
    %548 = arith.index_cast %c6_i32 : i32 to index
    %c0_112 = arith.constant 0 : index
    %c0_113 = arith.constant 0 : index
    %549 = vector.load %arg6[%548, %c0_112, %c0_113] : memref<8x2x32xbf16, #tpu.memory_space<vmem>>, vector<1x2x32xbf16>
    %550 = vector.shape_cast %549 : vector<1x2x32xbf16> to vector<2x32xbf16>
    %551 = vector.shape_cast %547 : vector<2x32xbf16> to vector<1x2x32xbf16>
    tpu.vector_store %arg6[%548, %c0_112, %c0_113], %551 {strides = array<i32>} : memref<8x2x32xbf16, #tpu.memory_space<vmem>>, vector<1x2x32xbf16>,
    %552 = arith.truncf %546 : vector<2x32xf32> to vector<2x32xbf16>
    %553 = arith.index_cast %478 : i32 to index
    %c0_114 = arith.constant 0 : index
    %c0_115 = arith.constant 0 : index
    %554 = vector.load %arg7[%553, %c0_114, %c0_115] : memref<8x2x32xbf16, #tpu.memory_space<vmem>>, vector<1x2x32xbf16>
    %555 = vector.shape_cast %554 : vector<1x2x32xbf16> to vector<2x32xbf16>
    %556 = vector.shape_cast %552 : vector<2x32xbf16> to vector<1x2x32xbf16>
    tpu.vector_store %arg7[%553, %c0_114, %c0_115], %556 {strides = array<i32>} : memref<8x2x32xbf16, #tpu.memory_space<vmem>>, vector<1x2x32xbf16>,
    %c7_i32_116 = arith.constant 7 : i32
    %c7_i32_117 = arith.constant 7 : i32
    %557 = arith.subi %c7_i32_117, %c7_i32_116 : i32
    %558 = arith.index_cast %c7_i32_116 : i32 to index
    %c0_118 = arith.constant 0 : index
    %c0_119 = arith.constant 0 : index
    %559 = vector.load %arg1[%558, %c0_118, %c0_119] : memref<8x2x96xbf16, #tpu.memory_space<vmem>>, vector<1x2x96xbf16>
    %560 = vector.shape_cast %559 : vector<1x2x96xbf16> to vector<2x96xbf16>
    %561 = arith.extf %560 : vector<2x96xbf16> to vector<2x96xf32>
    %562 = arith.index_cast %557 : i32 to index
    %c0_120 = arith.constant 0 : index
    %c0_121 = arith.constant 0 : index
    %563 = vector.load %arg2[%562, %c0_120, %c0_121] : memref<8x2x96xbf16, #tpu.memory_space<vmem>>, vector<1x2x96xbf16>
    %564 = vector.shape_cast %563 : vector<1x2x96xbf16> to vector<2x96xbf16>
    %565 = arith.extf %564 : vector<2x96xbf16> to vector<2x96xf32>
    %566 = tpu.concatenate %517, %546 in 1 : vector<2x32xf32>, vector<2x32xf32> -> vector<2x64xf32>
    %cst_122 = arith.constant dense<0.000000e+00> : vector<2x192xf32>
    %567 = tpu.matmul %566, %0, %cst_122 {dimension_numbers = #tpu.dot_dimension_numbers<[1], [0], [0], [1], [0, 0, 1, 1], [], []>} : vector<2x64xf32>, vector<64x192xf32>, vector<2x192xf32> -> vector<2x192xf32>
    %568 = vector.extract_strided_slice %567 {offsets = [0, 0], sizes = [2, 96], strides = [1, 1]} : vector<2x192xf32> to vector<2x96xf32>
    %569 = vector.extract_strided_slice %561 {offsets = [0, 0], sizes = [2, 32], strides = [1, 1]} : vector<2x96xf32> to vector<2x32xf32>
    %570 = vector.extract_strided_slice %568 {offsets = [0, 0], sizes = [2, 32], strides = [1, 1]} : vector<2x96xf32> to vector<2x32xf32>
    %571 = arith.addf %569, %570 : vector<2x32xf32>
    %572 = arith.negf %571 : vector<2x32xf32>
    %573 = math.exp %572 : vector<2x32xf32>
    %cst_123 = arith.constant 1.000000e+00 : f32
    %574 = vector.broadcast %cst_123 : f32 to vector<2x32xf32>
    %575 = arith.addf %574, %573 : vector<2x32xf32>
    %576 = arith.divf %574, %575 : vector<2x32xf32>
    %577 = vector.extract_strided_slice %561 {offsets = [0, 32], sizes = [2, 32], strides = [1, 1]} : vector<2x96xf32> to vector<2x32xf32>
    %578 = vector.extract_strided_slice %568 {offsets = [0, 32], sizes = [2, 32], strides = [1, 1]} : vector<2x96xf32> to vector<2x32xf32>
    %579 = arith.addf %577, %578 : vector<2x32xf32>
    %580 = arith.negf %579 : vector<2x32xf32>
    %581 = math.exp %580 : vector<2x32xf32>
    %cst_124 = arith.constant 1.000000e+00 : f32
    %582 = vector.broadcast %cst_124 : f32 to vector<2x32xf32>
    %583 = arith.addf %582, %581 : vector<2x32xf32>
    %584 = arith.divf %582, %583 : vector<2x32xf32>
    %585 = vector.extract_strided_slice %561 {offsets = [0, 64], sizes = [2, 32], strides = [1, 1]} : vector<2x96xf32> to vector<2x32xf32>
    %586 = vector.extract_strided_slice %568 {offsets = [0, 64], sizes = [2, 32], strides = [1, 1]} : vector<2x96xf32> to vector<2x32xf32>
    %587 = vector.broadcast %1 : vector<1x32xf32> to vector<2x32xf32>
    %588 = arith.addf %586, %587 : vector<2x32xf32>
    %589 = arith.mulf %576, %588 : vector<2x32xf32>
    %590 = arith.addf %585, %589 : vector<2x32xf32>
    %591 = math.tanh %590 : vector<2x32xf32>
    %cst_125 = arith.constant 1.000000e+00 : f32
    %592 = vector.broadcast %cst_125 : f32 to vector<2x32xf32>
    %593 = arith.subf %592, %584 : vector<2x32xf32>
    %594 = arith.mulf %593, %591 : vector<2x32xf32>
    %595 = arith.mulf %584, %517 : vector<2x32xf32>
    %596 = arith.addf %594, %595 : vector<2x32xf32>
    %597 = vector.extract_strided_slice %567 {offsets = [0, 96], sizes = [2, 96], strides = [1, 1]} : vector<2x192xf32> to vector<2x96xf32>
    %598 = vector.extract_strided_slice %565 {offsets = [0, 0], sizes = [2, 32], strides = [1, 1]} : vector<2x96xf32> to vector<2x32xf32>
    %599 = vector.extract_strided_slice %597 {offsets = [0, 0], sizes = [2, 32], strides = [1, 1]} : vector<2x96xf32> to vector<2x32xf32>
    %600 = arith.addf %598, %599 : vector<2x32xf32>
    %601 = arith.negf %600 : vector<2x32xf32>
    %602 = math.exp %601 : vector<2x32xf32>
    %cst_126 = arith.constant 1.000000e+00 : f32
    %603 = vector.broadcast %cst_126 : f32 to vector<2x32xf32>
    %604 = arith.addf %603, %602 : vector<2x32xf32>
    %605 = arith.divf %603, %604 : vector<2x32xf32>
    %606 = vector.extract_strided_slice %565 {offsets = [0, 32], sizes = [2, 32], strides = [1, 1]} : vector<2x96xf32> to vector<2x32xf32>
    %607 = vector.extract_strided_slice %597 {offsets = [0, 32], sizes = [2, 32], strides = [1, 1]} : vector<2x96xf32> to vector<2x32xf32>
    %608 = arith.addf %606, %607 : vector<2x32xf32>
    %609 = arith.negf %608 : vector<2x32xf32>
    %610 = math.exp %609 : vector<2x32xf32>
    %cst_127 = arith.constant 1.000000e+00 : f32
    %611 = vector.broadcast %cst_127 : f32 to vector<2x32xf32>
    %612 = arith.addf %611, %610 : vector<2x32xf32>
    %613 = arith.divf %611, %612 : vector<2x32xf32>
    %614 = vector.extract_strided_slice %565 {offsets = [0, 64], sizes = [2, 32], strides = [1, 1]} : vector<2x96xf32> to vector<2x32xf32>
    %615 = vector.extract_strided_slice %597 {offsets = [0, 64], sizes = [2, 32], strides = [1, 1]} : vector<2x96xf32> to vector<2x32xf32>
    %616 = vector.broadcast %2 : vector<1x32xf32> to vector<2x32xf32>
    %617 = arith.addf %615, %616 : vector<2x32xf32>
    %618 = arith.mulf %605, %617 : vector<2x32xf32>
    %619 = arith.addf %614, %618 : vector<2x32xf32>
    %620 = math.tanh %619 : vector<2x32xf32>
    %cst_128 = arith.constant 1.000000e+00 : f32
    %621 = vector.broadcast %cst_128 : f32 to vector<2x32xf32>
    %622 = arith.subf %621, %613 : vector<2x32xf32>
    %623 = arith.mulf %622, %620 : vector<2x32xf32>
    %624 = arith.mulf %613, %546 : vector<2x32xf32>
    %625 = arith.addf %623, %624 : vector<2x32xf32>
    %626 = arith.truncf %596 : vector<2x32xf32> to vector<2x32xbf16>
    %627 = arith.index_cast %c7_i32_116 : i32 to index
    %c0_129 = arith.constant 0 : index
    %c0_130 = arith.constant 0 : index
    %628 = vector.load %arg6[%627, %c0_129, %c0_130] : memref<8x2x32xbf16, #tpu.memory_space<vmem>>, vector<1x2x32xbf16>
    %629 = vector.shape_cast %628 : vector<1x2x32xbf16> to vector<2x32xbf16>
    %630 = vector.shape_cast %626 : vector<2x32xbf16> to vector<1x2x32xbf16>
    tpu.vector_store %arg6[%627, %c0_129, %c0_130], %630 {strides = array<i32>} : memref<8x2x32xbf16, #tpu.memory_space<vmem>>, vector<1x2x32xbf16>,
    %631 = arith.truncf %625 : vector<2x32xf32> to vector<2x32xbf16>
    %632 = arith.index_cast %557 : i32 to index
    %c0_131 = arith.constant 0 : index
    %c0_132 = arith.constant 0 : index
    %633 = vector.load %arg7[%632, %c0_131, %c0_132] : memref<8x2x32xbf16, #tpu.memory_space<vmem>>, vector<1x2x32xbf16>
    %634 = vector.shape_cast %633 : vector<1x2x32xbf16> to vector<2x32xbf16>
    %635 = vector.shape_cast %631 : vector<2x32xbf16> to vector<1x2x32xbf16>
    tpu.vector_store %arg7[%632, %c0_131, %c0_132], %635 {strides = array<i32>} : memref<8x2x32xbf16, #tpu.memory_space<vmem>>, vector<1x2x32xbf16>,
    %c8_i32 = arith.constant 8 : i32
    %c0_133 = arith.constant 0 : index
    %c0_134 = arith.constant 0 : index
    %c0_135 = arith.constant 0 : index
    %636 = vector.load %arg8[%c0_133, %c0_134, %c0_135] : memref<2x2x32xf32, #tpu.memory_space<vmem>>, vector<1x2x32xf32>
    %637 = vector.shape_cast %636 : vector<1x2x32xf32> to vector<2x32xf32>
    %638 = vector.shape_cast %596 : vector<2x32xf32> to vector<1x2x32xf32>
    tpu.vector_store %arg8[%c0_133, %c0_134, %c0_135], %638 {strides = array<i32>} : memref<2x2x32xf32, #tpu.memory_space<vmem>>, vector<1x2x32xf32>,
    %c1 = arith.constant 1 : index
    %c0_136 = arith.constant 0 : index
    %c0_137 = arith.constant 0 : index
    %639 = vector.load %arg8[%c1, %c0_136, %c0_137] : memref<2x2x32xf32, #tpu.memory_space<vmem>>, vector<1x2x32xf32>
    %640 = vector.shape_cast %639 : vector<1x2x32xf32> to vector<2x32xf32>
    %641 = vector.shape_cast %625 : vector<2x32xf32> to vector<1x2x32xf32>
    tpu.vector_store %arg8[%c1, %c0_136, %c0_137], %641 {strides = array<i32>} : memref<2x2x32xf32, #tpu.memory_space<vmem>>, vector<1x2x32xf32>,
    return
  }
  func.func @transform_0(%arg0: i32) -> (i32, i32, i32) {
    %c0_i32 = arith.constant 0 : i32
    %c0_i32_0 = arith.constant 0 : i32
    %c0_i32_1 = arith.constant 0 : i32
    return %c0_i32, %arg0, %c0_i32_0 : i32, i32, i32
  }
  func.func @transform_1(%arg0: i32) -> (i32, i32, i32) {
    %c0_i32 = arith.constant 0 : i32
    %c0_i32_0 = arith.constant 0 : i32
    %c0_i32_1 = arith.constant 0 : i32
    return %c0_i32, %arg0, %c0_i32_0 : i32, i32, i32
  }
  func.func @transform_2(%arg0: i32) -> (i32, i32) {
    %c0_i32 = arith.constant 0 : i32
    %c0_i32_0 = arith.constant 0 : i32
    %c0_i32_1 = arith.constant 0 : i32
    return %c0_i32, %c0_i32_0 : i32, i32
  }
  func.func @transform_3(%arg0: i32) -> (i32, i32) {
    %c0_i32 = arith.constant 0 : i32
    %c0_i32_0 = arith.constant 0 : i32
    %c0_i32_1 = arith.constant 0 : i32
    return %c0_i32, %c0_i32_0 : i32, i32
  }
  func.func @transform_4(%arg0: i32) -> (i32, i32) {
    %c0_i32 = arith.constant 0 : i32
    %c0_i32_0 = arith.constant 0 : i32
    %c0_i32_1 = arith.constant 0 : i32
    return %c0_i32, %c0_i32_0 : i32, i32
  }
  func.func @transform_5(%arg0: i32) -> (i32, i32, i32) {
    %c0_i32 = arith.constant 0 : i32
    %c0_i32_0 = arith.constant 0 : i32
    %c0_i32_1 = arith.constant 0 : i32
    return %c0_i32, %arg0, %c0_i32_0 : i32, i32, i32
  }
  func.func @transform_6(%arg0: i32) -> (i32, i32, i32) {
    %c0_i32 = arith.constant 0 : i32
    %c0_i32_0 = arith.constant 0 : i32
    %c0_i32_1 = arith.constant 0 : i32
    return %c0_i32, %arg0, %c0_i32_0 : i32, i32, i32
  }
  func.func @transform_7(%arg0: i32) -> (i32, i32, i32) {
    %c0_i32 = arith.constant 0 : i32
    %c0_i32_0 = arith.constant 0 : i32
    %c0_i32_1 = arith.constant 0 : i32
    return %c0_i32, %arg0, %c0_i32_0 : i32, i32, i32
  }
}

module attributes {stable_mosaic.version = 11 : i64} {
  func.func @_bigru_recurrent_kernel(%arg0: i32, %arg1: memref<8x2x96xbf16, #tpu.memory_space<vmem>>, %arg2: memref<8x2x96xbf16, #tpu.memory_space<vmem>>, %arg3: memref<64x192xf32, #tpu.memory_space<vmem>>, %arg4: memref<1x32xf32, #tpu.memory_space<vmem>>, %arg5: memref<1x32xf32, #tpu.memory_space<vmem>>, %arg6: memref<8x2x32xbf16, #tpu.memory_space<vmem>>, %arg7: memref<8x2x32xbf16, #tpu.memory_space<vmem>>, %arg8: memref<2x2x32xf32, #tpu.memory_space<vmem>>) attributes {dimension_semantics = [#tpu.dimension_semantics<parallel>], iteration_bounds = array<i64: 1>, scalar_prefetch = 0 : i64, scratch_operands = 0 : i64, tpu.core_type = #tpu.core_type<tc>, window_params = [{transform_indices = @transform_0, window_bounds = array<i64: 8, 2, 96>}, {transform_indices = @transform_1, window_bounds = array<i64: 8, 2, 96>}, {pipeline_mode = #tpu.pipeline_mode<synchronous>, transform_indices = @transform_2, window_bounds = array<i64: 64, 192>}, {pipeline_mode = #tpu.pipeline_mode<synchronous>, transform_indices = @transform_3, window_bounds = array<i64: 1, 32>}, {pipeline_mode = #tpu.pipeline_mode<synchronous>, transform_indices = @transform_4, window_bounds = array<i64: 1, 32>}, {transform_indices = @transform_5, window_bounds = array<i64: 8, 2, 32>}, {transform_indices = @transform_6, window_bounds = array<i64: 8, 2, 32>}, {transform_indices = @transform_7, window_bounds = array<i64: 2, 2, 32>}]} {
    %c0 = arith.constant 0 : index
    %c0_0 = arith.constant 0 : index
    %0 = vector.load %arg3[%c0, %c0_0] : memref<64x192xf32, #tpu.memory_space<vmem>>, vector<64x192xf32>
    %c0_1 = arith.constant 0 : index
    %c0_2 = arith.constant 0 : index
    %1 = vector.load %arg4[%c0_1, %c0_2] : memref<1x32xf32, #tpu.memory_space<vmem>>, vector<1x32xf32>
    %c0_3 = arith.constant 0 : index
    %c0_4 = arith.constant 0 : index
    %2 = vector.load %arg5[%c0_3, %c0_4] : memref<1x32xf32, #tpu.memory_space<vmem>>, vector<1x32xf32>
    %cst = arith.constant 0.000000e+00 : f32
    %3 = vector.broadcast %cst : f32 to vector<2x32xf32>
    %c0_i32 = arith.constant 0 : i32
    %c7_i32 = arith.constant 7 : i32
    %4 = arith.subi %c7_i32, %c0_i32 : i32
    %5 = arith.index_cast %c0_i32 : i32 to index
    %c0_5 = arith.constant 0 : index
    %c0_6 = arith.constant 0 : index
    %6 = vector.load %arg1[%5, %c0_5, %c0_6] : memref<8x2x96xbf16, #tpu.memory_space<vmem>>, vector<1x2x96xbf16>
    %7 = vector.shape_cast %6 : vector<1x2x96xbf16> to vector<2x96xbf16>
    %8 = arith.extf %7 : vector<2x96xbf16> to vector<2x96xf32>
    %9 = arith.index_cast %4 : i32 to index
    %c0_7 = arith.constant 0 : index
    %c0_8 = arith.constant 0 : index
    %10 = vector.load %arg2[%9, %c0_7, %c0_8] : memref<8x2x96xbf16, #tpu.memory_space<vmem>>, vector<1x2x96xbf16>
    %11 = vector.shape_cast %10 : vector<1x2x96xbf16> to vector<2x96xbf16>
    %12 = arith.extf %11 : vector<2x96xbf16> to vector<2x96xf32>
    %13 = tpu.concatenate %3, %3 in 1 : vector<2x32xf32>, vector<2x32xf32> -> vector<2x64xf32>
    %cst_9 = arith.constant dense<0.000000e+00> : vector<2x192xf32>
    %14 = tpu.matmul %13, %0, %cst_9 {dimension_numbers = #tpu.dot_dimension_numbers<[1], [0], [0], [1], [0, 0, 1, 1], [], []>} : vector<2x64xf32>, vector<64x192xf32>, vector<2x192xf32> -> vector<2x192xf32>
    %15 = vector.extract_strided_slice %14 {offsets = [0, 0], sizes = [2, 96], strides = [1, 1]} : vector<2x192xf32> to vector<2x96xf32>
    %16 = vector.extract_strided_slice %8 {offsets = [0, 0], sizes = [2, 32], strides = [1, 1]} : vector<2x96xf32> to vector<2x32xf32>
    %17 = vector.extract_strided_slice %15 {offsets = [0, 0], sizes = [2, 32], strides = [1, 1]} : vector<2x96xf32> to vector<2x32xf32>
    %18 = arith.addf %16, %17 : vector<2x32xf32>
    %19 = arith.negf %18 : vector<2x32xf32>
    %20 = math.exp %19 : vector<2x32xf32>
    %cst_10 = arith.constant 1.000000e+00 : f32
    %21 = vector.broadcast %cst_10 : f32 to vector<2x32xf32>
    %22 = arith.addf %21, %20 : vector<2x32xf32>
    %23 = arith.divf %21, %22 : vector<2x32xf32>
    %24 = vector.extract_strided_slice %8 {offsets = [0, 32], sizes = [2, 32], strides = [1, 1]} : vector<2x96xf32> to vector<2x32xf32>
    %25 = vector.extract_strided_slice %15 {offsets = [0, 32], sizes = [2, 32], strides = [1, 1]} : vector<2x96xf32> to vector<2x32xf32>
    %26 = arith.addf %24, %25 : vector<2x32xf32>
    %27 = arith.negf %26 : vector<2x32xf32>
    %28 = math.exp %27 : vector<2x32xf32>
    %cst_11 = arith.constant 1.000000e+00 : f32
    %29 = vector.broadcast %cst_11 : f32 to vector<2x32xf32>
    %30 = arith.addf %29, %28 : vector<2x32xf32>
    %31 = arith.divf %29, %30 : vector<2x32xf32>
    %32 = vector.extract_strided_slice %8 {offsets = [0, 64], sizes = [2, 32], strides = [1, 1]} : vector<2x96xf32> to vector<2x32xf32>
    %33 = vector.extract_strided_slice %15 {offsets = [0, 64], sizes = [2, 32], strides = [1, 1]} : vector<2x96xf32> to vector<2x32xf32>
    %34 = vector.broadcast %1 : vector<1x32xf32> to vector<2x32xf32>
    %35 = arith.addf %33, %34 : vector<2x32xf32>
    %36 = arith.mulf %23, %35 : vector<2x32xf32>
    %37 = arith.addf %32, %36 : vector<2x32xf32>
    %38 = math.tanh %37 : vector<2x32xf32>
    %cst_12 = arith.constant 1.000000e+00 : f32
    %39 = vector.broadcast %cst_12 : f32 to vector<2x32xf32>
    %40 = arith.subf %39, %31 : vector<2x32xf32>
    %41 = arith.mulf %40, %38 : vector<2x32xf32>
    %42 = arith.mulf %31, %3 : vector<2x32xf32>
    %43 = arith.addf %41, %42 : vector<2x32xf32>
    %44 = vector.extract_strided_slice %14 {offsets = [0, 96], sizes = [2, 96], strides = [1, 1]} : vector<2x192xf32> to vector<2x96xf32>
    %45 = vector.extract_strided_slice %12 {offsets = [0, 0], sizes = [2, 32], strides = [1, 1]} : vector<2x96xf32> to vector<2x32xf32>
    %46 = vector.extract_strided_slice %44 {offsets = [0, 0], sizes = [2, 32], strides = [1, 1]} : vector<2x96xf32> to vector<2x32xf32>
    %47 = arith.addf %45, %46 : vector<2x32xf32>
    %48 = arith.negf %47 : vector<2x32xf32>
    %49 = math.exp %48 : vector<2x32xf32>
    %cst_13 = arith.constant 1.000000e+00 : f32
    %50 = vector.broadcast %cst_13 : f32 to vector<2x32xf32>
    %51 = arith.addf %50, %49 : vector<2x32xf32>
    %52 = arith.divf %50, %51 : vector<2x32xf32>
    %53 = vector.extract_strided_slice %12 {offsets = [0, 32], sizes = [2, 32], strides = [1, 1]} : vector<2x96xf32> to vector<2x32xf32>
    %54 = vector.extract_strided_slice %44 {offsets = [0, 32], sizes = [2, 32], strides = [1, 1]} : vector<2x96xf32> to vector<2x32xf32>
    %55 = arith.addf %53, %54 : vector<2x32xf32>
    %56 = arith.negf %55 : vector<2x32xf32>
    %57 = math.exp %56 : vector<2x32xf32>
    %cst_14 = arith.constant 1.000000e+00 : f32
    %58 = vector.broadcast %cst_14 : f32 to vector<2x32xf32>
    %59 = arith.addf %58, %57 : vector<2x32xf32>
    %60 = arith.divf %58, %59 : vector<2x32xf32>
    %61 = vector.extract_strided_slice %12 {offsets = [0, 64], sizes = [2, 32], strides = [1, 1]} : vector<2x96xf32> to vector<2x32xf32>
    %62 = vector.extract_strided_slice %44 {offsets = [0, 64], sizes = [2, 32], strides = [1, 1]} : vector<2x96xf32> to vector<2x32xf32>
    %63 = vector.broadcast %2 : vector<1x32xf32> to vector<2x32xf32>
    %64 = arith.addf %62, %63 : vector<2x32xf32>
    %65 = arith.mulf %52, %64 : vector<2x32xf32>
    %66 = arith.addf %61, %65 : vector<2x32xf32>
    %67 = math.tanh %66 : vector<2x32xf32>
    %cst_15 = arith.constant 1.000000e+00 : f32
    %68 = vector.broadcast %cst_15 : f32 to vector<2x32xf32>
    %69 = arith.subf %68, %60 : vector<2x32xf32>
    %70 = arith.mulf %69, %67 : vector<2x32xf32>
    %71 = arith.mulf %60, %3 : vector<2x32xf32>
    %72 = arith.addf %70, %71 : vector<2x32xf32>
    %73 = arith.truncf %43 : vector<2x32xf32> to vector<2x32xbf16>
    %74 = arith.index_cast %c0_i32 : i32 to index
    %c0_16 = arith.constant 0 : index
    %c0_17 = arith.constant 0 : index
    %75 = vector.load %arg6[%74, %c0_16, %c0_17] : memref<8x2x32xbf16, #tpu.memory_space<vmem>>, vector<1x2x32xbf16>
    %76 = vector.shape_cast %75 : vector<1x2x32xbf16> to vector<2x32xbf16>
    %77 = vector.shape_cast %73 : vector<2x32xbf16> to vector<1x2x32xbf16>
    tpu.vector_store %arg6[%74, %c0_16, %c0_17], %77 {strides = array<i32>} : memref<8x2x32xbf16, #tpu.memory_space<vmem>>, vector<1x2x32xbf16>,
    %78 = arith.truncf %72 : vector<2x32xf32> to vector<2x32xbf16>
    %79 = arith.index_cast %4 : i32 to index
    %c0_18 = arith.constant 0 : index
    %c0_19 = arith.constant 0 : index
    %80 = vector.load %arg7[%79, %c0_18, %c0_19] : memref<8x2x32xbf16, #tpu.memory_space<vmem>>, vector<1x2x32xbf16>
    %81 = vector.shape_cast %80 : vector<1x2x32xbf16> to vector<2x32xbf16>
    %82 = vector.shape_cast %78 : vector<2x32xbf16> to vector<1x2x32xbf16>
    tpu.vector_store %arg7[%79, %c0_18, %c0_19], %82 {strides = array<i32>} : memref<8x2x32xbf16, #tpu.memory_space<vmem>>, vector<1x2x32xbf16>,
    %c1_i32 = arith.constant 1 : i32
    %c7_i32_20 = arith.constant 7 : i32
    %83 = arith.subi %c7_i32_20, %c1_i32 : i32
    %84 = arith.index_cast %c1_i32 : i32 to index
    %c0_21 = arith.constant 0 : index
    %c0_22 = arith.constant 0 : index
    %85 = vector.load %arg1[%84, %c0_21, %c0_22] : memref<8x2x96xbf16, #tpu.memory_space<vmem>>, vector<1x2x96xbf16>
    %86 = vector.shape_cast %85 : vector<1x2x96xbf16> to vector<2x96xbf16>
    %87 = arith.extf %86 : vector<2x96xbf16> to vector<2x96xf32>
    %88 = arith.index_cast %83 : i32 to index
    %c0_23 = arith.constant 0 : index
    %c0_24 = arith.constant 0 : index
    %89 = vector.load %arg2[%88, %c0_23, %c0_24] : memref<8x2x96xbf16, #tpu.memory_space<vmem>>, vector<1x2x96xbf16>
    %90 = vector.shape_cast %89 : vector<1x2x96xbf16> to vector<2x96xbf16>
    %91 = arith.extf %90 : vector<2x96xbf16> to vector<2x96xf32>
    %92 = tpu.concatenate %43, %72 in 1 : vector<2x32xf32>, vector<2x32xf32> -> vector<2x64xf32>
    %cst_25 = arith.constant dense<0.000000e+00> : vector<2x192xf32>
    %93 = tpu.matmul %92, %0, %cst_25 {dimension_numbers = #tpu.dot_dimension_numbers<[1], [0], [0], [1], [0, 0, 1, 1], [], []>} : vector<2x64xf32>, vector<64x192xf32>, vector<2x192xf32> -> vector<2x192xf32>
    %94 = vector.extract_strided_slice %93 {offsets = [0, 0], sizes = [2, 96], strides = [1, 1]} : vector<2x192xf32> to vector<2x96xf32>
    %95 = vector.extract_strided_slice %87 {offsets = [0, 0], sizes = [2, 32], strides = [1, 1]} : vector<2x96xf32> to vector<2x32xf32>
    %96 = vector.extract_strided_slice %94 {offsets = [0, 0], sizes = [2, 32], strides = [1, 1]} : vector<2x96xf32> to vector<2x32xf32>
    %97 = arith.addf %95, %96 : vector<2x32xf32>
    %98 = arith.negf %97 : vector<2x32xf32>
    %99 = math.exp %98 : vector<2x32xf32>
    %cst_26 = arith.constant 1.000000e+00 : f32
    %100 = vector.broadcast %cst_26 : f32 to vector<2x32xf32>
    %101 = arith.addf %100, %99 : vector<2x32xf32>
    %102 = arith.divf %100, %101 : vector<2x32xf32>
    %103 = vector.extract_strided_slice %87 {offsets = [0, 32], sizes = [2, 32], strides = [1, 1]} : vector<2x96xf32> to vector<2x32xf32>
    %104 = vector.extract_strided_slice %94 {offsets = [0, 32], sizes = [2, 32], strides = [1, 1]} : vector<2x96xf32> to vector<2x32xf32>
    %105 = arith.addf %103, %104 : vector<2x32xf32>
    %106 = arith.negf %105 : vector<2x32xf32>
    %107 = math.exp %106 : vector<2x32xf32>
    %cst_27 = arith.constant 1.000000e+00 : f32
    %108 = vector.broadcast %cst_27 : f32 to vector<2x32xf32>
    %109 = arith.addf %108, %107 : vector<2x32xf32>
    %110 = arith.divf %108, %109 : vector<2x32xf32>
    %111 = vector.extract_strided_slice %87 {offsets = [0, 64], sizes = [2, 32], strides = [1, 1]} : vector<2x96xf32> to vector<2x32xf32>
    %112 = vector.extract_strided_slice %94 {offsets = [0, 64], sizes = [2, 32], strides = [1, 1]} : vector<2x96xf32> to vector<2x32xf32>
    %113 = vector.broadcast %1 : vector<1x32xf32> to vector<2x32xf32>
    %114 = arith.addf %112, %113 : vector<2x32xf32>
    %115 = arith.mulf %102, %114 : vector<2x32xf32>
    %116 = arith.addf %111, %115 : vector<2x32xf32>
    %117 = math.tanh %116 : vector<2x32xf32>
    %cst_28 = arith.constant 1.000000e+00 : f32
    %118 = vector.broadcast %cst_28 : f32 to vector<2x32xf32>
    %119 = arith.subf %118, %110 : vector<2x32xf32>
    %120 = arith.mulf %119, %117 : vector<2x32xf32>
    %121 = arith.mulf %110, %43 : vector<2x32xf32>
    %122 = arith.addf %120, %121 : vector<2x32xf32>
    %123 = vector.extract_strided_slice %93 {offsets = [0, 96], sizes = [2, 96], strides = [1, 1]} : vector<2x192xf32> to vector<2x96xf32>
    %124 = vector.extract_strided_slice %91 {offsets = [0, 0], sizes = [2, 32], strides = [1, 1]} : vector<2x96xf32> to vector<2x32xf32>
    %125 = vector.extract_strided_slice %123 {offsets = [0, 0], sizes = [2, 32], strides = [1, 1]} : vector<2x96xf32> to vector<2x32xf32>
    %126 = arith.addf %124, %125 : vector<2x32xf32>
    %127 = arith.negf %126 : vector<2x32xf32>
    %128 = math.exp %127 : vector<2x32xf32>
    %cst_29 = arith.constant 1.000000e+00 : f32
    %129 = vector.broadcast %cst_29 : f32 to vector<2x32xf32>
    %130 = arith.addf %129, %128 : vector<2x32xf32>
    %131 = arith.divf %129, %130 : vector<2x32xf32>
    %132 = vector.extract_strided_slice %91 {offsets = [0, 32], sizes = [2, 32], strides = [1, 1]} : vector<2x96xf32> to vector<2x32xf32>
    %133 = vector.extract_strided_slice %123 {offsets = [0, 32], sizes = [2, 32], strides = [1, 1]} : vector<2x96xf32> to vector<2x32xf32>
    %134 = arith.addf %132, %133 : vector<2x32xf32>
    %135 = arith.negf %134 : vector<2x32xf32>
    %136 = math.exp %135 : vector<2x32xf32>
    %cst_30 = arith.constant 1.000000e+00 : f32
    %137 = vector.broadcast %cst_30 : f32 to vector<2x32xf32>
    %138 = arith.addf %137, %136 : vector<2x32xf32>
    %139 = arith.divf %137, %138 : vector<2x32xf32>
    %140 = vector.extract_strided_slice %91 {offsets = [0, 64], sizes = [2, 32], strides = [1, 1]} : vector<2x96xf32> to vector<2x32xf32>
    %141 = vector.extract_strided_slice %123 {offsets = [0, 64], sizes = [2, 32], strides = [1, 1]} : vector<2x96xf32> to vector<2x32xf32>
    %142 = vector.broadcast %2 : vector<1x32xf32> to vector<2x32xf32>
    %143 = arith.addf %141, %142 : vector<2x32xf32>
    %144 = arith.mulf %131, %143 : vector<2x32xf32>
    %145 = arith.addf %140, %144 : vector<2x32xf32>
    %146 = math.tanh %145 : vector<2x32xf32>
    %cst_31 = arith.constant 1.000000e+00 : f32
    %147 = vector.broadcast %cst_31 : f32 to vector<2x32xf32>
    %148 = arith.subf %147, %139 : vector<2x32xf32>
    %149 = arith.mulf %148, %146 : vector<2x32xf32>
    %150 = arith.mulf %139, %72 : vector<2x32xf32>
    %151 = arith.addf %149, %150 : vector<2x32xf32>
    %152 = arith.truncf %122 : vector<2x32xf32> to vector<2x32xbf16>
    %153 = arith.index_cast %c1_i32 : i32 to index
    %c0_32 = arith.constant 0 : index
    %c0_33 = arith.constant 0 : index
    %154 = vector.load %arg6[%153, %c0_32, %c0_33] : memref<8x2x32xbf16, #tpu.memory_space<vmem>>, vector<1x2x32xbf16>
    %155 = vector.shape_cast %154 : vector<1x2x32xbf16> to vector<2x32xbf16>
    %156 = vector.shape_cast %152 : vector<2x32xbf16> to vector<1x2x32xbf16>
    tpu.vector_store %arg6[%153, %c0_32, %c0_33], %156 {strides = array<i32>} : memref<8x2x32xbf16, #tpu.memory_space<vmem>>, vector<1x2x32xbf16>,
    %157 = arith.truncf %151 : vector<2x32xf32> to vector<2x32xbf16>
    %158 = arith.index_cast %83 : i32 to index
    %c0_34 = arith.constant 0 : index
    %c0_35 = arith.constant 0 : index
    %159 = vector.load %arg7[%158, %c0_34, %c0_35] : memref<8x2x32xbf16, #tpu.memory_space<vmem>>, vector<1x2x32xbf16>
    %160 = vector.shape_cast %159 : vector<1x2x32xbf16> to vector<2x32xbf16>
    %161 = vector.shape_cast %157 : vector<2x32xbf16> to vector<1x2x32xbf16>
    tpu.vector_store %arg7[%158, %c0_34, %c0_35], %161 {strides = array<i32>} : memref<8x2x32xbf16, #tpu.memory_space<vmem>>, vector<1x2x32xbf16>,
    %c2_i32 = arith.constant 2 : i32
    %c7_i32_36 = arith.constant 7 : i32
    %162 = arith.subi %c7_i32_36, %c2_i32 : i32
    %163 = arith.index_cast %c2_i32 : i32 to index
    %c0_37 = arith.constant 0 : index
    %c0_38 = arith.constant 0 : index
    %164 = vector.load %arg1[%163, %c0_37, %c0_38] : memref<8x2x96xbf16, #tpu.memory_space<vmem>>, vector<1x2x96xbf16>
    %165 = vector.shape_cast %164 : vector<1x2x96xbf16> to vector<2x96xbf16>
    %166 = arith.extf %165 : vector<2x96xbf16> to vector<2x96xf32>
    %167 = arith.index_cast %162 : i32 to index
    %c0_39 = arith.constant 0 : index
    %c0_40 = arith.constant 0 : index
    %168 = vector.load %arg2[%167, %c0_39, %c0_40] : memref<8x2x96xbf16, #tpu.memory_space<vmem>>, vector<1x2x96xbf16>
    %169 = vector.shape_cast %168 : vector<1x2x96xbf16> to vector<2x96xbf16>
    %170 = arith.extf %169 : vector<2x96xbf16> to vector<2x96xf32>
    %171 = tpu.concatenate %122, %151 in 1 : vector<2x32xf32>, vector<2x32xf32> -> vector<2x64xf32>
    %cst_41 = arith.constant dense<0.000000e+00> : vector<2x192xf32>
    %172 = tpu.matmul %171, %0, %cst_41 {dimension_numbers = #tpu.dot_dimension_numbers<[1], [0], [0], [1], [0, 0, 1, 1], [], []>} : vector<2x64xf32>, vector<64x192xf32>, vector<2x192xf32> -> vector<2x192xf32>
    %173 = vector.extract_strided_slice %172 {offsets = [0, 0], sizes = [2, 96], strides = [1, 1]} : vector<2x192xf32> to vector<2x96xf32>
    %174 = vector.extract_strided_slice %166 {offsets = [0, 0], sizes = [2, 32], strides = [1, 1]} : vector<2x96xf32> to vector<2x32xf32>
    %175 = vector.extract_strided_slice %173 {offsets = [0, 0], sizes = [2, 32], strides = [1, 1]} : vector<2x96xf32> to vector<2x32xf32>
    %176 = arith.addf %174, %175 : vector<2x32xf32>
    %177 = arith.negf %176 : vector<2x32xf32>
    %178 = math.exp %177 : vector<2x32xf32>
    %cst_42 = arith.constant 1.000000e+00 : f32
    %179 = vector.broadcast %cst_42 : f32 to vector<2x32xf32>
    %180 = arith.addf %179, %178 : vector<2x32xf32>
    %181 = arith.divf %179, %180 : vector<2x32xf32>
    %182 = vector.extract_strided_slice %166 {offsets = [0, 32], sizes = [2, 32], strides = [1, 1]} : vector<2x96xf32> to vector<2x32xf32>
    %183 = vector.extract_strided_slice %173 {offsets = [0, 32], sizes = [2, 32], strides = [1, 1]} : vector<2x96xf32> to vector<2x32xf32>
    %184 = arith.addf %182, %183 : vector<2x32xf32>
    %185 = arith.negf %184 : vector<2x32xf32>
    %186 = math.exp %185 : vector<2x32xf32>
    %cst_43 = arith.constant 1.000000e+00 : f32
    %187 = vector.broadcast %cst_43 : f32 to vector<2x32xf32>
    %188 = arith.addf %187, %186 : vector<2x32xf32>
    %189 = arith.divf %187, %188 : vector<2x32xf32>
    %190 = vector.extract_strided_slice %166 {offsets = [0, 64], sizes = [2, 32], strides = [1, 1]} : vector<2x96xf32> to vector<2x32xf32>
    %191 = vector.extract_strided_slice %173 {offsets = [0, 64], sizes = [2, 32], strides = [1, 1]} : vector<2x96xf32> to vector<2x32xf32>
    %192 = vector.broadcast %1 : vector<1x32xf32> to vector<2x32xf32>
    %193 = arith.addf %191, %192 : vector<2x32xf32>
    %194 = arith.mulf %181, %193 : vector<2x32xf32>
    %195 = arith.addf %190, %194 : vector<2x32xf32>
    %196 = math.tanh %195 : vector<2x32xf32>
    %cst_44 = arith.constant 1.000000e+00 : f32
    %197 = vector.broadcast %cst_44 : f32 to vector<2x32xf32>
    %198 = arith.subf %197, %189 : vector<2x32xf32>
    %199 = arith.mulf %198, %196 : vector<2x32xf32>
    %200 = arith.mulf %189, %122 : vector<2x32xf32>
    %201 = arith.addf %199, %200 : vector<2x32xf32>
    %202 = vector.extract_strided_slice %172 {offsets = [0, 96], sizes = [2, 96], strides = [1, 1]} : vector<2x192xf32> to vector<2x96xf32>
    %203 = vector.extract_strided_slice %170 {offsets = [0, 0], sizes = [2, 32], strides = [1, 1]} : vector<2x96xf32> to vector<2x32xf32>
    %204 = vector.extract_strided_slice %202 {offsets = [0, 0], sizes = [2, 32], strides = [1, 1]} : vector<2x96xf32> to vector<2x32xf32>
    %205 = arith.addf %203, %204 : vector<2x32xf32>
    %206 = arith.negf %205 : vector<2x32xf32>
    %207 = math.exp %206 : vector<2x32xf32>
    %cst_45 = arith.constant 1.000000e+00 : f32
    %208 = vector.broadcast %cst_45 : f32 to vector<2x32xf32>
    %209 = arith.addf %208, %207 : vector<2x32xf32>
    %210 = arith.divf %208, %209 : vector<2x32xf32>
    %211 = vector.extract_strided_slice %170 {offsets = [0, 32], sizes = [2, 32], strides = [1, 1]} : vector<2x96xf32> to vector<2x32xf32>
    %212 = vector.extract_strided_slice %202 {offsets = [0, 32], sizes = [2, 32], strides = [1, 1]} : vector<2x96xf32> to vector<2x32xf32>
    %213 = arith.addf %211, %212 : vector<2x32xf32>
    %214 = arith.negf %213 : vector<2x32xf32>
    %215 = math.exp %214 : vector<2x32xf32>
    %cst_46 = arith.constant 1.000000e+00 : f32
    %216 = vector.broadcast %cst_46 : f32 to vector<2x32xf32>
    %217 = arith.addf %216, %215 : vector<2x32xf32>
    %218 = arith.divf %216, %217 : vector<2x32xf32>
    %219 = vector.extract_strided_slice %170 {offsets = [0, 64], sizes = [2, 32], strides = [1, 1]} : vector<2x96xf32> to vector<2x32xf32>
    %220 = vector.extract_strided_slice %202 {offsets = [0, 64], sizes = [2, 32], strides = [1, 1]} : vector<2x96xf32> to vector<2x32xf32>
    %221 = vector.broadcast %2 : vector<1x32xf32> to vector<2x32xf32>
    %222 = arith.addf %220, %221 : vector<2x32xf32>
    %223 = arith.mulf %210, %222 : vector<2x32xf32>
    %224 = arith.addf %219, %223 : vector<2x32xf32>
    %225 = math.tanh %224 : vector<2x32xf32>
    %cst_47 = arith.constant 1.000000e+00 : f32
    %226 = vector.broadcast %cst_47 : f32 to vector<2x32xf32>
    %227 = arith.subf %226, %218 : vector<2x32xf32>
    %228 = arith.mulf %227, %225 : vector<2x32xf32>
    %229 = arith.mulf %218, %151 : vector<2x32xf32>
    %230 = arith.addf %228, %229 : vector<2x32xf32>
    %231 = arith.truncf %201 : vector<2x32xf32> to vector<2x32xbf16>
    %232 = arith.index_cast %c2_i32 : i32 to index
    %c0_48 = arith.constant 0 : index
    %c0_49 = arith.constant 0 : index
    %233 = vector.load %arg6[%232, %c0_48, %c0_49] : memref<8x2x32xbf16, #tpu.memory_space<vmem>>, vector<1x2x32xbf16>
    %234 = vector.shape_cast %233 : vector<1x2x32xbf16> to vector<2x32xbf16>
    %235 = vector.shape_cast %231 : vector<2x32xbf16> to vector<1x2x32xbf16>
    tpu.vector_store %arg6[%232, %c0_48, %c0_49], %235 {strides = array<i32>} : memref<8x2x32xbf16, #tpu.memory_space<vmem>>, vector<1x2x32xbf16>,
    %236 = arith.truncf %230 : vector<2x32xf32> to vector<2x32xbf16>
    %237 = arith.index_cast %162 : i32 to index
    %c0_50 = arith.constant 0 : index
    %c0_51 = arith.constant 0 : index
    %238 = vector.load %arg7[%237, %c0_50, %c0_51] : memref<8x2x32xbf16, #tpu.memory_space<vmem>>, vector<1x2x32xbf16>
    %239 = vector.shape_cast %238 : vector<1x2x32xbf16> to vector<2x32xbf16>
    %240 = vector.shape_cast %236 : vector<2x32xbf16> to vector<1x2x32xbf16>
    tpu.vector_store %arg7[%237, %c0_50, %c0_51], %240 {strides = array<i32>} : memref<8x2x32xbf16, #tpu.memory_space<vmem>>, vector<1x2x32xbf16>,
    %c3_i32 = arith.constant 3 : i32
    %c7_i32_52 = arith.constant 7 : i32
    %241 = arith.subi %c7_i32_52, %c3_i32 : i32
    %242 = arith.index_cast %c3_i32 : i32 to index
    %c0_53 = arith.constant 0 : index
    %c0_54 = arith.constant 0 : index
    %243 = vector.load %arg1[%242, %c0_53, %c0_54] : memref<8x2x96xbf16, #tpu.memory_space<vmem>>, vector<1x2x96xbf16>
    %244 = vector.shape_cast %243 : vector<1x2x96xbf16> to vector<2x96xbf16>
    %245 = arith.extf %244 : vector<2x96xbf16> to vector<2x96xf32>
    %246 = arith.index_cast %241 : i32 to index
    %c0_55 = arith.constant 0 : index
    %c0_56 = arith.constant 0 : index
    %247 = vector.load %arg2[%246, %c0_55, %c0_56] : memref<8x2x96xbf16, #tpu.memory_space<vmem>>, vector<1x2x96xbf16>
    %248 = vector.shape_cast %247 : vector<1x2x96xbf16> to vector<2x96xbf16>
    %249 = arith.extf %248 : vector<2x96xbf16> to vector<2x96xf32>
    %250 = tpu.concatenate %201, %230 in 1 : vector<2x32xf32>, vector<2x32xf32> -> vector<2x64xf32>
    %cst_57 = arith.constant dense<0.000000e+00> : vector<2x192xf32>
    %251 = tpu.matmul %250, %0, %cst_57 {dimension_numbers = #tpu.dot_dimension_numbers<[1], [0], [0], [1], [0, 0, 1, 1], [], []>} : vector<2x64xf32>, vector<64x192xf32>, vector<2x192xf32> -> vector<2x192xf32>
    %252 = vector.extract_strided_slice %251 {offsets = [0, 0], sizes = [2, 96], strides = [1, 1]} : vector<2x192xf32> to vector<2x96xf32>
    %253 = vector.extract_strided_slice %245 {offsets = [0, 0], sizes = [2, 32], strides = [1, 1]} : vector<2x96xf32> to vector<2x32xf32>
    %254 = vector.extract_strided_slice %252 {offsets = [0, 0], sizes = [2, 32], strides = [1, 1]} : vector<2x96xf32> to vector<2x32xf32>
    %255 = arith.addf %253, %254 : vector<2x32xf32>
    %256 = arith.negf %255 : vector<2x32xf32>
    %257 = math.exp %256 : vector<2x32xf32>
    %cst_58 = arith.constant 1.000000e+00 : f32
    %258 = vector.broadcast %cst_58 : f32 to vector<2x32xf32>
    %259 = arith.addf %258, %257 : vector<2x32xf32>
    %260 = arith.divf %258, %259 : vector<2x32xf32>
    %261 = vector.extract_strided_slice %245 {offsets = [0, 32], sizes = [2, 32], strides = [1, 1]} : vector<2x96xf32> to vector<2x32xf32>
    %262 = vector.extract_strided_slice %252 {offsets = [0, 32], sizes = [2, 32], strides = [1, 1]} : vector<2x96xf32> to vector<2x32xf32>
    %263 = arith.addf %261, %262 : vector<2x32xf32>
    %264 = arith.negf %263 : vector<2x32xf32>
    %265 = math.exp %264 : vector<2x32xf32>
    %cst_59 = arith.constant 1.000000e+00 : f32
    %266 = vector.broadcast %cst_59 : f32 to vector<2x32xf32>
    %267 = arith.addf %266, %265 : vector<2x32xf32>
    %268 = arith.divf %266, %267 : vector<2x32xf32>
    %269 = vector.extract_strided_slice %245 {offsets = [0, 64], sizes = [2, 32], strides = [1, 1]} : vector<2x96xf32> to vector<2x32xf32>
    %270 = vector.extract_strided_slice %252 {offsets = [0, 64], sizes = [2, 32], strides = [1, 1]} : vector<2x96xf32> to vector<2x32xf32>
    %271 = vector.broadcast %1 : vector<1x32xf32> to vector<2x32xf32>
    %272 = arith.addf %270, %271 : vector<2x32xf32>
    %273 = arith.mulf %260, %272 : vector<2x32xf32>
    %274 = arith.addf %269, %273 : vector<2x32xf32>
    %275 = math.tanh %274 : vector<2x32xf32>
    %cst_60 = arith.constant 1.000000e+00 : f32
    %276 = vector.broadcast %cst_60 : f32 to vector<2x32xf32>
    %277 = arith.subf %276, %268 : vector<2x32xf32>
    %278 = arith.mulf %277, %275 : vector<2x32xf32>
    %279 = arith.mulf %268, %201 : vector<2x32xf32>
    %280 = arith.addf %278, %279 : vector<2x32xf32>
    %281 = vector.extract_strided_slice %251 {offsets = [0, 96], sizes = [2, 96], strides = [1, 1]} : vector<2x192xf32> to vector<2x96xf32>
    %282 = vector.extract_strided_slice %249 {offsets = [0, 0], sizes = [2, 32], strides = [1, 1]} : vector<2x96xf32> to vector<2x32xf32>
    %283 = vector.extract_strided_slice %281 {offsets = [0, 0], sizes = [2, 32], strides = [1, 1]} : vector<2x96xf32> to vector<2x32xf32>
    %284 = arith.addf %282, %283 : vector<2x32xf32>
    %285 = arith.negf %284 : vector<2x32xf32>
    %286 = math.exp %285 : vector<2x32xf32>
    %cst_61 = arith.constant 1.000000e+00 : f32
    %287 = vector.broadcast %cst_61 : f32 to vector<2x32xf32>
    %288 = arith.addf %287, %286 : vector<2x32xf32>
    %289 = arith.divf %287, %288 : vector<2x32xf32>
    %290 = vector.extract_strided_slice %249 {offsets = [0, 32], sizes = [2, 32], strides = [1, 1]} : vector<2x96xf32> to vector<2x32xf32>
    %291 = vector.extract_strided_slice %281 {offsets = [0, 32], sizes = [2, 32], strides = [1, 1]} : vector<2x96xf32> to vector<2x32xf32>
    %292 = arith.addf %290, %291 : vector<2x32xf32>
    %293 = arith.negf %292 : vector<2x32xf32>
    %294 = math.exp %293 : vector<2x32xf32>
    %cst_62 = arith.constant 1.000000e+00 : f32
    %295 = vector.broadcast %cst_62 : f32 to vector<2x32xf32>
    %296 = arith.addf %295, %294 : vector<2x32xf32>
    %297 = arith.divf %295, %296 : vector<2x32xf32>
    %298 = vector.extract_strided_slice %249 {offsets = [0, 64], sizes = [2, 32], strides = [1, 1]} : vector<2x96xf32> to vector<2x32xf32>
    %299 = vector.extract_strided_slice %281 {offsets = [0, 64], sizes = [2, 32], strides = [1, 1]} : vector<2x96xf32> to vector<2x32xf32>
    %300 = vector.broadcast %2 : vector<1x32xf32> to vector<2x32xf32>
    %301 = arith.addf %299, %300 : vector<2x32xf32>
    %302 = arith.mulf %289, %301 : vector<2x32xf32>
    %303 = arith.addf %298, %302 : vector<2x32xf32>
    %304 = math.tanh %303 : vector<2x32xf32>
    %cst_63 = arith.constant 1.000000e+00 : f32
    %305 = vector.broadcast %cst_63 : f32 to vector<2x32xf32>
    %306 = arith.subf %305, %297 : vector<2x32xf32>
    %307 = arith.mulf %306, %304 : vector<2x32xf32>
    %308 = arith.mulf %297, %230 : vector<2x32xf32>
    %309 = arith.addf %307, %308 : vector<2x32xf32>
    %310 = arith.truncf %280 : vector<2x32xf32> to vector<2x32xbf16>
    %311 = arith.index_cast %c3_i32 : i32 to index
    %c0_64 = arith.constant 0 : index
    %c0_65 = arith.constant 0 : index
    %312 = vector.load %arg6[%311, %c0_64, %c0_65] : memref<8x2x32xbf16, #tpu.memory_space<vmem>>, vector<1x2x32xbf16>
    %313 = vector.shape_cast %312 : vector<1x2x32xbf16> to vector<2x32xbf16>
    %314 = vector.shape_cast %310 : vector<2x32xbf16> to vector<1x2x32xbf16>
    tpu.vector_store %arg6[%311, %c0_64, %c0_65], %314 {strides = array<i32>} : memref<8x2x32xbf16, #tpu.memory_space<vmem>>, vector<1x2x32xbf16>,
    %315 = arith.truncf %309 : vector<2x32xf32> to vector<2x32xbf16>
    %316 = arith.index_cast %241 : i32 to index
    %c0_66 = arith.constant 0 : index
    %c0_67 = arith.constant 0 : index
    %317 = vector.load %arg7[%316, %c0_66, %c0_67] : memref<8x2x32xbf16, #tpu.memory_space<vmem>>, vector<1x2x32xbf16>
    %318 = vector.shape_cast %317 : vector<1x2x32xbf16> to vector<2x32xbf16>
    %319 = vector.shape_cast %315 : vector<2x32xbf16> to vector<1x2x32xbf16>
    tpu.vector_store %arg7[%316, %c0_66, %c0_67], %319 {strides = array<i32>} : memref<8x2x32xbf16, #tpu.memory_space<vmem>>, vector<1x2x32xbf16>,
    %c4_i32 = arith.constant 4 : i32
    %c7_i32_68 = arith.constant 7 : i32
    %320 = arith.subi %c7_i32_68, %c4_i32 : i32
    %321 = arith.index_cast %c4_i32 : i32 to index
    %c0_69 = arith.constant 0 : index
    %c0_70 = arith.constant 0 : index
    %322 = vector.load %arg1[%321, %c0_69, %c0_70] : memref<8x2x96xbf16, #tpu.memory_space<vmem>>, vector<1x2x96xbf16>
    %323 = vector.shape_cast %322 : vector<1x2x96xbf16> to vector<2x96xbf16>
    %324 = arith.extf %323 : vector<2x96xbf16> to vector<2x96xf32>
    %325 = arith.index_cast %320 : i32 to index
    %c0_71 = arith.constant 0 : index
    %c0_72 = arith.constant 0 : index
    %326 = vector.load %arg2[%325, %c0_71, %c0_72] : memref<8x2x96xbf16, #tpu.memory_space<vmem>>, vector<1x2x96xbf16>
    %327 = vector.shape_cast %326 : vector<1x2x96xbf16> to vector<2x96xbf16>
    %328 = arith.extf %327 : vector<2x96xbf16> to vector<2x96xf32>
    %329 = tpu.concatenate %280, %309 in 1 : vector<2x32xf32>, vector<2x32xf32> -> vector<2x64xf32>
    %cst_73 = arith.constant dense<0.000000e+00> : vector<2x192xf32>
    %330 = tpu.matmul %329, %0, %cst_73 {dimension_numbers = #tpu.dot_dimension_numbers<[1], [0], [0], [1], [0, 0, 1, 1], [], []>} : vector<2x64xf32>, vector<64x192xf32>, vector<2x192xf32> -> vector<2x192xf32>
    %331 = vector.extract_strided_slice %330 {offsets = [0, 0], sizes = [2, 96], strides = [1, 1]} : vector<2x192xf32> to vector<2x96xf32>
    %332 = vector.extract_strided_slice %324 {offsets = [0, 0], sizes = [2, 32], strides = [1, 1]} : vector<2x96xf32> to vector<2x32xf32>
    %333 = vector.extract_strided_slice %331 {offsets = [0, 0], sizes = [2, 32], strides = [1, 1]} : vector<2x96xf32> to vector<2x32xf32>
    %334 = arith.addf %332, %333 : vector<2x32xf32>
    %335 = arith.negf %334 : vector<2x32xf32>
    %336 = math.exp %335 : vector<2x32xf32>
    %cst_74 = arith.constant 1.000000e+00 : f32
    %337 = vector.broadcast %cst_74 : f32 to vector<2x32xf32>
    %338 = arith.addf %337, %336 : vector<2x32xf32>
    %339 = arith.divf %337, %338 : vector<2x32xf32>
    %340 = vector.extract_strided_slice %324 {offsets = [0, 32], sizes = [2, 32], strides = [1, 1]} : vector<2x96xf32> to vector<2x32xf32>
    %341 = vector.extract_strided_slice %331 {offsets = [0, 32], sizes = [2, 32], strides = [1, 1]} : vector<2x96xf32> to vector<2x32xf32>
    %342 = arith.addf %340, %341 : vector<2x32xf32>
    %343 = arith.negf %342 : vector<2x32xf32>
    %344 = math.exp %343 : vector<2x32xf32>
    %cst_75 = arith.constant 1.000000e+00 : f32
    %345 = vector.broadcast %cst_75 : f32 to vector<2x32xf32>
    %346 = arith.addf %345, %344 : vector<2x32xf32>
    %347 = arith.divf %345, %346 : vector<2x32xf32>
    %348 = vector.extract_strided_slice %324 {offsets = [0, 64], sizes = [2, 32], strides = [1, 1]} : vector<2x96xf32> to vector<2x32xf32>
    %349 = vector.extract_strided_slice %331 {offsets = [0, 64], sizes = [2, 32], strides = [1, 1]} : vector<2x96xf32> to vector<2x32xf32>
    %350 = vector.broadcast %1 : vector<1x32xf32> to vector<2x32xf32>
    %351 = arith.addf %349, %350 : vector<2x32xf32>
    %352 = arith.mulf %339, %351 : vector<2x32xf32>
    %353 = arith.addf %348, %352 : vector<2x32xf32>
    %354 = math.tanh %353 : vector<2x32xf32>
    %cst_76 = arith.constant 1.000000e+00 : f32
    %355 = vector.broadcast %cst_76 : f32 to vector<2x32xf32>
    %356 = arith.subf %355, %347 : vector<2x32xf32>
    %357 = arith.mulf %356, %354 : vector<2x32xf32>
    %358 = arith.mulf %347, %280 : vector<2x32xf32>
    %359 = arith.addf %357, %358 : vector<2x32xf32>
    %360 = vector.extract_strided_slice %330 {offsets = [0, 96], sizes = [2, 96], strides = [1, 1]} : vector<2x192xf32> to vector<2x96xf32>
    %361 = vector.extract_strided_slice %328 {offsets = [0, 0], sizes = [2, 32], strides = [1, 1]} : vector<2x96xf32> to vector<2x32xf32>
    %362 = vector.extract_strided_slice %360 {offsets = [0, 0], sizes = [2, 32], strides = [1, 1]} : vector<2x96xf32> to vector<2x32xf32>
    %363 = arith.addf %361, %362 : vector<2x32xf32>
    %364 = arith.negf %363 : vector<2x32xf32>
    %365 = math.exp %364 : vector<2x32xf32>
    %cst_77 = arith.constant 1.000000e+00 : f32
    %366 = vector.broadcast %cst_77 : f32 to vector<2x32xf32>
    %367 = arith.addf %366, %365 : vector<2x32xf32>
    %368 = arith.divf %366, %367 : vector<2x32xf32>
    %369 = vector.extract_strided_slice %328 {offsets = [0, 32], sizes = [2, 32], strides = [1, 1]} : vector<2x96xf32> to vector<2x32xf32>
    %370 = vector.extract_strided_slice %360 {offsets = [0, 32], sizes = [2, 32], strides = [1, 1]} : vector<2x96xf32> to vector<2x32xf32>
    %371 = arith.addf %369, %370 : vector<2x32xf32>
    %372 = arith.negf %371 : vector<2x32xf32>
    %373 = math.exp %372 : vector<2x32xf32>
    %cst_78 = arith.constant 1.000000e+00 : f32
    %374 = vector.broadcast %cst_78 : f32 to vector<2x32xf32>
    %375 = arith.addf %374, %373 : vector<2x32xf32>
    %376 = arith.divf %374, %375 : vector<2x32xf32>
    %377 = vector.extract_strided_slice %328 {offsets = [0, 64], sizes = [2, 32], strides = [1, 1]} : vector<2x96xf32> to vector<2x32xf32>
    %378 = vector.extract_strided_slice %360 {offsets = [0, 64], sizes = [2, 32], strides = [1, 1]} : vector<2x96xf32> to vector<2x32xf32>
    %379 = vector.broadcast %2 : vector<1x32xf32> to vector<2x32xf32>
    %380 = arith.addf %378, %379 : vector<2x32xf32>
    %381 = arith.mulf %368, %380 : vector<2x32xf32>
    %382 = arith.addf %377, %381 : vector<2x32xf32>
    %383 = math.tanh %382 : vector<2x32xf32>
    %cst_79 = arith.constant 1.000000e+00 : f32
    %384 = vector.broadcast %cst_79 : f32 to vector<2x32xf32>
    %385 = arith.subf %384, %376 : vector<2x32xf32>
    %386 = arith.mulf %385, %383 : vector<2x32xf32>
    %387 = arith.mulf %376, %309 : vector<2x32xf32>
    %388 = arith.addf %386, %387 : vector<2x32xf32>
    %389 = arith.truncf %359 : vector<2x32xf32> to vector<2x32xbf16>
    %390 = arith.index_cast %c4_i32 : i32 to index
    %c0_80 = arith.constant 0 : index
    %c0_81 = arith.constant 0 : index
    %391 = vector.load %arg6[%390, %c0_80, %c0_81] : memref<8x2x32xbf16, #tpu.memory_space<vmem>>, vector<1x2x32xbf16>
    %392 = vector.shape_cast %391 : vector<1x2x32xbf16> to vector<2x32xbf16>
    %393 = vector.shape_cast %389 : vector<2x32xbf16> to vector<1x2x32xbf16>
    tpu.vector_store %arg6[%390, %c0_80, %c0_81], %393 {strides = array<i32>} : memref<8x2x32xbf16, #tpu.memory_space<vmem>>, vector<1x2x32xbf16>,
    %394 = arith.truncf %388 : vector<2x32xf32> to vector<2x32xbf16>
    %395 = arith.index_cast %320 : i32 to index
    %c0_82 = arith.constant 0 : index
    %c0_83 = arith.constant 0 : index
    %396 = vector.load %arg7[%395, %c0_82, %c0_83] : memref<8x2x32xbf16, #tpu.memory_space<vmem>>, vector<1x2x32xbf16>
    %397 = vector.shape_cast %396 : vector<1x2x32xbf16> to vector<2x32xbf16>
    %398 = vector.shape_cast %394 : vector<2x32xbf16> to vector<1x2x32xbf16>
    tpu.vector_store %arg7[%395, %c0_82, %c0_83], %398 {strides = array<i32>} : memref<8x2x32xbf16, #tpu.memory_space<vmem>>, vector<1x2x32xbf16>,
    %c5_i32 = arith.constant 5 : i32
    %c7_i32_84 = arith.constant 7 : i32
    %399 = arith.subi %c7_i32_84, %c5_i32 : i32
    %400 = arith.index_cast %c5_i32 : i32 to index
    %c0_85 = arith.constant 0 : index
    %c0_86 = arith.constant 0 : index
    %401 = vector.load %arg1[%400, %c0_85, %c0_86] : memref<8x2x96xbf16, #tpu.memory_space<vmem>>, vector<1x2x96xbf16>
    %402 = vector.shape_cast %401 : vector<1x2x96xbf16> to vector<2x96xbf16>
    %403 = arith.extf %402 : vector<2x96xbf16> to vector<2x96xf32>
    %404 = arith.index_cast %399 : i32 to index
    %c0_87 = arith.constant 0 : index
    %c0_88 = arith.constant 0 : index
    %405 = vector.load %arg2[%404, %c0_87, %c0_88] : memref<8x2x96xbf16, #tpu.memory_space<vmem>>, vector<1x2x96xbf16>
    %406 = vector.shape_cast %405 : vector<1x2x96xbf16> to vector<2x96xbf16>
    %407 = arith.extf %406 : vector<2x96xbf16> to vector<2x96xf32>
    %408 = tpu.concatenate %359, %388 in 1 : vector<2x32xf32>, vector<2x32xf32> -> vector<2x64xf32>
    %cst_89 = arith.constant dense<0.000000e+00> : vector<2x192xf32>
    %409 = tpu.matmul %408, %0, %cst_89 {dimension_numbers = #tpu.dot_dimension_numbers<[1], [0], [0], [1], [0, 0, 1, 1], [], []>} : vector<2x64xf32>, vector<64x192xf32>, vector<2x192xf32> -> vector<2x192xf32>
    %410 = vector.extract_strided_slice %409 {offsets = [0, 0], sizes = [2, 96], strides = [1, 1]} : vector<2x192xf32> to vector<2x96xf32>
    %411 = vector.extract_strided_slice %403 {offsets = [0, 0], sizes = [2, 32], strides = [1, 1]} : vector<2x96xf32> to vector<2x32xf32>
    %412 = vector.extract_strided_slice %410 {offsets = [0, 0], sizes = [2, 32], strides = [1, 1]} : vector<2x96xf32> to vector<2x32xf32>
    %413 = arith.addf %411, %412 : vector<2x32xf32>
    %414 = arith.negf %413 : vector<2x32xf32>
    %415 = math.exp %414 : vector<2x32xf32>
    %cst_90 = arith.constant 1.000000e+00 : f32
    %416 = vector.broadcast %cst_90 : f32 to vector<2x32xf32>
    %417 = arith.addf %416, %415 : vector<2x32xf32>
    %418 = arith.divf %416, %417 : vector<2x32xf32>
    %419 = vector.extract_strided_slice %403 {offsets = [0, 32], sizes = [2, 32], strides = [1, 1]} : vector<2x96xf32> to vector<2x32xf32>
    %420 = vector.extract_strided_slice %410 {offsets = [0, 32], sizes = [2, 32], strides = [1, 1]} : vector<2x96xf32> to vector<2x32xf32>
    %421 = arith.addf %419, %420 : vector<2x32xf32>
    %422 = arith.negf %421 : vector<2x32xf32>
    %423 = math.exp %422 : vector<2x32xf32>
    %cst_91 = arith.constant 1.000000e+00 : f32
    %424 = vector.broadcast %cst_91 : f32 to vector<2x32xf32>
    %425 = arith.addf %424, %423 : vector<2x32xf32>
    %426 = arith.divf %424, %425 : vector<2x32xf32>
    %427 = vector.extract_strided_slice %403 {offsets = [0, 64], sizes = [2, 32], strides = [1, 1]} : vector<2x96xf32> to vector<2x32xf32>
    %428 = vector.extract_strided_slice %410 {offsets = [0, 64], sizes = [2, 32], strides = [1, 1]} : vector<2x96xf32> to vector<2x32xf32>
    %429 = vector.broadcast %1 : vector<1x32xf32> to vector<2x32xf32>
    %430 = arith.addf %428, %429 : vector<2x32xf32>
    %431 = arith.mulf %418, %430 : vector<2x32xf32>
    %432 = arith.addf %427, %431 : vector<2x32xf32>
    %433 = math.tanh %432 : vector<2x32xf32>
    %cst_92 = arith.constant 1.000000e+00 : f32
    %434 = vector.broadcast %cst_92 : f32 to vector<2x32xf32>
    %435 = arith.subf %434, %426 : vector<2x32xf32>
    %436 = arith.mulf %435, %433 : vector<2x32xf32>
    %437 = arith.mulf %426, %359 : vector<2x32xf32>
    %438 = arith.addf %436, %437 : vector<2x32xf32>
    %439 = vector.extract_strided_slice %409 {offsets = [0, 96], sizes = [2, 96], strides = [1, 1]} : vector<2x192xf32> to vector<2x96xf32>
    %440 = vector.extract_strided_slice %407 {offsets = [0, 0], sizes = [2, 32], strides = [1, 1]} : vector<2x96xf32> to vector<2x32xf32>
    %441 = vector.extract_strided_slice %439 {offsets = [0, 0], sizes = [2, 32], strides = [1, 1]} : vector<2x96xf32> to vector<2x32xf32>
    %442 = arith.addf %440, %441 : vector<2x32xf32>
    %443 = arith.negf %442 : vector<2x32xf32>
    %444 = math.exp %443 : vector<2x32xf32>
    %cst_93 = arith.constant 1.000000e+00 : f32
    %445 = vector.broadcast %cst_93 : f32 to vector<2x32xf32>
    %446 = arith.addf %445, %444 : vector<2x32xf32>
    %447 = arith.divf %445, %446 : vector<2x32xf32>
    %448 = vector.extract_strided_slice %407 {offsets = [0, 32], sizes = [2, 32], strides = [1, 1]} : vector<2x96xf32> to vector<2x32xf32>
    %449 = vector.extract_strided_slice %439 {offsets = [0, 32], sizes = [2, 32], strides = [1, 1]} : vector<2x96xf32> to vector<2x32xf32>
    %450 = arith.addf %448, %449 : vector<2x32xf32>
    %451 = arith.negf %450 : vector<2x32xf32>
    %452 = math.exp %451 : vector<2x32xf32>
    %cst_94 = arith.constant 1.000000e+00 : f32
    %453 = vector.broadcast %cst_94 : f32 to vector<2x32xf32>
    %454 = arith.addf %453, %452 : vector<2x32xf32>
    %455 = arith.divf %453, %454 : vector<2x32xf32>
    %456 = vector.extract_strided_slice %407 {offsets = [0, 64], sizes = [2, 32], strides = [1, 1]} : vector<2x96xf32> to vector<2x32xf32>
    %457 = vector.extract_strided_slice %439 {offsets = [0, 64], sizes = [2, 32], strides = [1, 1]} : vector<2x96xf32> to vector<2x32xf32>
    %458 = vector.broadcast %2 : vector<1x32xf32> to vector<2x32xf32>
    %459 = arith.addf %457, %458 : vector<2x32xf32>
    %460 = arith.mulf %447, %459 : vector<2x32xf32>
    %461 = arith.addf %456, %460 : vector<2x32xf32>
    %462 = math.tanh %461 : vector<2x32xf32>
    %cst_95 = arith.constant 1.000000e+00 : f32
    %463 = vector.broadcast %cst_95 : f32 to vector<2x32xf32>
    %464 = arith.subf %463, %455 : vector<2x32xf32>
    %465 = arith.mulf %464, %462 : vector<2x32xf32>
    %466 = arith.mulf %455, %388 : vector<2x32xf32>
    %467 = arith.addf %465, %466 : vector<2x32xf32>
    %468 = arith.truncf %438 : vector<2x32xf32> to vector<2x32xbf16>
    %469 = arith.index_cast %c5_i32 : i32 to index
    %c0_96 = arith.constant 0 : index
    %c0_97 = arith.constant 0 : index
    %470 = vector.load %arg6[%469, %c0_96, %c0_97] : memref<8x2x32xbf16, #tpu.memory_space<vmem>>, vector<1x2x32xbf16>
    %471 = vector.shape_cast %470 : vector<1x2x32xbf16> to vector<2x32xbf16>
    %472 = vector.shape_cast %468 : vector<2x32xbf16> to vector<1x2x32xbf16>
    tpu.vector_store %arg6[%469, %c0_96, %c0_97], %472 {strides = array<i32>} : memref<8x2x32xbf16, #tpu.memory_space<vmem>>, vector<1x2x32xbf16>,
    %473 = arith.truncf %467 : vector<2x32xf32> to vector<2x32xbf16>
    %474 = arith.index_cast %399 : i32 to index
    %c0_98 = arith.constant 0 : index
    %c0_99 = arith.constant 0 : index
    %475 = vector.load %arg7[%474, %c0_98, %c0_99] : memref<8x2x32xbf16, #tpu.memory_space<vmem>>, vector<1x2x32xbf16>
    %476 = vector.shape_cast %475 : vector<1x2x32xbf16> to vector<2x32xbf16>
    %477 = vector.shape_cast %473 : vector<2x32xbf16> to vector<1x2x32xbf16>
    tpu.vector_store %arg7[%474, %c0_98, %c0_99], %477 {strides = array<i32>} : memref<8x2x32xbf16, #tpu.memory_space<vmem>>, vector<1x2x32xbf16>,
    %c6_i32 = arith.constant 6 : i32
    %c7_i32_100 = arith.constant 7 : i32
    %478 = arith.subi %c7_i32_100, %c6_i32 : i32
    %479 = arith.index_cast %c6_i32 : i32 to index
    %c0_101 = arith.constant 0 : index
    %c0_102 = arith.constant 0 : index
    %480 = vector.load %arg1[%479, %c0_101, %c0_102] : memref<8x2x96xbf16, #tpu.memory_space<vmem>>, vector<1x2x96xbf16>
    %481 = vector.shape_cast %480 : vector<1x2x96xbf16> to vector<2x96xbf16>
    %482 = arith.extf %481 : vector<2x96xbf16> to vector<2x96xf32>
    %483 = arith.index_cast %478 : i32 to index
    %c0_103 = arith.constant 0 : index
    %c0_104 = arith.constant 0 : index
    %484 = vector.load %arg2[%483, %c0_103, %c0_104] : memref<8x2x96xbf16, #tpu.memory_space<vmem>>, vector<1x2x96xbf16>
    %485 = vector.shape_cast %484 : vector<1x2x96xbf16> to vector<2x96xbf16>
    %486 = arith.extf %485 : vector<2x96xbf16> to vector<2x96xf32>
    %487 = tpu.concatenate %438, %467 in 1 : vector<2x32xf32>, vector<2x32xf32> -> vector<2x64xf32>
    %cst_105 = arith.constant dense<0.000000e+00> : vector<2x192xf32>
    %488 = tpu.matmul %487, %0, %cst_105 {dimension_numbers = #tpu.dot_dimension_numbers<[1], [0], [0], [1], [0, 0, 1, 1], [], []>} : vector<2x64xf32>, vector<64x192xf32>, vector<2x192xf32> -> vector<2x192xf32>
    %489 = vector.extract_strided_slice %488 {offsets = [0, 0], sizes = [2, 96], strides = [1, 1]} : vector<2x192xf32> to vector<2x96xf32>
    %490 = vector.extract_strided_slice %482 {offsets = [0, 0], sizes = [2, 32], strides = [1, 1]} : vector<2x96xf32> to vector<2x32xf32>
    %491 = vector.extract_strided_slice %489 {offsets = [0, 0], sizes = [2, 32], strides = [1, 1]} : vector<2x96xf32> to vector<2x32xf32>
    %492 = arith.addf %490, %491 : vector<2x32xf32>
    %493 = arith.negf %492 : vector<2x32xf32>
    %494 = math.exp %493 : vector<2x32xf32>
    %cst_106 = arith.constant 1.000000e+00 : f32
    %495 = vector.broadcast %cst_106 : f32 to vector<2x32xf32>
    %496 = arith.addf %495, %494 : vector<2x32xf32>
    %497 = arith.divf %495, %496 : vector<2x32xf32>
    %498 = vector.extract_strided_slice %482 {offsets = [0, 32], sizes = [2, 32], strides = [1, 1]} : vector<2x96xf32> to vector<2x32xf32>
    %499 = vector.extract_strided_slice %489 {offsets = [0, 32], sizes = [2, 32], strides = [1, 1]} : vector<2x96xf32> to vector<2x32xf32>
    %500 = arith.addf %498, %499 : vector<2x32xf32>
    %501 = arith.negf %500 : vector<2x32xf32>
    %502 = math.exp %501 : vector<2x32xf32>
    %cst_107 = arith.constant 1.000000e+00 : f32
    %503 = vector.broadcast %cst_107 : f32 to vector<2x32xf32>
    %504 = arith.addf %503, %502 : vector<2x32xf32>
    %505 = arith.divf %503, %504 : vector<2x32xf32>
    %506 = vector.extract_strided_slice %482 {offsets = [0, 64], sizes = [2, 32], strides = [1, 1]} : vector<2x96xf32> to vector<2x32xf32>
    %507 = vector.extract_strided_slice %489 {offsets = [0, 64], sizes = [2, 32], strides = [1, 1]} : vector<2x96xf32> to vector<2x32xf32>
    %508 = vector.broadcast %1 : vector<1x32xf32> to vector<2x32xf32>
    %509 = arith.addf %507, %508 : vector<2x32xf32>
    %510 = arith.mulf %497, %509 : vector<2x32xf32>
    %511 = arith.addf %506, %510 : vector<2x32xf32>
    %512 = math.tanh %511 : vector<2x32xf32>
    %cst_108 = arith.constant 1.000000e+00 : f32
    %513 = vector.broadcast %cst_108 : f32 to vector<2x32xf32>
    %514 = arith.subf %513, %505 : vector<2x32xf32>
    %515 = arith.mulf %514, %512 : vector<2x32xf32>
    %516 = arith.mulf %505, %438 : vector<2x32xf32>
    %517 = arith.addf %515, %516 : vector<2x32xf32>
    %518 = vector.extract_strided_slice %488 {offsets = [0, 96], sizes = [2, 96], strides = [1, 1]} : vector<2x192xf32> to vector<2x96xf32>
    %519 = vector.extract_strided_slice %486 {offsets = [0, 0], sizes = [2, 32], strides = [1, 1]} : vector<2x96xf32> to vector<2x32xf32>
    %520 = vector.extract_strided_slice %518 {offsets = [0, 0], sizes = [2, 32], strides = [1, 1]} : vector<2x96xf32> to vector<2x32xf32>
    %521 = arith.addf %519, %520 : vector<2x32xf32>
    %522 = arith.negf %521 : vector<2x32xf32>
    %523 = math.exp %522 : vector<2x32xf32>
    %cst_109 = arith.constant 1.000000e+00 : f32
    %524 = vector.broadcast %cst_109 : f32 to vector<2x32xf32>
    %525 = arith.addf %524, %523 : vector<2x32xf32>
    %526 = arith.divf %524, %525 : vector<2x32xf32>
    %527 = vector.extract_strided_slice %486 {offsets = [0, 32], sizes = [2, 32], strides = [1, 1]} : vector<2x96xf32> to vector<2x32xf32>
    %528 = vector.extract_strided_slice %518 {offsets = [0, 32], sizes = [2, 32], strides = [1, 1]} : vector<2x96xf32> to vector<2x32xf32>
    %529 = arith.addf %527, %528 : vector<2x32xf32>
    %530 = arith.negf %529 : vector<2x32xf32>
    %531 = math.exp %530 : vector<2x32xf32>
    %cst_110 = arith.constant 1.000000e+00 : f32
    %532 = vector.broadcast %cst_110 : f32 to vector<2x32xf32>
    %533 = arith.addf %532, %531 : vector<2x32xf32>
    %534 = arith.divf %532, %533 : vector<2x32xf32>
    %535 = vector.extract_strided_slice %486 {offsets = [0, 64], sizes = [2, 32], strides = [1, 1]} : vector<2x96xf32> to vector<2x32xf32>
    %536 = vector.extract_strided_slice %518 {offsets = [0, 64], sizes = [2, 32], strides = [1, 1]} : vector<2x96xf32> to vector<2x32xf32>
    %537 = vector.broadcast %2 : vector<1x32xf32> to vector<2x32xf32>
    %538 = arith.addf %536, %537 : vector<2x32xf32>
    %539 = arith.mulf %526, %538 : vector<2x32xf32>
    %540 = arith.addf %535, %539 : vector<2x32xf32>
    %541 = math.tanh %540 : vector<2x32xf32>
    %cst_111 = arith.constant 1.000000e+00 : f32
    %542 = vector.broadcast %cst_111 : f32 to vector<2x32xf32>
    %543 = arith.subf %542, %534 : vector<2x32xf32>
    %544 = arith.mulf %543, %541 : vector<2x32xf32>
    %545 = arith.mulf %534, %467 : vector<2x32xf32>
    %546 = arith.addf %544, %545 : vector<2x32xf32>
    %547 = arith.truncf %517 : vector<2x32xf32> to vector<2x32xbf16>
    %548 = arith.index_cast %c6_i32 : i32 to index
    %c0_112 = arith.constant 0 : index
    %c0_113 = arith.constant 0 : index
    %549 = vector.load %arg6[%548, %c0_112, %c0_113] : memref<8x2x32xbf16, #tpu.memory_space<vmem>>, vector<1x2x32xbf16>
    %550 = vector.shape_cast %549 : vector<1x2x32xbf16> to vector<2x32xbf16>
    %551 = vector.shape_cast %547 : vector<2x32xbf16> to vector<1x2x32xbf16>
    tpu.vector_store %arg6[%548, %c0_112, %c0_113], %551 {strides = array<i32>} : memref<8x2x32xbf16, #tpu.memory_space<vmem>>, vector<1x2x32xbf16>,
    %552 = arith.truncf %546 : vector<2x32xf32> to vector<2x32xbf16>
    %553 = arith.index_cast %478 : i32 to index
    %c0_114 = arith.constant 0 : index
    %c0_115 = arith.constant 0 : index
    %554 = vector.load %arg7[%553, %c0_114, %c0_115] : memref<8x2x32xbf16, #tpu.memory_space<vmem>>, vector<1x2x32xbf16>
    %555 = vector.shape_cast %554 : vector<1x2x32xbf16> to vector<2x32xbf16>
    %556 = vector.shape_cast %552 : vector<2x32xbf16> to vector<1x2x32xbf16>
    tpu.vector_store %arg7[%553, %c0_114, %c0_115], %556 {strides = array<i32>} : memref<8x2x32xbf16, #tpu.memory_space<vmem>>, vector<1x2x32xbf16>,
    %c7_i32_116 = arith.constant 7 : i32
    %c7_i32_117 = arith.constant 7 : i32
    %557 = arith.subi %c7_i32_117, %c7_i32_116 : i32
    %558 = arith.index_cast %c7_i32_116 : i32 to index
    %c0_118 = arith.constant 0 : index
    %c0_119 = arith.constant 0 : index
    %559 = vector.load %arg1[%558, %c0_118, %c0_119] : memref<8x2x96xbf16, #tpu.memory_space<vmem>>, vector<1x2x96xbf16>
    %560 = vector.shape_cast %559 : vector<1x2x96xbf16> to vector<2x96xbf16>
    %561 = arith.extf %560 : vector<2x96xbf16> to vector<2x96xf32>
    %562 = arith.index_cast %557 : i32 to index
    %c0_120 = arith.constant 0 : index
    %c0_121 = arith.constant 0 : index
    %563 = vector.load %arg2[%562, %c0_120, %c0_121] : memref<8x2x96xbf16, #tpu.memory_space<vmem>>, vector<1x2x96xbf16>
    %564 = vector.shape_cast %563 : vector<1x2x96xbf16> to vector<2x96xbf16>
    %565 = arith.extf %564 : vector<2x96xbf16> to vector<2x96xf32>
    %566 = tpu.concatenate %517, %546 in 1 : vector<2x32xf32>, vector<2x32xf32> -> vector<2x64xf32>
    %cst_122 = arith.constant dense<0.000000e+00> : vector<2x192xf32>
    %567 = tpu.matmul %566, %0, %cst_122 {dimension_numbers = #tpu.dot_dimension_numbers<[1], [0], [0], [1], [0, 0, 1, 1], [], []>} : vector<2x64xf32>, vector<64x192xf32>, vector<2x192xf32> -> vector<2x192xf32>
    %568 = vector.extract_strided_slice %567 {offsets = [0, 0], sizes = [2, 96], strides = [1, 1]} : vector<2x192xf32> to vector<2x96xf32>
    %569 = vector.extract_strided_slice %561 {offsets = [0, 0], sizes = [2, 32], strides = [1, 1]} : vector<2x96xf32> to vector<2x32xf32>
    %570 = vector.extract_strided_slice %568 {offsets = [0, 0], sizes = [2, 32], strides = [1, 1]} : vector<2x96xf32> to vector<2x32xf32>
    %571 = arith.addf %569, %570 : vector<2x32xf32>
    %572 = arith.negf %571 : vector<2x32xf32>
    %573 = math.exp %572 : vector<2x32xf32>
    %cst_123 = arith.constant 1.000000e+00 : f32
    %574 = vector.broadcast %cst_123 : f32 to vector<2x32xf32>
    %575 = arith.addf %574, %573 : vector<2x32xf32>
    %576 = arith.divf %574, %575 : vector<2x32xf32>
    %577 = vector.extract_strided_slice %561 {offsets = [0, 32], sizes = [2, 32], strides = [1, 1]} : vector<2x96xf32> to vector<2x32xf32>
    %578 = vector.extract_strided_slice %568 {offsets = [0, 32], sizes = [2, 32], strides = [1, 1]} : vector<2x96xf32> to vector<2x32xf32>
    %579 = arith.addf %577, %578 : vector<2x32xf32>
    %580 = arith.negf %579 : vector<2x32xf32>
    %581 = math.exp %580 : vector<2x32xf32>
    %cst_124 = arith.constant 1.000000e+00 : f32
    %582 = vector.broadcast %cst_124 : f32 to vector<2x32xf32>
    %583 = arith.addf %582, %581 : vector<2x32xf32>
    %584 = arith.divf %582, %583 : vector<2x32xf32>
    %585 = vector.extract_strided_slice %561 {offsets = [0, 64], sizes = [2, 32], strides = [1, 1]} : vector<2x96xf32> to vector<2x32xf32>
    %586 = vector.extract_strided_slice %568 {offsets = [0, 64], sizes = [2, 32], strides = [1, 1]} : vector<2x96xf32> to vector<2x32xf32>
    %587 = vector.broadcast %1 : vector<1x32xf32> to vector<2x32xf32>
    %588 = arith.addf %586, %587 : vector<2x32xf32>
    %589 = arith.mulf %576, %588 : vector<2x32xf32>
    %590 = arith.addf %585, %589 : vector<2x32xf32>
    %591 = math.tanh %590 : vector<2x32xf32>
    %cst_125 = arith.constant 1.000000e+00 : f32
    %592 = vector.broadcast %cst_125 : f32 to vector<2x32xf32>
    %593 = arith.subf %592, %584 : vector<2x32xf32>
    %594 = arith.mulf %593, %591 : vector<2x32xf32>
    %595 = arith.mulf %584, %517 : vector<2x32xf32>
    %596 = arith.addf %594, %595 : vector<2x32xf32>
    %597 = vector.extract_strided_slice %567 {offsets = [0, 96], sizes = [2, 96], strides = [1, 1]} : vector<2x192xf32> to vector<2x96xf32>
    %598 = vector.extract_strided_slice %565 {offsets = [0, 0], sizes = [2, 32], strides = [1, 1]} : vector<2x96xf32> to vector<2x32xf32>
    %599 = vector.extract_strided_slice %597 {offsets = [0, 0], sizes = [2, 32], strides = [1, 1]} : vector<2x96xf32> to vector<2x32xf32>
    %600 = arith.addf %598, %599 : vector<2x32xf32>
    %601 = arith.negf %600 : vector<2x32xf32>
    %602 = math.exp %601 : vector<2x32xf32>
    %cst_126 = arith.constant 1.000000e+00 : f32
    %603 = vector.broadcast %cst_126 : f32 to vector<2x32xf32>
    %604 = arith.addf %603, %602 : vector<2x32xf32>
    %605 = arith.divf %603, %604 : vector<2x32xf32>
    %606 = vector.extract_strided_slice %565 {offsets = [0, 32], sizes = [2, 32], strides = [1, 1]} : vector<2x96xf32> to vector<2x32xf32>
    %607 = vector.extract_strided_slice %597 {offsets = [0, 32], sizes = [2, 32], strides = [1, 1]} : vector<2x96xf32> to vector<2x32xf32>
    %608 = arith.addf %606, %607 : vector<2x32xf32>
    %609 = arith.negf %608 : vector<2x32xf32>
    %610 = math.exp %609 : vector<2x32xf32>
    %cst_127 = arith.constant 1.000000e+00 : f32
    %611 = vector.broadcast %cst_127 : f32 to vector<2x32xf32>
    %612 = arith.addf %611, %610 : vector<2x32xf32>
    %613 = arith.divf %611, %612 : vector<2x32xf32>
    %614 = vector.extract_strided_slice %565 {offsets = [0, 64], sizes = [2, 32], strides = [1, 1]} : vector<2x96xf32> to vector<2x32xf32>
    %615 = vector.extract_strided_slice %597 {offsets = [0, 64], sizes = [2, 32], strides = [1, 1]} : vector<2x96xf32> to vector<2x32xf32>
    %616 = vector.broadcast %2 : vector<1x32xf32> to vector<2x32xf32>
    %617 = arith.addf %615, %616 : vector<2x32xf32>
    %618 = arith.mulf %605, %617 : vector<2x32xf32>
    %619 = arith.addf %614, %618 : vector<2x32xf32>
    %620 = math.tanh %619 : vector<2x32xf32>
    %cst_128 = arith.constant 1.000000e+00 : f32
    %621 = vector.broadcast %cst_128 : f32 to vector<2x32xf32>
    %622 = arith.subf %621, %613 : vector<2x32xf32>
    %623 = arith.mulf %622, %620 : vector<2x32xf32>
    %624 = arith.mulf %613, %546 : vector<2x32xf32>
    %625 = arith.addf %623, %624 : vector<2x32xf32>
    %626 = arith.truncf %596 : vector<2x32xf32> to vector<2x32xbf16>
    %627 = arith.index_cast %c7_i32_116 : i32 to index
    %c0_129 = arith.constant 0 : index
    %c0_130 = arith.constant 0 : index
    %628 = vector.load %arg6[%627, %c0_129, %c0_130] : memref<8x2x32xbf16, #tpu.memory_space<vmem>>, vector<1x2x32xbf16>
    %629 = vector.shape_cast %628 : vector<1x2x32xbf16> to vector<2x32xbf16>
    %630 = vector.shape_cast %626 : vector<2x32xbf16> to vector<1x2x32xbf16>
    tpu.vector_store %arg6[%627, %c0_129, %c0_130], %630 {strides = array<i32>} : memref<8x2x32xbf16, #tpu.memory_space<vmem>>, vector<1x2x32xbf16>,
    %631 = arith.truncf %625 : vector<2x32xf32> to vector<2x32xbf16>
    %632 = arith.index_cast %557 : i32 to index
    %c0_131 = arith.constant 0 : index
    %c0_132 = arith.constant 0 : index
    %633 = vector.load %arg7[%632, %c0_131, %c0_132] : memref<8x2x32xbf16, #tpu.memory_space<vmem>>, vector<1x2x32xbf16>
    %634 = vector.shape_cast %633 : vector<1x2x32xbf16> to vector<2x32xbf16>
    %635 = vector.shape_cast %631 : vector<2x32xbf16> to vector<1x2x32xbf16>
    tpu.vector_store %arg7[%632, %c0_131, %c0_132], %635 {strides = array<i32>} : memref<8x2x32xbf16, #tpu.memory_space<vmem>>, vector<1x2x32xbf16>,
    %c8_i32 = arith.constant 8 : i32
    %c0_133 = arith.constant 0 : index
    %c0_134 = arith.constant 0 : index
    %c0_135 = arith.constant 0 : index
    %636 = vector.load %arg8[%c0_133, %c0_134, %c0_135] : memref<2x2x32xf32, #tpu.memory_space<vmem>>, vector<1x2x32xf32>
    %637 = vector.shape_cast %636 : vector<1x2x32xf32> to vector<2x32xf32>
    %638 = vector.shape_cast %596 : vector<2x32xf32> to vector<1x2x32xf32>
    tpu.vector_store %arg8[%c0_133, %c0_134, %c0_135], %638 {strides = array<i32>} : memref<2x2x32xf32, #tpu.memory_space<vmem>>, vector<1x2x32xf32>,
    %c1 = arith.constant 1 : index
    %c0_136 = arith.constant 0 : index
    %c0_137 = arith.constant 0 : index
    %639 = vector.load %arg8[%c1, %c0_136, %c0_137] : memref<2x2x32xf32, #tpu.memory_space<vmem>>, vector<1x2x32xf32>
    %640 = vector.shape_cast %639 : vector<1x2x32xf32> to vector<2x32xf32>
    %641 = vector.shape_cast %625 : vector<2x32xf32> to vector<1x2x32xf32>
    tpu.vector_store %arg8[%c1, %c0_136, %c0_137], %641 {strides = array<i32>} : memref<2x2x32xf32, #tpu.memory_space<vmem>>, vector<1x2x32xf32>,
    return
  }
  func.func @transform_0(%arg0: i32) -> (i32, i32, i32) {
    %c0_i32 = arith.constant 0 : i32
    %c0_i32_0 = arith.constant 0 : i32
    %c0_i32_1 = arith.constant 0 : i32
    return %c0_i32, %arg0, %c0_i32_0 : i32, i32, i32
  }
  func.func @transform_1(%arg0: i32) -> (i32, i32, i32) {
    %c0_i32 = arith.constant 0 : i32
    %c0_i32_0 = arith.constant 0 : i32
    %c0_i32_1 = arith.constant 0 : i32
    return %c0_i32, %arg0, %c0_i32_0 : i32, i32, i32
  }
  func.func @transform_2(%arg0: i32) -> (i32, i32) {
    %c0_i32 = arith.constant 0 : i32
    %c0_i32_0 = arith.constant 0 : i32
    %c0_i32_1 = arith.constant 0 : i32
    return %c0_i32, %c0_i32_0 : i32, i32
  }
  func.func @transform_3(%arg0: i32) -> (i32, i32) {
    %c0_i32 = arith.constant 0 : i32
    %c0_i32_0 = arith.constant 0 : i32
    %c0_i32_1 = arith.constant 0 : i32
    return %c0_i32, %c0_i32_0 : i32, i32
  }
  func.func @transform_4(%arg0: i32) -> (i32, i32) {
    %c0_i32 = arith.constant 0 : i32
    %c0_i32_0 = arith.constant 0 : i32
    %c0_i32_1 = arith.constant 0 : i32
    return %c0_i32, %c0_i32_0 : i32, i32
  }
  func.func @transform_5(%arg0: i32) -> (i32, i32, i32) {
    %c0_i32 = arith.constant 0 : i32
    %c0_i32_0 = arith.constant 0 : i32
    %c0_i32_1 = arith.constant 0 : i32
    return %c0_i32, %arg0, %c0_i32_0 : i32, i32, i32
  }
  func.func @transform_6(%arg0: i32) -> (i32, i32, i32) {
    %c0_i32 = arith.constant 0 : i32
    %c0_i32_0 = arith.constant 0 : i32
    %c0_i32_1 = arith.constant 0 : i32
    return %c0_i32, %arg0, %c0_i32_0 : i32, i32, i32
  }
  func.func @transform_7(%arg0: i32) -> (i32, i32, i32) {
    %c0_i32 = arith.constant 0 : i32
    %c0_i32_0 = arith.constant 0 : i32
    %c0_i32_1 = arith.constant 0 : i32
    return %c0_i32, %arg0, %c0_i32_0 : i32, i32, i32
  }
}

</mosaic_0001>

<bundles_post_ra>
// kernel: rnn_forward.4
= control target key start
LH: loop header
LB: loop body
LE: loop exit
PB: predicated region body
PF: predicated region fallthrough
CT: control target
= control target key end

     0   :  { %10 = vsyncpa [#allocation3], 0  ;;  %s172_s18 = smov [#allocation2]   ;;  %s173_s20 = smov 128   ;;  %s226_s0 = inlined_call_operand.vmem [shape: bf16[16,16], index: 0, kind: input, shape index: {}]   ;;  %s227_s1 = inlined_call_operand.hbm [shape: bf16[16,192], index: 1, kind: input, shape index: {}]   ;;  %s228_s2 = inlined_call_operand.vmem [shape: f32[1,192], index: 2, kind: input, shape index: {}]   ;;  %s229_s3 = inlined_call_operand.vmem [shape: bf16[16,96], index: 3, kind: output, shape index: {0}]   ;;  %s230_s4 = inlined_call_operand.vmem [shape: bf16[16,96], index: 4, kind: output, shape index: {1}]  }
   0x1   :  { %s17_s17 = sshll.u32 %s227_s1, 4  ;;  %s19_s19 = sshll.u32 %s172_s18, 4  ;;  %s18_s17 = int_to_ptr.hbm [resolvable:$true] %s17_s17  ;;  %s20_s19 = int_to_ptr.vmem [resolvable:$true] %s19_s19 }
   0x2   :  { %s174_s21 = smov 8  }
   0x3   :  { %25 = dma.hbm_to_vmem [thread:$0]  %s18_s17, 256, %s20_s19, [#allocation3], %s173_s20, %s173_s20, %s174_s21  }
   0x4   :  { %170 = dma.done.wait [#allocation3], 256  }
   0x5   :  { %171 = vsyncadd [#allocation3], 4294967040  ;;  %v131_v0 = vld [vmem:[#allocation2] sm:$0xf]  ;;  %v141_v1 = vld [vmem:[#allocation2 + $0x4] sm:$0xf0] }
   0x6   :  { %v140_v2 = vld [vmem:[#allocation2 + $0x4] sm:$0xf]  ;;  %v132_v3 = vor.u32 %v141_v1, %v131_v0  ;;  %v133_v4 = vld [vmem:[#allocation2 + $0x8] sm:$0xf0]  ;;  %vm53_vm0 = vcmask 130048   ;;  %vm96_vm1 = vcmask 781312  }
   0x7   :  { %v136_v5 = vor.u32 %v140_v2, %v133_v4  ;;  %v139_v6 = vld [vmem:[%s226_s0] sm:$0xff]  ;;  %s175_s26 = smov 32   ;;  %vm109_vm2 = vcmask 261120  }
   0x8   :  { %64 = vmatpush.bf16.msra.mxu0 %v132_v3  ;;  %v33_v7 = vld [vmem:[%s228_s2] sm:$0x3] }
   0x9   :  { %78 = vmatpush.bf16.msra.mxu1 %v136_v5  ;;  %v86_v8 = vperm.slane %v33_v7, 0  ;;  %v87_v9 = vperm.slane %v33_v7, 1 }
   0xb   :  { %137 = vmatmul.msk.bf16.vlgmr.msra.gmra.mxu0 %vm53_vm0, %v139_v6 }
   0xc   :  { %138 = vmatmul.msk.bf16.vlgmr.msra.gmra.mxu1 %vm53_vm0, %v139_v6 }
  0x88   :  { %v66_v10 = vpop.f32.mrf.mxu0 }
  0x89   :  { %v90_v11 = vadd.f32 %v86_v8, %v66_v10  ;;  %v80_v12 = vpop.f32.mrf.mxu1 }
  0x8a   :  { %v91_v13 = vadd.f32 %v87_v9, %v80_v12 }
  0x8b   :  { %v94_v14 = vpack.c.bf16 %v90_v11, %v90_v11 }
  0x8c   :  { %v99_v15 = vpack.c.bf16 %v91_v13, %v90_v11 }
  0x8d   :  { %97 = vst.msk [vmem:[%s229_s3] sm:$0xf] %vm96_vm1, %v94_v14 }
  0x8e   :  { %103 = vrot.lane.b32.xlu0 %v99_v15, %s175_s26 }
  0x90   :  { %v68_v16 = vpop.f32.mrf.mxu0 }
  0x91   :  { %v92_v17 = vadd.f32 %v86_v8, %v68_v16  ;;  %v82_v18 = vpop.f32.mrf.mxu1 }
  0x92   :  { %v93_v19 = vadd.f32 %v87_v9, %v82_v18 }
  0x93   :  { %v95_v20 = vpack.c.bf16 %v92_v17, %v92_v17 }
  0x94   :  { %v100_v21 = vpack.c.bf16 %v93_v19, %v92_v17 }
  0x95   :  { %98 = vst.msk [vmem:[%s229_s3 + $0x4] sm:$0xf] %vm96_vm1, %v95_v20 }
  0x96   :  { %105 = vrot.lane.b32.xlu0 %v100_v21, %s175_s26 }
 0x100   :  { %v104_v22 = vpop.permute.xlu0 %103 }
 0x101   :  { %v107_v23 = vrot.slane %v104_v22, 4 }
 0x103   :  { %v110_v24 = vsel %vm109_vm2, %v104_v22, %v107_v23 }
 0x104   :  { %114 = vst.msk [vmem:[%s230_s4] sm:$0xf] %vm96_vm1, %v110_v24 }
 0x108   :  { %v106_v25 = vpop.permute.xlu0 %105 }
 0x109   :  { %v108_v26 = vrot.slane %v106_v25, 4 }
 0x10b   :  { %v111_v27 = vsel %vm109_vm2, %v106_v25, %v108_v26 }
 0x10c   :  { %115 = vst.msk [vmem:[%s230_s4 + $0x4] sm:$0xf] %vm96_vm1, %v111_v27 }
 0x10d   :  { %124 = vsyncpa [#allocation3], 1 }

// kernel: rnn_forward.6
= control target key start
LH: loop header
LB: loop body
LE: loop exit
PB: predicated region body
PF: predicated region fallthrough
CT: control target
= control target key end

     0   :  { %12 = vsyncpa [#allocation3], 0  ;;  %s293_s24 = smov [#allocation2]   ;;  %s294_s26 = smov 128   ;;  %s390_s0 = inlined_call_operand.vmem [shape: bf16[16,32], index: 0, kind: input, shape index: {}]   ;;  %s391_s1 = inlined_call_operand.vmem [shape: bf16[16,32], index: 1, kind: input, shape index: {}]   ;;  %s392_s2 = inlined_call_operand.vmem [shape: bf16[32,192], index: 2, kind: input, shape index: {}]   ;;  %s393_s3 = inlined_call_operand.hbm [shape: bf16[32,192], index: 3, kind: input, shape index: {}]   ;;  %s394_s4 = inlined_call_operand.vmem [shape: f32[1,192], index: 4, kind: input, shape index: {}]   ;;  %s395_s5 = inlined_call_operand.vmem [shape: bf16[16,96], index: 5, kind: output, shape index: {0}]   ;;  %s396_s6 = inlined_call_operand.vmem [shape: bf16[16,96], index: 6, kind: output, shape index: {1}]  }
   0x1   :  { %s23_s23 = sshll.u32 %s393_s3, 4  ;;  %s25_s25 = sshll.u32 %s293_s24, 4  ;;  %s24_s23 = int_to_ptr.hbm [resolvable:$true] %s23_s23  ;;  %s26_s25 = int_to_ptr.vmem [resolvable:$true] %s25_s25 }
   0x2   :  { %s295_s27 = smov 8  }
   0x3   :  { %31 = dma.hbm_to_vmem [thread:$0]  %s24_s23, 512, %s26_s25, [#allocation3], %s294_s26, %s294_s26, %s295_s27  }
   0x4   :  { %291 = dma.done.wait [#allocation3], 512  }
   0x5   :  { %292 = vsyncadd [#allocation3], 4294966784  ;;  %v223_v0 = vld [vmem:[%s392_s2 + $0x10] sm:$0xf]  ;;  %v257_v1 = vld [vmem:[%s392_s2 + $0x14] sm:$0xf0] }
   0x6   :  { %v256_v2 = vld [vmem:[%s392_s2 + $0x14] sm:$0xf]  ;;  %v224_v3 = vor.u32 %v257_v1, %v223_v0  ;;  %v225_v4 = vld [vmem:[%s392_s2 + $0x18] sm:$0xf0]  ;;  %v245_v5 = vld [vmem:[#allocation2 + $0x10] sm:$0xf] }
   0x7   :  { %v262_v6 = vld [vmem:[#allocation2 + $0x14] sm:$0xf0]  ;;  %v228_v7 = vor.u32 %v256_v2, %v225_v4  ;;  %v261_v9 = vld [vmem:[#allocation2 + $0x14] sm:$0xf]  ;;  %v247_v10 = vld [vmem:[#allocation2 + $0x18] sm:$0xf0] }
   0x8   :  { %v246_v8 = vor.u32 %v262_v6, %v245_v5  ;;  %v215_v11 = vld [vmem:[%s392_s2] sm:$0xf]  ;;  %81 = vmatpush.bf16.msra.mxu0 %v224_v3  ;;  %v250_v12 = vor.u32 %v261_v9, %v247_v10  ;;  %v255_v13 = vld [vmem:[%s392_s2 + $0x4] sm:$0xf0]  ;;  %v254_v14 = vld [vmem:[%s392_s2 + $0x4] sm:$0xf] }
   0x9   :  { %v217_v15 = vld [vmem:[%s392_s2 + $0x8] sm:$0xf0]  ;;  %95 = vmatpush.bf16.msra.mxu1 %v228_v7  ;;  %v216_v16 = vor.u32 %v255_v13, %v215_v11  ;;  %v237_v18 = vld [vmem:[#allocation2] sm:$0xf]  ;;  %v260_v19 = vld [vmem:[#allocation2 + $0x4] sm:$0xf0] }
   0xa   :  { %152 = vmatpush.bf16.msra.mxu2 %v246_v8  ;;  %v220_v17 = vor.u32 %v254_v14, %v217_v15  ;;  %v259_v20 = vld [vmem:[#allocation2 + $0x4] sm:$0xf]  ;;  %166 = vmatpush.bf16.msra.mxu3 %v250_v12  ;;  %v238_v21 = vor.u32 %v260_v19, %v237_v18  ;;  %v239_v22 = vld [vmem:[#allocation2 + $0x8] sm:$0xf0]  ;;  %vm71_vm0 = vcmask 261120   ;;  %vm180_vm1 = vcmask 781312  }
   0xb   :  { %v242_v23 = vor.u32 %v259_v20, %v239_v22  ;;  %v253_v24 = vld [vmem:[%s390_s0] sm:$0xff] }
   0xc   :  { %82 = vmatpush.bf16.msra.mxu0 %v216_v16  ;;  %v258_v25 = vld [vmem:[%s391_s1] sm:$0xff] }
   0xd   :  { %96 = vmatpush.bf16.msra.mxu1 %v220_v17  ;;  %v39_v26 = vld [vmem:[%s394_s4] sm:$0x3]  ;;  %s296_s4 = smov 32  }
   0xe   :  { %153 = vmatpush.bf16.msra.mxu2 %v238_v21  ;;  %167 = vmatpush.bf16.msra.mxu3 %v242_v23  ;;  %v104_v27 = vperm.slane %v39_v26, 0  ;;  %v105_v29 = vperm.slane %v39_v26, 1 }
   0xf   :  { %229 = vmatmul.msk.bf16.vlgmr.msra.gmra.mxu0 %vm71_vm0, %v253_v24 }
  0x10   :  { %230 = vmatmul.msk.bf16.vlgmr.msra.gmra.mxu1 %vm71_vm0, %v253_v24 }
  0x11   :  { %251 = vmatmul.msk.bf16.vlgmr.msra.gmra.mxu2 %vm71_vm0, %v258_v25  ;;  %252 = vmatmul.msk.bf16.vlgmr.msra.gmra.mxu3 %vm71_vm0, %v258_v25 }
  0x8c   :  { %v84_v28 = vpop.f32.mrf.mxu0 }
  0x8d   :  { %v98_v30 = vpop.f32.mrf.mxu1  ;;  %v108_v31 = vadd.f32 %v104_v27, %v84_v28 }
  0x8e   :  { %v109_v32 = vadd.f32 %v105_v29, %v98_v30 }
  0x94   :  { %v155_v33 = vpop.f32.mrf.mxu2  ;;  %v169_v35 = vpop.f32.mrf.mxu3 }
  0x95   :  { %v174_v34 = vadd.f32 %v155_v33, %v108_v31  ;;  %v175_v36 = vadd.f32 %v169_v35, %v109_v32  ;;  %v86_v38 = vpop.f32.mrf.mxu0  ;;  %v100_v40 = vpop.f32.mrf.mxu1 }
  0x96   :  { %v110_v41 = vadd.f32 %v104_v27, %v86_v38  ;;  %v111_v42 = vadd.f32 %v105_v29, %v100_v40 }
  0x97   :  { %v178_v37 = vpack.c.bf16 %v174_v34, %v174_v34  ;;  %v183_v39 = vpack.c.bf16 %v175_v36, %v174_v34 }
  0x99   :  { %181 = vst.msk [vmem:[%s395_s5] sm:$0xf] %vm180_vm1, %v178_v37  ;;  %187 = vrot.lane.b32.xlu0 %v183_v39, %s296_s4 }
  0x9c   :  { %v157_v43 = vpop.f32.mrf.mxu2  ;;  %v171_v45 = vpop.f32.mrf.mxu3 }
  0x9d   :  { %v176_v44 = vadd.f32 %v157_v43, %v110_v41  ;;  %v177_v46 = vadd.f32 %v171_v45, %v111_v42 }
  0x9f   :  { %v179_v47 = vpack.c.bf16 %v176_v44, %v176_v44  ;;  %v184_v48 = vpack.c.bf16 %v177_v46, %v176_v44 }
  0xa1   :  { %182 = vst.msk [vmem:[%s395_s5 + $0x4] sm:$0xf] %vm180_vm1, %v179_v47  ;;  %189 = vrot.lane.b32.xlu0 %v184_v48, %s296_s4 }
 0x10b   :  { %v188_v49 = vpop.permute.xlu0 %187 }
 0x10c   :  { %v191_v50 = vrot.slane %v188_v49, 4 }
 0x10e   :  { %v194_v51 = vsel %vm71_vm0, %v188_v49, %v191_v50 }
 0x10f   :  { %198 = vst.msk [vmem:[%s396_s6] sm:$0xf] %vm180_vm1, %v194_v51 }
 0x113   :  { %v190_v52 = vpop.permute.xlu0 %189 }
 0x114   :  { %v192_v53 = vrot.slane %v190_v52, 4 }
 0x116   :  { %v195_v54 = vsel %vm71_vm0, %v190_v52, %v192_v53 }
 0x117   :  { %199 = vst.msk [vmem:[%s396_s6 + $0x4] sm:$0xf] %vm180_vm1, %v195_v54 }
 0x118   :  { %208 = vsyncpa [#allocation3], 1 }

// kernel: rnn_forward.5
= control target key start
LH: loop header
LB: loop body
LE: loop exit
PB: predicated region body
PF: predicated region fallthrough
CT: control target
= control target key end

     0   :  { %s1778_s23 = smov 32   ;;  %v1779_v18 = vmov 0.0   ;;  %s1780_s15 = smov 96   ;;  %vm245_vm12 = vcmask 261120   ;;  %vm46_vm13 = vcmask 523264   ;;  %s2402_s2 = inlined_call_operand.vmem [shape: f32[64,192], index: 2, kind: input, shape index: {}]   ;;  %s2403_s3 = inlined_call_operand.vmem [shape: f32[1,32], index: 3, kind: input, shape index: {}]   ;;  %s2404_s4 = inlined_call_operand.vmem [shape: f32[1,32], index: 4, kind: input, shape index: {}]   ;;  %s2405_s0 = inlined_call_operand.vmem [shape: bf16[8,2,96], index: 0, kind: input, shape index: {}]   ;;  %s2406_s1 = inlined_call_operand.vmem [shape: bf16[8,2,96], index: 1, kind: input, shape index: {}]   ;;  %s2407_s5 = inlined_call_operand.vmem [shape: bf16[8,2,32], index: 5, kind: output, shape index: {0}]   ;;  %s2408_s6 = inlined_call_operand.vmem [shape: bf16[8,2,32], index: 6, kind: output, shape index: {1}]   ;;  %s2409_s7 = inlined_call_operand.vmem [shape: f32[2,2,32], index: 7, kind: output, shape index: {2}]  }
   0x1   :  { %v1824_v0 = vld [vmem:[%s2402_s2 + $0x70] sm:$0xff]  ;;  %v1829_v1 = vld [vmem:[%s2402_s2 + $0x60] sm:$0xff]  ;;  %v1845_v4 = vld [vmem:[%s2402_s2 + $0x78] sm:$0xff] }
   0x2   :  { %58 = vmatpush.msra.mxu0 %v1824_v0  ;;  %258 = vmatpush.msra.mxu2 %v1824_v0  ;;  %v1836_v2 = vld [vmem:[%s2402_s2 + $0x50] sm:$0xff]  ;;  %v1647_v3 = vld [vmem:[%s2403_s3] ss:$0 sm:$0xff]  ;;  %v1850_v5 = vld [vmem:[%s2402_s2 + $0x68] sm:$0xff]  ;;  %s1777_s3 = smov 64  }
   0x3   :  { %v1856_v6 = vld [vmem:[%s2402_s2 + $0x40] sm:$0xff]  ;;  %78 = vmatpush.msra.mxu1 %v1845_v4  ;;  %278 = vmatpush.msra.mxu3 %v1845_v4  ;;  %v1865_v7 = vld [vmem:[%s2402_s2 + $0x58] sm:$0xff]  ;;  %v1873_v9 = vld [vmem:[%s2402_s2 + $0x30] sm:$0xff] }
   0x4   :  { %59 = vmatpush.msra.mxu0 %v1829_v1  ;;  %259 = vmatpush.msra.mxu2 %v1829_v1  ;;  %v1648_v8 = vld [vmem:[%s2404_s4] ss:$0 sm:$0xff]  ;;  %v1881_v10 = vld [vmem:[%s2402_s2 + $0x48] sm:$0xff]  ;;  %v1895_v12 = vld [vmem:[%s2402_s2 + $0x38] sm:$0xff] }
   0x5   :  { %112 = vrot.lane.b32.xlu0 %v1647_v3, %s1777_s3  ;;  %79 = vmatpush.msra.mxu1 %v1850_v5  ;;  %v1887_v11 = vld [vmem:[%s2402_s2 + $0x20] sm:$0xff]  ;;  %v1901_v13 = vld [vmem:[%s2402_s2 + $0x10] sm:$0xff]  ;;  %v1909_v14 = vld [vmem:[%s2402_s2 + $0x28] sm:$0xff] }
   0x6   :  { %60 = vmatpush.msra.mxu0 %v1836_v2  ;;  %279 = vmatpush.msra.mxu3 %v1850_v5  ;;  %v1915_v15 = vld [vmem:[%s2402_s2] sm:$0xff]  ;;  %v1923_v16 = vld [vmem:[%s2402_s2 + $0x18] sm:$0xff]  ;;  %v1932_v17 = vld [vmem:[%s2402_s2 + $0x8] sm:$0xff] }
   0x7   :  { %185 = vrot.lane.b32.xlu1 %v1648_v8, %s1778_s23  ;;  %80 = vmatpush.msra.mxu1 %v1865_v7  ;;  %v41_v22 = vld [vmem:[%s2405_s0] sm:$0x1]  ;;  %v1576_v43 = vld [vmem:[%s2406_s1 + $0x7] sm:$0x1] }
   0x8   :  { %61 = vmatpush.msra.mxu0 %v1856_v6  ;;  %260 = vmatpush.msra.mxu2 %v1836_v2  ;;  %v42_v23 = vunpack.c.l.bf16 %v41_v22  ;;  %v45_v44 = vunpack.c.l.bf16 %v1576_v43 }
   0x9   :  { %280 = vmatpush.msra.mxu3 %v1865_v7  ;;  %81 = vmatpush.msra.mxu1 %v1881_v10 }
   0xa   :  { %62 = vmatpush.msra.mxu0 %v1873_v9  ;;  %261 = vmatpush.msra.mxu2 %v1856_v6 }
   0xb   :  { %281 = vmatpush.msra.mxu3 %v1881_v10  ;;  %82 = vmatpush.msra.mxu1 %v1895_v12 }
   0xc   :  { %63 = vmatpush.msra.mxu0 %v1887_v11  ;;  %262 = vmatpush.msra.mxu2 %v1873_v9 }
   0xd   :  { %282 = vmatpush.msra.mxu3 %v1895_v12  ;;  %83 = vmatpush.msra.mxu1 %v1909_v14 }
   0xe   :  { %64 = vmatpush.msra.mxu0 %v1901_v13  ;;  %263 = vmatpush.msra.mxu2 %v1887_v11 }
   0xf   :  { %283 = vmatpush.msra.mxu3 %v1909_v14  ;;  %84 = vmatpush.msra.mxu1 %v1923_v16 }
  0x10   :  { %65 = vmatpush.msra.mxu0 %v1915_v15  ;;  %264 = vmatpush.msra.mxu2 %v1901_v13 }
  0x11   :  { %66 = vmatmul.f32.vlgmr.msra.gmra.mxu0 %v1779_v18  ;;  %284 = vmatpush.msra.mxu3 %v1923_v16 }
  0x12   :  { %85 = vmatpush.msra.mxu1 %v1932_v17  ;;  %446 = vmatpush.msrb.mxu0 %v1824_v0 }
  0x13   :  { %86 = vmatmul.f32.vlgmr.msra.gmra.mxu1 %v1779_v18  ;;  %265 = vmatpush.msra.mxu2 %v1915_v15 }
  0x14   :  { %285 = vmatpush.msra.mxu3 %v1932_v17  ;;  %466 = vmatpush.msrb.mxu1 %v1845_v4 }
  0x15   :  { %447 = vmatpush.msrb.mxu0 %v1829_v1  ;;  %634 = vmatpush.msrb.mxu2 %v1824_v0 }
  0x16   :  { %467 = vmatpush.msrb.mxu1 %v1850_v5  ;;  %654 = vmatpush.msrb.mxu3 %v1845_v4 }
  0x17   :  { %448 = vmatpush.msrb.mxu0 %v1836_v2  ;;  %635 = vmatpush.msrb.mxu2 %v1829_v1 }
  0x18   :  { %468 = vmatpush.msrb.mxu1 %v1865_v7  ;;  %655 = vmatpush.msrb.mxu3 %v1850_v5 }
  0x19   :  { %449 = vmatpush.msrb.mxu0 %v1856_v6  ;;  %636 = vmatpush.msrb.mxu2 %v1836_v2 }
  0x1a   :  { %469 = vmatpush.msrb.mxu1 %v1881_v10  ;;  %656 = vmatpush.msrb.mxu3 %v1865_v7 }
  0x1b   :  { %450 = vmatpush.msrb.mxu0 %v1873_v9  ;;  %637 = vmatpush.msrb.mxu2 %v1856_v6 }
  0x1c   :  { %470 = vmatpush.msrb.mxu1 %v1895_v12  ;;  %657 = vmatpush.msrb.mxu3 %v1881_v10 }
  0x1d   :  { %451 = vmatpush.msrb.mxu0 %v1887_v11  ;;  %638 = vmatpush.msrb.mxu2 %v1873_v9 }
  0x1e   :  { %471 = vmatpush.msrb.mxu1 %v1909_v14  ;;  %658 = vmatpush.msrb.mxu3 %v1895_v12 }
  0x1f   :  { %452 = vmatpush.msrb.mxu0 %v1901_v13  ;;  %639 = vmatpush.msrb.mxu2 %v1887_v11 }
  0x20   :  { %472 = vmatpush.msrb.mxu1 %v1923_v16  ;;  %659 = vmatpush.msrb.mxu3 %v1909_v14 }
  0x21   :  { %453 = vmatpush.msrb.mxu0 %v1915_v15  ;;  %640 = vmatpush.msrb.mxu2 %v1901_v13 }
  0x22   :  { %473 = vmatpush.msrb.mxu1 %v1932_v17  ;;  %660 = vmatpush.msrb.mxu3 %v1923_v16 }
  0x23   :  { %641 = vmatpush.msrb.mxu2 %v1915_v15  ;;  %822 = vmatpush.msra.mxu0 %v1824_v0 }
  0x24   :  { %661 = vmatpush.msrb.mxu3 %v1932_v17  ;;  %842 = vmatpush.msra.mxu1 %v1845_v4 }
  0x25   :  { %823 = vmatpush.msra.mxu0 %v1829_v1 }
  0x26   :  { %843 = vmatpush.msra.mxu1 %v1850_v5 }
  0x27   :  { %824 = vmatpush.msra.mxu0 %v1836_v2 }
  0x28   :  { %844 = vmatpush.msra.mxu1 %v1865_v7 }
  0x29   :  { %825 = vmatpush.msra.mxu0 %v1856_v6 }
  0x2a   :  { %845 = vmatpush.msra.mxu1 %v1881_v10 }
  0x2b   :  { %826 = vmatpush.msra.mxu0 %v1873_v9 }
  0x2c   :  { %846 = vmatpush.msra.mxu1 %v1895_v12 }
  0x2d   :  { %827 = vmatpush.msra.mxu0 %v1887_v11 }
  0x2e   :  { %847 = vmatpush.msra.mxu1 %v1909_v14 }
  0x2f   :  { %828 = vmatpush.msra.mxu0 %v1901_v13 }
  0x30   :  { %848 = vmatpush.msra.mxu1 %v1923_v16 }
  0x31   :  { %829 = vmatpush.msra.mxu0 %v1915_v15 }
  0x32   :  { %849 = vmatpush.msra.mxu1 %v1932_v17 }
  0x77   :  { %v1989_v19 = vpop.permute.xlu0 %112 }
  0x79   :  { %v1998_v41 = vpop.permute.xlu1 %185 }
  0x8e   :  { %v67_v20 = vpop.f32.mrf.mxu0 }
  0x8f   :  { %v115_v21 = vadd.f32 %v1989_v19, %v67_v20  ;;  %136 = vrot.lane.b32.xlu1 %v67_v20, %s1778_s23  ;;  %v90_v24 = vadd.f32 %v67_v20, %v42_v23 }
  0x90   :  { %v87_v40 = vpop.f32.mrf.mxu1 }
  0x91   :  { %117 = vrot.lane.b32.xlu0 %v115_v21, %s1777_s3  ;;  %v1577_v25 = vmul.f32 -1.442695, %v90_v24  ;;  %v188_v42 = vadd.f32 %v1998_v41, %v87_v40 }
  0x93   :  { %1649 = vpow2.f32 %v1577_v25 }
  0x99   :  { %v1650_v26 = vpop.eup %1649 }
  0x9a   :  { %v94_v27 = vadd.f32 1.0, %v1650_v26 }
  0x9c   :  { %1651 = vrcp.f32 %v94_v27  ;;  %v106_v33 = vand.u32 2147483648, %v94_v27  ;;  %vm100_vm1 = vweird.f32 %v94_v27  ;;  %v104_v34 = vand.u32 2147483647, %v94_v27 }
  0x9e   :  { %v107_v36 = vor.u32 1.1754944e-38, %v106_v33  ;;  %vm105_vm3 = vcmp.eq.f32.partialorder %v104_v34, 8.507059e+37 }
  0xa2   :  { %v1652_v28 = vpop.eup %1651 }
  0xa3   :  { %v96_v29 = vmul.f32 %v1652_v28, %v94_v27  ;;  %vm101_vm0 = vweird.f32 %v1652_v28 }
  0xa4   :  { %vm102_vm2 = vmor %vm100_vm1, %vm101_vm0 }
  0xa5   :  { %v97_v30 = vsub.f32 1.0, %v96_v29 }
  0xa7   :  { %v98_v31 = vmul.f32 %v1652_v28, %v97_v30 }
  0xa9   :  { %v99_v32 = vadd.f32 %v1652_v28, %v98_v31 }
  0xab   :  { %v103_v35 = vsel %vm102_vm2, %v1652_v28, %v99_v32 }
  0xac   :  { %v108_v38 = vsel %vm105_vm3, %v107_v36, %v103_v35 }
  0xad   :  { %v127_v8 = vsub.f32 1.0, %v108_v38  ;;  %v133_v20 = vmul.f32 0.0, %v108_v38 }
 0x101   :  { %v137_v45 = vpop.permute.xlu1 %136 }
 0x102   :  { %v139_v46 = vadd.f32 %v137_v45, %v45_v44 }
 0x103   :  { %v118_v37 = vpop.permute.xlu0 %117 }
 0x104   :  { %v120_v39 = vmul.f32 %v118_v37, %v108_v38  ;;  %v1578_v47 = vmul.f32 -1.442695, %v139_v46 }
 0x106   :  { %122 = vrot.lane.b32.xlu2 %v120_v39, %s1777_s3  ;;  %1653 = vpow2.f32 %v1578_v47 }
 0x10c   :  { %v1654_v48 = vpop.eup %1653 }
 0x10d   :  { %v143_v49 = vadd.f32 1.0, %v1654_v48 }
 0x10e   :  { %190 = vrot.lane.b32.xlu2 %v188_v42, %s1780_s15 }
 0x10f   :  { %1655 = vrcp.f32 %v143_v49  ;;  %v155_v57 = vand.u32 2147483648, %v143_v49  ;;  %vm149_vm5 = vweird.f32 %v143_v49  ;;  %v153_v58 = vand.u32 2147483647, %v143_v49 }
 0x111   :  { %v156_v60 = vor.u32 1.1754944e-38, %v155_v57  ;;  %vm154_vm7 = vcmp.eq.f32.partialorder %v153_v58, 8.507059e+37 }
 0x115   :  { %v1656_v50 = vpop.eup %1655 }
 0x116   :  { %160 = vrot.lane.b32.xlu2 %v87_v40, %s1778_s23  ;;  %v145_v51 = vmul.f32 %v1656_v50, %v143_v49  ;;  %vm150_vm4 = vweird.f32 %v1656_v50 }
 0x117   :  { %vm151_vm6 = vmor %vm149_vm5, %vm150_vm4 }
 0x118   :  { %v146_v52 = vsub.f32 1.0, %v145_v51 }
 0x11a   :  { %v147_v53 = vmul.f32 %v1656_v50, %v146_v52 }
 0x11c   :  { %v148_v56 = vadd.f32 %v1656_v50, %v147_v53 }
 0x11e   :  { %v152_v59 = vsel %vm151_vm6, %v1656_v50, %v148_v56 }
 0x11f   :  { %v157_v61 = vsel %vm154_vm7, %v156_v60, %v152_v59 }
 0x160   :  { %v123_v54 = vpop.permute.xlu2 %122 }
 0x161   :  { %v125_v55 = vadd.f32 %v123_v54, %v42_v23  ;;  %v1581_v54 = vld [vmem:[%s2405_s0 + $0x1] sm:$0x1] }
 0x163   :  { %1657 = vtanh.f32 %v125_v55  ;;  %v235_v55 = vunpack.c.l.bf16 %v1581_v54 }
 0x168   :  { %v191_v62 = vpop.permute.xlu2 %190 }
 0x169   :  { %v1658_v63 = vpop.eup %1657  ;;  %v193_v3 = vmul.f32 %v191_v62, %v157_v61 }
 0x16a   :  { %129 = vrot.lane.b32.xlu1 %v1658_v63, %s1780_s15 }
 0x16b   :  { %195 = vrot.lane.b32.xlu0 %v193_v3, %s1777_s3 }
 0x170   :  { %v161_v27 = vpop.permute.xlu2 %160 }
 0x171   :  { %v163_v28 = vadd.f32 %v161_v27, %v45_v44 }
 0x173   :  { %v1579_v29 = vmul.f32 -1.442695, %v163_v28 }
 0x1dc   :  { %v130_v18 = vpop.permute.xlu1 %129 }
 0x1dd   :  { %v132_v21 = vmul.f32 %v130_v18, %v127_v8  ;;  %v196_v22 = vpop.permute.xlu0 %195 }
 0x1de   :  { %v198_v23 = vadd.f32 %v196_v22, %v45_v44 }
 0x1df   :  { %v2008_v24 = vadd.f32 %v133_v20, %v132_v21 }
 0x1e0   :  { %1659 = vtanh.f32 %v198_v23 }
 0x1e1   :  { %240 = vst [vmem:[#allocation1] ss:$4 sm:$0xff] %v2008_v24  ;;  %1661 = vpow2.f32 %v1579_v29 }
 0x1e6   :  { %v1660_v25 = vpop.eup %1659 }
 0x1e7   :  { %202 = vrot.lane.b32.xlu0 %v1660_v25, %s1780_s15  ;;  %v1662_v30 = vpop.eup %1661 }
 0x1e8   :  { %v241_v26 = vld.sshfl [vmem:[#allocation1] sm:$0xff pattern:$0x73625140]  ;;  %v167_v31 = vadd.f32 1.0, %v1662_v30 }
 0x1e9   :  { %242 = vrot.lane.b32.xlu1 %v241_v26, %s1780_s15  ;;  %v1582_v26 = vld [vmem:[%s2406_s1 + $0x6] sm:$0x1] }
 0x1ea   :  { %1663 = vrcp.f32 %v167_v31  ;;  %v179_v37 = vand.u32 2147483648, %v167_v31  ;;  %vm173_vm9 = vweird.f32 %v167_v31  ;;  %v177_v38 = vand.u32 2147483647, %v167_v31 }
 0x1eb   :  { %v238_v27 = vunpack.c.l.bf16 %v1582_v26 }
 0x1ec   :  { %v180_v40 = vor.u32 1.1754944e-38, %v179_v37  ;;  %vm178_vm11 = vcmp.eq.f32.partialorder %v177_v38, 8.507059e+37 }
 0x1f0   :  { %v1664_v32 = vpop.eup %1663 }
 0x1f1   :  { %v169_v33 = vmul.f32 %v1664_v32, %v167_v31  ;;  %vm174_vm8 = vweird.f32 %v1664_v32 }
 0x1f2   :  { %vm175_vm10 = vmor %vm173_vm9, %vm174_vm8 }
 0x1f3   :  { %v170_v34 = vsub.f32 1.0, %v169_v33 }
 0x1f5   :  { %v171_v35 = vmul.f32 %v1664_v32, %v170_v34 }
 0x1f7   :  { %v172_v36 = vadd.f32 %v1664_v32, %v171_v35 }
 0x1f9   :  { %v176_v39 = vsel %vm175_vm10, %v1664_v32, %v172_v36 }
 0x1fa   :  { %v181_v42 = vsel %vm178_vm11, %v180_v40, %v176_v39 }
 0x1fb   :  { %v200_v43 = vsub.f32 1.0, %v181_v42  ;;  %v206_v46 = vmul.f32 0.0, %v181_v42 }
 0x259   :  { %v203_v44 = vpop.permute.xlu0 %202 }
 0x25a   :  { %v205_v45 = vmul.f32 %v203_v44, %v200_v43 }
 0x25b   :  { %v243_v48 = vpop.permute.xlu1 %242 }
 0x25c   :  { %v2013_v47 = vadd.f32 %v206_v46, %v205_v45 }
 0x25e   :  { %v246_v49 = vsel %vm245_vm12, %v243_v48, %v2013_v47 }
 0x25f   :  { %1583 = vmatmul.msk.f32.vlgmr.msra.gmra.mxu2 %vm46_vm13, %v246_v49  ;;  %1584 = vmatmul.msk.f32.vlgmr.msra.gmra.mxu3 %vm46_vm13, %v246_v49 }
 0x260   :  { %1010 = vmatpush.msra.mxu2 %v1824_v0  ;;  %1030 = vmatpush.msra.mxu3 %v1845_v4 }
 0x262   :  { %1011 = vmatpush.msra.mxu2 %v1829_v1  ;;  %1031 = vmatpush.msra.mxu3 %v1850_v5 }
 0x264   :  { %1012 = vmatpush.msra.mxu2 %v1836_v2  ;;  %1032 = vmatpush.msra.mxu3 %v1865_v7 }
 0x266   :  { %1013 = vmatpush.msra.mxu2 %v1856_v6  ;;  %1033 = vmatpush.msra.mxu3 %v1881_v10 }
 0x268   :  { %1014 = vmatpush.msra.mxu2 %v1873_v9  ;;  %1034 = vmatpush.msra.mxu3 %v1895_v12 }
 0x26a   :  { %1015 = vmatpush.msra.mxu2 %v1887_v11  ;;  %1035 = vmatpush.msra.mxu3 %v1909_v14 }
 0x26c   :  { %1016 = vmatpush.msra.mxu2 %v1901_v13  ;;  %1036 = vmatpush.msra.mxu3 %v1923_v16 }
 0x26e   :  { %1017 = vmatpush.msra.mxu2 %v1915_v15  ;;  %1037 = vmatpush.msra.mxu3 %v1932_v17 }
 0x2e2   :  { %v267_v50 = vpop.f32.mrf.mxu2  ;;  %v287_v52 = vpop.f32.mrf.mxu3 }
 0x2e3   :  { %v310_v51 = vadd.f32 %v267_v50, %v1989_v19  ;;  %331 = vrot.lane.b32.xlu0 %v267_v50, %s1778_s23  ;;  %v378_v53 = vadd.f32 %v287_v52, %v1998_v41  ;;  %v290_v56 = vadd.f32 %v267_v50, %v235_v55 }
 0x2e5   :  { %312 = vrot.lane.b32.xlu2 %v310_v51, %s1777_s3  ;;  %v1585_v57 = vmul.f32 -1.442695, %v290_v56 }
 0x2e7   :  { %1665 = vpow2.f32 %v1585_v57 }
 0x2ed   :  { %380 = vrot.lane.b32.xlu2 %v378_v53, %s1780_s15  ;;  %v1666_v58 = vpop.eup %1665 }
 0x2ee   :  { %v294_v59 = vadd.f32 1.0, %v1666_v58 }
 0x2f0   :  { %1667 = vrcp.f32 %v294_v59  ;;  %v306_v8 = vand.u32 2147483648, %v294_v59  ;;  %vm300_vm15 = vweird.f32 %v294_v59  ;;  %v304_v18 = vand.u32 2147483647, %v294_v59 }
 0x2f2   :  { %v307_v21 = vor.u32 1.1754944e-38, %v306_v8  ;;  %vm305_vm1 = vcmp.eq.f32.partialorder %v304_v18, 8.507059e+37 }
 0x2f5   :  { %355 = vrot.lane.b32.xlu2 %v287_v52, %s1778_s23 }
 0x2f6   :  { %v1668_v60 = vpop.eup %1667 }
 0x2f7   :  { %v296_v61 = vmul.f32 %v1668_v60, %v294_v59  ;;  %vm301_vm14 = vweird.f32 %v1668_v60 }
 0x2f8   :  { %vm302_vm0 = vmor %vm300_vm15, %vm301_vm14 }
 0x2f9   :  { %v297_v62 = vsub.f32 1.0, %v296_v61 }
 0x2fb   :  { %v298_v63 = vmul.f32 %v1668_v60, %v297_v62 }
 0x2fd   :  { %v299_v3 = vadd.f32 %v1668_v60, %v298_v63 }
 0x2ff   :  { %v303_v20 = vsel %vm302_vm0, %v1668_v60, %v299_v3 }
 0x300   :  { %v308_v23 = vsel %vm305_vm1, %v307_v21, %v303_v20 }
 0x301   :  { %v322_v53 = vsub.f32 1.0, %v308_v23  ;;  %v328_v56 = vmul.f32 %v308_v23, %v2008_v24 }
 0x33f   :  { %v313_v22 = vpop.permute.xlu2 %312 }
 0x340   :  { %v315_v25 = vmul.f32 %v313_v22, %v308_v23 }
 0x342   :  { %317 = vrot.lane.b32.xlu1 %v315_v25, %s1777_s3 }
 0x347   :  { %v381_v43 = vpop.permute.xlu2 %380 }
 0x34f   :  { %v356_v59 = vpop.permute.xlu2 %355 }
 0x350   :  { %v358_v60 = vadd.f32 %v356_v59, %v238_v27 }
 0x352   :  { %v1587_v61 = vmul.f32 -1.442695, %v358_v60  ;;  %v1591_v60 = vld [vmem:[%s2406_s1 + $0x5] sm:$0x1] }
 0x355   :  { %v332_v28 = vpop.permute.xlu0 %331 }
 0x356   :  { %v334_v29 = vadd.f32 %v332_v28, %v238_v27 }
 0x358   :  { %v1586_v30 = vmul.f32 -1.442695, %v334_v29 }
 0x35a   :  { %1669 = vpow2.f32 %v1586_v30 }
 0x360   :  { %v1670_v31 = vpop.eup %1669 }
 0x361   :  { %v338_v32 = vadd.f32 1.0, %v1670_v31 }
 0x363   :  { %1671 = vrcp.f32 %v338_v32  ;;  %v350_v36 = vand.u32 2147483648, %v338_v32  ;;  %v348_v38 = vand.u32 2147483647, %v338_v32  ;;  %vm344_vm3 = vweird.f32 %v338_v32 }
 0x365   :  { %v351_v40 = vor.u32 1.1754944e-38, %v350_v36  ;;  %vm349_vm5 = vcmp.eq.f32.partialorder %v348_v38, 8.507059e+37 }
 0x369   :  { %v1672_v33 = vpop.eup %1671 }
 0x36a   :  { %v340_v34 = vmul.f32 %v1672_v33, %v338_v32  ;;  %vm345_vm2 = vweird.f32 %v1672_v33 }
 0x36b   :  { %vm346_vm4 = vmor %vm344_vm3, %vm345_vm2 }
 0x36c   :  { %v341_v35 = vsub.f32 1.0, %v340_v34 }
 0x36e   :  { %v342_v37 = vmul.f32 %v1672_v33, %v341_v35 }
 0x370   :  { %v343_v39 = vadd.f32 %v1672_v33, %v342_v37 }
 0x372   :  { %v347_v42 = vsel %vm346_vm4, %v1672_v33, %v343_v39  ;;  %v1590_v39 = vld [vmem:[%s2405_s0 + $0x2] sm:$0x1] }
 0x373   :  { %v352_v44 = vsel %vm349_vm5, %v351_v40, %v347_v42  ;;  %v424_v40 = vunpack.c.l.bf16 %v1590_v39 }
 0x374   :  { %v383_v45 = vmul.f32 %v381_v43, %v352_v44 }
 0x376   :  { %385 = vrot.lane.b32.xlu0 %v383_v45, %s1777_s3 }
 0x3b4   :  { %v318_v46 = vpop.permute.xlu1 %317 }
 0x3b5   :  { %v320_v48 = vadd.f32 %v318_v46, %v235_v55 }
 0x3b7   :  { %1673 = vtanh.f32 %v320_v48 }
 0x3bd   :  { %v1674_v49 = vpop.eup %1673 }
 0x3be   :  { %324 = vrot.lane.b32.xlu1 %v1674_v49, %s1780_s15 }
 0x3e8   :  { %v386_v50 = vpop.permute.xlu0 %385 }
 0x3e9   :  { %v388_v51 = vadd.f32 %v386_v50, %v238_v27 }
 0x3eb   :  { %1675 = vtanh.f32 %v388_v51 }
 0x3ec   :  { %1677 = vpow2.f32 %v1587_v61  ;;  %v427_v61 = vunpack.c.l.bf16 %v1591_v60 }
 0x3f1   :  { %v1676_v52 = vpop.eup %1675 }
 0x3f2   :  { %392 = vrot.lane.b32.xlu0 %v1676_v52, %s1780_s15  ;;  %v1678_v62 = vpop.eup %1677 }
 0x3f3   :  { %v362_v63 = vadd.f32 1.0, %v1678_v62 }
 0x3f5   :  { %1679 = vrcp.f32 %v362_v63  ;;  %v374_v22 = vand.u32 2147483648, %v362_v63  ;;  %vm368_vm7 = vweird.f32 %v362_v63  ;;  %v372_v23 = vand.u32 2147483647, %v362_v63 }
 0x3f7   :  { %v375_v26 = vor.u32 1.1754944e-38, %v374_v22  ;;  %vm373_vm9 = vcmp.eq.f32.partialorder %v372_v23, 8.507059e+37 }
 0x3fb   :  { %v1680_v3 = vpop.eup %1679 }
 0x3fc   :  { %v364_v8 = vmul.f32 %v1680_v3, %v362_v63  ;;  %vm369_vm6 = vweird.f32 %v1680_v3 }
 0x3fd   :  { %vm370_vm8 = vmor %vm368_vm7, %vm369_vm6 }
 0x3fe   :  { %v365_v18 = vsub.f32 1.0, %v364_v8 }
 0x400   :  { %v366_v20 = vmul.f32 %v1680_v3, %v365_v18 }
 0x402   :  { %v367_v21 = vadd.f32 %v1680_v3, %v366_v20 }
 0x404   :  { %v371_v25 = vsel %vm370_vm8, %v1680_v3, %v367_v21 }
 0x405   :  { %v376_v28 = vsel %vm373_vm9, %v375_v26, %v371_v25 }
 0x406   :  { %v390_v29 = vsub.f32 1.0, %v376_v28  ;;  %v396_v31 = vmul.f32 %v376_v28, %v2013_v47 }
 0x430   :  { %v325_v54 = vpop.permute.xlu1 %324 }
 0x431   :  { %v327_v57 = vmul.f32 %v325_v54, %v322_v53 }
 0x433   :  { %v2052_v58 = vadd.f32 %v328_v56, %v327_v57 }
 0x435   :  { %429 = vst [vmem:[#allocation1] ss:$4 sm:$0xff] %v2052_v58 }
 0x43c   :  { %v430_v55 = vld.sshfl [vmem:[#allocation1] sm:$0xff pattern:$0x73625140] }
 0x43d   :  { %431 = vrot.lane.b32.xlu1 %v430_v55, %s1780_s15 }
 0x464   :  { %v393_v27 = vpop.permute.xlu0 %392 }
 0x465   :  { %v395_v30 = vmul.f32 %v393_v27, %v390_v29 }
 0x467   :  { %v2057_v32 = vadd.f32 %v396_v31, %v395_v30 }
 0x4af   :  { %v432_v33 = vpop.permute.xlu1 %431 }
 0x4b0   :  { %v434_v34 = vsel %vm245_vm12, %v432_v33, %v2057_v32 }
 0x4b1   :  { %1592 = vmatmul.msk.f32.vlgmr.msrb.gmra.mxu0 %vm46_vm13, %v434_v34  ;;  %1593 = vmatmul.msk.f32.vlgmr.msrb.gmra.mxu1 %vm46_vm13, %v434_v34 }
 0x4b2   :  { %1198 = vmatpush.msrb.mxu0 %v1824_v0  ;;  %1218 = vmatpush.msrb.mxu1 %v1845_v4 }
 0x4b4   :  { %1199 = vmatpush.msrb.mxu0 %v1829_v1  ;;  %1219 = vmatpush.msrb.mxu1 %v1850_v5 }
 0x4b6   :  { %1200 = vmatpush.msrb.mxu0 %v1836_v2  ;;  %1220 = vmatpush.msrb.mxu1 %v1865_v7 }
 0x4b8   :  { %1201 = vmatpush.msrb.mxu0 %v1856_v6  ;;  %1221 = vmatpush.msrb.mxu1 %v1881_v10 }
 0x4ba   :  { %1202 = vmatpush.msrb.mxu0 %v1873_v9  ;;  %1222 = vmatpush.msrb.mxu1 %v1895_v12 }
 0x4bc   :  { %1203 = vmatpush.msrb.mxu0 %v1887_v11  ;;  %1223 = vmatpush.msrb.mxu1 %v1909_v14 }
 0x4be   :  { %1204 = vmatpush.msrb.mxu0 %v1901_v13  ;;  %1224 = vmatpush.msrb.mxu1 %v1923_v16 }
 0x4c0   :  { %1205 = vmatpush.msrb.mxu0 %v1915_v15  ;;  %1225 = vmatpush.msrb.mxu1 %v1932_v17 }
 0x52e   :  { %v455_v35 = vpop.f32.mrf.mxu0  ;;  %v475_v37 = vpop.f32.mrf.mxu1 }
 0x52f   :  { %v498_v36 = vadd.f32 %v455_v35, %v1989_v19  ;;  %519 = vrot.lane.b32.xlu0 %v455_v35, %s1778_s23  ;;  %v566_v38 = vadd.f32 %v475_v37, %v1998_v41  ;;  %v478_v42 = vadd.f32 %v455_v35, %v424_v40 }
 0x531   :  { %500 = vrot.lane.b32.xlu2 %v498_v36, %s1777_s3  ;;  %v1594_v43 = vmul.f32 -1.442695, %v478_v42 }
 0x533   :  { %1681 = vpow2.f32 %v1594_v43 }
 0x539   :  { %568 = vrot.lane.b32.xlu2 %v566_v38, %s1780_s15  ;;  %v1682_v44 = vpop.eup %1681 }
 0x53a   :  { %v482_v45 = vadd.f32 1.0, %v1682_v44 }
 0x53c   :  { %1683 = vrcp.f32 %v482_v45  ;;  %v494_v52 = vand.u32 2147483648, %v482_v45  ;;  %vm488_vm11 = vweird.f32 %v482_v45  ;;  %v492_v53 = vand.u32 2147483647, %v482_v45 }
 0x53e   :  { %v495_v56 = vor.u32 1.1754944e-38, %v494_v52  ;;  %vm493_vm15 = vcmp.eq.f32.partialorder %v492_v53, 8.507059e+37 }
 0x541   :  { %543 = vrot.lane.b32.xlu2 %v475_v37, %s1778_s23 }
 0x542   :  { %v1684_v46 = vpop.eup %1683 }
 0x543   :  { %v484_v48 = vmul.f32 %v1684_v46, %v482_v45  ;;  %vm489_vm10 = vweird.f32 %v1684_v46 }
 0x544   :  { %vm490_vm14 = vmor %vm488_vm11, %vm489_vm10 }
 0x545   :  { %v485_v49 = vsub.f32 1.0, %v484_v48 }
 0x547   :  { %v486_v50 = vmul.f32 %v1684_v46, %v485_v49 }
 0x549   :  { %v487_v51 = vadd.f32 %v1684_v46, %v486_v50 }
 0x54b   :  { %v491_v54 = vsel %vm490_vm14, %v1684_v46, %v487_v51 }
 0x54c   :  { %v496_v55 = vsel %vm493_vm15, %v495_v56, %v491_v54 }
 0x54d   :  { %v510_v42 = vsub.f32 1.0, %v496_v55  ;;  %v516_v44 = vmul.f32 %v496_v55, %v2052_v58 }
 0x58b   :  { %v501_v57 = vpop.permute.xlu2 %500 }
 0x58c   :  { %v503_v59 = vmul.f32 %v501_v57, %v496_v55 }
 0x58e   :  { %505 = vrot.lane.b32.xlu1 %v503_v59, %s1777_s3 }
 0x593   :  { %v569_v30 = vpop.permute.xlu2 %568 }
 0x59b   :  { %v544_v48 = vpop.permute.xlu2 %543 }
 0x59c   :  { %v546_v49 = vadd.f32 %v544_v48, %v427_v61 }
 0x59e   :  { %v1596_v50 = vmul.f32 -1.442695, %v546_v49 }
 0x5a1   :  { %v520_v62 = vpop.permute.xlu0 %519 }
 0x5a2   :  { %v522_v63 = vadd.f32 %v520_v62, %v427_v61 }
 0x5a4   :  { %v1595_v3 = vmul.f32 -1.442695, %v522_v63 }
 0x5a6   :  { %1685 = vpow2.f32 %v1595_v3 }
 0x5ac   :  { %v1686_v8 = vpop.eup %1685 }
 0x5ad   :  { %v526_v18 = vadd.f32 1.0, %v1686_v8 }
 0x5af   :  { %1687 = vrcp.f32 %v526_v18  ;;  %v538_v23 = vand.u32 2147483648, %v526_v18  ;;  %v536_v26 = vand.u32 2147483647, %v526_v18  ;;  %vm532_vm1 = vweird.f32 %v526_v18 }
 0x5b1   :  { %v539_v27 = vor.u32 1.1754944e-38, %v538_v23  ;;  %vm537_vm3 = vcmp.eq.f32.partialorder %v536_v26, 8.507059e+37 }
 0x5b5   :  { %v1688_v20 = vpop.eup %1687 }
 0x5b6   :  { %v528_v21 = vmul.f32 %v1688_v20, %v526_v18  ;;  %vm533_vm0 = vweird.f32 %v1688_v20 }
 0x5b7   :  { %vm534_vm2 = vmor %vm532_vm1, %vm533_vm0 }
 0x5b8   :  { %v529_v22 = vsub.f32 1.0, %v528_v21 }
 0x5ba   :  { %v530_v25 = vmul.f32 %v1688_v20, %v529_v22 }
 0x5bc   :  { %v531_v28 = vadd.f32 %v1688_v20, %v530_v25 }
 0x5be   :  { %v535_v29 = vsel %vm534_vm2, %v1688_v20, %v531_v28 }
 0x5bf   :  { %v540_v31 = vsel %vm537_vm3, %v539_v27, %v535_v29 }
 0x5c0   :  { %v571_v33 = vmul.f32 %v569_v30, %v540_v31  ;;  %v1600_v31 = vld [vmem:[%s2406_s1 + $0x4] sm:$0x1] }
 0x5c2   :  { %573 = vrot.lane.b32.xlu0 %v571_v33, %s1777_s3  ;;  %v615_v33 = vunpack.c.l.bf16 %v1600_v31 }
 0x600   :  { %v506_v34 = vpop.permute.xlu1 %505 }
 0x601   :  { %v508_v35 = vadd.f32 %v506_v34, %v424_v40 }
 0x603   :  { %1689 = vtanh.f32 %v508_v35 }
 0x609   :  { %v1690_v36 = vpop.eup %1689 }
 0x60a   :  { %512 = vrot.lane.b32.xlu1 %v1690_v36, %s1780_s15 }
 0x634   :  { %v574_v37 = vpop.permute.xlu0 %573 }
 0x635   :  { %v576_v38 = vadd.f32 %v574_v37, %v427_v61 }
 0x637   :  { %1691 = vtanh.f32 %v576_v38 }
 0x638   :  { %1693 = vpow2.f32 %v1596_v50 }
 0x63d   :  { %v1692_v39 = vpop.eup %1691 }
 0x63e   :  { %580 = vrot.lane.b32.xlu0 %v1692_v39, %s1780_s15  ;;  %v1694_v51 = vpop.eup %1693 }
 0x63f   :  { %v550_v52 = vadd.f32 1.0, %v1694_v51 }
 0x641   :  { %1695 = vrcp.f32 %v550_v52  ;;  %v562_v59 = vand.u32 2147483648, %v550_v52  ;;  %vm556_vm5 = vweird.f32 %v550_v52  ;;  %v560_v60 = vand.u32 2147483647, %v550_v52 }
 0x643   :  { %v563_v63 = vor.u32 1.1754944e-38, %v562_v59  ;;  %vm561_vm7 = vcmp.eq.f32.partialorder %v560_v60, 8.507059e+37 }
 0x647   :  { %v1696_v53 = vpop.eup %1695 }
 0x648   :  { %v552_v54 = vmul.f32 %v1696_v53, %v550_v52  ;;  %vm557_vm4 = vweird.f32 %v1696_v53 }
 0x649   :  { %vm558_vm6 = vmor %vm556_vm5, %vm557_vm4 }
 0x64a   :  { %v553_v56 = vsub.f32 1.0, %v552_v54 }
 0x64c   :  { %v554_v57 = vmul.f32 %v1696_v53, %v553_v56 }
 0x64e   :  { %v555_v55 = vadd.f32 %v1696_v53, %v554_v57 }
 0x650   :  { %v559_v62 = vsel %vm558_vm6, %v1696_v53, %v555_v55 }
 0x651   :  { %v564_v3 = vsel %vm561_vm7, %v563_v63, %v559_v62 }
 0x652   :  { %v578_v8 = vsub.f32 1.0, %v564_v3  ;;  %v584_v20 = vmul.f32 %v564_v3, %v2057_v32 }
 0x67c   :  { %v513_v43 = vpop.permute.xlu1 %512 }
 0x67d   :  { %v515_v45 = vmul.f32 %v513_v43, %v510_v42 }
 0x67f   :  { %v2096_v46 = vadd.f32 %v516_v44, %v515_v45 }
 0x681   :  { %617 = vst [vmem:[#allocation1] ss:$4 sm:$0xff] %v2096_v46 }
 0x688   :  { %v618_v40 = vld.sshfl [vmem:[#allocation1] sm:$0xff pattern:$0x73625140] }
 0x689   :  { %619 = vrot.lane.b32.xlu1 %v618_v40, %s1780_s15 }
 0x6b0   :  { %v581_v61 = vpop.permute.xlu0 %580 }
 0x6b1   :  { %v583_v18 = vmul.f32 %v581_v61, %v578_v8 }
 0x6b3   :  { %v2101_v21 = vadd.f32 %v584_v20, %v583_v18 }
 0x6fb   :  { %v620_v22 = vpop.permute.xlu1 %619 }
 0x6fc   :  { %v622_v23 = vsel %vm245_vm12, %v620_v22, %v2101_v21 }
 0x6fd   :  { %1601 = vmatmul.msk.f32.vlgmr.msrb.gmra.mxu2 %vm46_vm13, %v622_v23  ;;  %1602 = vmatmul.msk.f32.vlgmr.msrb.gmra.mxu3 %vm46_vm13, %v622_v23 }
 0x6fe   :  { %1385 = vmatpush.msrb.mxu2 %v1824_v0  ;;  %1405 = vmatpush.msrb.mxu3 %v1845_v4 }
 0x700   :  { %1386 = vmatpush.msrb.mxu2 %v1829_v1  ;;  %1406 = vmatpush.msrb.mxu3 %v1850_v5  ;;  %v1599_v5 = vld [vmem:[%s2405_s0 + $0x3] sm:$0x1] }
 0x702   :  { %1387 = vmatpush.msrb.mxu2 %v1836_v2  ;;  %1407 = vmatpush.msrb.mxu3 %v1865_v7 }
 0x704   :  { %1388 = vmatpush.msrb.mxu2 %v1856_v6  ;;  %1408 = vmatpush.msrb.mxu3 %v1881_v10  ;;  %v612_v6 = vunpack.c.l.bf16 %v1599_v5 }
 0x706   :  { %1389 = vmatpush.msrb.mxu2 %v1873_v9  ;;  %1409 = vmatpush.msrb.mxu3 %v1895_v12 }
 0x708   :  { %1390 = vmatpush.msrb.mxu2 %v1887_v11  ;;  %1410 = vmatpush.msrb.mxu3 %v1909_v14 }
 0x70a   :  { %1391 = vmatpush.msrb.mxu2 %v1901_v13  ;;  %1411 = vmatpush.msrb.mxu3 %v1923_v16 }
 0x70c   :  { %1392 = vmatpush.msrb.mxu2 %v1915_v15  ;;  %1412 = vmatpush.msrb.mxu3 %v1932_v17 }
 0x780   :  { %v643_v0 = vpop.f32.mrf.mxu2  ;;  %v663_v2 = vpop.f32.mrf.mxu3 }
 0x781   :  { %v686_v1 = vadd.f32 %v643_v0, %v1989_v19  ;;  %707 = vrot.lane.b32.xlu0 %v643_v0, %s1778_s23  ;;  %v754_v4 = vadd.f32 %v663_v2, %v1998_v41  ;;  %v666_v7 = vadd.f32 %v643_v0, %v612_v6 }
 0x783   :  { %688 = vrot.lane.b32.xlu2 %v686_v1, %s1777_s3  ;;  %v1603_v9 = vmul.f32 -1.442695, %v666_v7 }
 0x785   :  { %1697 = vpow2.f32 %v1603_v9 }
 0x78b   :  { %756 = vrot.lane.b32.xlu2 %v754_v4, %s1780_s15  ;;  %v1698_v10 = vpop.eup %1697 }
 0x78c   :  { %v670_v11 = vadd.f32 1.0, %v1698_v10 }
 0x78e   :  { %1699 = vrcp.f32 %v670_v11  ;;  %v682_v17 = vand.u32 2147483648, %v670_v11  ;;  %vm676_vm9 = vweird.f32 %v670_v11  ;;  %v680_v25 = vand.u32 2147483647, %v670_v11 }
 0x790   :  { %v683_v28 = vor.u32 1.1754944e-38, %v682_v17  ;;  %vm681_vm11 = vcmp.eq.f32.partialorder %v680_v25, 8.507059e+37 }
 0x793   :  { %731 = vrot.lane.b32.xlu2 %v663_v2, %s1778_s23 }
 0x794   :  { %v1700_v12 = vpop.eup %1699 }
 0x795   :  { %v672_v13 = vmul.f32 %v1700_v12, %v670_v11  ;;  %vm677_vm8 = vweird.f32 %v1700_v12 }
 0x796   :  { %vm678_vm10 = vmor %vm676_vm9, %vm677_vm8 }
 0x797   :  { %v673_v14 = vsub.f32 1.0, %v672_v13 }
 0x799   :  { %v674_v15 = vmul.f32 %v1700_v12, %v673_v14 }
 0x79b   :  { %v675_v16 = vadd.f32 %v1700_v12, %v674_v15 }
 0x79d   :  { %v679_v26 = vsel %vm678_vm10, %v1700_v12, %v675_v16 }
 0x79e   :  { %v684_v29 = vsel %vm681_vm11, %v683_v28, %v679_v26 }
 0x79f   :  { %v698_v62 = vsub.f32 1.0, %v684_v29  ;;  %v704_v3 = vmul.f32 %v684_v29, %v2096_v46 }
 0x7dd   :  { %v689_v27 = vpop.permute.xlu2 %688 }
 0x7de   :  { %v691_v30 = vmul.f32 %v689_v27, %v684_v29 }
 0x7e0   :  { %693 = vrot.lane.b32.xlu1 %v691_v30, %s1777_s3 }
 0x7e5   :  { %v757_v51 = vpop.permute.xlu2 %756 }
 0x7ed   :  { %v732_v20 = vpop.permute.xlu2 %731 }
 0x7ee   :  { %v734_v22 = vadd.f32 %v732_v20, %v615_v33 }
 0x7f0   :  { %v1605_v23 = vmul.f32 -1.442695, %v734_v22 }
 0x7f3   :  { %v708_v34 = vpop.permute.xlu0 %707 }
 0x7f4   :  { %v710_v35 = vadd.f32 %v708_v34, %v615_v33 }
 0x7f6   :  { %v1604_v36 = vmul.f32 -1.442695, %v710_v35 }
 0x7f8   :  { %1701 = vpow2.f32 %v1604_v36 }
 0x7fe   :  { %v1702_v37 = vpop.eup %1701 }
 0x7ff   :  { %v714_v38 = vadd.f32 1.0, %v1702_v37 }
 0x801   :  { %1703 = vrcp.f32 %v714_v38  ;;  %v726_v44 = vand.u32 2147483648, %v714_v38  ;;  %v724_v40 = vand.u32 2147483647, %v714_v38  ;;  %vm720_vm15 = vweird.f32 %v714_v38 }
 0x803   :  { %v727_v49 = vor.u32 1.1754944e-38, %v726_v44  ;;  %vm725_vm1 = vcmp.eq.f32.partialorder %v724_v40, 8.507059e+37 }
 0x807   :  { %v1704_v39 = vpop.eup %1703 }
 0x808   :  { %v716_v42 = vmul.f32 %v1704_v39, %v714_v38  ;;  %vm721_vm14 = vweird.f32 %v1704_v39 }
 0x809   :  { %vm722_vm0 = vmor %vm720_vm15, %vm721_vm14 }
 0x80a   :  { %v717_v43 = vsub.f32 1.0, %v716_v42 }
 0x80c   :  { %v718_v45 = vmul.f32 %v1704_v39, %v717_v43 }
 0x80e   :  { %v719_v48 = vadd.f32 %v1704_v39, %v718_v45 }
 0x810   :  { %v723_v50 = vsel %vm722_vm0, %v1704_v39, %v719_v48 }
 0x811   :  { %v728_v52 = vsel %vm725_vm1, %v727_v49, %v723_v50 }
 0x812   :  { %v759_v53 = vmul.f32 %v757_v51, %v728_v52 }
 0x814   :  { %761 = vrot.lane.b32.xlu0 %v759_v53, %s1777_s3 }
 0x852   :  { %v694_v54 = vpop.permute.xlu1 %693 }
 0x853   :  { %v696_v56 = vadd.f32 %v694_v54, %v612_v6  ;;  %v1609_v54 = vld [vmem:[%s2406_s1 + $0x3] sm:$0x1] }
 0x855   :  { %1705 = vtanh.f32 %v696_v56  ;;  %v803_v56 = vunpack.c.l.bf16 %v1609_v54 }
 0x85b   :  { %v1706_v57 = vpop.eup %1705 }
 0x85c   :  { %700 = vrot.lane.b32.xlu1 %v1706_v57, %s1780_s15 }
 0x886   :  { %v762_v55 = vpop.permute.xlu0 %761 }
 0x887   :  { %v764_v59 = vadd.f32 %v762_v55, %v615_v33  ;;  %v1608_v33 = vld [vmem:[%s2405_s0 + $0x4] sm:$0x1] }
 0x888   :  { %v800_v34 = vunpack.c.l.bf16 %v1608_v33 }
 0x889   :  { %1707 = vtanh.f32 %v764_v59 }
 0x88a   :  { %1709 = vpow2.f32 %v1605_v23 }
 0x88f   :  { %v1708_v60 = vpop.eup %1707 }
 0x890   :  { %768 = vrot.lane.b32.xlu0 %v1708_v60, %s1780_s15  ;;  %v1710_v0 = vpop.eup %1709 }
 0x891   :  { %v738_v1 = vadd.f32 1.0, %v1710_v0 }
 0x893   :  { %1711 = vrcp.f32 %v738_v1  ;;  %v750_v9 = vand.u32 2147483648, %v738_v1  ;;  %vm744_vm3 = vweird.f32 %v738_v1  ;;  %v748_v10 = vand.u32 2147483647, %v738_v1 }
 0x895   :  { %v751_v12 = vor.u32 1.1754944e-38, %v750_v9  ;;  %vm749_vm5 = vcmp.eq.f32.partialorder %v748_v10, 8.507059e+37 }
 0x899   :  { %v1712_v2 = vpop.eup %1711 }
 0x89a   :  { %v740_v4 = vmul.f32 %v1712_v2, %v738_v1  ;;  %vm745_vm2 = vweird.f32 %v1712_v2 }
 0x89b   :  { %vm746_vm4 = vmor %vm744_vm3, %vm745_vm2 }
 0x89c   :  { %v741_v5 = vsub.f32 1.0, %v740_v4 }
 0x89e   :  { %v742_v6 = vmul.f32 %v1712_v2, %v741_v5 }
 0x8a0   :  { %v743_v7 = vadd.f32 %v1712_v2, %v742_v6 }
 0x8a2   :  { %v747_v11 = vsel %vm746_vm4, %v1712_v2, %v743_v7 }
 0x8a3   :  { %v752_v13 = vsel %vm749_vm5, %v751_v12, %v747_v11 }
 0x8a4   :  { %v766_v15 = vsub.f32 1.0, %v752_v13  ;;  %v772_v17 = vmul.f32 %v752_v13, %v2101_v21 }
 0x8ce   :  { %v701_v63 = vpop.permute.xlu1 %700 }
 0x8cf   :  { %v703_v61 = vmul.f32 %v701_v63, %v698_v62 }
 0x8d1   :  { %v2140_v8 = vadd.f32 %v704_v3, %v703_v61 }
 0x8d3   :  { %805 = vst [vmem:[#allocation1] ss:$4 sm:$0xff] %v2140_v8 }
 0x8da   :  { %v806_v18 = vld.sshfl [vmem:[#allocation1] sm:$0xff pattern:$0x73625140] }
 0x8db   :  { %807 = vrot.lane.b32.xlu1 %v806_v18, %s1780_s15 }
 0x902   :  { %v769_v14 = vpop.permute.xlu0 %768 }
 0x903   :  { %v771_v16 = vmul.f32 %v769_v14, %v766_v15 }
 0x905   :  { %v2145_v25 = vadd.f32 %v772_v17, %v771_v16 }
 0x94d   :  { %v808_v26 = vpop.permute.xlu1 %807 }
 0x94e   :  { %v810_v28 = vsel %vm245_vm12, %v808_v26, %v2145_v25 }
 0x94f   :  { %1610 = vmatmul.msk.f32.vlgmr.msra.gmra.mxu0 %vm46_vm13, %v810_v28  ;;  %1611 = vmatmul.msk.f32.vlgmr.msra.gmra.mxu1 %vm46_vm13, %v810_v28 }
 0x9cc   :  { %v831_v27 = vpop.f32.mrf.mxu0  ;;  %v851_v30 = vpop.f32.mrf.mxu1 }
 0x9cd   :  { %v874_v29 = vadd.f32 %v831_v27, %v1989_v19  ;;  %895 = vrot.lane.b32.xlu0 %v831_v27, %s1778_s23  ;;  %v942_v31 = vadd.f32 %v851_v30, %v1998_v41  ;;  %v854_v35 = vadd.f32 %v831_v27, %v800_v34 }
 0x9cf   :  { %876 = vrot.lane.b32.xlu2 %v874_v29, %s1777_s3  ;;  %v1612_v36 = vmul.f32 -1.442695, %v854_v35 }
 0x9d1   :  { %1713 = vpow2.f32 %v1612_v36 }
 0x9d7   :  { %944 = vrot.lane.b32.xlu2 %v942_v31, %s1780_s15  ;;  %v1714_v37 = vpop.eup %1713 }
 0x9d8   :  { %v858_v38 = vadd.f32 1.0, %v1714_v37 }
 0x9da   :  { %1715 = vrcp.f32 %v858_v38  ;;  %v870_v40 = vand.u32 2147483648, %v858_v38  ;;  %vm864_vm7 = vweird.f32 %v858_v38  ;;  %v868_v48 = vand.u32 2147483647, %v858_v38 }
 0x9dc   :  { %v871_v50 = vor.u32 1.1754944e-38, %v870_v40  ;;  %vm869_vm9 = vcmp.eq.f32.partialorder %v868_v48, 8.507059e+37 }
 0x9df   :  { %919 = vrot.lane.b32.xlu2 %v851_v30, %s1778_s23 }
 0x9e0   :  { %v1716_v39 = vpop.eup %1715 }
 0x9e1   :  { %v860_v42 = vmul.f32 %v1716_v39, %v858_v38  ;;  %vm865_vm6 = vweird.f32 %v1716_v39 }
 0x9e2   :  { %vm866_vm8 = vmor %vm864_vm7, %vm865_vm6 }
 0x9e3   :  { %v861_v43 = vsub.f32 1.0, %v860_v42 }
 0x9e5   :  { %v862_v44 = vmul.f32 %v1716_v39, %v861_v43 }
 0x9e7   :  { %v863_v45 = vadd.f32 %v1716_v39, %v862_v44 }
 0x9e9   :  { %v867_v49 = vsel %vm866_vm8, %v1716_v39, %v863_v45 }
 0x9ea   :  { %v872_v52 = vsel %vm869_vm9, %v871_v50, %v867_v49 }
 0x9eb   :  { %v886_v13 = vsub.f32 1.0, %v872_v52  ;;  %v892_v15 = vmul.f32 %v872_v52, %v2140_v8 }
 0xa29   :  { %v877_v51 = vpop.permute.xlu2 %876 }
 0xa2a   :  { %v879_v53 = vmul.f32 %v877_v51, %v872_v52 }
 0xa2c   :  { %881 = vrot.lane.b32.xlu1 %v879_v53, %s1777_s3 }
 0xa31   :  { %v945_v2 = vpop.permute.xlu2 %944 }
 0xa39   :  { %v920_v28 = vpop.permute.xlu2 %919 }
 0xa3a   :  { %v922_v27 = vadd.f32 %v920_v28, %v803_v56 }
 0xa3c   :  { %v1614_v29 = vmul.f32 -1.442695, %v922_v27 }
 0xa3f   :  { %v896_v57 = vpop.permute.xlu0 %895 }
 0xa40   :  { %v898_v55 = vadd.f32 %v896_v57, %v803_v56 }
 0xa42   :  { %v1613_v59 = vmul.f32 -1.442695, %v898_v55  ;;  %v1617_v55 = vld [vmem:[%s2405_s0 + $0x5] sm:$0x1] }
 0xa44   :  { %1717 = vpow2.f32 %v1613_v59  ;;  %v988_v59 = vunpack.c.l.bf16 %v1617_v55 }
 0xa4a   :  { %v1718_v60 = vpop.eup %1717 }
 0xa4b   :  { %v902_v62 = vadd.f32 1.0, %v1718_v60 }
 0xa4d   :  { %1719 = vrcp.f32 %v902_v62  ;;  %v914_v18 = vand.u32 2147483648, %v902_v62  ;;  %v912_v22 = vand.u32 2147483647, %v902_v62  ;;  %vm908_vm11 = vweird.f32 %v902_v62 }
 0xa4f   :  { %v915_v0 = vor.u32 1.1754944e-38, %v914_v18  ;;  %vm913_vm15 = vcmp.eq.f32.partialorder %v912_v22, 8.507059e+37 }
 0xa53   :  { %v1720_v63 = vpop.eup %1719 }
 0xa54   :  { %v904_v3 = vmul.f32 %v1720_v63, %v902_v62  ;;  %vm909_vm10 = vweird.f32 %v1720_v63 }
 0xa55   :  { %vm910_vm14 = vmor %vm908_vm11, %vm909_vm10 }
 0xa56   :  { %v905_v61 = vsub.f32 1.0, %v904_v3 }
 0xa58   :  { %v906_v20 = vmul.f32 %v1720_v63, %v905_v61 }
 0xa5a   :  { %v907_v23 = vadd.f32 %v1720_v63, %v906_v20 }
 0xa5c   :  { %v911_v1 = vsel %vm910_vm14, %v1720_v63, %v907_v23 }
 0xa5d   :  { %v916_v4 = vsel %vm913_vm15, %v915_v0, %v911_v1 }
 0xa5e   :  { %v947_v5 = vmul.f32 %v945_v2, %v916_v4 }
 0xa60   :  { %949 = vrot.lane.b32.xlu0 %v947_v5, %s1777_s3 }
 0xa9e   :  { %v882_v6 = vpop.permute.xlu1 %881 }
 0xa9f   :  { %v884_v7 = vadd.f32 %v882_v6, %v800_v34 }
 0xaa1   :  { %1721 = vtanh.f32 %v884_v7 }
 0xaa7   :  { %v1722_v9 = vpop.eup %1721 }
 0xaa8   :  { %888 = vrot.lane.b32.xlu1 %v1722_v9, %s1780_s15  ;;  %v1618_v9 = vld [vmem:[%s2406_s1 + $0x2] sm:$0x1] }
 0xad2   :  { %v950_v10 = vpop.permute.xlu0 %949 }
 0xad3   :  { %v952_v11 = vadd.f32 %v950_v10, %v803_v56  ;;  %v991_v10 = vunpack.c.l.bf16 %v1618_v9 }
 0xad5   :  { %1723 = vtanh.f32 %v952_v11 }
 0xad6   :  { %1725 = vpow2.f32 %v1614_v29 }
 0xadb   :  { %v1724_v12 = vpop.eup %1723 }
 0xadc   :  { %956 = vrot.lane.b32.xlu0 %v1724_v12, %s1780_s15  ;;  %v1726_v30 = vpop.eup %1725 }
 0xadd   :  { %v926_v31 = vadd.f32 1.0, %v1726_v30 }
 0xadf   :  { %1727 = vrcp.f32 %v926_v31  ;;  %v938_v38 = vand.u32 2147483648, %v926_v31  ;;  %vm932_vm1 = vweird.f32 %v926_v31  ;;  %v936_v39 = vand.u32 2147483647, %v926_v31 }
 0xae1   :  { %v939_v43 = vor.u32 1.1754944e-38, %v938_v38  ;;  %vm937_vm3 = vcmp.eq.f32.partialorder %v936_v39, 8.507059e+37 }
 0xae5   :  { %v1728_v33 = vpop.eup %1727 }
 0xae6   :  { %v928_v34 = vmul.f32 %v1728_v33, %v926_v31  ;;  %vm933_vm0 = vweird.f32 %v1728_v33 }
 0xae7   :  { %vm934_vm2 = vmor %vm932_vm1, %vm933_vm0 }
 0xae8   :  { %v929_v35 = vsub.f32 1.0, %v928_v34 }
 0xaea   :  { %v930_v36 = vmul.f32 %v1728_v33, %v929_v35 }
 0xaec   :  { %v931_v37 = vadd.f32 %v1728_v33, %v930_v36 }
 0xaee   :  { %v935_v42 = vsel %vm934_vm2, %v1728_v33, %v931_v37 }
 0xaef   :  { %v940_v44 = vsel %vm937_vm3, %v939_v43, %v935_v42 }
 0xaf0   :  { %v954_v40 = vsub.f32 1.0, %v940_v44  ;;  %v960_v49 = vmul.f32 %v940_v44, %v2145_v25 }
 0xb1a   :  { %v889_v14 = vpop.permute.xlu1 %888 }
 0xb1b   :  { %v891_v16 = vmul.f32 %v889_v14, %v886_v13 }
 0xb1d   :  { %v2168_v17 = vadd.f32 %v892_v15, %v891_v16 }
 0xb1f   :  { %993 = vst [vmem:[#allocation1] ss:$4 sm:$0xff] %v2168_v17 }
 0xb26   :  { %v994_v26 = vld.sshfl [vmem:[#allocation1] sm:$0xff pattern:$0x73625140] }
 0xb27   :  { %995 = vrot.lane.b32.xlu1 %v994_v26, %s1780_s15 }
 0xb4e   :  { %v957_v45 = vpop.permute.xlu0 %956 }
 0xb4f   :  { %v959_v48 = vmul.f32 %v957_v45, %v954_v40 }
 0xb51   :  { %v2173_v50 = vadd.f32 %v960_v49, %v959_v48 }
 0xb99   :  { %v996_v51 = vpop.permute.xlu1 %995 }
 0xb9a   :  { %v998_v52 = vsel %vm245_vm12, %v996_v51, %v2173_v50 }
 0xb9b   :  { %1619 = vmatmul.msk.f32.vlgmr.msra.gmra.mxu2 %vm46_vm13, %v998_v52  ;;  %1620 = vmatmul.msk.f32.vlgmr.msra.gmra.mxu3 %vm46_vm13, %v998_v52 }
 0xc1e   :  { %v1019_v53 = vpop.f32.mrf.mxu2  ;;  %v1039_v56 = vpop.f32.mrf.mxu3 }
 0xc1f   :  { %v1062_v54 = vadd.f32 %v1019_v53, %v1989_v19  ;;  %1083 = vrot.lane.b32.xlu0 %v1019_v53, %s1778_s23  ;;  %v1130_v57 = vadd.f32 %v1039_v56, %v1998_v41  ;;  %v1042_v60 = vadd.f32 %v1019_v53, %v988_v59 }
 0xc21   :  { %1064 = vrot.lane.b32.xlu2 %v1062_v54, %s1777_s3  ;;  %v1621_v62 = vmul.f32 -1.442695, %v1042_v60 }
 0xc23   :  { %1729 = vpow2.f32 %v1621_v62 }
 0xc29   :  { %1132 = vrot.lane.b32.xlu2 %v1130_v57, %s1780_s15  ;;  %v1730_v63 = vpop.eup %1729 }
 0xc2a   :  { %v1046_v3 = vadd.f32 1.0, %v1730_v63 }
 0xc2c   :  { %1731 = vrcp.f32 %v1046_v3  ;;  %v1058_v0 = vand.u32 2147483648, %v1046_v3  ;;  %vm1052_vm5 = vweird.f32 %v1046_v3  ;;  %v1056_v1 = vand.u32 2147483647, %v1046_v3 }
 0xc2e   :  { %v1059_v4 = vor.u32 1.1754944e-38, %v1058_v0  ;;  %vm1057_vm7 = vcmp.eq.f32.partialorder %v1056_v1, 8.507059e+37 }
 0xc31   :  { %1107 = vrot.lane.b32.xlu2 %v1039_v56, %s1778_s23 }
 0xc32   :  { %v1732_v61 = vpop.eup %1731 }
 0xc33   :  { %v1048_v18 = vmul.f32 %v1732_v61, %v1046_v3  ;;  %vm1053_vm4 = vweird.f32 %v1732_v61 }
 0xc34   :  { %vm1054_vm6 = vmor %vm1052_vm5, %vm1053_vm4 }
 0xc35   :  { %v1049_v20 = vsub.f32 1.0, %v1048_v18 }
 0xc37   :  { %v1050_v22 = vmul.f32 %v1732_v61, %v1049_v20 }
 0xc39   :  { %v1051_v23 = vadd.f32 %v1732_v61, %v1050_v22 }
 0xc3b   :  { %v1055_v2 = vsel %vm1054_vm6, %v1732_v61, %v1051_v23 }
 0xc3c   :  { %v1060_v6 = vsel %vm1057_vm7, %v1059_v4, %v1055_v2 }
 0xc3d   :  { %v1074_v40 = vsub.f32 1.0, %v1060_v6  ;;  %v1080_v49 = vmul.f32 %v1060_v6, %v2168_v17 }
 0xc7b   :  { %v1065_v5 = vpop.permute.xlu2 %1064 }
 0xc7c   :  { %v1067_v7 = vmul.f32 %v1065_v5, %v1060_v6 }
 0xc7e   :  { %1069 = vrot.lane.b32.xlu1 %v1067_v7, %s1777_s3 }
 0xc83   :  { %v1133_v35 = vpop.permute.xlu2 %1132 }
 0xc8b   :  { %v1108_v54 = vpop.permute.xlu2 %1107 }
 0xc8c   :  { %v1110_v56 = vadd.f32 %v1108_v54, %v991_v10 }
 0xc8e   :  { %v1623_v57 = vmul.f32 -1.442695, %v1110_v56 }
 0xc91   :  { %v1084_v11 = vpop.permute.xlu0 %1083 }
 0xc92   :  { %v1086_v12 = vadd.f32 %v1084_v11, %v991_v10 }
 0xc94   :  { %v1622_v13 = vmul.f32 -1.442695, %v1086_v12 }
 0xc96   :  { %1733 = vpow2.f32 %v1622_v13 }
 0xc9c   :  { %v1734_v14 = vpop.eup %1733 }
 0xc9d   :  { %v1090_v15 = vadd.f32 1.0, %v1734_v14  ;;  %v1626_v14 = vld [vmem:[%s2405_s0 + $0x6] sm:$0x1] }
 0xc9f   :  { %1735 = vrcp.f32 %v1090_v15  ;;  %v1102_v27 = vand.u32 2147483648, %v1090_v15  ;;  %v1100_v30 = vand.u32 2147483647, %v1090_v15  ;;  %vm1096_vm9 = vweird.f32 %v1090_v15 }
 0xca1   :  { %v1103_v33 = vor.u32 1.1754944e-38, %v1102_v27  ;;  %vm1101_vm11 = vcmp.eq.f32.partialorder %v1100_v30, 8.507059e+37 }
 0xca5   :  { %v1736_v16 = vpop.eup %1735 }
 0xca6   :  { %v1092_v26 = vmul.f32 %v1736_v16, %v1090_v15  ;;  %vm1097_vm8 = vweird.f32 %v1736_v16  ;;  %v1176_v15 = vunpack.c.l.bf16 %v1626_v14 }
 0xca7   :  { %vm1098_vm10 = vmor %vm1096_vm9, %vm1097_vm8 }
 0xca8   :  { %v1093_v28 = vsub.f32 1.0, %v1092_v26 }
 0xcaa   :  { %v1094_v29 = vmul.f32 %v1736_v16, %v1093_v28 }
 0xcac   :  { %v1095_v31 = vadd.f32 %v1736_v16, %v1094_v29 }
 0xcae   :  { %v1099_v34 = vsel %vm1098_vm10, %v1736_v16, %v1095_v31 }
 0xcaf   :  { %v1104_v36 = vsel %vm1101_vm11, %v1103_v33, %v1099_v34 }
 0xcb0   :  { %v1135_v37 = vmul.f32 %v1133_v35, %v1104_v36 }
 0xcb2   :  { %1137 = vrot.lane.b32.xlu0 %v1135_v37, %s1777_s3 }
 0xcf0   :  { %v1070_v38 = vpop.permute.xlu1 %1069 }
 0xcf1   :  { %v1072_v39 = vadd.f32 %v1070_v38, %v988_v59 }
 0xcf3   :  { %1737 = vtanh.f32 %v1072_v39 }
 0xcf9   :  { %v1738_v42 = vpop.eup %1737 }
 0xcfa   :  { %1076 = vrot.lane.b32.xlu1 %v1738_v42, %s1780_s15 }
 0xd24   :  { %v1138_v43 = vpop.permute.xlu0 %1137 }
 0xd25   :  { %v1140_v44 = vadd.f32 %v1138_v43, %v991_v10 }
 0xd27   :  { %1739 = vtanh.f32 %v1140_v44  ;;  %v1627_v44 = vld [vmem:[%s2406_s1 + $0x1] sm:$0x1] }
 0xd28   :  { %1741 = vpow2.f32 %v1623_v57 }
 0xd2d   :  { %v1740_v45 = vpop.eup %1739 }
 0xd2e   :  { %1144 = vrot.lane.b32.xlu0 %v1740_v45, %s1780_s15  ;;  %v1742_v55 = vpop.eup %1741  ;;  %v1179_v45 = vunpack.c.l.bf16 %v1627_v44 }
 0xd2f   :  { %v1114_v59 = vadd.f32 1.0, %v1742_v55 }
 0xd31   :  { %1743 = vrcp.f32 %v1114_v59  ;;  %v1126_v18 = vand.u32 2147483648, %v1114_v59  ;;  %vm1120_vm15 = vweird.f32 %v1114_v59  ;;  %v1124_v20 = vand.u32 2147483647, %v1114_v59 }
 0xd33   :  { %v1127_v23 = vor.u32 1.1754944e-38, %v1126_v18  ;;  %vm1125_vm1 = vcmp.eq.f32.partialorder %v1124_v20, 8.507059e+37 }
 0xd37   :  { %v1744_v60 = vpop.eup %1743 }
 0xd38   :  { %v1116_v62 = vmul.f32 %v1744_v60, %v1114_v59  ;;  %vm1121_vm14 = vweird.f32 %v1744_v60 }
 0xd39   :  { %vm1122_vm0 = vmor %vm1120_vm15, %vm1121_vm14 }
 0xd3a   :  { %v1117_v63 = vsub.f32 1.0, %v1116_v62 }
 0xd3c   :  { %v1118_v3 = vmul.f32 %v1744_v60, %v1117_v63 }
 0xd3e   :  { %v1119_v61 = vadd.f32 %v1744_v60, %v1118_v3 }
 0xd40   :  { %v1123_v22 = vsel %vm1122_vm0, %v1744_v60, %v1119_v61 }
 0xd41   :  { %v1128_v0 = vsel %vm1125_vm1, %v1127_v23, %v1123_v22 }
 0xd42   :  { %v1142_v2 = vsub.f32 1.0, %v1128_v0  ;;  %v1148_v5 = vmul.f32 %v1128_v0, %v2173_v50 }
 0xd6c   :  { %v1077_v48 = vpop.permute.xlu1 %1076 }
 0xd6d   :  { %v1079_v51 = vmul.f32 %v1077_v48, %v1074_v40 }
 0xd6f   :  { %v2196_v52 = vadd.f32 %v1080_v49, %v1079_v51 }
 0xd71   :  { %1181 = vst [vmem:[#allocation1] ss:$4 sm:$0xff] %v2196_v52 }
 0xd78   :  { %v1182_v53 = vld.sshfl [vmem:[#allocation1] sm:$0xff pattern:$0x73625140] }
 0xd79   :  { %1183 = vrot.lane.b32.xlu1 %v1182_v53, %s1780_s15 }
 0xda0   :  { %v1145_v1 = vpop.permute.xlu0 %1144 }
 0xda1   :  { %v1147_v4 = vmul.f32 %v1145_v1, %v1142_v2 }
 0xda3   :  { %v2201_v6 = vadd.f32 %v1148_v5, %v1147_v4 }
 0xdeb   :  { %v1184_v7 = vpop.permute.xlu1 %1183 }
 0xdec   :  { %v1186_v9 = vsel %vm245_vm12, %v1184_v7, %v2201_v6 }
 0xded   :  { %1628 = vmatmul.msk.f32.vlgmr.msrb.gmra.mxu0 %vm46_vm13, %v1186_v9  ;;  %1629 = vmatmul.msk.f32.vlgmr.msrb.gmra.mxu1 %vm46_vm13, %v1186_v9 }
 0xe6a   :  { %v1207_v10 = vpop.f32.mrf.mxu0  ;;  %v1227_v12 = vpop.f32.mrf.mxu1 }
 0xe6b   :  { %v1250_v11 = vadd.f32 %v1207_v10, %v1989_v19  ;;  %1271 = vrot.lane.b32.xlu0 %v1207_v10, %s1778_s23  ;;  %v1318_v13 = vadd.f32 %v1227_v12, %v1998_v41  ;;  %v1230_v16 = vadd.f32 %v1207_v10, %v1176_v15 }
 0xe6d   :  { %1252 = vrot.lane.b32.xlu2 %v1250_v11, %s1777_s3  ;;  %v1630_v26 = vmul.f32 -1.442695, %v1230_v16 }
 0xe6f   :  { %1745 = vpow2.f32 %v1630_v26 }
 0xe75   :  { %1320 = vrot.lane.b32.xlu2 %v1318_v13, %s1780_s15  ;;  %v1746_v28 = vpop.eup %1745 }
 0xe76   :  { %v1234_v27 = vadd.f32 1.0, %v1746_v28 }
 0xe78   :  { %1747 = vrcp.f32 %v1234_v27  ;;  %v1246_v35 = vand.u32 2147483648, %v1234_v27  ;;  %vm1240_vm3 = vweird.f32 %v1234_v27  ;;  %v1244_v36 = vand.u32 2147483647, %v1234_v27 }
 0xe7a   :  { %v1247_v38 = vor.u32 1.1754944e-38, %v1246_v35  ;;  %vm1245_vm5 = vcmp.eq.f32.partialorder %v1244_v36, 8.507059e+37 }
 0xe7d   :  { %1295 = vrot.lane.b32.xlu2 %v1227_v12, %s1778_s23 }
 0xe7e   :  { %v1748_v29 = vpop.eup %1747 }
 0xe7f   :  { %v1236_v30 = vmul.f32 %v1748_v29, %v1234_v27  ;;  %vm1241_vm2 = vweird.f32 %v1748_v29 }
 0xe80   :  { %vm1242_vm4 = vmor %vm1240_vm3, %vm1241_vm2 }
 0xe81   :  { %v1237_v31 = vsub.f32 1.0, %v1236_v30 }
 0xe83   :  { %v1238_v33 = vmul.f32 %v1748_v29, %v1237_v31 }
 0xe85   :  { %v1239_v34 = vadd.f32 %v1748_v29, %v1238_v33 }
 0xe87   :  { %v1243_v37 = vsel %vm1242_vm4, %v1748_v29, %v1239_v34 }
 0xe88   :  { %v1248_v42 = vsel %vm1245_vm5, %v1247_v38, %v1243_v37 }
 0xe89   :  { %v1262_v5 = vsub.f32 1.0, %v1248_v42  ;;  %v1268_v9 = vmul.f32 %v1248_v42, %v2196_v52 }
 0xec7   :  { %v1253_v39 = vpop.permute.xlu2 %1252 }
 0xec8   :  { %v1255_v43 = vmul.f32 %v1253_v39, %v1248_v42 }
 0xeca   :  { %1257 = vrot.lane.b32.xlu1 %v1255_v43, %s1777_s3 }
 0xecf   :  { %v1321_v61 = vpop.permute.xlu2 %1320 }
 0xed7   :  { %v1296_v13 = vpop.permute.xlu2 %1295 }
 0xed8   :  { %v1298_v14 = vadd.f32 %v1296_v13, %v1179_v45 }
 0xedd   :  { %v1272_v40 = vpop.permute.xlu0 %1271 }
 0xede   :  { %v1274_v48 = vadd.f32 %v1272_v40, %v1179_v45 }
 0xee0   :  { %v1631_v49 = vmul.f32 -1.442695, %v1274_v48 }
 0xee2   :  { %1749 = vpow2.f32 %v1631_v49 }
 0xee8   :  { %v1750_v51 = vpop.eup %1749 }
 0xee9   :  { %v1278_v53 = vadd.f32 1.0, %v1750_v51 }
 0xeeb   :  { %1751 = vrcp.f32 %v1278_v53  ;;  %v1290_v55 = vand.u32 2147483648, %v1278_v53  ;;  %v1288_v60 = vand.u32 2147483647, %v1278_v53  ;;  %vm1284_vm7 = vweird.f32 %v1278_v53 }
 0xeed   :  { %v1291_v63 = vor.u32 1.1754944e-38, %v1290_v55  ;;  %vm1289_vm9 = vcmp.eq.f32.partialorder %v1288_v60, 8.507059e+37 }
 0xef1   :  { %v1752_v54 = vpop.eup %1751 }
 0xef2   :  { %v1280_v56 = vmul.f32 %v1752_v54, %v1278_v53  ;;  %vm1285_vm6 = vweird.f32 %v1752_v54 }
 0xef3   :  { %vm1286_vm8 = vmor %vm1284_vm7, %vm1285_vm6  ;;  %vm219_vm7 = vcmask 253952  }
 0xef4   :  { %v1281_v57 = vsub.f32 1.0, %v1280_v56 }
 0xef6   :  { %v1282_v59 = vmul.f32 %v1752_v54, %v1281_v57 }
 0xef8   :  { %v1283_v62 = vadd.f32 %v1752_v54, %v1282_v59  ;;  %v774_v59 = vpack.c.bf16 %v2140_v8, %v2140_v8 }
 0xefa   :  { %v1287_v3 = vsel %vm1286_vm8, %v1752_v54, %v1283_v62  ;;  %v208_v54 = vpack.c.bf16 %v2008_v24, %v2008_v24  ;;  %v776_v24 = vrot.slane %v774_v59, 3  ;;  %v974_v62 = vpack.c.bf16 %v2173_v50, %v2173_v50 }
 0xefb   :  { %v1292_v18 = vsel %vm1289_vm9, %v1291_v63, %v1287_v3 }
 0xefc   :  { %v1323_v20 = vmul.f32 %v1321_v61, %v1292_v18  ;;  %v210_v56 = vrot.slane %v208_v54, 3  ;;  %v976_v63 = vrot.slane %v974_v62, 3  ;;  %v2264_v18 = vld [vmem:[%s2405_s0 + $0x7] sm:$0x1] }
 0xefd   :  { %v1364_v50 = vunpack.c.l.bf16 %v2264_v18 }
 0xefe   :  { %1325 = vrot.lane.b32.xlu0 %v1323_v20, %s1777_s3 }
 0xf3c   :  { %v1258_v22 = vpop.permute.xlu1 %1257 }
 0xf3d   :  { %v1260_v23 = vadd.f32 %v1258_v22, %v1176_v15  ;;  %v1632_v15 = vmul.f32 -1.442695, %v1298_v14 }
 0xf3f   :  { %1753 = vtanh.f32 %v1260_v23 }
 0xf45   :  { %v1754_v0 = vpop.eup %1753 }
 0xf46   :  { %1264 = vrot.lane.b32.xlu1 %v1754_v0, %s1780_s15 }
 0xf70   :  { %v1326_v1 = vpop.permute.xlu0 %1325 }
 0xf71   :  { %v1328_v2 = vadd.f32 %v1326_v1, %v1179_v45  ;;  %v1365_v1 = vld [vmem:[%s2406_s1] sm:$0x1] }
 0xf73   :  { %1755 = vtanh.f32 %v1328_v2  ;;  %v2272_v2 = vunpack.c.l.bf16 %v1365_v1 }
 0xf74   :  { %1757 = vpow2.f32 %v1632_v15 }
 0xf79   :  { %v1756_v4 = vpop.eup %1755 }
 0xf7a   :  { %1332 = vrot.lane.b32.xlu0 %v1756_v4, %s1780_s15  ;;  %v1758_v16 = vpop.eup %1757 }
 0xf7b   :  { %v1302_v26 = vadd.f32 1.0, %v1758_v16 }
 0xf7d   :  { %1759 = vrcp.f32 %v1302_v26  ;;  %v1314_v33 = vand.u32 2147483648, %v1302_v26  ;;  %vm1308_vm11 = vweird.f32 %v1302_v26  ;;  %v1312_v34 = vand.u32 2147483647, %v1302_v26 }
 0xf7f   :  { %v1315_v36 = vor.u32 1.1754944e-38, %v1314_v33  ;;  %vm1313_vm15 = vcmp.eq.f32.partialorder %v1312_v34, 8.507059e+37 }
 0xf83   :  { %v1760_v28 = vpop.eup %1759 }
 0xf84   :  { %v1304_v27 = vmul.f32 %v1760_v28, %v1302_v26  ;;  %vm1309_vm10 = vweird.f32 %v1760_v28 }
 0xf85   :  { %vm1310_vm14 = vmor %vm1308_vm11, %vm1309_vm10 }
 0xf86   :  { %v1305_v29 = vsub.f32 1.0, %v1304_v27 }
 0xf88   :  { %v1306_v30 = vmul.f32 %v1760_v28, %v1305_v29 }
 0xf8a   :  { %v1307_v31 = vadd.f32 %v1760_v28, %v1306_v30 }
 0xf8c   :  { %v1311_v35 = vsel %vm1310_vm14, %v1760_v28, %v1307_v31  ;;  %vm1554_vm14 = vcmask 254976  }
 0xf8d   :  { %v1316_v37 = vsel %vm1313_vm15, %v1315_v36, %v1311_v35 }
 0xf8e   :  { %v1330_v39 = vsub.f32 1.0, %v1316_v37  ;;  %v1336_v43 = vmul.f32 %v1316_v37, %v2201_v6 }
 0xfb8   :  { %v1265_v7 = vpop.permute.xlu1 %1264 }
 0xfb9   :  { %v1267_v10 = vmul.f32 %v1265_v7, %v1262_v5 }
 0xfbb   :  { %v2224_v11 = vadd.f32 %v1268_v9, %v1267_v10 }
 0xfbd   :  { %1368 = vst [vmem:[#allocation1] ss:$4 sm:$0xff] %v2224_v11  ;;  %v1338_v3 = vpack.c.bf16 %v2224_v11, %v2224_v11 }
 0xfbf   :  { %v1340_v61 = vrot.slane %v1338_v3, 3 }
 0xfc4   :  { %v1369_v12 = vld.sshfl [vmem:[#allocation1] sm:$0xff pattern:$0x73625140] }
 0xfc5   :  { %1370 = vrot.lane.b32.xlu1 %v1369_v12, %s1780_s15 }
 0xfec   :  { %v1333_v38 = vpop.permute.xlu0 %1332 }
 0xfed   :  { %v1335_v42 = vmul.f32 %v1333_v38, %v1330_v39 }
 0xfef   :  { %v2229_v44 = vadd.f32 %v1336_v43, %v1335_v42 }
 0xff1   :  { %v1350_v1 = vpack.c.bf16 %v2229_v44, %v2229_v44 }
0x1037   :  { %v1371_v45 = vpop.permute.xlu1 %1370 }
0x1038   :  { %v1373_v40 = vsel %vm245_vm12, %v1371_v45, %v2229_v44  ;;  %vm211_vm12 = vcmask 1040384  }
0x1039   :  { %1636 = vmatmul.msk.f32.vlgmr.msrb.gmra.mxu2 %vm46_vm13, %v1373_v40  ;;  %1637 = vmatmul.msk.f32.vlgmr.msrb.gmra.mxu3 %vm46_vm13, %v1373_v40  ;;  %v214_v57 = vsel %vm211_vm12, %v208_v54, %v210_v56  ;;  %v779_v60 = vsel %vm211_vm12, %v774_v59, %v776_v24  ;;  %v1343_v8 = vsel %vm211_vm12, %v1338_v3, %v1340_v61 }
0x103a   :  { %v221_v24 = vpack.c.bf16 %v2013_v47, %v2013_v47  ;;  %v786_v61 = vpack.c.bf16 %v2145_v25, %v2145_v25 }
0x103c   :  { %v788_v18 = vrot.slane %v786_v61, 3 }
0x10bc   :  { %v1394_v48 = vpop.f32.mrf.mxu2  ;;  %v1414_v49 = vpop.f32.mrf.mxu3 }
0x10bd   :  { %v1437_v51 = vadd.f32 %v1394_v48, %v1989_v19  ;;  %v1505_v53 = vadd.f32 %v1414_v49, %v1998_v41  ;;  %1458 = vrot.lane.b32.xlu2 %v1394_v48, %s1778_s23  ;;  %v410_v19 = vpack.c.bf16 %v2057_v32, %v2057_v32  ;;  %v979_v32 = vsel %vm211_vm12, %v974_v62, %v976_v63 }
0x10be   :  { %v1417_v20 = vadd.f32 %v1394_v48, %v1364_v50  ;;  %v586_v63 = vpack.c.bf16 %v2096_v46, %v2096_v46  ;;  %v1150_v46 = vpack.c.bf16 %v2196_v52, %v2196_v52  ;;  %v1352_v52 = vrot.slane %v1350_v1, 3 }
0x10bf   :  { %1507 = vrot.lane.b32.xlu1 %v1505_v53, %s1780_s15  ;;  %1439 = vrot.lane.b32.xlu0 %v1437_v51, %s1777_s3  ;;  %v412_v41 = vrot.slane %v410_v19, 3 }
0x10c0   :  { %v1638_v22 = vmul.f32 -1.442695, %v1417_v20 }
0x10c1   :  { %v415_v55 = vsel %vm211_vm12, %v410_v19, %v412_v41 }
0x10c2   :  { %1761 = vpow2.f32 %v1638_v22  ;;  %v1152_v22 = vrot.slane %v1150_v46, 3 }
0x10c4   :  { %v1155_v25 = vsel %vm211_vm12, %v1150_v46, %v1152_v22 }
0x10c7   :  { %1482 = vrot.lane.b32.xlu1 %v1414_v49, %s1778_s23 }
0x10c8   :  { %v1762_v23 = vpop.eup %1761 }
0x10c9   :  { %v1421_v0 = vadd.f32 1.0, %v1762_v23  ;;  %v398_v23 = vpack.c.bf16 %v2052_v58, %v2052_v58  ;;  %v1355_v58 = vsel %vm211_vm12, %v1350_v1, %v1352_v52 }
0x10cb   :  { %1763 = vrcp.f32 %v1421_v0  ;;  %v1433_v28 = vand.u32 2147483648, %v1421_v0  ;;  %vm1427_vm0 = vweird.f32 %v1421_v0  ;;  %v1431_v29 = vand.u32 2147483647, %v1421_v0 }
0x10cd   :  { %v1434_v34 = vor.u32 1.1754944e-38, %v1433_v28  ;;  %vm1432_vm3 = vcmp.eq.f32.partialorder %v1431_v29, 8.507059e+37 }
0x10cf   :  { %216 = vrot.lane.b32.xlu1 %v214_v57, %s1780_s15 }
0x10d1   :  { %v1764_v9 = vpop.eup %1763 }
0x10d2   :  { %v1423_v10 = vmul.f32 %v1764_v9, %v1421_v0  ;;  %vm1428_vm13 = vweird.f32 %v1764_v9  ;;  %v400_v0 = vrot.slane %v398_v23, 3 }
0x10d3   :  { %vm1429_vm1 = vmor %vm1427_vm0, %vm1428_vm13 }
0x10d4   :  { %v1424_v13 = vsub.f32 1.0, %v1423_v10  ;;  %v962_v10 = vpack.c.bf16 %v2168_v17, %v2168_v17 }
0x10d6   :  { %v1425_v15 = vmul.f32 %v1764_v9, %v1424_v13 }
0x10d7   :  { %417 = vrot.lane.b32.xlu1 %v415_v55, %s1780_s15 }
0x10d8   :  { %v1426_v16 = vadd.f32 %v1764_v9, %v1425_v15 }
0x10da   :  { %v1430_v31 = vsel %vm1429_vm1, %v1764_v9, %v1426_v16 }
0x10db   :  { %v2275_v39 = vsel %vm1432_vm3, %v1434_v34, %v1430_v31 }
0x10dc   :  { %v1455_v28 = vmul.f32 %v2275_v39, %v2224_v11 }
0x10df   :  { %781 = vrot.lane.b32.xlu1 %v779_v60, %s1780_s15  ;;  %v223_v60 = vrot.slane %v221_v24, 3 }
0x10e1   :  { %v226_v62 = vsel %vm211_vm12, %v221_v24, %v223_v60 }
0x10e7   :  { %981 = vrot.lane.b32.xlu1 %v979_v32, %s1780_s15  ;;  %v588_v32 = vrot.slane %v586_v63, 3 }
0x10e9   :  { %v591_v3 = vsel %vm211_vm12, %v586_v63, %v588_v32 }
0x10ef   :  { %1345 = vrot.lane.b32.xlu1 %v1343_v8, %s1780_s15 }
0x1117   :  { %v1459_v4 = vpop.permute.xlu2 %1458 }
0x1118   :  { %v1461_v5 = vadd.f32 %v1459_v4, %v2272_v2  ;;  %v403_v4 = vsel %vm211_vm12, %v398_v23, %v400_v0 }
0x111a   :  { %v1639_v7 = vmul.f32 -1.442695, %v1461_v5  ;;  %v598_v5 = vpack.c.bf16 %v2101_v21, %v2101_v21  ;;  %v1162_v21 = vpack.c.bf16 %v2201_v6, %v2201_v6 }
0x111c   :  { %1765 = vpow2.f32 %v1639_v7  ;;  %v600_v7 = vrot.slane %v598_v5, 3 }
0x111e   :  { %v603_v9 = vsel %vm211_vm12, %v598_v5, %v600_v7 }
0x1122   :  { %v1766_v12 = vpop.eup %1765 }
0x1123   :  { %v1465_v14 = vadd.f32 1.0, %v1766_v12  ;;  %v964_v12 = vrot.slane %v962_v10, 3 }
0x1125   :  { %1767 = vrcp.f32 %v1465_v14  ;;  %v1477_v33 = vand.u32 2147483648, %v1465_v14  ;;  %v1475_v36 = vand.u32 2147483647, %v1465_v14  ;;  %vm1471_vm4 = vweird.f32 %v1465_v14 }
0x1126   :  { %v967_v13 = vsel %vm211_vm12, %v962_v10, %v964_v12 }
0x1127   :  { %v1478_v45 = vor.u32 1.1754944e-38, %v1477_v33  ;;  %vm1476_vm6 = vcmp.eq.f32.partialorder %v1475_v36, 8.507059e+37 }
0x112b   :  { %v1768_v26 = vpop.eup %1767 }
0x112c   :  { %v1467_v27 = vmul.f32 %v1768_v26, %v1465_v14  ;;  %vm1472_vm2 = vweird.f32 %v1768_v26  ;;  %v1164_v14 = vrot.slane %v1162_v21, 3 }
0x112d   :  { %vm1473_vm5 = vmor %vm1471_vm4, %vm1472_vm2 }
0x112e   :  { %v1468_v30 = vsub.f32 1.0, %v1467_v27  ;;  %v1167_v15 = vsel %vm211_vm12, %v1162_v21, %v1164_v14 }
0x1130   :  { %v1469_v35 = vmul.f32 %v1768_v26, %v1468_v30 }
0x1131   :  { %v1508_v37 = vpop.permute.xlu1 %1507  ;;  %v1440_v38 = vpop.permute.xlu0 %1439 }
0x1132   :  { %v1470_v42 = vadd.f32 %v1768_v26, %v1469_v35  ;;  %v1442_v43 = vmul.f32 %v1440_v38, %v2275_v39 }
0x1134   :  { %v1474_v40 = vsel %vm1473_vm5, %v1768_v26, %v1470_v42  ;;  %1444 = vrot.lane.b32.xlu2 %v1442_v43, %s1777_s3  ;;  %v1449_v26 = vsub.f32 1.0, %v2275_v39 }
0x1135   :  { %v1479_v48 = vsel %vm1476_vm6, %v1478_v45, %v1474_v40 }
0x1136   :  { %v1510_v49 = vmul.f32 %v1508_v37, %v1479_v48 }
0x1138   :  { %1512 = vrot.lane.b32.xlu0 %v1510_v49, %s1777_s3 }
0x1139   :  { %v1483_v51 = vpop.permute.xlu1 %1482 }
0x113a   :  { %v1485_v16 = vadd.f32 %v1483_v51, %v2272_v2 }
0x113c   :  { %v1640_v29 = vmul.f32 -1.442695, %v1485_v16 }
0x1141   :  { %v217_v53 = vpop.permute.xlu1 %216 }
0x1142   :  { %220 = vst.msk [vmem:[%s2407_s5] sm:$0x1] %vm219_vm7, %v217_v53 }
0x1149   :  { %v418_v54 = vpop.permute.xlu1 %417 }
0x114a   :  { %1589 = vst.msk [vmem:[%s2408_s6 + $0x6] sm:$0x1] %vm219_vm7, %v418_v54 }
0x1151   :  { %v782_v56 = vpop.permute.xlu1 %781 }
0x1152   :  { %1606 = vst.msk [vmem:[%s2407_s5 + $0x3] sm:$0x1] %vm219_vm7, %v782_v56 }
0x1159   :  { %v982_v57 = vpop.permute.xlu1 %981 }
0x115a   :  { %1616 = vst.msk [vmem:[%s2408_s6 + $0x3] sm:$0x1] %vm219_vm7, %v982_v57 }
0x1161   :  { %v1346_v19 = vpop.permute.xlu1 %1345 }
0x1162   :  { %1633 = vst.msk [vmem:[%s2407_s5 + $0x6] sm:$0x1] %vm219_vm7, %v1346_v19 }
0x118e   :  { %v1445_v41 = vpop.permute.xlu2 %1444 }
0x118f   :  { %v1447_v55 = vadd.f32 %v1445_v41, %v1364_v50  ;;  %v791_v50 = vsel %vm211_vm12, %v786_v61, %v788_v18 }
0x1191   :  { %1769 = vtanh.f32 %v1447_v55 }
0x1197   :  { %v1770_v59 = vpop.eup %1769 }
0x1198   :  { %1451 = vrot.lane.b32.xlu2 %v1770_v59, %s1780_s15 }
0x11a0   :  { %228 = vrot.lane.b32.xlu2 %v226_v62, %s1780_s15 }
0x11a8   :  { %593 = vrot.lane.b32.xlu2 %v591_v3, %s1780_s15 }
0x11aa   :  { %v1513_v8 = vpop.permute.xlu0 %1512 }
0x11ab   :  { %v1515_v47 = vadd.f32 %v1513_v8, %v2272_v2 }
0x11ad   :  { %1771 = vtanh.f32 %v1515_v47 }
0x11ae   :  { %1773 = vpow2.f32 %v1640_v29 }
0x11b0   :  { %793 = vrot.lane.b32.xlu2 %v791_v50, %s1780_s15 }
0x11b3   :  { %v1772_v20 = vpop.eup %1771 }
0x11b4   :  { %1519 = vrot.lane.b32.xlu0 %v1772_v20, %s1780_s15  ;;  %v1774_v35 = vpop.eup %1773 }
0x11b5   :  { %v1489_v11 = vadd.f32 1.0, %v1774_v35 }
0x11b7   :  { %1775 = vrcp.f32 %v1489_v11  ;;  %v1501_v49 = vand.u32 2147483648, %v1489_v11  ;;  %vm1495_vm9 = vweird.f32 %v1489_v11  ;;  %v1499_v51 = vand.u32 2147483647, %v1489_v11 }
0x11b8   :  { %1157 = vrot.lane.b32.xlu2 %v1155_v25, %s1780_s15 }
0x11b9   :  { %v1502_v54 = vor.u32 1.1754944e-38, %v1501_v49  ;;  %vm1500_vm11 = vcmp.eq.f32.partialorder %v1499_v51, 8.507059e+37 }
0x11bc   :  { %405 = vrot.lane.b32.xlu0 %v403_v4, %s1780_s15 }
0x11bd   :  { %v1776_v38 = vpop.eup %1775 }
0x11be   :  { %v1491_v39 = vmul.f32 %v1776_v38, %v1489_v11  ;;  %vm1496_vm8 = vweird.f32 %v1776_v38 }
0x11bf   :  { %vm1497_vm10 = vmor %vm1495_vm9, %vm1496_vm8 }
0x11c0   :  { %1357 = vrot.lane.b32.xlu2 %v1355_v58, %s1780_s15  ;;  %v1492_v43 = vsub.f32 1.0, %v1491_v39 }
0x11c2   :  { %v1493_v45 = vmul.f32 %v1776_v38, %v1492_v43 }
0x11c4   :  { %605 = vrot.lane.b32.xlu0 %v603_v9, %s1780_s15  ;;  %v1494_v48 = vadd.f32 %v1776_v38, %v1493_v45 }
0x11c6   :  { %v1498_v53 = vsel %vm1497_vm10, %v1776_v38, %v1494_v48 }
0x11c7   :  { %v1503_v56 = vsel %vm1500_vm11, %v1502_v54, %v1498_v53 }
0x11c8   :  { %v1517_v57 = vsub.f32 1.0, %v1503_v56  ;;  %v1523_v41 = vmul.f32 %v1503_v56, %v2229_v44 }
0x11cc   :  { %969 = vrot.lane.b32.xlu0 %v967_v13, %s1780_s15 }
0x11d4   :  { %1169 = vrot.lane.b32.xlu0 %v1167_v15, %s1780_s15 }
0x11f2   :  { %v1452_v17 = vpop.permute.xlu2 %1451 }
0x11f3   :  { %v1454_v27 = vmul.f32 %v1452_v17, %v1449_v26 }
0x11f5   :  { %v1456_v30 = vadd.f32 %v1455_v28, %v1454_v27 }
0x11f7   :  { %v1525_v31 = vpack.c.bf16 %v1456_v30, %v1456_v30  ;;  %1549 = vst [vmem:[#allocation1] ss:$4 sm:$0xff] %v1456_v30 }
0x11f9   :  { %v1527_v6 = vrot.slane %v1525_v31, 3 }
0x11fa   :  { %v229_v33 = vpop.permute.xlu2 %228 }
0x11fb   :  { %1580 = vst.msk [vmem:[%s2408_s6 + $0x7] sm:$0x1] %vm219_vm7, %v229_v33  ;;  %v1530_v2 = vsel %vm211_vm12, %v1525_v31, %v1527_v6 }
0x11fc   :  { %1532 = vrot.lane.b32.xlu0 %v1530_v2, %s1780_s15 }
0x11fe   :  { %v1550_v34 = vld.sshfl [vmem:[#allocation1] sm:$0xff pattern:$0x73625140] }
0x11ff   :  { %1551 = vrot.lane.b32.xlu2 %v1550_v34, %s1780_s15 }
0x1202   :  { %v594_v36 = vpop.permute.xlu2 %593 }
0x1203   :  { %1597 = vst.msk [vmem:[%s2407_s5 + $0x2] sm:$0x1] %vm219_vm7, %v594_v36 }
0x120a   :  { %v794_v37 = vpop.permute.xlu2 %793 }
0x120b   :  { %1607 = vst.msk [vmem:[%s2408_s6 + $0x4] sm:$0x1] %vm219_vm7, %v794_v37 }
0x1212   :  { %v1158_v42 = vpop.permute.xlu2 %1157 }
0x1213   :  { %1624 = vst.msk [vmem:[%s2407_s5 + $0x5] sm:$0x1] %vm219_vm7, %v1158_v42 }
0x121a   :  { %v1358_v40 = vpop.permute.xlu2 %1357 }
0x121b   :  { %1634 = vst.msk [vmem:[%s2408_s6 + $0x1] sm:$0x1] %vm219_vm7, %v1358_v40 }
0x1226   :  { %v1520_v19 = vpop.permute.xlu0 %1519 }
0x1227   :  { %v1522_v55 = vmul.f32 %v1520_v19, %v1517_v57 }
0x1229   :  { %v1524_v59 = vadd.f32 %v1523_v41, %v1522_v55 }
0x122b   :  { %v1537_v24 = vpack.c.bf16 %v1524_v59, %v1524_v59  ;;  %1557 = vst [vmem:[#allocation1] ss:$4 sm:$0xff] %v1524_v59 }
0x122d   :  { %v1539_v60 = vrot.slane %v1537_v24, 3 }
0x122e   :  { %v406_v62 = vpop.permute.xlu0 %405 }
0x122f   :  { %1588 = vst.msk [vmem:[%s2407_s5 + $0x1] sm:$0x1] %vm219_vm7, %v406_v62  ;;  %v1542_v63 = vsel %vm211_vm12, %v1537_v24, %v1539_v60 }
0x1230   :  { %1544 = vrot.lane.b32.xlu1 %v1542_v63, %s1780_s15 }
0x1232   :  { %v1558_v32 = vld.sshfl [vmem:[#allocation1] sm:$0xff pattern:$0x73625140] }
0x1233   :  { %1559 = vrot.lane.b32.xlu0 %v1558_v32, %s1780_s15 }
0x1236   :  { %v606_v3 = vpop.permute.xlu0 %605 }
0x1237   :  { %1598 = vst.msk [vmem:[%s2408_s6 + $0x5] sm:$0x1] %vm219_vm7, %v606_v3 }
0x123e   :  { %v970_v44 = vpop.permute.xlu0 %969 }
0x123f   :  { %1615 = vst.msk [vmem:[%s2407_s5 + $0x4] sm:$0x1] %vm219_vm7, %v970_v44 }
0x1246   :  { %v1170_v61 = vpop.permute.xlu0 %1169 }
0x1247   :  { %1625 = vst.msk [vmem:[%s2408_s6 + $0x2] sm:$0x1] %vm219_vm7, %v1170_v61 }
0x1259   :  { %v1552_v8 = vpop.permute.xlu2 %1551 }
0x125a   :  { %1555 = vst.msk [vmem:[%s2409_s7] sm:$0x3] %vm1554_vm14, %v1552_v8 }
0x126e   :  { %v1533_v47 = vpop.permute.xlu0 %1532 }
0x126f   :  { %1641 = vst.msk [vmem:[%s2407_s5 + $0x7] sm:$0x1] %vm219_vm7, %v1533_v47 }
0x12a2   :  { %v1545_v18 = vpop.permute.xlu1 %1544 }
0x12a3   :  { %1547 = vst.msk [vmem:[%s2408_s6] sm:$0x1] %vm219_vm7, %v1545_v18 }
0x12a5   :  { %v1560_v50 = vpop.permute.xlu0 %1559 }
0x12a6   :  { %1642 = vst.msk [vmem:[%s2409_s7 + $0x2] sm:$0x3] %vm1554_vm14, %v1560_v50 }

// kernel: rnn_forward.7
= control target key start
LH: loop header
LB: loop body
LE: loop exit
PB: predicated region body
PF: predicated region fallthrough
CT: control target
= control target key end

     0   :  { %13 = vsyncpa [#allocation3], 0  ;;  %s2445_s0 = inlined_call_operand.vmem [shape: bf16[8,2,96], index: 0, kind: input, shape index: {}]   ;;  %s2446_s1 = inlined_call_operand.vmem [shape: bf16[8,2,96], index: 1, kind: input, shape index: {}]   ;;  %s2447_s2 = inlined_call_operand.hbm [shape: f32[64,192], index: 2, kind: input, shape index: {}]   ;;  %s2448_s3 = inlined_call_operand.vmem [shape: f32[1,32], index: 3, kind: input, shape index: {}]   ;;  %s2449_s4 = inlined_call_operand.vmem [shape: f32[1,32], index: 4, kind: input, shape index: {}]   ;;  %s2450_s5 = inlined_call_operand.hbm [shape: bf16[8,2,32], index: 5, kind: output, shape index: {0}]   ;;  %s2451_s6 = inlined_call_operand.hbm [shape: bf16[8,2,32], index: 6, kind: output, shape index: {1}]   ;;  %s2452_s7 = inlined_call_operand.vmem [shape: f32[2,2,32], index: 7, kind: output, shape index: {2}]  }
   0x1   :  { %14 = vsyncpa [#allocation4], 0 }
   0x2   :  { %15 = vsyncpa [#allocation7], 0  ;;  %s24_s26 = sshll.u32 %s2447_s2, 4  ;;  %s1894_s27 = smov [#allocation2]   ;;  %s25_s26 = int_to_ptr.hbm [resolvable:$true] %s24_s26 }
   0x3   :  { %s26_s28 = sshll.u32 %s1894_s27, 4  ;;  %s1895_s29 = smov 256   ;;  %s27_s28 = int_to_ptr.vmem [resolvable:$true] %s26_s28 }
   0x4   :  { %s1896_s30 = smov 16  }
   0x5   :  { %32 = dma.hbm_to_vmem [thread:$0]  %s25_s26, 2048, %s27_s28, [#allocation3], %s1895_s29, %s1895_s29, %s1896_s30  }
   0x6   :  { %1888 = dma.done.wait [#allocation3], 2048  }
   0x7   :  { %1889 = vsyncadd [#allocation3], 4294965248  ;;  %v1948_v0 = vld [vmem:[#allocation2 + $0x70] sm:$0xff]  ;;  %v1950_v1 = vld [vmem:[#allocation2 + $0x60] sm:$0xff]  ;;  %s1897_s9 = smov 64   ;;  %s1898_s11 = smov 32  }
   0x8   :  { %76 = vmatpush.msra.mxu0 %v1948_v0  ;;  %276 = vmatpush.msra.mxu2 %v1948_v0  ;;  %v1954_v2 = vld [vmem:[#allocation2 + $0x50] sm:$0xff]  ;;  %v1686_v3 = vld [vmem:[%s2448_s3] ss:$0 sm:$0xff]  ;;  %v1962_v5 = vld [vmem:[#allocation2 + $0x68] sm:$0xff]  ;;  %v1899_v18 = vmov 0.0   ;;  %s1900_s13 = smov 96  }
   0x9   :  { %v1960_v4 = vld [vmem:[#allocation2 + $0x78] sm:$0xff]  ;;  %v1965_v6 = vld [vmem:[#allocation2 + $0x40] sm:$0xff]  ;;  %130 = vrot.lane.b32.xlu0 %v1686_v3, %s1897_s9  ;;  %v1976_v9 = vld [vmem:[#allocation2 + $0x30] sm:$0xff]  ;;  %vm263_vm12 = vcmask 261120   ;;  %vm64_vm13 = vcmask 523264   ;;  %s1588_s23 = sshll.u32 %s2450_s5, 4  ;;  %s1589_s23 = int_to_ptr.hbm [resolvable:$true] %s1588_s23 }
   0xa   :  { %77 = vmatpush.msra.mxu0 %v1950_v1  ;;  %277 = vmatpush.msra.mxu2 %v1950_v1  ;;  %v1971_v7 = vld [vmem:[#allocation2 + $0x58] sm:$0xff]  ;;  %v1981_v10 = vld [vmem:[#allocation2 + $0x48] sm:$0xff]  ;;  %v1984_v11 = vld [vmem:[#allocation2 + $0x20] sm:$0xff]  ;;  %s1902_s24 = smov 1   ;;  %s1903_s25 = smov [#allocation6]  }
   0xb   :  { %96 = vmatpush.msra.mxu1 %v1960_v4  ;;  %296 = vmatpush.msra.mxu3 %v1960_v4  ;;  %v1687_v8 = vld [vmem:[%s2449_s4] ss:$0 sm:$0xff]  ;;  %v1992_v13 = vld [vmem:[#allocation2 + $0x10] sm:$0xff]  ;;  %v1997_v14 = vld [vmem:[#allocation2 + $0x28] sm:$0xff]  ;;  %s1599_s26 = sshll.u32 %s1903_s25, 4  ;;  %s1601_s29 = sshll.u32 %s2451_s6, 4  ;;  %s1600_s26 = int_to_ptr.vmem [resolvable:$true] %s1599_s26  ;;  %s1602_s29 = int_to_ptr.hbm [resolvable:$true] %s1601_s29 }
   0xc   :  { %78 = vmatpush.msra.mxu0 %v1954_v2  ;;  %203 = vrot.lane.b32.xlu1 %v1687_v8, %s1898_s11  ;;  %v1989_v12 = vld [vmem:[#allocation2 + $0x38] sm:$0xff]  ;;  %v2000_v15 = vld [vmem:[#allocation2] sm:$0xff]  ;;  %v2011_v17 = vld [vmem:[#allocation2 + $0x8] sm:$0xff] }
   0xd   :  { %97 = vmatpush.msra.mxu1 %v1962_v5  ;;  %297 = vmatpush.msra.mxu3 %v1962_v5  ;;  %v2005_v16 = vld [vmem:[#allocation2 + $0x18] sm:$0xff] }
   0xe   :  { %79 = vmatpush.msra.mxu0 %v1965_v6  ;;  %278 = vmatpush.msra.mxu2 %v1954_v2  ;;  %v59_v22 = vld [vmem:[%s2445_s0] sm:$0x1]  ;;  %v1623_v43 = vld [vmem:[%s2446_s1 + $0x7] sm:$0x1] }
   0xf   :  { %98 = vmatpush.msra.mxu1 %v1971_v7  ;;  %298 = vmatpush.msra.mxu3 %v1971_v7  ;;  %v60_v23 = vunpack.c.l.bf16 %v59_v22  ;;  %v63_v44 = vunpack.c.l.bf16 %v1623_v43 }
  0x10   :  { %80 = vmatpush.msra.mxu0 %v1976_v9  ;;  %279 = vmatpush.msra.mxu2 %v1965_v6 }
  0x11   :  { %99 = vmatpush.msra.mxu1 %v1981_v10  ;;  %299 = vmatpush.msra.mxu3 %v1981_v10 }
  0x12   :  { %81 = vmatpush.msra.mxu0 %v1984_v11  ;;  %280 = vmatpush.msra.mxu2 %v1976_v9 }
  0x13   :  { %100 = vmatpush.msra.mxu1 %v1989_v12  ;;  %300 = vmatpush.msra.mxu3 %v1989_v12 }
  0x14   :  { %82 = vmatpush.msra.mxu0 %v1992_v13  ;;  %281 = vmatpush.msra.mxu2 %v1984_v11 }
  0x15   :  { %101 = vmatpush.msra.mxu1 %v1997_v14  ;;  %301 = vmatpush.msra.mxu3 %v1997_v14 }
  0x16   :  { %83 = vmatpush.msra.mxu0 %v2000_v15  ;;  %282 = vmatpush.msra.mxu2 %v1992_v13 }
  0x17   :  { %84 = vmatmul.f32.vlgmr.msra.gmra.mxu0 %v1899_v18  ;;  %102 = vmatpush.msra.mxu1 %v2005_v16 }
  0x18   :  { %302 = vmatpush.msra.mxu3 %v2005_v16  ;;  %464 = vmatpush.msrb.mxu0 %v1948_v0 }
  0x19   :  { %103 = vmatpush.msra.mxu1 %v2011_v17  ;;  %283 = vmatpush.msra.mxu2 %v2000_v15 }
  0x1a   :  { %104 = vmatmul.f32.vlgmr.msra.gmra.mxu1 %v1899_v18  ;;  %303 = vmatpush.msra.mxu3 %v2011_v17 }
  0x1b   :  { %484 = vmatpush.msrb.mxu1 %v1960_v4  ;;  %465 = vmatpush.msrb.mxu0 %v1950_v1 }
  0x1c   :  { %652 = vmatpush.msrb.mxu2 %v1948_v0  ;;  %672 = vmatpush.msrb.mxu3 %v1960_v4 }
  0x1d   :  { %485 = vmatpush.msrb.mxu1 %v1962_v5  ;;  %466 = vmatpush.msrb.mxu0 %v1954_v2 }
  0x1e   :  { %653 = vmatpush.msrb.mxu2 %v1950_v1  ;;  %673 = vmatpush.msrb.mxu3 %v1962_v5 }
  0x1f   :  { %486 = vmatpush.msrb.mxu1 %v1971_v7  ;;  %467 = vmatpush.msrb.mxu0 %v1965_v6 }
  0x20   :  { %654 = vmatpush.msrb.mxu2 %v1954_v2  ;;  %674 = vmatpush.msrb.mxu3 %v1971_v7 }
  0x21   :  { %487 = vmatpush.msrb.mxu1 %v1981_v10  ;;  %468 = vmatpush.msrb.mxu0 %v1976_v9 }
  0x22   :  { %655 = vmatpush.msrb.mxu2 %v1965_v6  ;;  %675 = vmatpush.msrb.mxu3 %v1981_v10 }
  0x23   :  { %488 = vmatpush.msrb.mxu1 %v1989_v12  ;;  %469 = vmatpush.msrb.mxu0 %v1984_v11 }
  0x24   :  { %656 = vmatpush.msrb.mxu2 %v1976_v9  ;;  %676 = vmatpush.msrb.mxu3 %v1989_v12 }
  0x25   :  { %489 = vmatpush.msrb.mxu1 %v1997_v14  ;;  %470 = vmatpush.msrb.mxu0 %v1992_v13 }
  0x26   :  { %657 = vmatpush.msrb.mxu2 %v1984_v11  ;;  %677 = vmatpush.msrb.mxu3 %v1997_v14 }
  0x27   :  { %490 = vmatpush.msrb.mxu1 %v2005_v16  ;;  %471 = vmatpush.msrb.mxu0 %v2000_v15 }
  0x28   :  { %658 = vmatpush.msrb.mxu2 %v1992_v13  ;;  %678 = vmatpush.msrb.mxu3 %v2005_v16 }
  0x29   :  { %491 = vmatpush.msrb.mxu1 %v2011_v17  ;;  %840 = vmatpush.msra.mxu0 %v1948_v0 }
  0x2a   :  { %659 = vmatpush.msrb.mxu2 %v2000_v15  ;;  %679 = vmatpush.msrb.mxu3 %v2011_v17 }
  0x2b   :  { %860 = vmatpush.msra.mxu1 %v1960_v4  ;;  %841 = vmatpush.msra.mxu0 %v1950_v1 }
  0x2d   :  { %861 = vmatpush.msra.mxu1 %v1962_v5  ;;  %842 = vmatpush.msra.mxu0 %v1954_v2 }
  0x2f   :  { %862 = vmatpush.msra.mxu1 %v1971_v7  ;;  %843 = vmatpush.msra.mxu0 %v1965_v6 }
  0x31   :  { %863 = vmatpush.msra.mxu1 %v1981_v10  ;;  %844 = vmatpush.msra.mxu0 %v1976_v9 }
  0x33   :  { %864 = vmatpush.msra.mxu1 %v1989_v12  ;;  %845 = vmatpush.msra.mxu0 %v1984_v11 }
  0x35   :  { %865 = vmatpush.msra.mxu1 %v1997_v14  ;;  %846 = vmatpush.msra.mxu0 %v1992_v13 }
  0x37   :  { %866 = vmatpush.msra.mxu1 %v2005_v16  ;;  %847 = vmatpush.msra.mxu0 %v2000_v15 }
  0x39   :  { %867 = vmatpush.msra.mxu1 %v2011_v17 }
  0x7b   :  { %v2068_v19 = vpop.permute.xlu0 %130 }
  0x7e   :  { %v2077_v41 = vpop.permute.xlu1 %203 }
  0x94   :  { %v85_v20 = vpop.f32.mrf.mxu0 }
  0x95   :  { %v133_v21 = vadd.f32 %v2068_v19, %v85_v20  ;;  %154 = vrot.lane.b32.xlu1 %v85_v20, %s1898_s11  ;;  %v108_v24 = vadd.f32 %v85_v20, %v60_v23 }
  0x97   :  { %135 = vrot.lane.b32.xlu0 %v133_v21, %s1897_s9  ;;  %v1624_v25 = vmul.f32 -1.442695, %v108_v24  ;;  %v105_v40 = vpop.f32.mrf.mxu1 }
  0x98   :  { %v206_v42 = vadd.f32 %v2077_v41, %v105_v40 }
  0x99   :  { %1688 = vpow2.f32 %v1624_v25 }
  0x9f   :  { %v1689_v26 = vpop.eup %1688 }
  0xa0   :  { %v112_v27 = vadd.f32 1.0, %v1689_v26 }
  0xa2   :  { %1690 = vrcp.f32 %v112_v27  ;;  %v124_v33 = vand.u32 2147483648, %v112_v27  ;;  %vm118_vm1 = vweird.f32 %v112_v27  ;;  %v122_v34 = vand.u32 2147483647, %v112_v27 }
  0xa4   :  { %v125_v36 = vor.u32 1.1754944e-38, %v124_v33  ;;  %vm123_vm3 = vcmp.eq.f32.partialorder %v122_v34, 8.507059e+37 }
  0xa8   :  { %v1691_v28 = vpop.eup %1690 }
  0xa9   :  { %v114_v29 = vmul.f32 %v1691_v28, %v112_v27  ;;  %vm119_vm0 = vweird.f32 %v1691_v28 }
  0xaa   :  { %vm120_vm2 = vmor %vm118_vm1, %vm119_vm0 }
  0xab   :  { %v115_v30 = vsub.f32 1.0, %v114_v29 }
  0xad   :  { %v116_v31 = vmul.f32 %v1691_v28, %v115_v30 }
  0xaf   :  { %v117_v32 = vadd.f32 %v1691_v28, %v116_v31 }
  0xb1   :  { %v121_v35 = vsel %vm120_vm2, %v1691_v28, %v117_v32 }
  0xb2   :  { %v126_v38 = vsel %vm123_vm3, %v125_v36, %v121_v35 }
  0xb3   :  { %v145_v8 = vsub.f32 1.0, %v126_v38  ;;  %v151_v20 = vmul.f32 0.0, %v126_v38 }
 0x107   :  { %v155_v45 = vpop.permute.xlu1 %154 }
 0x108   :  { %v157_v46 = vadd.f32 %v155_v45, %v63_v44 }
 0x109   :  { %v136_v37 = vpop.permute.xlu0 %135 }
 0x10a   :  { %v138_v39 = vmul.f32 %v136_v37, %v126_v38  ;;  %v1625_v47 = vmul.f32 -1.442695, %v157_v46 }
 0x10c   :  { %140 = vrot.lane.b32.xlu2 %v138_v39, %s1897_s9  ;;  %1692 = vpow2.f32 %v1625_v47 }
 0x112   :  { %v1693_v48 = vpop.eup %1692 }
 0x113   :  { %v161_v49 = vadd.f32 1.0, %v1693_v48 }
 0x114   :  { %208 = vrot.lane.b32.xlu2 %v206_v42, %s1900_s13 }
 0x115   :  { %1694 = vrcp.f32 %v161_v49  ;;  %v173_v57 = vand.u32 2147483648, %v161_v49  ;;  %vm167_vm5 = vweird.f32 %v161_v49  ;;  %v171_v58 = vand.u32 2147483647, %v161_v49 }
 0x117   :  { %v174_v60 = vor.u32 1.1754944e-38, %v173_v57  ;;  %vm172_vm7 = vcmp.eq.f32.partialorder %v171_v58, 8.507059e+37 }
 0x11b   :  { %v1695_v50 = vpop.eup %1694 }
 0x11c   :  { %178 = vrot.lane.b32.xlu2 %v105_v40, %s1898_s11  ;;  %v163_v51 = vmul.f32 %v1695_v50, %v161_v49  ;;  %vm168_vm4 = vweird.f32 %v1695_v50 }
 0x11d   :  { %vm169_vm6 = vmor %vm167_vm5, %vm168_vm4 }
 0x11e   :  { %v164_v52 = vsub.f32 1.0, %v163_v51 }
 0x120   :  { %v165_v53 = vmul.f32 %v1695_v50, %v164_v52 }
 0x122   :  { %v166_v56 = vadd.f32 %v1695_v50, %v165_v53 }
 0x124   :  { %v170_v59 = vsel %vm169_vm6, %v1695_v50, %v166_v56 }
 0x125   :  { %v175_v61 = vsel %vm172_vm7, %v174_v60, %v170_v59 }
 0x166   :  { %v141_v54 = vpop.permute.xlu2 %140 }
 0x167   :  { %v143_v55 = vadd.f32 %v141_v54, %v60_v23  ;;  %v1627_v54 = vld [vmem:[%s2445_s0 + $0x1] sm:$0x1] }
 0x169   :  { %1696 = vtanh.f32 %v143_v55  ;;  %v253_v55 = vunpack.c.l.bf16 %v1627_v54 }
 0x16e   :  { %v209_v62 = vpop.permute.xlu2 %208 }
 0x16f   :  { %v1697_v63 = vpop.eup %1696  ;;  %v211_v3 = vmul.f32 %v209_v62, %v175_v61 }
 0x170   :  { %147 = vrot.lane.b32.xlu1 %v1697_v63, %s1900_s13 }
 0x171   :  { %213 = vrot.lane.b32.xlu0 %v211_v3, %s1897_s9 }
 0x176   :  { %v179_v27 = vpop.permute.xlu2 %178 }
 0x177   :  { %v181_v28 = vadd.f32 %v179_v27, %v63_v44 }
 0x179   :  { %v1626_v29 = vmul.f32 -1.442695, %v181_v28 }
 0x1e2   :  { %v148_v18 = vpop.permute.xlu1 %147 }
 0x1e3   :  { %v150_v21 = vmul.f32 %v148_v18, %v145_v8  ;;  %v214_v22 = vpop.permute.xlu0 %213 }
 0x1e4   :  { %v216_v23 = vadd.f32 %v214_v22, %v63_v44 }
 0x1e5   :  { %v2087_v24 = vadd.f32 %v151_v20, %v150_v21 }
 0x1e6   :  { %1698 = vtanh.f32 %v216_v23 }
 0x1e7   :  { %258 = vst [vmem:[#allocation1] ss:$4 sm:$0xff] %v2087_v24  ;;  %1700 = vpow2.f32 %v1626_v29 }
 0x1ec   :  { %v1699_v25 = vpop.eup %1698 }
 0x1ed   :  { %220 = vrot.lane.b32.xlu0 %v1699_v25, %s1900_s13  ;;  %v1701_v30 = vpop.eup %1700 }
 0x1ee   :  { %v259_v26 = vld.sshfl [vmem:[#allocation1] sm:$0xff pattern:$0x73625140]  ;;  %v185_v31 = vadd.f32 1.0, %v1701_v30 }
 0x1ef   :  { %260 = vrot.lane.b32.xlu1 %v259_v26, %s1900_s13  ;;  %v1628_v26 = vld [vmem:[%s2446_s1 + $0x6] sm:$0x1] }
 0x1f0   :  { %1702 = vrcp.f32 %v185_v31  ;;  %v197_v37 = vand.u32 2147483648, %v185_v31  ;;  %vm191_vm9 = vweird.f32 %v185_v31  ;;  %v195_v38 = vand.u32 2147483647, %v185_v31 }
 0x1f1   :  { %v256_v27 = vunpack.c.l.bf16 %v1628_v26 }
 0x1f2   :  { %v198_v40 = vor.u32 1.1754944e-38, %v197_v37  ;;  %vm196_vm11 = vcmp.eq.f32.partialorder %v195_v38, 8.507059e+37 }
 0x1f6   :  { %v1703_v32 = vpop.eup %1702 }
 0x1f7   :  { %v187_v33 = vmul.f32 %v1703_v32, %v185_v31  ;;  %vm192_vm8 = vweird.f32 %v1703_v32 }
 0x1f8   :  { %vm193_vm10 = vmor %vm191_vm9, %vm192_vm8 }
 0x1f9   :  { %v188_v34 = vsub.f32 1.0, %v187_v33 }
 0x1fb   :  { %v189_v35 = vmul.f32 %v1703_v32, %v188_v34 }
 0x1fd   :  { %v190_v36 = vadd.f32 %v1703_v32, %v189_v35 }
 0x1ff   :  { %v194_v39 = vsel %vm193_vm10, %v1703_v32, %v190_v36 }
 0x200   :  { %v199_v42 = vsel %vm196_vm11, %v198_v40, %v194_v39 }
 0x201   :  { %v218_v43 = vsub.f32 1.0, %v199_v42  ;;  %v224_v46 = vmul.f32 0.0, %v199_v42 }
 0x25f   :  { %v221_v44 = vpop.permute.xlu0 %220 }
 0x260   :  { %v223_v45 = vmul.f32 %v221_v44, %v218_v43 }
 0x261   :  { %v261_v48 = vpop.permute.xlu1 %260 }
 0x262   :  { %v2092_v47 = vadd.f32 %v224_v46, %v223_v45 }
 0x264   :  { %v264_v49 = vsel %vm263_vm12, %v261_v48, %v2092_v47 }
 0x265   :  { %1629 = vmatmul.msk.f32.vlgmr.msra.gmra.mxu2 %vm64_vm13, %v264_v49  ;;  %1630 = vmatmul.msk.f32.vlgmr.msra.gmra.mxu3 %vm64_vm13, %v264_v49 }
 0x266   :  { %1028 = vmatpush.msra.mxu2 %v1948_v0  ;;  %1048 = vmatpush.msra.mxu3 %v1960_v4 }
 0x268   :  { %1029 = vmatpush.msra.mxu2 %v1950_v1  ;;  %1049 = vmatpush.msra.mxu3 %v1962_v5 }
 0x26a   :  { %1030 = vmatpush.msra.mxu2 %v1954_v2  ;;  %1050 = vmatpush.msra.mxu3 %v1971_v7 }
 0x26c   :  { %1031 = vmatpush.msra.mxu2 %v1965_v6  ;;  %1051 = vmatpush.msra.mxu3 %v1981_v10 }
 0x26e   :  { %1032 = vmatpush.msra.mxu2 %v1976_v9  ;;  %1052 = vmatpush.msra.mxu3 %v1989_v12 }
 0x270   :  { %1033 = vmatpush.msra.mxu2 %v1984_v11  ;;  %1053 = vmatpush.msra.mxu3 %v1997_v14 }
 0x272   :  { %1034 = vmatpush.msra.mxu2 %v1992_v13  ;;  %1054 = vmatpush.msra.mxu3 %v2005_v16 }
 0x274   :  { %1035 = vmatpush.msra.mxu2 %v2000_v15  ;;  %1055 = vmatpush.msra.mxu3 %v2011_v17 }
 0x2e8   :  { %v285_v50 = vpop.f32.mrf.mxu2  ;;  %v305_v52 = vpop.f32.mrf.mxu3 }
 0x2e9   :  { %v328_v51 = vadd.f32 %v285_v50, %v2068_v19  ;;  %349 = vrot.lane.b32.xlu0 %v285_v50, %s1898_s11  ;;  %v396_v53 = vadd.f32 %v305_v52, %v2077_v41  ;;  %v308_v56 = vadd.f32 %v285_v50, %v253_v55 }
 0x2eb   :  { %330 = vrot.lane.b32.xlu2 %v328_v51, %s1897_s9  ;;  %v1631_v57 = vmul.f32 -1.442695, %v308_v56 }
 0x2ed   :  { %1704 = vpow2.f32 %v1631_v57 }
 0x2f3   :  { %398 = vrot.lane.b32.xlu2 %v396_v53, %s1900_s13  ;;  %v1705_v58 = vpop.eup %1704 }
 0x2f4   :  { %v312_v59 = vadd.f32 1.0, %v1705_v58 }
 0x2f6   :  { %1706 = vrcp.f32 %v312_v59  ;;  %v324_v8 = vand.u32 2147483648, %v312_v59  ;;  %vm318_vm15 = vweird.f32 %v312_v59  ;;  %v322_v18 = vand.u32 2147483647, %v312_v59 }
 0x2f8   :  { %v325_v21 = vor.u32 1.1754944e-38, %v324_v8  ;;  %vm323_vm1 = vcmp.eq.f32.partialorder %v322_v18, 8.507059e+37 }
 0x2fb   :  { %373 = vrot.lane.b32.xlu2 %v305_v52, %s1898_s11 }
 0x2fc   :  { %v1707_v60 = vpop.eup %1706 }
 0x2fd   :  { %v314_v61 = vmul.f32 %v1707_v60, %v312_v59  ;;  %vm319_vm14 = vweird.f32 %v1707_v60 }
 0x2fe   :  { %vm320_vm0 = vmor %vm318_vm15, %vm319_vm14 }
 0x2ff   :  { %v315_v62 = vsub.f32 1.0, %v314_v61 }
 0x301   :  { %v316_v63 = vmul.f32 %v1707_v60, %v315_v62 }
 0x303   :  { %v317_v3 = vadd.f32 %v1707_v60, %v316_v63 }
 0x305   :  { %v321_v20 = vsel %vm320_vm0, %v1707_v60, %v317_v3 }
 0x306   :  { %v326_v23 = vsel %vm323_vm1, %v325_v21, %v321_v20 }
 0x307   :  { %v340_v53 = vsub.f32 1.0, %v326_v23  ;;  %v346_v56 = vmul.f32 %v326_v23, %v2087_v24 }
 0x345   :  { %v331_v22 = vpop.permute.xlu2 %330 }
 0x346   :  { %v333_v25 = vmul.f32 %v331_v22, %v326_v23 }
 0x348   :  { %335 = vrot.lane.b32.xlu1 %v333_v25, %s1897_s9 }
 0x34d   :  { %v399_v43 = vpop.permute.xlu2 %398 }
 0x355   :  { %v374_v59 = vpop.permute.xlu2 %373 }
 0x356   :  { %v376_v60 = vadd.f32 %v374_v59, %v256_v27 }
 0x358   :  { %v1633_v61 = vmul.f32 -1.442695, %v376_v60  ;;  %v1635_v60 = vld [vmem:[%s2446_s1 + $0x5] sm:$0x1] }
 0x35b   :  { %v350_v28 = vpop.permute.xlu0 %349 }
 0x35c   :  { %v352_v29 = vadd.f32 %v350_v28, %v256_v27 }
 0x35e   :  { %v1632_v30 = vmul.f32 -1.442695, %v352_v29 }
 0x360   :  { %1708 = vpow2.f32 %v1632_v30 }
 0x366   :  { %v1709_v31 = vpop.eup %1708 }
 0x367   :  { %v356_v32 = vadd.f32 1.0, %v1709_v31 }
 0x369   :  { %1710 = vrcp.f32 %v356_v32  ;;  %v368_v36 = vand.u32 2147483648, %v356_v32  ;;  %v366_v38 = vand.u32 2147483647, %v356_v32  ;;  %vm362_vm3 = vweird.f32 %v356_v32 }
 0x36b   :  { %v369_v40 = vor.u32 1.1754944e-38, %v368_v36  ;;  %vm367_vm5 = vcmp.eq.f32.partialorder %v366_v38, 8.507059e+37 }
 0x36f   :  { %v1711_v33 = vpop.eup %1710 }
 0x370   :  { %v358_v34 = vmul.f32 %v1711_v33, %v356_v32  ;;  %vm363_vm2 = vweird.f32 %v1711_v33 }
 0x371   :  { %vm364_vm4 = vmor %vm362_vm3, %vm363_vm2 }
 0x372   :  { %v359_v35 = vsub.f32 1.0, %v358_v34 }
 0x374   :  { %v360_v37 = vmul.f32 %v1711_v33, %v359_v35 }
 0x376   :  { %v361_v39 = vadd.f32 %v1711_v33, %v360_v37 }
 0x378   :  { %v365_v42 = vsel %vm364_vm4, %v1711_v33, %v361_v39  ;;  %v1634_v39 = vld [vmem:[%s2445_s0 + $0x2] sm:$0x1] }
 0x379   :  { %v370_v44 = vsel %vm367_vm5, %v369_v40, %v365_v42  ;;  %v442_v40 = vunpack.c.l.bf16 %v1634_v39 }
 0x37a   :  { %v401_v45 = vmul.f32 %v399_v43, %v370_v44 }
 0x37c   :  { %403 = vrot.lane.b32.xlu0 %v401_v45, %s1897_s9 }
 0x3ba   :  { %v336_v46 = vpop.permute.xlu1 %335 }
 0x3bb   :  { %v338_v48 = vadd.f32 %v336_v46, %v253_v55 }
 0x3bd   :  { %1712 = vtanh.f32 %v338_v48 }
 0x3c3   :  { %v1713_v49 = vpop.eup %1712 }
 0x3c4   :  { %342 = vrot.lane.b32.xlu1 %v1713_v49, %s1900_s13 }
 0x3ee   :  { %v404_v50 = vpop.permute.xlu0 %403 }
 0x3ef   :  { %v406_v51 = vadd.f32 %v404_v50, %v256_v27 }
 0x3f1   :  { %1714 = vtanh.f32 %v406_v51 }
 0x3f2   :  { %1716 = vpow2.f32 %v1633_v61  ;;  %v445_v61 = vunpack.c.l.bf16 %v1635_v60 }
 0x3f7   :  { %v1715_v52 = vpop.eup %1714 }
 0x3f8   :  { %410 = vrot.lane.b32.xlu0 %v1715_v52, %s1900_s13  ;;  %v1717_v62 = vpop.eup %1716 }
 0x3f9   :  { %v380_v63 = vadd.f32 1.0, %v1717_v62 }
 0x3fb   :  { %1718 = vrcp.f32 %v380_v63  ;;  %v392_v22 = vand.u32 2147483648, %v380_v63  ;;  %vm386_vm7 = vweird.f32 %v380_v63  ;;  %v390_v23 = vand.u32 2147483647, %v380_v63 }
 0x3fd   :  { %v393_v26 = vor.u32 1.1754944e-38, %v392_v22  ;;  %vm391_vm9 = vcmp.eq.f32.partialorder %v390_v23, 8.507059e+37 }
 0x401   :  { %v1719_v3 = vpop.eup %1718 }
 0x402   :  { %v382_v8 = vmul.f32 %v1719_v3, %v380_v63  ;;  %vm387_vm6 = vweird.f32 %v1719_v3 }
 0x403   :  { %vm388_vm8 = vmor %vm386_vm7, %vm387_vm6 }
 0x404   :  { %v383_v18 = vsub.f32 1.0, %v382_v8 }
 0x406   :  { %v384_v20 = vmul.f32 %v1719_v3, %v383_v18 }
 0x408   :  { %v385_v21 = vadd.f32 %v1719_v3, %v384_v20 }
 0x40a   :  { %v389_v25 = vsel %vm388_vm8, %v1719_v3, %v385_v21 }
 0x40b   :  { %v394_v28 = vsel %vm391_vm9, %v393_v26, %v389_v25 }
 0x40c   :  { %v408_v29 = vsub.f32 1.0, %v394_v28  ;;  %v414_v31 = vmul.f32 %v394_v28, %v2092_v47 }
 0x436   :  { %v343_v54 = vpop.permute.xlu1 %342 }
 0x437   :  { %v345_v57 = vmul.f32 %v343_v54, %v340_v53 }
 0x439   :  { %v2131_v58 = vadd.f32 %v346_v56, %v345_v57 }
 0x43b   :  { %447 = vst [vmem:[#allocation1] ss:$4 sm:$0xff] %v2131_v58 }
 0x442   :  { %v448_v55 = vld.sshfl [vmem:[#allocation1] sm:$0xff pattern:$0x73625140] }
 0x443   :  { %449 = vrot.lane.b32.xlu1 %v448_v55, %s1900_s13 }
 0x46a   :  { %v411_v27 = vpop.permute.xlu0 %410 }
 0x46b   :  { %v413_v30 = vmul.f32 %v411_v27, %v408_v29 }
 0x46d   :  { %v2136_v32 = vadd.f32 %v414_v31, %v413_v30 }
 0x4b5   :  { %v450_v33 = vpop.permute.xlu1 %449 }
 0x4b6   :  { %v452_v34 = vsel %vm263_vm12, %v450_v33, %v2136_v32 }
 0x4b7   :  { %1636 = vmatmul.msk.f32.vlgmr.msrb.gmra.mxu0 %vm64_vm13, %v452_v34  ;;  %1637 = vmatmul.msk.f32.vlgmr.msrb.gmra.mxu1 %vm64_vm13, %v452_v34 }
 0x4b8   :  { %1216 = vmatpush.msrb.mxu0 %v1948_v0  ;;  %1236 = vmatpush.msrb.mxu1 %v1960_v4 }
 0x4ba   :  { %1217 = vmatpush.msrb.mxu0 %v1950_v1  ;;  %1237 = vmatpush.msrb.mxu1 %v1962_v5 }
 0x4bc   :  { %1218 = vmatpush.msrb.mxu0 %v1954_v2  ;;  %1238 = vmatpush.msrb.mxu1 %v1971_v7 }
 0x4be   :  { %1219 = vmatpush.msrb.mxu0 %v1965_v6  ;;  %1239 = vmatpush.msrb.mxu1 %v1981_v10 }
 0x4c0   :  { %1220 = vmatpush.msrb.mxu0 %v1976_v9  ;;  %1240 = vmatpush.msrb.mxu1 %v1989_v12 }
 0x4c2   :  { %1221 = vmatpush.msrb.mxu0 %v1984_v11  ;;  %1241 = vmatpush.msrb.mxu1 %v1997_v14 }
 0x4c4   :  { %1222 = vmatpush.msrb.mxu0 %v1992_v13  ;;  %1242 = vmatpush.msrb.mxu1 %v2005_v16 }
 0x4c6   :  { %1223 = vmatpush.msrb.mxu0 %v2000_v15  ;;  %1243 = vmatpush.msrb.mxu1 %v2011_v17 }
 0x534   :  { %v473_v35 = vpop.f32.mrf.mxu0  ;;  %v493_v37 = vpop.f32.mrf.mxu1 }
 0x535   :  { %v516_v36 = vadd.f32 %v473_v35, %v2068_v19  ;;  %537 = vrot.lane.b32.xlu0 %v473_v35, %s1898_s11  ;;  %v584_v38 = vadd.f32 %v493_v37, %v2077_v41  ;;  %v496_v42 = vadd.f32 %v473_v35, %v442_v40 }
 0x537   :  { %518 = vrot.lane.b32.xlu2 %v516_v36, %s1897_s9  ;;  %v1638_v43 = vmul.f32 -1.442695, %v496_v42 }
 0x539   :  { %1720 = vpow2.f32 %v1638_v43 }
 0x53f   :  { %586 = vrot.lane.b32.xlu2 %v584_v38, %s1900_s13  ;;  %v1721_v44 = vpop.eup %1720 }
 0x540   :  { %v500_v45 = vadd.f32 1.0, %v1721_v44 }
 0x542   :  { %1722 = vrcp.f32 %v500_v45  ;;  %v512_v52 = vand.u32 2147483648, %v500_v45  ;;  %vm506_vm11 = vweird.f32 %v500_v45  ;;  %v510_v53 = vand.u32 2147483647, %v500_v45 }
 0x544   :  { %v513_v56 = vor.u32 1.1754944e-38, %v512_v52  ;;  %vm511_vm15 = vcmp.eq.f32.partialorder %v510_v53, 8.507059e+37 }
 0x547   :  { %561 = vrot.lane.b32.xlu2 %v493_v37, %s1898_s11 }
 0x548   :  { %v1723_v46 = vpop.eup %1722 }
 0x549   :  { %v502_v48 = vmul.f32 %v1723_v46, %v500_v45  ;;  %vm507_vm10 = vweird.f32 %v1723_v46 }
 0x54a   :  { %vm508_vm14 = vmor %vm506_vm11, %vm507_vm10 }
 0x54b   :  { %v503_v49 = vsub.f32 1.0, %v502_v48 }
 0x54d   :  { %v504_v50 = vmul.f32 %v1723_v46, %v503_v49 }
 0x54f   :  { %v505_v51 = vadd.f32 %v1723_v46, %v504_v50 }
 0x551   :  { %v509_v54 = vsel %vm508_vm14, %v1723_v46, %v505_v51 }
 0x552   :  { %v514_v55 = vsel %vm511_vm15, %v513_v56, %v509_v54 }
 0x553   :  { %v528_v42 = vsub.f32 1.0, %v514_v55  ;;  %v534_v44 = vmul.f32 %v514_v55, %v2131_v58 }
 0x591   :  { %v519_v57 = vpop.permute.xlu2 %518 }
 0x592   :  { %v521_v59 = vmul.f32 %v519_v57, %v514_v55 }
 0x594   :  { %523 = vrot.lane.b32.xlu1 %v521_v59, %s1897_s9 }
 0x599   :  { %v587_v30 = vpop.permute.xlu2 %586 }
 0x5a1   :  { %v562_v48 = vpop.permute.xlu2 %561 }
 0x5a2   :  { %v564_v49 = vadd.f32 %v562_v48, %v445_v61 }
 0x5a4   :  { %v1640_v50 = vmul.f32 -1.442695, %v564_v49 }
 0x5a7   :  { %v538_v62 = vpop.permute.xlu0 %537 }
 0x5a8   :  { %v540_v63 = vadd.f32 %v538_v62, %v445_v61 }
 0x5aa   :  { %v1639_v3 = vmul.f32 -1.442695, %v540_v63 }
 0x5ac   :  { %1724 = vpow2.f32 %v1639_v3 }
 0x5b2   :  { %v1725_v8 = vpop.eup %1724 }
 0x5b3   :  { %v544_v18 = vadd.f32 1.0, %v1725_v8 }
 0x5b5   :  { %1726 = vrcp.f32 %v544_v18  ;;  %v556_v23 = vand.u32 2147483648, %v544_v18  ;;  %v554_v26 = vand.u32 2147483647, %v544_v18  ;;  %vm550_vm1 = vweird.f32 %v544_v18 }
 0x5b7   :  { %v557_v27 = vor.u32 1.1754944e-38, %v556_v23  ;;  %vm555_vm3 = vcmp.eq.f32.partialorder %v554_v26, 8.507059e+37 }
 0x5bb   :  { %v1727_v20 = vpop.eup %1726 }
 0x5bc   :  { %v546_v21 = vmul.f32 %v1727_v20, %v544_v18  ;;  %vm551_vm0 = vweird.f32 %v1727_v20 }
 0x5bd   :  { %vm552_vm2 = vmor %vm550_vm1, %vm551_vm0 }
 0x5be   :  { %v547_v22 = vsub.f32 1.0, %v546_v21 }
 0x5c0   :  { %v548_v25 = vmul.f32 %v1727_v20, %v547_v22 }
 0x5c2   :  { %v549_v28 = vadd.f32 %v1727_v20, %v548_v25 }
 0x5c4   :  { %v553_v29 = vsel %vm552_vm2, %v1727_v20, %v549_v28 }
 0x5c5   :  { %v558_v31 = vsel %vm555_vm3, %v557_v27, %v553_v29 }
 0x5c6   :  { %v589_v33 = vmul.f32 %v587_v30, %v558_v31  ;;  %v1642_v31 = vld [vmem:[%s2446_s1 + $0x4] sm:$0x1] }
 0x5c8   :  { %591 = vrot.lane.b32.xlu0 %v589_v33, %s1897_s9  ;;  %v633_v33 = vunpack.c.l.bf16 %v1642_v31 }
 0x606   :  { %v524_v34 = vpop.permute.xlu1 %523 }
 0x607   :  { %v526_v35 = vadd.f32 %v524_v34, %v442_v40 }
 0x609   :  { %1728 = vtanh.f32 %v526_v35 }
 0x60f   :  { %v1729_v36 = vpop.eup %1728 }
 0x610   :  { %530 = vrot.lane.b32.xlu1 %v1729_v36, %s1900_s13 }
 0x63a   :  { %v592_v37 = vpop.permute.xlu0 %591 }
 0x63b   :  { %v594_v38 = vadd.f32 %v592_v37, %v445_v61 }
 0x63d   :  { %1730 = vtanh.f32 %v594_v38 }
 0x63e   :  { %1732 = vpow2.f32 %v1640_v50 }
 0x643   :  { %v1731_v39 = vpop.eup %1730 }
 0x644   :  { %598 = vrot.lane.b32.xlu0 %v1731_v39, %s1900_s13  ;;  %v1733_v51 = vpop.eup %1732 }
 0x645   :  { %v568_v52 = vadd.f32 1.0, %v1733_v51 }
 0x647   :  { %1734 = vrcp.f32 %v568_v52  ;;  %v580_v59 = vand.u32 2147483648, %v568_v52  ;;  %vm574_vm5 = vweird.f32 %v568_v52  ;;  %v578_v60 = vand.u32 2147483647, %v568_v52 }
 0x649   :  { %v581_v63 = vor.u32 1.1754944e-38, %v580_v59  ;;  %vm579_vm7 = vcmp.eq.f32.partialorder %v578_v60, 8.507059e+37 }
 0x64d   :  { %v1735_v53 = vpop.eup %1734 }
 0x64e   :  { %v570_v54 = vmul.f32 %v1735_v53, %v568_v52  ;;  %vm575_vm4 = vweird.f32 %v1735_v53 }
 0x64f   :  { %vm576_vm6 = vmor %vm574_vm5, %vm575_vm4 }
 0x650   :  { %v571_v56 = vsub.f32 1.0, %v570_v54 }
 0x652   :  { %v572_v57 = vmul.f32 %v1735_v53, %v571_v56 }
 0x654   :  { %v573_v55 = vadd.f32 %v1735_v53, %v572_v57 }
 0x656   :  { %v577_v62 = vsel %vm576_vm6, %v1735_v53, %v573_v55 }
 0x657   :  { %v582_v3 = vsel %vm579_vm7, %v581_v63, %v577_v62 }
 0x658   :  { %v596_v8 = vsub.f32 1.0, %v582_v3  ;;  %v602_v20 = vmul.f32 %v582_v3, %v2136_v32 }
 0x682   :  { %v531_v43 = vpop.permute.xlu1 %530 }
 0x683   :  { %v533_v45 = vmul.f32 %v531_v43, %v528_v42 }
 0x685   :  { %v2175_v46 = vadd.f32 %v534_v44, %v533_v45 }
 0x687   :  { %635 = vst [vmem:[#allocation1] ss:$4 sm:$0xff] %v2175_v46 }
 0x68e   :  { %v636_v40 = vld.sshfl [vmem:[#allocation1] sm:$0xff pattern:$0x73625140] }
 0x68f   :  { %637 = vrot.lane.b32.xlu1 %v636_v40, %s1900_s13 }
 0x6b6   :  { %v599_v61 = vpop.permute.xlu0 %598 }
 0x6b7   :  { %v601_v18 = vmul.f32 %v599_v61, %v596_v8 }
 0x6b9   :  { %v2180_v21 = vadd.f32 %v602_v20, %v601_v18 }
 0x701   :  { %v638_v22 = vpop.permute.xlu1 %637 }
 0x702   :  { %v640_v23 = vsel %vm263_vm12, %v638_v22, %v2180_v21 }
 0x703   :  { %1643 = vmatmul.msk.f32.vlgmr.msrb.gmra.mxu2 %vm64_vm13, %v640_v23  ;;  %1644 = vmatmul.msk.f32.vlgmr.msrb.gmra.mxu3 %vm64_vm13, %v640_v23 }
 0x704   :  { %1403 = vmatpush.msrb.mxu2 %v1948_v0  ;;  %1423 = vmatpush.msrb.mxu3 %v1960_v4 }
 0x706   :  { %1404 = vmatpush.msrb.mxu2 %v1950_v1  ;;  %1424 = vmatpush.msrb.mxu3 %v1962_v5  ;;  %v1641_v5 = vld [vmem:[%s2445_s0 + $0x3] sm:$0x1] }
 0x708   :  { %1405 = vmatpush.msrb.mxu2 %v1954_v2  ;;  %1425 = vmatpush.msrb.mxu3 %v1971_v7 }
 0x70a   :  { %1406 = vmatpush.msrb.mxu2 %v1965_v6  ;;  %1426 = vmatpush.msrb.mxu3 %v1981_v10  ;;  %v630_v6 = vunpack.c.l.bf16 %v1641_v5 }
 0x70c   :  { %1407 = vmatpush.msrb.mxu2 %v1976_v9  ;;  %1427 = vmatpush.msrb.mxu3 %v1989_v12 }
 0x70e   :  { %1408 = vmatpush.msrb.mxu2 %v1984_v11  ;;  %1428 = vmatpush.msrb.mxu3 %v1997_v14 }
 0x710   :  { %1409 = vmatpush.msrb.mxu2 %v1992_v13  ;;  %1429 = vmatpush.msrb.mxu3 %v2005_v16 }
 0x712   :  { %1410 = vmatpush.msrb.mxu2 %v2000_v15  ;;  %1430 = vmatpush.msrb.mxu3 %v2011_v17 }
 0x786   :  { %v661_v0 = vpop.f32.mrf.mxu2  ;;  %v681_v2 = vpop.f32.mrf.mxu3 }
 0x787   :  { %v704_v1 = vadd.f32 %v661_v0, %v2068_v19  ;;  %725 = vrot.lane.b32.xlu0 %v661_v0, %s1898_s11  ;;  %v772_v4 = vadd.f32 %v681_v2, %v2077_v41  ;;  %v684_v7 = vadd.f32 %v661_v0, %v630_v6 }
 0x789   :  { %706 = vrot.lane.b32.xlu2 %v704_v1, %s1897_s9  ;;  %v1645_v9 = vmul.f32 -1.442695, %v684_v7 }
 0x78b   :  { %1736 = vpow2.f32 %v1645_v9 }
 0x791   :  { %774 = vrot.lane.b32.xlu2 %v772_v4, %s1900_s13  ;;  %v1737_v10 = vpop.eup %1736 }
 0x792   :  { %v688_v11 = vadd.f32 1.0, %v1737_v10 }
 0x794   :  { %1738 = vrcp.f32 %v688_v11  ;;  %v700_v17 = vand.u32 2147483648, %v688_v11  ;;  %vm694_vm9 = vweird.f32 %v688_v11  ;;  %v698_v25 = vand.u32 2147483647, %v688_v11 }
 0x796   :  { %v701_v28 = vor.u32 1.1754944e-38, %v700_v17  ;;  %vm699_vm11 = vcmp.eq.f32.partialorder %v698_v25, 8.507059e+37 }
 0x799   :  { %749 = vrot.lane.b32.xlu2 %v681_v2, %s1898_s11 }
 0x79a   :  { %v1739_v12 = vpop.eup %1738 }
 0x79b   :  { %v690_v13 = vmul.f32 %v1739_v12, %v688_v11  ;;  %vm695_vm8 = vweird.f32 %v1739_v12 }
 0x79c   :  { %vm696_vm10 = vmor %vm694_vm9, %vm695_vm8 }
 0x79d   :  { %v691_v14 = vsub.f32 1.0, %v690_v13 }
 0x79f   :  { %v692_v15 = vmul.f32 %v1739_v12, %v691_v14 }
 0x7a1   :  { %v693_v16 = vadd.f32 %v1739_v12, %v692_v15 }
 0x7a3   :  { %v697_v26 = vsel %vm696_vm10, %v1739_v12, %v693_v16 }
 0x7a4   :  { %v702_v29 = vsel %vm699_vm11, %v701_v28, %v697_v26 }
 0x7a5   :  { %v716_v62 = vsub.f32 1.0, %v702_v29  ;;  %v722_v3 = vmul.f32 %v702_v29, %v2175_v46 }
 0x7e3   :  { %v707_v27 = vpop.permute.xlu2 %706 }
 0x7e4   :  { %v709_v30 = vmul.f32 %v707_v27, %v702_v29 }
 0x7e6   :  { %711 = vrot.lane.b32.xlu1 %v709_v30, %s1897_s9 }
 0x7eb   :  { %v775_v51 = vpop.permute.xlu2 %774 }
 0x7f3   :  { %v750_v20 = vpop.permute.xlu2 %749 }
 0x7f4   :  { %v752_v22 = vadd.f32 %v750_v20, %v633_v33 }
 0x7f6   :  { %v1647_v23 = vmul.f32 -1.442695, %v752_v22 }
 0x7f9   :  { %v726_v34 = vpop.permute.xlu0 %725 }
 0x7fa   :  { %v728_v35 = vadd.f32 %v726_v34, %v633_v33 }
 0x7fc   :  { %v1646_v36 = vmul.f32 -1.442695, %v728_v35 }
 0x7fe   :  { %1740 = vpow2.f32 %v1646_v36 }
 0x804   :  { %v1741_v37 = vpop.eup %1740 }
 0x805   :  { %v732_v38 = vadd.f32 1.0, %v1741_v37 }
 0x807   :  { %1742 = vrcp.f32 %v732_v38  ;;  %v744_v44 = vand.u32 2147483648, %v732_v38  ;;  %v742_v40 = vand.u32 2147483647, %v732_v38  ;;  %vm738_vm15 = vweird.f32 %v732_v38 }
 0x809   :  { %v745_v49 = vor.u32 1.1754944e-38, %v744_v44  ;;  %vm743_vm1 = vcmp.eq.f32.partialorder %v742_v40, 8.507059e+37 }
 0x80d   :  { %v1743_v39 = vpop.eup %1742 }
 0x80e   :  { %v734_v42 = vmul.f32 %v1743_v39, %v732_v38  ;;  %vm739_vm14 = vweird.f32 %v1743_v39 }
 0x80f   :  { %vm740_vm0 = vmor %vm738_vm15, %vm739_vm14 }
 0x810   :  { %v735_v43 = vsub.f32 1.0, %v734_v42 }
 0x812   :  { %v736_v45 = vmul.f32 %v1743_v39, %v735_v43 }
 0x814   :  { %v737_v48 = vadd.f32 %v1743_v39, %v736_v45 }
 0x816   :  { %v741_v50 = vsel %vm740_vm0, %v1743_v39, %v737_v48 }
 0x817   :  { %v746_v52 = vsel %vm743_vm1, %v745_v49, %v741_v50 }
 0x818   :  { %v777_v53 = vmul.f32 %v775_v51, %v746_v52 }
 0x81a   :  { %779 = vrot.lane.b32.xlu0 %v777_v53, %s1897_s9 }
 0x858   :  { %v712_v54 = vpop.permute.xlu1 %711 }
 0x859   :  { %v714_v56 = vadd.f32 %v712_v54, %v630_v6  ;;  %v1649_v54 = vld [vmem:[%s2446_s1 + $0x3] sm:$0x1] }
 0x85b   :  { %1744 = vtanh.f32 %v714_v56  ;;  %v821_v56 = vunpack.c.l.bf16 %v1649_v54 }
 0x861   :  { %v1745_v57 = vpop.eup %1744 }
 0x862   :  { %718 = vrot.lane.b32.xlu1 %v1745_v57, %s1900_s13 }
 0x88c   :  { %v780_v55 = vpop.permute.xlu0 %779 }
 0x88d   :  { %v782_v59 = vadd.f32 %v780_v55, %v633_v33  ;;  %v1648_v33 = vld [vmem:[%s2445_s0 + $0x4] sm:$0x1] }
 0x88e   :  { %v818_v34 = vunpack.c.l.bf16 %v1648_v33 }
 0x88f   :  { %1746 = vtanh.f32 %v782_v59 }
 0x890   :  { %1748 = vpow2.f32 %v1647_v23 }
 0x895   :  { %v1747_v60 = vpop.eup %1746 }
 0x896   :  { %786 = vrot.lane.b32.xlu0 %v1747_v60, %s1900_s13  ;;  %v1749_v0 = vpop.eup %1748 }
 0x897   :  { %v756_v1 = vadd.f32 1.0, %v1749_v0 }
 0x899   :  { %1750 = vrcp.f32 %v756_v1  ;;  %v768_v9 = vand.u32 2147483648, %v756_v1  ;;  %vm762_vm3 = vweird.f32 %v756_v1  ;;  %v766_v10 = vand.u32 2147483647, %v756_v1 }
 0x89b   :  { %v769_v12 = vor.u32 1.1754944e-38, %v768_v9  ;;  %vm767_vm5 = vcmp.eq.f32.partialorder %v766_v10, 8.507059e+37 }
 0x89f   :  { %v1751_v2 = vpop.eup %1750 }
 0x8a0   :  { %v758_v4 = vmul.f32 %v1751_v2, %v756_v1  ;;  %vm763_vm2 = vweird.f32 %v1751_v2 }
 0x8a1   :  { %vm764_vm4 = vmor %vm762_vm3, %vm763_vm2 }
 0x8a2   :  { %v759_v5 = vsub.f32 1.0, %v758_v4 }
 0x8a4   :  { %v760_v6 = vmul.f32 %v1751_v2, %v759_v5 }
 0x8a6   :  { %v761_v7 = vadd.f32 %v1751_v2, %v760_v6 }
 0x8a8   :  { %v765_v11 = vsel %vm764_vm4, %v1751_v2, %v761_v7 }
 0x8a9   :  { %v770_v13 = vsel %vm767_vm5, %v769_v12, %v765_v11 }
 0x8aa   :  { %v784_v15 = vsub.f32 1.0, %v770_v13  ;;  %v790_v17 = vmul.f32 %v770_v13, %v2180_v21 }
 0x8d4   :  { %v719_v63 = vpop.permute.xlu1 %718 }
 0x8d5   :  { %v721_v61 = vmul.f32 %v719_v63, %v716_v62 }
 0x8d7   :  { %v2219_v8 = vadd.f32 %v722_v3, %v721_v61 }
 0x8d9   :  { %823 = vst [vmem:[#allocation1] ss:$4 sm:$0xff] %v2219_v8 }
 0x8e0   :  { %v824_v18 = vld.sshfl [vmem:[#allocation1] sm:$0xff pattern:$0x73625140] }
 0x8e1   :  { %825 = vrot.lane.b32.xlu1 %v824_v18, %s1900_s13 }
 0x908   :  { %v787_v14 = vpop.permute.xlu0 %786 }
 0x909   :  { %v789_v16 = vmul.f32 %v787_v14, %v784_v15 }
 0x90b   :  { %v2224_v25 = vadd.f32 %v790_v17, %v789_v16 }
 0x953   :  { %v826_v26 = vpop.permute.xlu1 %825 }
 0x954   :  { %v828_v28 = vsel %vm263_vm12, %v826_v26, %v2224_v25 }
 0x955   :  { %1650 = vmatmul.msk.f32.vlgmr.msra.gmra.mxu0 %vm64_vm13, %v828_v28  ;;  %1651 = vmatmul.msk.f32.vlgmr.msra.gmra.mxu1 %vm64_vm13, %v828_v28 }
 0x9d2   :  { %v849_v27 = vpop.f32.mrf.mxu0  ;;  %v869_v30 = vpop.f32.mrf.mxu1 }
 0x9d3   :  { %v892_v29 = vadd.f32 %v849_v27, %v2068_v19  ;;  %913 = vrot.lane.b32.xlu0 %v849_v27, %s1898_s11  ;;  %v960_v31 = vadd.f32 %v869_v30, %v2077_v41  ;;  %v872_v35 = vadd.f32 %v849_v27, %v818_v34 }
 0x9d5   :  { %894 = vrot.lane.b32.xlu2 %v892_v29, %s1897_s9  ;;  %v1652_v36 = vmul.f32 -1.442695, %v872_v35 }
 0x9d7   :  { %1752 = vpow2.f32 %v1652_v36 }
 0x9dd   :  { %962 = vrot.lane.b32.xlu2 %v960_v31, %s1900_s13  ;;  %v1753_v37 = vpop.eup %1752 }
 0x9de   :  { %v876_v38 = vadd.f32 1.0, %v1753_v37 }
 0x9e0   :  { %1754 = vrcp.f32 %v876_v38  ;;  %v888_v40 = vand.u32 2147483648, %v876_v38  ;;  %vm882_vm7 = vweird.f32 %v876_v38  ;;  %v886_v48 = vand.u32 2147483647, %v876_v38 }
 0x9e2   :  { %v889_v50 = vor.u32 1.1754944e-38, %v888_v40  ;;  %vm887_vm9 = vcmp.eq.f32.partialorder %v886_v48, 8.507059e+37 }
 0x9e5   :  { %937 = vrot.lane.b32.xlu2 %v869_v30, %s1898_s11 }
 0x9e6   :  { %v1755_v39 = vpop.eup %1754 }
 0x9e7   :  { %v878_v42 = vmul.f32 %v1755_v39, %v876_v38  ;;  %vm883_vm6 = vweird.f32 %v1755_v39 }
 0x9e8   :  { %vm884_vm8 = vmor %vm882_vm7, %vm883_vm6 }
 0x9e9   :  { %v879_v43 = vsub.f32 1.0, %v878_v42 }
 0x9eb   :  { %v880_v44 = vmul.f32 %v1755_v39, %v879_v43 }
 0x9ed   :  { %v881_v45 = vadd.f32 %v1755_v39, %v880_v44 }
 0x9ef   :  { %v885_v49 = vsel %vm884_vm8, %v1755_v39, %v881_v45 }
 0x9f0   :  { %v890_v52 = vsel %vm887_vm9, %v889_v50, %v885_v49 }
 0x9f1   :  { %v904_v13 = vsub.f32 1.0, %v890_v52  ;;  %v910_v15 = vmul.f32 %v890_v52, %v2219_v8 }
 0xa2f   :  { %v895_v51 = vpop.permute.xlu2 %894 }
 0xa30   :  { %v897_v53 = vmul.f32 %v895_v51, %v890_v52 }
 0xa32   :  { %899 = vrot.lane.b32.xlu1 %v897_v53, %s1897_s9 }
 0xa37   :  { %v963_v2 = vpop.permute.xlu2 %962 }
 0xa3f   :  { %v938_v28 = vpop.permute.xlu2 %937 }
 0xa40   :  { %v940_v27 = vadd.f32 %v938_v28, %v821_v56 }
 0xa42   :  { %v1654_v29 = vmul.f32 -1.442695, %v940_v27 }
 0xa45   :  { %v914_v57 = vpop.permute.xlu0 %913 }
 0xa46   :  { %v916_v55 = vadd.f32 %v914_v57, %v821_v56 }
 0xa48   :  { %v1653_v59 = vmul.f32 -1.442695, %v916_v55  ;;  %v1655_v55 = vld [vmem:[%s2445_s0 + $0x5] sm:$0x1] }
 0xa4a   :  { %1756 = vpow2.f32 %v1653_v59  ;;  %v1006_v59 = vunpack.c.l.bf16 %v1655_v55 }
 0xa50   :  { %v1757_v60 = vpop.eup %1756 }
 0xa51   :  { %v920_v62 = vadd.f32 1.0, %v1757_v60 }
 0xa53   :  { %1758 = vrcp.f32 %v920_v62  ;;  %v932_v18 = vand.u32 2147483648, %v920_v62  ;;  %v930_v22 = vand.u32 2147483647, %v920_v62  ;;  %vm926_vm11 = vweird.f32 %v920_v62 }
 0xa55   :  { %v933_v0 = vor.u32 1.1754944e-38, %v932_v18  ;;  %vm931_vm15 = vcmp.eq.f32.partialorder %v930_v22, 8.507059e+37 }
 0xa59   :  { %v1759_v63 = vpop.eup %1758 }
 0xa5a   :  { %v922_v3 = vmul.f32 %v1759_v63, %v920_v62  ;;  %vm927_vm10 = vweird.f32 %v1759_v63 }
 0xa5b   :  { %vm928_vm14 = vmor %vm926_vm11, %vm927_vm10 }
 0xa5c   :  { %v923_v61 = vsub.f32 1.0, %v922_v3 }
 0xa5e   :  { %v924_v20 = vmul.f32 %v1759_v63, %v923_v61 }
 0xa60   :  { %v925_v23 = vadd.f32 %v1759_v63, %v924_v20 }
 0xa62   :  { %v929_v1 = vsel %vm928_vm14, %v1759_v63, %v925_v23 }
 0xa63   :  { %v934_v4 = vsel %vm931_vm15, %v933_v0, %v929_v1 }
 0xa64   :  { %v965_v5 = vmul.f32 %v963_v2, %v934_v4 }
 0xa66   :  { %967 = vrot.lane.b32.xlu0 %v965_v5, %s1897_s9 }
 0xaa4   :  { %v900_v6 = vpop.permute.xlu1 %899 }
 0xaa5   :  { %v902_v7 = vadd.f32 %v900_v6, %v818_v34 }
 0xaa7   :  { %1760 = vtanh.f32 %v902_v7 }
 0xaad   :  { %v1761_v9 = vpop.eup %1760 }
 0xaae   :  { %906 = vrot.lane.b32.xlu1 %v1761_v9, %s1900_s13  ;;  %v1656_v9 = vld [vmem:[%s2446_s1 + $0x2] sm:$0x1] }
 0xad8   :  { %v968_v10 = vpop.permute.xlu0 %967 }
 0xad9   :  { %v970_v11 = vadd.f32 %v968_v10, %v821_v56  ;;  %v1009_v10 = vunpack.c.l.bf16 %v1656_v9 }
 0xadb   :  { %1762 = vtanh.f32 %v970_v11 }
 0xadc   :  { %1764 = vpow2.f32 %v1654_v29 }
 0xae1   :  { %v1763_v12 = vpop.eup %1762 }
 0xae2   :  { %974 = vrot.lane.b32.xlu0 %v1763_v12, %s1900_s13  ;;  %v1765_v30 = vpop.eup %1764 }
 0xae3   :  { %v944_v31 = vadd.f32 1.0, %v1765_v30 }
 0xae5   :  { %1766 = vrcp.f32 %v944_v31  ;;  %v956_v38 = vand.u32 2147483648, %v944_v31  ;;  %vm950_vm1 = vweird.f32 %v944_v31  ;;  %v954_v39 = vand.u32 2147483647, %v944_v31 }
 0xae7   :  { %v957_v43 = vor.u32 1.1754944e-38, %v956_v38  ;;  %vm955_vm3 = vcmp.eq.f32.partialorder %v954_v39, 8.507059e+37 }
 0xaeb   :  { %v1767_v33 = vpop.eup %1766 }
 0xaec   :  { %v946_v34 = vmul.f32 %v1767_v33, %v944_v31  ;;  %vm951_vm0 = vweird.f32 %v1767_v33 }
 0xaed   :  { %vm952_vm2 = vmor %vm950_vm1, %vm951_vm0 }
 0xaee   :  { %v947_v35 = vsub.f32 1.0, %v946_v34 }
 0xaf0   :  { %v948_v36 = vmul.f32 %v1767_v33, %v947_v35 }
 0xaf2   :  { %v949_v37 = vadd.f32 %v1767_v33, %v948_v36 }
 0xaf4   :  { %v953_v42 = vsel %vm952_vm2, %v1767_v33, %v949_v37 }
 0xaf5   :  { %v958_v44 = vsel %vm955_vm3, %v957_v43, %v953_v42 }
 0xaf6   :  { %v972_v40 = vsub.f32 1.0, %v958_v44  ;;  %v978_v49 = vmul.f32 %v958_v44, %v2224_v25 }
 0xb20   :  { %v907_v14 = vpop.permute.xlu1 %906 }
 0xb21   :  { %v909_v16 = vmul.f32 %v907_v14, %v904_v13 }
 0xb23   :  { %v2247_v17 = vadd.f32 %v910_v15, %v909_v16 }
 0xb25   :  { %1011 = vst [vmem:[#allocation1] ss:$4 sm:$0xff] %v2247_v17 }
 0xb2c   :  { %v1012_v26 = vld.sshfl [vmem:[#allocation1] sm:$0xff pattern:$0x73625140] }
 0xb2d   :  { %1013 = vrot.lane.b32.xlu1 %v1012_v26, %s1900_s13 }
 0xb54   :  { %v975_v45 = vpop.permute.xlu0 %974 }
 0xb55   :  { %v977_v48 = vmul.f32 %v975_v45, %v972_v40 }
 0xb57   :  { %v2252_v50 = vadd.f32 %v978_v49, %v977_v48 }
 0xb9f   :  { %v1014_v51 = vpop.permute.xlu1 %1013 }
 0xba0   :  { %v1016_v52 = vsel %vm263_vm12, %v1014_v51, %v2252_v50 }
 0xba1   :  { %1657 = vmatmul.msk.f32.vlgmr.msra.gmra.mxu2 %vm64_vm13, %v1016_v52  ;;  %1658 = vmatmul.msk.f32.vlgmr.msra.gmra.mxu3 %vm64_vm13, %v1016_v52 }
 0xc24   :  { %v1037_v53 = vpop.f32.mrf.mxu2  ;;  %v1057_v56 = vpop.f32.mrf.mxu3 }
 0xc25   :  { %v1080_v54 = vadd.f32 %v1037_v53, %v2068_v19  ;;  %1101 = vrot.lane.b32.xlu0 %v1037_v53, %s1898_s11  ;;  %v1148_v57 = vadd.f32 %v1057_v56, %v2077_v41  ;;  %v1060_v60 = vadd.f32 %v1037_v53, %v1006_v59 }
 0xc27   :  { %1082 = vrot.lane.b32.xlu2 %v1080_v54, %s1897_s9  ;;  %v1659_v62 = vmul.f32 -1.442695, %v1060_v60 }
 0xc29   :  { %1768 = vpow2.f32 %v1659_v62 }
 0xc2f   :  { %1150 = vrot.lane.b32.xlu2 %v1148_v57, %s1900_s13  ;;  %v1769_v63 = vpop.eup %1768 }
 0xc30   :  { %v1064_v3 = vadd.f32 1.0, %v1769_v63 }
 0xc32   :  { %1770 = vrcp.f32 %v1064_v3  ;;  %v1076_v0 = vand.u32 2147483648, %v1064_v3  ;;  %vm1070_vm5 = vweird.f32 %v1064_v3  ;;  %v1074_v1 = vand.u32 2147483647, %v1064_v3 }
 0xc34   :  { %v1077_v4 = vor.u32 1.1754944e-38, %v1076_v0  ;;  %vm1075_vm7 = vcmp.eq.f32.partialorder %v1074_v1, 8.507059e+37 }
 0xc37   :  { %1125 = vrot.lane.b32.xlu2 %v1057_v56, %s1898_s11 }
 0xc38   :  { %v1771_v61 = vpop.eup %1770 }
 0xc39   :  { %v1066_v18 = vmul.f32 %v1771_v61, %v1064_v3  ;;  %vm1071_vm4 = vweird.f32 %v1771_v61 }
 0xc3a   :  { %vm1072_vm6 = vmor %vm1070_vm5, %vm1071_vm4 }
 0xc3b   :  { %v1067_v20 = vsub.f32 1.0, %v1066_v18 }
 0xc3d   :  { %v1068_v22 = vmul.f32 %v1771_v61, %v1067_v20 }
 0xc3f   :  { %v1069_v23 = vadd.f32 %v1771_v61, %v1068_v22 }
 0xc41   :  { %v1073_v2 = vsel %vm1072_vm6, %v1771_v61, %v1069_v23 }
 0xc42   :  { %v1078_v6 = vsel %vm1075_vm7, %v1077_v4, %v1073_v2 }
 0xc43   :  { %v1092_v40 = vsub.f32 1.0, %v1078_v6  ;;  %v1098_v49 = vmul.f32 %v1078_v6, %v2247_v17 }
 0xc81   :  { %v1083_v5 = vpop.permute.xlu2 %1082 }
 0xc82   :  { %v1085_v7 = vmul.f32 %v1083_v5, %v1078_v6 }
 0xc84   :  { %1087 = vrot.lane.b32.xlu1 %v1085_v7, %s1897_s9 }
 0xc89   :  { %v1151_v35 = vpop.permute.xlu2 %1150 }
 0xc91   :  { %v1126_v54 = vpop.permute.xlu2 %1125 }
 0xc92   :  { %v1128_v56 = vadd.f32 %v1126_v54, %v1009_v10 }
 0xc94   :  { %v1661_v57 = vmul.f32 -1.442695, %v1128_v56 }
 0xc97   :  { %v1102_v11 = vpop.permute.xlu0 %1101 }
 0xc98   :  { %v1104_v12 = vadd.f32 %v1102_v11, %v1009_v10 }
 0xc9a   :  { %v1660_v13 = vmul.f32 -1.442695, %v1104_v12 }
 0xc9c   :  { %1772 = vpow2.f32 %v1660_v13 }
 0xca2   :  { %v1773_v14 = vpop.eup %1772 }
 0xca3   :  { %v1108_v15 = vadd.f32 1.0, %v1773_v14  ;;  %v1662_v14 = vld [vmem:[%s2445_s0 + $0x6] sm:$0x1] }
 0xca5   :  { %1774 = vrcp.f32 %v1108_v15  ;;  %v1120_v27 = vand.u32 2147483648, %v1108_v15  ;;  %v1118_v30 = vand.u32 2147483647, %v1108_v15  ;;  %vm1114_vm9 = vweird.f32 %v1108_v15 }
 0xca7   :  { %v1121_v33 = vor.u32 1.1754944e-38, %v1120_v27  ;;  %vm1119_vm11 = vcmp.eq.f32.partialorder %v1118_v30, 8.507059e+37 }
 0xcab   :  { %v1775_v16 = vpop.eup %1774 }
 0xcac   :  { %v1110_v26 = vmul.f32 %v1775_v16, %v1108_v15  ;;  %vm1115_vm8 = vweird.f32 %v1775_v16  ;;  %v1194_v15 = vunpack.c.l.bf16 %v1662_v14 }
 0xcad   :  { %vm1116_vm10 = vmor %vm1114_vm9, %vm1115_vm8 }
 0xcae   :  { %v1111_v28 = vsub.f32 1.0, %v1110_v26 }
 0xcb0   :  { %v1112_v29 = vmul.f32 %v1775_v16, %v1111_v28 }
 0xcb2   :  { %v1113_v31 = vadd.f32 %v1775_v16, %v1112_v29 }
 0xcb4   :  { %v1117_v34 = vsel %vm1116_vm10, %v1775_v16, %v1113_v31 }
 0xcb5   :  { %v1122_v36 = vsel %vm1119_vm11, %v1121_v33, %v1117_v34 }
 0xcb6   :  { %v1153_v37 = vmul.f32 %v1151_v35, %v1122_v36 }
 0xcb8   :  { %1155 = vrot.lane.b32.xlu0 %v1153_v37, %s1897_s9 }
 0xcf6   :  { %v1088_v38 = vpop.permute.xlu1 %1087 }
 0xcf7   :  { %v1090_v39 = vadd.f32 %v1088_v38, %v1006_v59 }
 0xcf9   :  { %1776 = vtanh.f32 %v1090_v39 }
 0xcff   :  { %v1777_v42 = vpop.eup %1776 }
 0xd00   :  { %1094 = vrot.lane.b32.xlu1 %v1777_v42, %s1900_s13 }
 0xd2a   :  { %v1156_v43 = vpop.permute.xlu0 %1155 }
 0xd2b   :  { %v1158_v44 = vadd.f32 %v1156_v43, %v1009_v10 }
 0xd2d   :  { %1778 = vtanh.f32 %v1158_v44  ;;  %v1663_v44 = vld [vmem:[%s2446_s1 + $0x1] sm:$0x1] }
 0xd2e   :  { %1780 = vpow2.f32 %v1661_v57 }
 0xd33   :  { %v1779_v45 = vpop.eup %1778 }
 0xd34   :  { %1162 = vrot.lane.b32.xlu0 %v1779_v45, %s1900_s13  ;;  %v1781_v55 = vpop.eup %1780  ;;  %v1197_v45 = vunpack.c.l.bf16 %v1663_v44 }
 0xd35   :  { %v1132_v59 = vadd.f32 1.0, %v1781_v55 }
 0xd37   :  { %1782 = vrcp.f32 %v1132_v59  ;;  %v1144_v18 = vand.u32 2147483648, %v1132_v59  ;;  %vm1138_vm15 = vweird.f32 %v1132_v59  ;;  %v1142_v20 = vand.u32 2147483647, %v1132_v59 }
 0xd39   :  { %v1145_v23 = vor.u32 1.1754944e-38, %v1144_v18  ;;  %vm1143_vm1 = vcmp.eq.f32.partialorder %v1142_v20, 8.507059e+37 }
 0xd3d   :  { %v1783_v60 = vpop.eup %1782 }
 0xd3e   :  { %v1134_v62 = vmul.f32 %v1783_v60, %v1132_v59  ;;  %vm1139_vm14 = vweird.f32 %v1783_v60 }
 0xd3f   :  { %vm1140_vm0 = vmor %vm1138_vm15, %vm1139_vm14 }
 0xd40   :  { %v1135_v63 = vsub.f32 1.0, %v1134_v62 }
 0xd42   :  { %v1136_v3 = vmul.f32 %v1783_v60, %v1135_v63 }
 0xd44   :  { %v1137_v61 = vadd.f32 %v1783_v60, %v1136_v3 }
 0xd46   :  { %v1141_v22 = vsel %vm1140_vm0, %v1783_v60, %v1137_v61 }
 0xd47   :  { %v1146_v0 = vsel %vm1143_vm1, %v1145_v23, %v1141_v22 }
 0xd48   :  { %v1160_v2 = vsub.f32 1.0, %v1146_v0  ;;  %v1166_v5 = vmul.f32 %v1146_v0, %v2252_v50 }
 0xd72   :  { %v1095_v48 = vpop.permute.xlu1 %1094 }
 0xd73   :  { %v1097_v51 = vmul.f32 %v1095_v48, %v1092_v40 }
 0xd75   :  { %v2275_v52 = vadd.f32 %v1098_v49, %v1097_v51 }
 0xd77   :  { %1199 = vst [vmem:[#allocation1] ss:$4 sm:$0xff] %v2275_v52 }
 0xd7e   :  { %v1200_v53 = vld.sshfl [vmem:[#allocation1] sm:$0xff pattern:$0x73625140] }
 0xd7f   :  { %1201 = vrot.lane.b32.xlu1 %v1200_v53, %s1900_s13 }
 0xda6   :  { %v1163_v1 = vpop.permute.xlu0 %1162 }
 0xda7   :  { %v1165_v4 = vmul.f32 %v1163_v1, %v1160_v2 }
 0xda9   :  { %v2280_v6 = vadd.f32 %v1166_v5, %v1165_v4 }
 0xdf1   :  { %v1202_v7 = vpop.permute.xlu1 %1201 }
 0xdf2   :  { %v1204_v9 = vsel %vm263_vm12, %v1202_v7, %v2280_v6 }
 0xdf3   :  { %1664 = vmatmul.msk.f32.vlgmr.msrb.gmra.mxu0 %vm64_vm13, %v1204_v9  ;;  %1665 = vmatmul.msk.f32.vlgmr.msrb.gmra.mxu1 %vm64_vm13, %v1204_v9 }
 0xe70   :  { %v1225_v10 = vpop.f32.mrf.mxu0  ;;  %v1245_v12 = vpop.f32.mrf.mxu1 }
 0xe71   :  { %v1268_v11 = vadd.f32 %v1225_v10, %v2068_v19  ;;  %1289 = vrot.lane.b32.xlu0 %v1225_v10, %s1898_s11  ;;  %v1336_v13 = vadd.f32 %v1245_v12, %v2077_v41  ;;  %v1248_v16 = vadd.f32 %v1225_v10, %v1194_v15 }
 0xe73   :  { %1270 = vrot.lane.b32.xlu2 %v1268_v11, %s1897_s9  ;;  %v1666_v26 = vmul.f32 -1.442695, %v1248_v16 }
 0xe75   :  { %1784 = vpow2.f32 %v1666_v26 }
 0xe7b   :  { %1338 = vrot.lane.b32.xlu2 %v1336_v13, %s1900_s13  ;;  %v1785_v28 = vpop.eup %1784 }
 0xe7c   :  { %v1252_v27 = vadd.f32 1.0, %v1785_v28 }
 0xe7e   :  { %1786 = vrcp.f32 %v1252_v27  ;;  %v1264_v35 = vand.u32 2147483648, %v1252_v27  ;;  %vm1258_vm3 = vweird.f32 %v1252_v27  ;;  %v1262_v36 = vand.u32 2147483647, %v1252_v27 }
 0xe80   :  { %v1265_v38 = vor.u32 1.1754944e-38, %v1264_v35  ;;  %vm1263_vm5 = vcmp.eq.f32.partialorder %v1262_v36, 8.507059e+37 }
 0xe83   :  { %1313 = vrot.lane.b32.xlu2 %v1245_v12, %s1898_s11 }
 0xe84   :  { %v1787_v29 = vpop.eup %1786 }
 0xe85   :  { %v1254_v30 = vmul.f32 %v1787_v29, %v1252_v27  ;;  %vm1259_vm2 = vweird.f32 %v1787_v29 }
 0xe86   :  { %vm1260_vm4 = vmor %vm1258_vm3, %vm1259_vm2 }
 0xe87   :  { %v1255_v31 = vsub.f32 1.0, %v1254_v30 }
 0xe89   :  { %v1256_v33 = vmul.f32 %v1787_v29, %v1255_v31 }
 0xe8b   :  { %v1257_v34 = vadd.f32 %v1787_v29, %v1256_v33 }
 0xe8d   :  { %v1261_v37 = vsel %vm1260_vm4, %v1787_v29, %v1257_v34 }
 0xe8e   :  { %v1266_v42 = vsel %vm1263_vm5, %v1265_v38, %v1261_v37 }
 0xe8f   :  { %v1280_v5 = vsub.f32 1.0, %v1266_v42  ;;  %v1286_v9 = vmul.f32 %v1266_v42, %v2275_v52 }
 0xecd   :  { %v1271_v39 = vpop.permute.xlu2 %1270 }
 0xece   :  { %v1273_v43 = vmul.f32 %v1271_v39, %v1266_v42 }
 0xed0   :  { %1275 = vrot.lane.b32.xlu1 %v1273_v43, %s1897_s9 }
 0xed5   :  { %v1339_v61 = vpop.permute.xlu2 %1338 }
 0xedd   :  { %v1314_v13 = vpop.permute.xlu2 %1313 }
 0xede   :  { %v1316_v14 = vadd.f32 %v1314_v13, %v1197_v45 }
 0xee3   :  { %v1290_v40 = vpop.permute.xlu0 %1289 }
 0xee4   :  { %v1292_v48 = vadd.f32 %v1290_v40, %v1197_v45 }
 0xee6   :  { %v1667_v49 = vmul.f32 -1.442695, %v1292_v48 }
 0xee8   :  { %1788 = vpow2.f32 %v1667_v49 }
 0xeee   :  { %v1789_v51 = vpop.eup %1788 }
 0xeef   :  { %v1296_v53 = vadd.f32 1.0, %v1789_v51 }
 0xef1   :  { %1790 = vrcp.f32 %v1296_v53  ;;  %v1308_v55 = vand.u32 2147483648, %v1296_v53  ;;  %v1306_v60 = vand.u32 2147483647, %v1296_v53  ;;  %vm1302_vm7 = vweird.f32 %v1296_v53 }
 0xef3   :  { %v1309_v63 = vor.u32 1.1754944e-38, %v1308_v55  ;;  %vm1307_vm9 = vcmp.eq.f32.partialorder %v1306_v60, 8.507059e+37 }
 0xef7   :  { %v1791_v54 = vpop.eup %1790 }
 0xef8   :  { %v1298_v56 = vmul.f32 %v1791_v54, %v1296_v53  ;;  %vm1303_vm6 = vweird.f32 %v1791_v54 }
 0xef9   :  { %vm1304_vm8 = vmor %vm1302_vm7, %vm1303_vm6  ;;  %vm237_vm7 = vcmask 253952  }
 0xefa   :  { %v1299_v57 = vsub.f32 1.0, %v1298_v56 }
 0xefc   :  { %v1300_v59 = vmul.f32 %v1791_v54, %v1299_v57 }
 0xefe   :  { %v1301_v62 = vadd.f32 %v1791_v54, %v1300_v59  ;;  %v792_v59 = vpack.c.bf16 %v2219_v8, %v2219_v8 }
 0xf00   :  { %v1305_v3 = vsel %vm1304_vm8, %v1791_v54, %v1301_v62  ;;  %v226_v54 = vpack.c.bf16 %v2087_v24, %v2087_v24  ;;  %v794_v24 = vrot.slane %v792_v59, 3  ;;  %v992_v62 = vpack.c.bf16 %v2252_v50, %v2252_v50 }
 0xf01   :  { %v1310_v18 = vsel %vm1307_vm9, %v1309_v63, %v1305_v3 }
 0xf02   :  { %v1341_v20 = vmul.f32 %v1339_v61, %v1310_v18  ;;  %v228_v56 = vrot.slane %v226_v54, 3  ;;  %v994_v63 = vrot.slane %v992_v62, 3  ;;  %v2343_v18 = vld [vmem:[%s2445_s0 + $0x7] sm:$0x1] }
 0xf03   :  { %v1382_v50 = vunpack.c.l.bf16 %v2343_v18 }
 0xf04   :  { %1343 = vrot.lane.b32.xlu0 %v1341_v20, %s1897_s9 }
 0xf42   :  { %v1276_v22 = vpop.permute.xlu1 %1275 }
 0xf43   :  { %v1278_v23 = vadd.f32 %v1276_v22, %v1194_v15  ;;  %v1668_v15 = vmul.f32 -1.442695, %v1316_v14 }
 0xf45   :  { %1792 = vtanh.f32 %v1278_v23 }
 0xf4b   :  { %v1793_v0 = vpop.eup %1792 }
 0xf4c   :  { %1282 = vrot.lane.b32.xlu1 %v1793_v0, %s1900_s13 }
 0xf76   :  { %v1344_v1 = vpop.permute.xlu0 %1343 }
 0xf77   :  { %v1346_v2 = vadd.f32 %v1344_v1, %v1197_v45  ;;  %v1383_v1 = vld [vmem:[%s2446_s1] sm:$0x1] }
 0xf79   :  { %1794 = vtanh.f32 %v1346_v2  ;;  %v2351_v2 = vunpack.c.l.bf16 %v1383_v1 }
 0xf7a   :  { %1796 = vpow2.f32 %v1668_v15 }
 0xf7f   :  { %v1795_v4 = vpop.eup %1794 }
 0xf80   :  { %1350 = vrot.lane.b32.xlu0 %v1795_v4, %s1900_s13  ;;  %v1797_v16 = vpop.eup %1796 }
 0xf81   :  { %v1320_v26 = vadd.f32 1.0, %v1797_v16 }
 0xf83   :  { %1798 = vrcp.f32 %v1320_v26  ;;  %v1332_v33 = vand.u32 2147483648, %v1320_v26  ;;  %vm1326_vm11 = vweird.f32 %v1320_v26  ;;  %v1330_v34 = vand.u32 2147483647, %v1320_v26 }
 0xf85   :  { %v1333_v36 = vor.u32 1.1754944e-38, %v1332_v33  ;;  %vm1331_vm15 = vcmp.eq.f32.partialorder %v1330_v34, 8.507059e+37 }
 0xf89   :  { %v1799_v28 = vpop.eup %1798 }
 0xf8a   :  { %v1322_v27 = vmul.f32 %v1799_v28, %v1320_v26  ;;  %vm1327_vm10 = vweird.f32 %v1799_v28 }
 0xf8b   :  { %vm1328_vm14 = vmor %vm1326_vm11, %vm1327_vm10 }
 0xf8c   :  { %v1323_v29 = vsub.f32 1.0, %v1322_v27 }
 0xf8e   :  { %v1324_v30 = vmul.f32 %v1799_v28, %v1323_v29 }
 0xf90   :  { %v1325_v31 = vadd.f32 %v1799_v28, %v1324_v30 }
 0xf92   :  { %v1329_v35 = vsel %vm1328_vm14, %v1799_v28, %v1325_v31  ;;  %vm1572_vm14 = vcmask 254976  }
 0xf93   :  { %v1334_v37 = vsel %vm1331_vm15, %v1333_v36, %v1329_v35 }
 0xf94   :  { %v1348_v39 = vsub.f32 1.0, %v1334_v37  ;;  %v1354_v43 = vmul.f32 %v1334_v37, %v2280_v6 }
 0xfbe   :  { %v1283_v7 = vpop.permute.xlu1 %1282 }
 0xfbf   :  { %v1285_v10 = vmul.f32 %v1283_v7, %v1280_v5 }
 0xfc1   :  { %v2303_v11 = vadd.f32 %v1286_v9, %v1285_v10 }
 0xfc3   :  { %1386 = vst [vmem:[#allocation1] ss:$4 sm:$0xff] %v2303_v11  ;;  %v1356_v3 = vpack.c.bf16 %v2303_v11, %v2303_v11 }
 0xfc5   :  { %v1358_v61 = vrot.slane %v1356_v3, 3 }
 0xfca   :  { %v1387_v12 = vld.sshfl [vmem:[#allocation1] sm:$0xff pattern:$0x73625140] }
 0xfcb   :  { %1388 = vrot.lane.b32.xlu1 %v1387_v12, %s1900_s13 }
 0xff2   :  { %v1351_v38 = vpop.permute.xlu0 %1350 }
 0xff3   :  { %v1353_v42 = vmul.f32 %v1351_v38, %v1348_v39 }
 0xff5   :  { %v2308_v44 = vadd.f32 %v1354_v43, %v1353_v42 }
 0xff7   :  { %v1368_v1 = vpack.c.bf16 %v2308_v44, %v2308_v44 }
0x103d   :  { %v1389_v45 = vpop.permute.xlu1 %1388 }
0x103e   :  { %v1391_v40 = vsel %vm263_vm12, %v1389_v45, %v2308_v44  ;;  %vm229_vm12 = vcmask 1040384  }
0x103f   :  { %1670 = vmatmul.msk.f32.vlgmr.msrb.gmra.mxu2 %vm64_vm13, %v1391_v40  ;;  %1671 = vmatmul.msk.f32.vlgmr.msrb.gmra.mxu3 %vm64_vm13, %v1391_v40  ;;  %v232_v57 = vsel %vm229_vm12, %v226_v54, %v228_v56  ;;  %v797_v60 = vsel %vm229_vm12, %v792_v59, %v794_v24  ;;  %v1361_v8 = vsel %vm229_vm12, %v1356_v3, %v1358_v61 }
0x1040   :  { %v239_v24 = vpack.c.bf16 %v2092_v47, %v2092_v47  ;;  %v804_v61 = vpack.c.bf16 %v2224_v25, %v2224_v25 }
0x1042   :  { %v806_v18 = vrot.slane %v804_v61, 3 }
0x10c2   :  { %v1412_v48 = vpop.f32.mrf.mxu2  ;;  %v1432_v49 = vpop.f32.mrf.mxu3 }
0x10c3   :  { %v1455_v51 = vadd.f32 %v1412_v48, %v2068_v19  ;;  %v1523_v53 = vadd.f32 %v1432_v49, %v2077_v41  ;;  %1476 = vrot.lane.b32.xlu2 %v1412_v48, %s1898_s11  ;;  %v428_v19 = vpack.c.bf16 %v2136_v32, %v2136_v32  ;;  %v997_v32 = vsel %vm229_vm12, %v992_v62, %v994_v63 }
0x10c4   :  { %v1435_v20 = vadd.f32 %v1412_v48, %v1382_v50  ;;  %v604_v63 = vpack.c.bf16 %v2175_v46, %v2175_v46  ;;  %v1168_v46 = vpack.c.bf16 %v2275_v52, %v2275_v52  ;;  %v1370_v52 = vrot.slane %v1368_v1, 3 }
0x10c5   :  { %1525 = vrot.lane.b32.xlu1 %v1523_v53, %s1900_s13  ;;  %1457 = vrot.lane.b32.xlu0 %v1455_v51, %s1897_s9  ;;  %v430_v41 = vrot.slane %v428_v19, 3 }
0x10c6   :  { %v1672_v22 = vmul.f32 -1.442695, %v1435_v20 }
0x10c7   :  { %v433_v55 = vsel %vm229_vm12, %v428_v19, %v430_v41 }
0x10c8   :  { %1800 = vpow2.f32 %v1672_v22  ;;  %v1170_v22 = vrot.slane %v1168_v46, 3 }
0x10ca   :  { %v1173_v25 = vsel %vm229_vm12, %v1168_v46, %v1170_v22 }
0x10cd   :  { %1500 = vrot.lane.b32.xlu1 %v1432_v49, %s1898_s11 }
0x10ce   :  { %v1801_v23 = vpop.eup %1800 }
0x10cf   :  { %v1439_v0 = vadd.f32 1.0, %v1801_v23  ;;  %v416_v23 = vpack.c.bf16 %v2131_v58, %v2131_v58  ;;  %v1373_v58 = vsel %vm229_vm12, %v1368_v1, %v1370_v52 }
0x10d1   :  { %1802 = vrcp.f32 %v1439_v0  ;;  %v1451_v28 = vand.u32 2147483648, %v1439_v0  ;;  %vm1445_vm0 = vweird.f32 %v1439_v0  ;;  %v1449_v29 = vand.u32 2147483647, %v1439_v0 }
0x10d3   :  { %v1452_v34 = vor.u32 1.1754944e-38, %v1451_v28  ;;  %vm1450_vm3 = vcmp.eq.f32.partialorder %v1449_v29, 8.507059e+37 }
0x10d5   :  { %234 = vrot.lane.b32.xlu1 %v232_v57, %s1900_s13 }
0x10d7   :  { %v1803_v9 = vpop.eup %1802 }
0x10d8   :  { %v1441_v10 = vmul.f32 %v1803_v9, %v1439_v0  ;;  %vm1446_vm13 = vweird.f32 %v1803_v9  ;;  %v418_v0 = vrot.slane %v416_v23, 3 }
0x10d9   :  { %vm1447_vm1 = vmor %vm1445_vm0, %vm1446_vm13 }
0x10da   :  { %v1442_v13 = vsub.f32 1.0, %v1441_v10  ;;  %v980_v10 = vpack.c.bf16 %v2247_v17, %v2247_v17 }
0x10dc   :  { %v1443_v15 = vmul.f32 %v1803_v9, %v1442_v13 }
0x10dd   :  { %435 = vrot.lane.b32.xlu1 %v433_v55, %s1900_s13 }
0x10de   :  { %v1444_v16 = vadd.f32 %v1803_v9, %v1443_v15 }
0x10e0   :  { %v1448_v31 = vsel %vm1447_vm1, %v1803_v9, %v1444_v16 }
0x10e1   :  { %v2354_v39 = vsel %vm1450_vm3, %v1452_v34, %v1448_v31 }
0x10e2   :  { %v1473_v28 = vmul.f32 %v2354_v39, %v2303_v11 }
0x10e5   :  { %799 = vrot.lane.b32.xlu1 %v797_v60, %s1900_s13  ;;  %v241_v60 = vrot.slane %v239_v24, 3 }
0x10e7   :  { %v244_v62 = vsel %vm229_vm12, %v239_v24, %v241_v60 }
0x10ed   :  { %999 = vrot.lane.b32.xlu1 %v997_v32, %s1900_s13  ;;  %v606_v32 = vrot.slane %v604_v63, 3 }
0x10ef   :  { %v609_v3 = vsel %vm229_vm12, %v604_v63, %v606_v32 }
0x10f5   :  { %1363 = vrot.lane.b32.xlu1 %v1361_v8, %s1900_s13 }
0x111d   :  { %v1477_v4 = vpop.permute.xlu2 %1476 }
0x111e   :  { %v1479_v5 = vadd.f32 %v1477_v4, %v2351_v2  ;;  %v421_v4 = vsel %vm229_vm12, %v416_v23, %v418_v0 }
0x1120   :  { %v1673_v7 = vmul.f32 -1.442695, %v1479_v5  ;;  %v616_v5 = vpack.c.bf16 %v2180_v21, %v2180_v21  ;;  %v1180_v21 = vpack.c.bf16 %v2280_v6, %v2280_v6 }
0x1122   :  { %1804 = vpow2.f32 %v1673_v7  ;;  %v618_v7 = vrot.slane %v616_v5, 3 }
0x1124   :  { %v621_v9 = vsel %vm229_vm12, %v616_v5, %v618_v7 }
0x1128   :  { %v1805_v12 = vpop.eup %1804 }
0x1129   :  { %v1483_v14 = vadd.f32 1.0, %v1805_v12  ;;  %v982_v12 = vrot.slane %v980_v10, 3 }
0x112b   :  { %1806 = vrcp.f32 %v1483_v14  ;;  %v1495_v33 = vand.u32 2147483648, %v1483_v14  ;;  %v1493_v36 = vand.u32 2147483647, %v1483_v14  ;;  %vm1489_vm4 = vweird.f32 %v1483_v14 }
0x112c   :  { %v985_v13 = vsel %vm229_vm12, %v980_v10, %v982_v12 }
0x112d   :  { %v1496_v45 = vor.u32 1.1754944e-38, %v1495_v33  ;;  %vm1494_vm6 = vcmp.eq.f32.partialorder %v1493_v36, 8.507059e+37 }
0x1131   :  { %v1807_v26 = vpop.eup %1806 }
0x1132   :  { %v1485_v27 = vmul.f32 %v1807_v26, %v1483_v14  ;;  %vm1490_vm2 = vweird.f32 %v1807_v26  ;;  %v1182_v14 = vrot.slane %v1180_v21, 3 }
0x1133   :  { %vm1491_vm5 = vmor %vm1489_vm4, %vm1490_vm2 }
0x1134   :  { %v1486_v30 = vsub.f32 1.0, %v1485_v27  ;;  %v1185_v15 = vsel %vm229_vm12, %v1180_v21, %v1182_v14 }
0x1136   :  { %v1487_v35 = vmul.f32 %v1807_v26, %v1486_v30 }
0x1137   :  { %v1526_v37 = vpop.permute.xlu1 %1525  ;;  %v1458_v38 = vpop.permute.xlu0 %1457 }
0x1138   :  { %v1488_v42 = vadd.f32 %v1807_v26, %v1487_v35  ;;  %v1460_v43 = vmul.f32 %v1458_v38, %v2354_v39 }
0x113a   :  { %v1492_v40 = vsel %vm1491_vm5, %v1807_v26, %v1488_v42  ;;  %1462 = vrot.lane.b32.xlu2 %v1460_v43, %s1897_s9  ;;  %v1467_v26 = vsub.f32 1.0, %v2354_v39 }
0x113b   :  { %v1497_v48 = vsel %vm1494_vm6, %v1496_v45, %v1492_v40 }
0x113c   :  { %v1528_v49 = vmul.f32 %v1526_v37, %v1497_v48 }
0x113e   :  { %1530 = vrot.lane.b32.xlu0 %v1528_v49, %s1897_s9  ;;  %s1901_s9 = smov [#allocation5]  }
0x113f   :  { %v1501_v51 = vpop.permute.xlu1 %1500  ;;  %s1586_s21 = sshll.u32 %s1901_s9, 4  ;;  %s1587_s21 = int_to_ptr.vmem [resolvable:$true] %s1586_s21 }
0x1140   :  { %v1503_v16 = vadd.f32 %v1501_v51, %v2351_v2 }
0x1142   :  { %v1674_v29 = vmul.f32 -1.442695, %v1503_v16 }
0x1147   :  { %v235_v53 = vpop.permute.xlu1 %234 }
0x1148   :  { %238 = vst.msk [vmem:[#allocation5] sm:$0x1] %vm237_vm7, %v235_v53 }
0x114f   :  { %v436_v54 = vpop.permute.xlu1 %435 }
0x1150   :  { %439 = vst.msk [vmem:[#allocation6 + $0x6] sm:$0x1] %vm237_vm7, %v436_v54 }
0x1157   :  { %v800_v56 = vpop.permute.xlu1 %799 }
0x1158   :  { %803 = vst.msk [vmem:[#allocation5 + $0x3] sm:$0x1] %vm237_vm7, %v800_v56 }
0x115f   :  { %v1000_v57 = vpop.permute.xlu1 %999 }
0x1160   :  { %1003 = vst.msk [vmem:[#allocation6 + $0x3] sm:$0x1] %vm237_vm7, %v1000_v57 }
0x1167   :  { %v1364_v19 = vpop.permute.xlu1 %1363 }
0x1168   :  { %1367 = vst.msk [vmem:[#allocation5 + $0x6] sm:$0x1] %vm237_vm7, %v1364_v19 }
0x1194   :  { %v1463_v41 = vpop.permute.xlu2 %1462 }
0x1195   :  { %v1465_v55 = vadd.f32 %v1463_v41, %v1382_v50  ;;  %v809_v50 = vsel %vm229_vm12, %v804_v61, %v806_v18 }
0x1197   :  { %1808 = vtanh.f32 %v1465_v55 }
0x119d   :  { %v1809_v59 = vpop.eup %1808 }
0x119e   :  { %1469 = vrot.lane.b32.xlu2 %v1809_v59, %s1900_s13 }
0x11a6   :  { %246 = vrot.lane.b32.xlu2 %v244_v62, %s1900_s13 }
0x11ae   :  { %611 = vrot.lane.b32.xlu2 %v609_v3, %s1900_s13 }
0x11b0   :  { %v1531_v8 = vpop.permute.xlu0 %1530 }
0x11b1   :  { %v1533_v47 = vadd.f32 %v1531_v8, %v2351_v2 }
0x11b3   :  { %1810 = vtanh.f32 %v1533_v47 }
0x11b4   :  { %1812 = vpow2.f32 %v1674_v29 }
0x11b6   :  { %811 = vrot.lane.b32.xlu2 %v809_v50, %s1900_s13 }
0x11b9   :  { %v1811_v20 = vpop.eup %1810 }
0x11ba   :  { %1537 = vrot.lane.b32.xlu0 %v1811_v20, %s1900_s13  ;;  %v1813_v35 = vpop.eup %1812 }
0x11bb   :  { %v1507_v36 = vadd.f32 1.0, %v1813_v35 }
0x11bd   :  { %1814 = vrcp.f32 %v1507_v36  ;;  %v1519_v49 = vand.u32 2147483648, %v1507_v36  ;;  %vm1513_vm9 = vweird.f32 %v1507_v36  ;;  %v1517_v51 = vand.u32 2147483647, %v1507_v36 }
0x11be   :  { %1175 = vrot.lane.b32.xlu2 %v1173_v25, %s1900_s13 }
0x11bf   :  { %v1520_v54 = vor.u32 1.1754944e-38, %v1519_v49  ;;  %vm1518_vm11 = vcmp.eq.f32.partialorder %v1517_v51, 8.507059e+37 }
0x11c2   :  { %423 = vrot.lane.b32.xlu0 %v421_v4, %s1900_s13 }
0x11c3   :  { %v1815_v38 = vpop.eup %1814 }
0x11c4   :  { %v1509_v39 = vmul.f32 %v1815_v38, %v1507_v36  ;;  %vm1514_vm8 = vweird.f32 %v1815_v38 }
0x11c5   :  { %vm1515_vm10 = vmor %vm1513_vm9, %vm1514_vm8 }
0x11c6   :  { %1375 = vrot.lane.b32.xlu2 %v1373_v58, %s1900_s13  ;;  %v1510_v43 = vsub.f32 1.0, %v1509_v39 }
0x11c8   :  { %v1511_v45 = vmul.f32 %v1815_v38, %v1510_v43 }
0x11ca   :  { %623 = vrot.lane.b32.xlu0 %v621_v9, %s1900_s13  ;;  %v1512_v48 = vadd.f32 %v1815_v38, %v1511_v45 }
0x11cc   :  { %v1516_v53 = vsel %vm1515_vm10, %v1815_v38, %v1512_v48 }
0x11cd   :  { %v1521_v56 = vsel %vm1518_vm11, %v1520_v54, %v1516_v53 }
0x11ce   :  { %v1535_v57 = vsub.f32 1.0, %v1521_v56  ;;  %v1541_v41 = vmul.f32 %v1521_v56, %v2308_v44 }
0x11d2   :  { %987 = vrot.lane.b32.xlu0 %v985_v13, %s1900_s13 }
0x11da   :  { %1187 = vrot.lane.b32.xlu0 %v1185_v15, %s1900_s13 }
0x11f8   :  { %v1470_v17 = vpop.permute.xlu2 %1469 }
0x11f9   :  { %v1472_v27 = vmul.f32 %v1470_v17, %v1467_v26 }
0x11fb   :  { %v1474_v30 = vadd.f32 %v1473_v28, %v1472_v27 }
0x11fd   :  { %v1543_v31 = vpack.c.bf16 %v1474_v30, %v1474_v30  ;;  %1567 = vst [vmem:[#allocation1] ss:$4 sm:$0xff] %v1474_v30 }
0x11ff   :  { %v1545_v6 = vrot.slane %v1543_v31, 3 }
0x1200   :  { %v247_v33 = vpop.permute.xlu2 %246 }
0x1201   :  { %250 = vst.msk [vmem:[#allocation6 + $0x7] sm:$0x1] %vm237_vm7, %v247_v33  ;;  %v1548_v34 = vsel %vm229_vm12, %v1543_v31, %v1545_v6 }
0x1202   :  { %1550 = vrot.lane.b32.xlu0 %v1548_v34, %s1900_s13 }
0x1204   :  { %v1568_v2 = vld.sshfl [vmem:[#allocation1] sm:$0xff pattern:$0x73625140] }
0x1205   :  { %1569 = vrot.lane.b32.xlu2 %v1568_v2, %s1900_s13 }
0x1208   :  { %v612_v11 = vpop.permute.xlu2 %611 }
0x1209   :  { %615 = vst.msk [vmem:[#allocation5 + $0x2] sm:$0x1] %vm237_vm7, %v612_v11 }
0x1210   :  { %v812_v37 = vpop.permute.xlu2 %811 }
0x1211   :  { %815 = vst.msk [vmem:[#allocation6 + $0x4] sm:$0x1] %vm237_vm7, %v812_v37 }
0x1218   :  { %v1176_v42 = vpop.permute.xlu2 %1175 }
0x1219   :  { %1179 = vst.msk [vmem:[#allocation5 + $0x5] sm:$0x1] %vm237_vm7, %v1176_v42 }
0x1220   :  { %v1376_v40 = vpop.permute.xlu2 %1375 }
0x1221   :  { %1379 = vst.msk [vmem:[#allocation6 + $0x1] sm:$0x1] %vm237_vm7, %v1376_v40 }
0x122c   :  { %v1538_v19 = vpop.permute.xlu0 %1537 }
0x122d   :  { %v1540_v55 = vmul.f32 %v1538_v19, %v1535_v57 }
0x122f   :  { %v1542_v59 = vadd.f32 %v1541_v41, %v1540_v55 }
0x1231   :  { %v1555_v24 = vpack.c.bf16 %v1542_v59, %v1542_v59  ;;  %1575 = vst [vmem:[#allocation1] ss:$4 sm:$0xff] %v1542_v59 }
0x1233   :  { %v1557_v60 = vrot.slane %v1555_v24, 3 }
0x1234   :  { %v424_v62 = vpop.permute.xlu0 %423 }
0x1235   :  { %427 = vst.msk [vmem:[#allocation5 + $0x1] sm:$0x1] %vm237_vm7, %v424_v62  ;;  %v1560_v63 = vsel %vm229_vm12, %v1555_v24, %v1557_v60 }
0x1236   :  { %1562 = vrot.lane.b32.xlu1 %v1560_v63, %s1900_s13 }
0x1238   :  { %v1576_v32 = vld.sshfl [vmem:[#allocation1] sm:$0xff pattern:$0x73625140] }
0x1239   :  { %1577 = vrot.lane.b32.xlu0 %v1576_v32, %s1900_s13 }
0x123c   :  { %v624_v3 = vpop.permute.xlu0 %623 }
0x123d   :  { %627 = vst.msk [vmem:[#allocation6 + $0x5] sm:$0x1] %vm237_vm7, %v624_v3 }
0x1244   :  { %v988_v61 = vpop.permute.xlu0 %987 }
0x1245   :  { %991 = vst.msk [vmem:[#allocation5 + $0x4] sm:$0x1] %vm237_vm7, %v988_v61 }
0x124c   :  { %v1188_v44 = vpop.permute.xlu0 %1187 }
0x124d   :  { %1191 = vst.msk [vmem:[#allocation6 + $0x2] sm:$0x1] %vm237_vm7, %v1188_v44 }
0x125f   :  { %v1570_v8 = vpop.permute.xlu2 %1569 }
0x1260   :  { %1573 = vst.msk [vmem:[%s2452_s7] sm:$0x3] %vm1572_vm14, %v1570_v8 }
0x1274   :  { %v1551_v47 = vpop.permute.xlu0 %1550 }
0x1275   :  { %1554 = vst.msk [vmem:[#allocation5 + $0x7] sm:$0x1] %vm237_vm7, %v1551_v47 }
0x1276   :  { %1594 = dma.vmem_to_hbm [thread:$0]  %s1587_s21, 128, %s1589_s23, [#allocation4], %s1896_s30, %s1896_s30, %s1902_s24  }
0x12a8   :  { %v1563_v18 = vpop.permute.xlu1 %1562 }
0x12a9   :  { %1565 = vst.msk [vmem:[#allocation6] sm:$0x1] %vm237_vm7, %v1563_v18 }
0x12aa   :  { %1607 = dma.vmem_to_hbm [thread:$0]  %s1600_s26, 128, %s1602_s29, [#allocation7], %s1896_s30, %s1896_s30, %s1902_s24  }
0x12ab   :  { %v1578_v50 = vpop.permute.xlu0 %1577 }
0x12ac   :  { %1675 = vst.msk [vmem:[%s2452_s7 + $0x2] sm:$0x3] %vm1572_vm14, %v1578_v50 }
0x12ad   :  { %1890 = dma.done.wait [#allocation4], 128  }
0x12ae   :  { %1891 = vsyncadd [#allocation4], 4294967168 }
0x12af   :  { %1892 = dma.done.wait [#allocation7], 128  }
0x12b0   :  { %1893 = vsyncadd [#allocation7], 4294967168 }
0x12b1   :  { %1620 = vsyncpa [#allocation3], 1 }
0x12b2   :  { %1621 = vsyncpa [#allocation4], 1 }
0x12b3   :  { %1622 = vsyncpa [#allocation7], 1 }

</bundles_post_ra>
